<compile_context>
chip_gen: v7x
topology: tpu7x:2x2x1
jax: 0.10.0
libtpu: 0.0.40
codegen_flags: <defaults>
</compile_context>

<pallas_src>
import numpy as np
import jax
import jax.numpy as jnp
from jax import lax
from jax.experimental import pallas as pl
from jax.experimental.pallas import tpu as pltpu


ENC_NF = [16, 32, 32]
DEC_NF = [32, 32, 32, 32, 16, 16]
IN_CHANNELS = 2


# ----------------------------------------------------------------------------
# Layer plan / parameters (PyTorch layout) — mirrors unet_core.__init__
# ----------------------------------------------------------------------------
def make_plan(img_size):
    nb = len(ENC_NF)
    dec_nf, final_convs = DEC_NF[:nb], DEC_NF[nb:]
    h, w = img_size
    plan = {"encoder": [], "decoder": [], "remaining": []}

    prev = IN_CHANNELS
    enc_out = []
    for nf in ENC_NF:
        plan["encoder"].append(((h, w), [prev], nf))
        enc_out.append(nf)
        prev = nf
        h, w = h // 2, w // 2

    skips = enc_out[::-1]           # popped in this order by the decoder
    pending = None
    for lvl, nf in enumerate(dec_nf):
        cins = [prev] if pending is None else [prev, pending]
        plan["decoder"].append(((h, w), cins, nf))
        prev = nf
        h, w = h * 2, w * 2
        pending = skips[lvl]
    for i, nf in enumerate(final_convs):
        cins = [prev, pending] if (i == 0 and pending is not None) else [prev]
        plan["remaining"].append(((h, w), cins, nf))
        prev = nf
    return plan


def build_params(key, plan):
    """PyTorch-layout params: per conv, w (3,3,Cin_total,Cout), b (Cout,)."""
    params = {}
    for stage in ("encoder", "decoder", "remaining"):
        layers = []
        for (_, cins, cout) in plan[stage]:
            cin = sum(cins)
            key, kw, kb = jax.random.split(key, 3)
            bound = 1.0 / (9.0 * cin) ** 0.5
            w = jax.random.uniform(kw, (3, 3, cin, cout), jnp.float32,
                                   -bound, bound)
            b = jax.random.uniform(kb, (cout,), jnp.float32, -bound, bound)
            layers.append((w, b))
        params[stage] = layers
    return params


# ----------------------------------------------------------------------------
# One-time host-side weight repacking (block-Toeplitz, layout-aware)
# ----------------------------------------------------------------------------
def _nat(w):
    return list(range(w))


def _eo(w):                                      # even pixels first, then odd
    return list(range(0, w, 2)) + list(range(1, w, 2))


def _up(w):                                      # nearest-upsample column dup
    return [j // 2 for j in range(2 * w)]


def _pack_wmat(w, w_in, in_order, out_map):
    """(3,3,Cin,Cout) conv weight -> (3, w_in*Cin, len(out_map)*Cout) bf16.

    Input storage block m holds spatial column in_order[m]; output storage
    block j computes the 'same'-padded conv at spatial column out_map[j]
    (horizontal zero-padding folded in by dropping out-of-range taps), so
        out_rows = sum_dy  padded_in_rows[dy : dy+M] @ Wmat[dy]
    """
    _, _, cin, cout = w.shape
    wn = np.asarray(w, np.float32)
    n_out = len(out_map)
    mat = np.zeros((3, w_in * cin, n_out * cout), np.float32)
    pos = {p: m for m, p in enumerate(in_order)}
    for j, p in enumerate(out_map):
        for dx in range(3):
            m = pos.get(p + dx - 1)
            if m is not None:
                mat[:, m * cin:(m + 1) * cin, j * cout:(j + 1) * cout] = wn[:, dx]
    return jnp.asarray(mat, dtype=jnp.bfloat16)


def _tile_bias(b, n_out):
    return jnp.tile(b, n_out).reshape(1, -1).astype(jnp.float32)


def prepare_params(params, plan):
    """Repack weights/biases into the megakernel layout (order matters)."""
    wmats, biases = [], []
    # encoder: natural input order, even|odd output order (pooled afterwards)
    for (w, b), ((_, wd), _, _) in zip(params["encoder"], plan["encoder"]):
        wmats.append(_pack_wmat(w, wd, _nat(wd), _eo(wd)))
        biases.append(_tile_bias(b, wd))
    # decoder: nearest-upsample folded into the output columns (2x width)
    for (w, b), ((_, wd), cins, _) in zip(params["decoder"], plan["decoder"]):
        off = 0
        for idx, ci in enumerate(cins):                 # [x, skip]
            order = _nat(wd) if idx == 0 else _eo(wd)
            wmats.append(_pack_wmat(w[:, :, off:off + ci, :], wd, order, _up(wd)))
            off += ci
        biases.append(_tile_bias(b, 2 * wd))
    # remaining: natural in/out
    for (w, b), ((_, wd), cins, _) in zip(params["remaining"], plan["remaining"]):
        off = 0
        for idx, ci in enumerate(cins):
            order = _nat(wd) if idx == 0 else _eo(wd)
            wmats.append(_pack_wmat(w[:, :, off:off + ci, :], wd, order, _nat(wd)))
            off += ci
        biases.append(_tile_bias(b, wd))
    return {"wmats": tuple(wmats), "biases": tuple(biases)}


# ----------------------------------------------------------------------------
# Constant 0/1 "data movement" operators (row select / duplicate / scatter),
# precomputed on the host and consumed by the kernel as MXU operands.
# ----------------------------------------------------------------------------
def _np_onehot(rows, cols, fn):
    m = np.zeros((rows, cols), np.float32)
    for r in range(rows):
        s = fn(r)
        if s is not None and 0 <= s < cols:
            m[r, s] = 1.0
    return jnp.asarray(m, jnp.bfloat16)


def build_aux(n_img, H):
    h0, h1, h2, h3 = H, H // 2, H // 4, H // 8
    mtot = lambda h: n_img * (h + 2) - 2

    def sel_pad(h_out, dup, src_blk, src_rows):
        # dest row (nn, p): interior p in [1, h_out] <- src row nn*src_blk+(p-1)//dup
        def fn(r):
            nn, p = divmod(r, h_out + 2)
            if 1 <= p <= h_out:
                return nn * src_blk + (p - 1) // dup
            return None
        return _np_onehot(n_img * (h_out + 2), src_rows, fn)

    def parity(h, par):
        hh = h // 2
        def fn(r):
            nn, j = divmod(r, hh)
            return nn * (h + 2) + 2 * j + par
        return _np_onehot(n_img * hh, mtot(h), fn)

    return [
        sel_pad(h0, 1, h0 + 2, mtot(h0)),      # same-res scatter @ h0 (S16, R1, R2)
        sel_pad(h1, 1, h1 + 2, mtot(h1)),      # @ h1 (S8)
        sel_pad(h2, 1, h2 + 2, mtot(h2)),      # @ h2 (S4)
        sel_pad(h2, 2, h3 + 2, mtot(h3)),      # upsample rows h3 -> h2 (U4)
        sel_pad(h1, 2, h2 + 2, mtot(h2)),      # h2 -> h1 (U8)
        sel_pad(h0, 2, h1 + 2, mtot(h1)),      # h1 -> h0 (U16)
        parity(h0, 0), parity(h0, 1), sel_pad(h1, 1, h1, n_img * h1),   # pool lvl0
        parity(h1, 0), parity(h1, 1), sel_pad(h2, 1, h2, n_img * h2),   # pool lvl1
        parity(h2, 0), parity(h2, 1), sel_pad(h3, 1, h3, n_img * h3),   # pool lvl2
    ]


# ----------------------------------------------------------------------------
# The megakernel: whole U-Net forward in one pallas_call
# ----------------------------------------------------------------------------
def make_unet_kernel(n_img, H, W):
    h0, h1, h2, h3 = H, H // 2, H // 4, H // 8
    c_e0, c_e1, c_e2 = ENC_NF
    c_d0, c_d1, c_d2 = DEC_NF[0], DEC_NF[1], DEC_NF[2]
    c_r0, c_r1, c_r2 = DEC_NF[3], DEC_NF[4], DEC_NF[5]

    def mtot(h):
        return n_img * (h + 2) - 2

    def kernel(*refs):
        x_ref = refs[0]
        (w_e0, w_e1, w_e2, w_d0, w_d1x, w_d1s, w_d2x, w_d2s,
         w_r0x, w_r0s, w_r1, w_r2) = refs[1:13]
        (b_e0, b_e1, b_e2, b_d0, b_d1, b_d2, b_r0, b_r1, b_r2) = refs[13:22]
        (sel_h0, sel_h1, sel_h2, up_h2, up_h1, up_h0,
         ev0, od0, ps0, ev1, od1, ps1, ev2, od2, ps2) = refs[22:37]
        o_ref = refs[37]
        (S16, A8, S8, A4, S4, A2, U4, U8, U16, R1, R2) = refs[38:49]

        f32, bf16 = jnp.float32, jnp.bfloat16

        def conv(ins, b_ref, m, cols):
            """3x3 same-conv + bias + LeakyReLU(0.2) over fused-concat inputs."""
            acc = jnp.zeros((m, cols), f32)
            for buf, wm in ins:                         # fused skip-concat
                for dy in range(3):                     # vertical taps
                    acc += jnp.dot(buf[dy:dy + m, :], wm[dy],
                                   preferred_element_type=f32)
            acc = acc + b_ref[...]
            return jnp.where(acc > 0, acc, 0.2 * acc)   # f32 (m, cols)

        def move(sel_ref, val_bf16):
            """Row select / duplicate / pad-scatter as an exact 0/1 matmul."""
            return jnp.dot(sel_ref[...], val_bf16,
                           preferred_element_type=f32).astype(bf16)

        def pool(ev_ref, od_ref, ps_ref, act):
            """Fused 2x2 max-pool of an encoder conv output (even|odd lanes)."""
            ab = act.astype(bf16)
            rm = jnp.maximum(
                jnp.dot(ev_ref[...], ab, preferred_element_type=f32),
                jnp.dot(od_ref[...], ab, preferred_element_type=f32))
            half = rm.shape[1] // 2
            pooled = jnp.maximum(rm[:, :half], rm[:, half:])
            return move(ps_ref, pooled.astype(bf16))

        m0, m1, m2, m3 = mtot(h0), mtot(h1), mtot(h2), mtot(h3)

        # ------------------------- encoder (pool fused) ----------------------
        a = conv([(x_ref, w_e0)], b_e0, m0, W * c_e0)
        S16[...] = move(sel_h0, a.astype(bf16))          # skip, even|odd lanes
        A8[...] = pool(ev0, od0, ps0, a)

        a = conv([(A8, w_e1)], b_e1, m1, (W // 2) * c_e1)
        S8[...] = move(sel_h1, a.astype(bf16))
        A4[...] = pool(ev1, od1, ps1, a)

        a = conv([(A4, w_e2)], b_e2, m2, (W // 4) * c_e2)
        S4[...] = move(sel_h2, a.astype(bf16))
        A2[...] = pool(ev2, od2, ps2, a)

        # ------------------------- decoder (upsample fused) ------------------
        a = conv([(A2, w_d0)], b_d0, m3, (W // 4) * c_d0)            # 2x2 level
        U4[...] = move(up_h2, a.astype(bf16))                         # row dup x2

        a = conv([(U4, w_d1x), (S4, w_d1s)], b_d1, m2, (W // 2) * c_d1)
        U8[...] = move(up_h1, a.astype(bf16))

        a = conv([(U8, w_d2x), (S8, w_d2s)], b_d2, m1, W * c_d2)
        U16[...] = move(up_h0, a.astype(bf16))

        # ------------------------- remaining ---------------------------------
        a = conv([(U16, w_r0x), (S16, w_r0s)], b_r0, m0, W * c_r0)
        R1[...] = move(sel_h0, a.astype(bf16))

        a = conv([(R1, w_r1)], b_r1, m0, W * c_r1)
        R2[...] = move(sel_h0, a.astype(bf16))

        a = conv([(R2, w_r2)], b_r2, m0, W * c_r2)
        o_ref[...] = a                                   # final output stays f32

    return kernel


def unet_forward(x_nchw, prepared):
    N, Cin, H, W = x_nchw.shape
    wmats, biases = prepared["wmats"], prepared["biases"]
    aux = build_aux(N, H)

    # Input prep: NCHW -> NHWC, vertical halo only, tall layout, bf16.
    x = jnp.transpose(x_nchw, (0, 2, 3, 1))
    x = jnp.pad(x, ((0, 0), (1, 1), (0, 0), (0, 0)))
    x_tall = x.reshape(N * (H + 2), W * Cin).astype(jnp.bfloat16)

    h0, h1, h2, h3 = H, H // 2, H // 4, H // 8
    c_e0, c_e1, c_e2 = ENC_NF
    c_d0, c_d1, c_d2, c_r0, c_r1, c_r2 = DEC_NF
    rows = lambda h: N * (h + 2)
    bf16 = jnp.bfloat16
    scratch = [
        pltpu.VMEM((rows(h0), W * c_e0), bf16),            # S16 (skip @16)
        pltpu.VMEM((rows(h1), (W // 2) * c_e0), bf16),     # A8  (pooled)
        pltpu.VMEM((rows(h1), (W // 2) * c_e1), bf16),     # S8  (skip @8)
        pltpu.VMEM((rows(h2), (W // 4) * c_e1), bf16),     # A4
        pltpu.VMEM((rows(h2), (W // 4) * c_e2), bf16),     # S4  (skip @4)
        pltpu.VMEM((rows(h3), (W // 8) * c_e2), bf16),     # A2
        pltpu.VMEM((rows(h2), (W // 4) * c_d0), bf16),     # U4  (upsampled)
        pltpu.VMEM((rows(h1), (W // 2) * c_d1), bf16),     # U8
        pltpu.VMEM((rows(h0), W * c_d2), bf16),            # U16
        pltpu.VMEM((rows(h0), W * c_r0), bf16),            # R1
        pltpu.VMEM((rows(h0), W * c_r1), bf16),            # R2
    ]

    def full_spec(arr):
        return pl.BlockSpec(arr.shape, lambda i, n=arr.ndim: (0,) * n)

    all_inputs = [x_tall] + list(wmats) + list(biases) + list(aux)
    mtot_out, out_cols = N * (H + 2) - 2, W * c_r2

    out_tall = pl.pallas_call(
        make_unet_kernel(N, H, W),
        out_shape=jax.ShapeDtypeStruct((mtot_out, out_cols), jnp.float32),
        grid=(1,),
        in_specs=[full_spec(a) for a in all_inputs],
        out_specs=pl.BlockSpec((mtot_out, out_cols), lambda i: (0, 0)),
        scratch_shapes=scratch,
        compiler_params=pltpu.CompilerParams(
            dimension_semantics=("arbitrary",),
            vmem_limit_bytes=32 * 1024 * 1024),
    )(*all_inputs)

    # Extract valid rows of the tall output (2 junk seam rows per image pair).
    out = jnp.stack([out_tall[n * (H + 2):n * (H + 2) + H] for n in range(N)])
    out = out.reshape(N, H, W, c_r2)
    return jnp.transpose(out, (0, 3, 1, 2))                # NHWC -> NCHW


# ----------------------------------------------------------------------------
# Plain-JAX reference (same bf16-operand / f32-accumulate dtype policy)
# ----------------------------------------------------------------------------
def maxpool2(x):
    N, H, W, C = x.shape
    return x.reshape(N, H // 2, 2, W // 2, 2, C).max(axis=(2, 4))


def upsample2_nearest(x):
    return jnp.repeat(jnp.repeat(x, 2, axis=1), 2, axis=2)


def _conv_ref(x, w, b):
    y = lax.conv_general_dilated(
        x.astype(jnp.bfloat16), w.astype(jnp.bfloat16),
        window_strides=(1, 1), padding="SAME",
        dimension_numbers=("NHWC", "HWIO", "NHWC"),
        preferred_element_type=jnp.float32)
    y = y + b
    return jnp.where(y > 0, y, 0.2 * y)


def unet_forward_ref(x_nchw, params):
    x = jnp.transpose(x_nchw, (0, 2, 3, 1))
    history = [x]
    for (w, b) in params["encoder"]:
        x = _conv_ref(x, w, b)
        history.append(x)
        x = maxpool2(x)
    for (w, b) in params["decoder"]:
        x = _conv_ref(x, w, b)
        x = upsample2_nearest(x)
        x = jnp.concatenate([x, history.pop()], axis=-1)
    for (w, b) in params["remaining"]:
        x = _conv_ref(x, w, b)
    return jnp.transpose(x, (0, 3, 1, 2))


# ----------------------------------------------------------------------------
if __name__ == "__main__":
    img_size = (16, 16)
    plan = make_plan(img_size)

    key = jax.random.PRNGKey(0)
    kp, kx = jax.random.split(key)
    params = build_params(kp, plan)
    prepared = prepare_params(params, plan)        # one-time weight repack

    # batch=2, in_channels=2, 16x16 -> x: (2, 2, 16, 16)
    x = jax.random.normal(kx, (2, IN_CHANNELS) + img_size, jnp.float32)

    fwd = jax.jit(unet_forward)
    fwd_ref = jax.jit(unet_forward_ref)

    out = jax.block_until_ready(fwd(x, prepared))
    ref = jax.block_until_ready(fwd_ref(x, params))

    assert out.shape == (2, 16, 16, 16), out.shape
    max_err = float(jnp.max(jnp.abs(out - ref)))
    assert jnp.allclose(out, ref, atol=1e-2, rtol=1e-2), max_err
    print("KERNEL_OK")
</pallas_src>

<mosaic_0001>
module attributes {stable_mosaic.version = 11 : i64} {
  func.func @kernel(%arg0: i32, %arg1: memref<36x32xbf16, #tpu.memory_space<vmem>>, %arg2: memref<3x32x256xbf16, #tpu.memory_space<vmem>>, %arg3: memref<3x128x256xbf16, #tpu.memory_space<vmem>>, %arg4: memref<3x128x128xbf16, #tpu.memory_space<vmem>>, %arg5: memref<3x64x128xbf16, #tpu.memory_space<vmem>>, %arg6: memref<3x128x256xbf16, #tpu.memory_space<vmem>>, %arg7: memref<3x128x256xbf16, #tpu.memory_space<vmem>>, %arg8: memref<3x256x512xbf16, #tpu.memory_space<vmem>>, %arg9: memref<3x256x512xbf16, #tpu.memory_space<vmem>>, %arg10: memref<3x512x512xbf16, #tpu.memory_space<vmem>>, %arg11: memref<3x256x512xbf16, #tpu.memory_space<vmem>>, %arg12: memref<3x512x256xbf16, #tpu.memory_space<vmem>>, %arg13: memref<3x256x256xbf16, #tpu.memory_space<vmem>>, %arg14: memref<1x256xf32, #tpu.memory_space<vmem>>, %arg15: memref<1x256xf32, #tpu.memory_space<vmem>>, %arg16: memref<1x128xf32, #tpu.memory_space<vmem>>, %arg17: memref<1x128xf32, #tpu.memory_space<vmem>>, %arg18: memref<1x256xf32, #tpu.memory_space<vmem>>, %arg19: memref<1x512xf32, #tpu.memory_space<vmem>>, %arg20: memref<1x512xf32, #tpu.memory_space<vmem>>, %arg21: memref<1x256xf32, #tpu.memory_space<vmem>>, %arg22: memref<1x256xf32, #tpu.memory_space<vmem>>, %arg23: memref<36x34xbf16, #tpu.memory_space<vmem>>, %arg24: memref<20x18xbf16, #tpu.memory_space<vmem>>, %arg25: memref<12x10xbf16, #tpu.memory_space<vmem>>, %arg26: memref<12x6xbf16, #tpu.memory_space<vmem>>, %arg27: memref<20x10xbf16, #tpu.memory_space<vmem>>, %arg28: memref<36x18xbf16, #tpu.memory_space<vmem>>, %arg29: memref<16x34xbf16, #tpu.memory_space<vmem>>, %arg30: memref<16x34xbf16, #tpu.memory_space<vmem>>, %arg31: memref<20x16xbf16, #tpu.memory_space<vmem>>, %arg32: memref<8x18xbf16, #tpu.memory_space<vmem>>, %arg33: memref<8x18xbf16, #tpu.memory_space<vmem>>, %arg34: memref<12x8xbf16, #tpu.memory_space<vmem>>, %arg35: memref<4x10xbf16, #tpu.memory_space<vmem>>, %arg36: memref<4x10xbf16, #tpu.memory_space<vmem>>, %arg37: memref<8x4xbf16, #tpu.memory_space<vmem>>, %arg38: memref<34x256xf32, #tpu.memory_space<vmem>>, %arg39: memref<36x256xbf16, #tpu.memory_space<vmem>>, %arg40: memref<20x128xbf16, #tpu.memory_space<vmem>>, %arg41: memref<20x256xbf16, #tpu.memory_space<vmem>>, %arg42: memref<12x128xbf16, #tpu.memory_space<vmem>>, %arg43: memref<12x128xbf16, #tpu.memory_space<vmem>>, %arg44: memref<8x64xbf16, #tpu.memory_space<vmem>>, %arg45: memref<12x128xbf16, #tpu.memory_space<vmem>>, %arg46: memref<20x256xbf16, #tpu.memory_space<vmem>>, %arg47: memref<36x512xbf16, #tpu.memory_space<vmem>>, %arg48: memref<36x512xbf16, #tpu.memory_space<vmem>>, %arg49: memref<36x256xbf16, #tpu.memory_space<vmem>>) attributes {dimension_semantics = [#tpu.dimension_semantics<arbitrary>], iteration_bounds = array<i64: 1>, scalar_prefetch = 0 : i64, scratch_operands = 11 : i64, tpu.core_type = #tpu.core_type<tc>, window_params = [{pipeline_mode = #tpu.pipeline_mode<synchronous>, transform_indices = @transform_0, window_bounds = array<i64: 36, 32>}, {pipeline_mode = #tpu.pipeline_mode<synchronous>, transform_indices = @transform_1, window_bounds = array<i64: 3, 32, 256>}, {pipeline_mode = #tpu.pipeline_mode<synchronous>, transform_indices = @transform_2, window_bounds = array<i64: 3, 128, 256>}, {pipeline_mode = #tpu.pipeline_mode<synchronous>, transform_indices = @transform_3, window_bounds = array<i64: 3, 128, 128>}, {pipeline_mode = #tpu.pipeline_mode<synchronous>, transform_indices = @transform_4, window_bounds = array<i64: 3, 64, 128>}, {pipeline_mode = #tpu.pipeline_mode<synchronous>, transform_indices = @transform_5, window_bounds = array<i64: 3, 128, 256>}, {pipeline_mode = #tpu.pipeline_mode<synchronous>, transform_indices = @transform_6, window_bounds = array<i64: 3, 128, 256>}, {pipeline_mode = #tpu.pipeline_mode<synchronous>, transform_indices = @transform_7, window_bounds = array<i64: 3, 256, 512>}, {pipeline_mode = #tpu.pipeline_mode<synchronous>, transform_indices = @transform_8, window_bounds = array<i64: 3, 256, 512>}, {pipeline_mode = #tpu.pipeline_mode<synchronous>, transform_indices = @transform_9, window_bounds = array<i64: 3, 512, 512>}, {pipeline_mode = #tpu.pipeline_mode<synchronous>, transform_indices = @transform_10, window_bounds = array<i64: 3, 256, 512>}, {pipeline_mode = #tpu.pipeline_mode<synchronous>, transform_indices = @transform_11, window_bounds = array<i64: 3, 512, 256>}, {pipeline_mode = #tpu.pipeline_mode<synchronous>, transform_indices = @transform_12, window_bounds = array<i64: 3, 256, 256>}, {pipeline_mode = #tpu.pipeline_mode<synchronous>, transform_indices = @transform_13, window_bounds = array<i64: 1, 256>}, {pipeline_mode = #tpu.pipeline_mode<synchronous>, transform_indices = @transform_14, window_bounds = array<i64: 1, 256>}, {pipeline_mode = #tpu.pipeline_mode<synchronous>, transform_indices = @transform_15, window_bounds = array<i64: 1, 128>}, {pipeline_mode = #tpu.pipeline_mode<synchronous>, transform_indices = @transform_16, window_bounds = array<i64: 1, 128>}, {pipeline_mode = #tpu.pipeline_mode<synchronous>, transform_indices = @transform_17, window_bounds = array<i64: 1, 256>}, {pipeline_mode = #tpu.pipeline_mode<synchronous>, transform_indices = @transform_18, window_bounds = array<i64: 1, 512>}, {pipeline_mode = #tpu.pipeline_mode<synchronous>, transform_indices = @transform_19, window_bounds = array<i64: 1, 512>}, {pipeline_mode = #tpu.pipeline_mode<synchronous>, transform_indices = @transform_20, window_bounds = array<i64: 1, 256>}, {pipeline_mode = #tpu.pipeline_mode<synchronous>, transform_indices = @transform_21, window_bounds = array<i64: 1, 256>}, {pipeline_mode = #tpu.pipeline_mode<synchronous>, transform_indices = @transform_22, window_bounds = array<i64: 36, 34>}, {pipeline_mode = #tpu.pipeline_mode<synchronous>, transform_indices = @transform_23, window_bounds = array<i64: 20, 18>}, {pipeline_mode = #tpu.pipeline_mode<synchronous>, transform_indices = @transform_24, window_bounds = array<i64: 12, 10>}, {pipeline_mode = #tpu.pipeline_mode<synchronous>, transform_indices = @transform_25, window_bounds = array<i64: 12, 6>}, {pipeline_mode = #tpu.pipeline_mode<synchronous>, transform_indices = @transform_26, window_bounds = array<i64: 20, 10>}, {pipeline_mode = #tpu.pipeline_mode<synchronous>, transform_indices = @transform_27, window_bounds = array<i64: 36, 18>}, {pipeline_mode = #tpu.pipeline_mode<synchronous>, transform_indices = @transform_28, window_bounds = array<i64: 16, 34>}, {pipeline_mode = #tpu.pipeline_mode<synchronous>, transform_indices = @transform_29, window_bounds = array<i64: 16, 34>}, {pipeline_mode = #tpu.pipeline_mode<synchronous>, transform_indices = @transform_30, window_bounds = array<i64: 20, 16>}, {pipeline_mode = #tpu.pipeline_mode<synchronous>, transform_indices = @transform_31, window_bounds = array<i64: 8, 18>}, {pipeline_mode = #tpu.pipeline_mode<synchronous>, transform_indices = @transform_32, window_bounds = array<i64: 8, 18>}, {pipeline_mode = #tpu.pipeline_mode<synchronous>, transform_indices = @transform_33, window_bounds = array<i64: 12, 8>}, {pipeline_mode = #tpu.pipeline_mode<synchronous>, transform_indices = @transform_34, window_bounds = array<i64: 4, 10>}, {pipeline_mode = #tpu.pipeline_mode<synchronous>, transform_indices = @transform_35, window_bounds = array<i64: 4, 10>}, {pipeline_mode = #tpu.pipeline_mode<synchronous>, transform_indices = @transform_36, window_bounds = array<i64: 8, 4>}, {pipeline_mode = #tpu.pipeline_mode<synchronous>, transform_indices = @transform_37, window_bounds = array<i64: 34, 256>}]} {
    %cst = arith.constant 0.000000e+00 : f32
    %0 = vector.broadcast %cst : f32 to vector<34x256xf32>
    %c0 = arith.constant 0 : index
    %c0_0 = arith.constant 0 : index
    %1 = vector.load %arg1[%c0, %c0_0] : memref<36x32xbf16, #tpu.memory_space<vmem>>, vector<34x32xbf16>
    %c0_1 = arith.constant 0 : index
    %c0_2 = arith.constant 0 : index
    %c0_3 = arith.constant 0 : index
    %2 = vector.load %arg2[%c0_1, %c0_2, %c0_3] : memref<3x32x256xbf16, #tpu.memory_space<vmem>>, vector<1x32x256xbf16>
    %3 = vector.shape_cast %2 : vector<1x32x256xbf16> to vector<32x256xbf16>
    %cst_4 = arith.constant dense<0.000000e+00> : vector<34x256xf32>
    %4 = tpu.matmul %1, %3, %cst_4 {dimension_numbers = #tpu.dot_dimension_numbers<[1], [0], [0], [1], [0, 0, 1, 1], [], []>} : vector<34x32xbf16>, vector<32x256xbf16>, vector<34x256xf32> -> vector<34x256xf32>
    %5 = arith.addf %0, %4 : vector<34x256xf32>
    %c1 = arith.constant 1 : index
    %c0_5 = arith.constant 0 : index
    %6 = vector.load %arg1[%c1, %c0_5] : memref<36x32xbf16, #tpu.memory_space<vmem>>, vector<34x32xbf16>
    %c1_6 = arith.constant 1 : index
    %c0_7 = arith.constant 0 : index
    %c0_8 = arith.constant 0 : index
    %7 = vector.load %arg2[%c1_6, %c0_7, %c0_8] : memref<3x32x256xbf16, #tpu.memory_space<vmem>>, vector<1x32x256xbf16>
    %8 = vector.shape_cast %7 : vector<1x32x256xbf16> to vector<32x256xbf16>
    %cst_9 = arith.constant dense<0.000000e+00> : vector<34x256xf32>
    %9 = tpu.matmul %6, %8, %cst_9 {dimension_numbers = #tpu.dot_dimension_numbers<[1], [0], [0], [1], [0, 0, 1, 1], [], []>} : vector<34x32xbf16>, vector<32x256xbf16>, vector<34x256xf32> -> vector<34x256xf32>
    %10 = arith.addf %5, %9 : vector<34x256xf32>
    %c2 = arith.constant 2 : index
    %c0_10 = arith.constant 0 : index
    %11 = vector.load %arg1[%c2, %c0_10] : memref<36x32xbf16, #tpu.memory_space<vmem>>, vector<34x32xbf16>
    %c2_11 = arith.constant 2 : index
    %c0_12 = arith.constant 0 : index
    %c0_13 = arith.constant 0 : index
    %12 = vector.load %arg2[%c2_11, %c0_12, %c0_13] : memref<3x32x256xbf16, #tpu.memory_space<vmem>>, vector<1x32x256xbf16>
    %13 = vector.shape_cast %12 : vector<1x32x256xbf16> to vector<32x256xbf16>
    %cst_14 = arith.constant dense<0.000000e+00> : vector<34x256xf32>
    %14 = tpu.matmul %11, %13, %cst_14 {dimension_numbers = #tpu.dot_dimension_numbers<[1], [0], [0], [1], [0, 0, 1, 1], [], []>} : vector<34x32xbf16>, vector<32x256xbf16>, vector<34x256xf32> -> vector<34x256xf32>
    %15 = arith.addf %10, %14 : vector<34x256xf32>
    %c0_15 = arith.constant 0 : index
    %c0_16 = arith.constant 0 : index
    %16 = vector.load %arg14[%c0_15, %c0_16] : memref<1x256xf32, #tpu.memory_space<vmem>>, vector<1x256xf32>
    %17 = vector.broadcast %16 : vector<1x256xf32> to vector<34x256xf32>
    %18 = arith.addf %15, %17 : vector<34x256xf32>
    %cst_17 = arith.constant 0.000000e+00 : f32
    %19 = vector.broadcast %cst_17 : f32 to vector<34x256xf32>
    %20 = arith.cmpf ogt, %18, %19 : vector<34x256xf32>
    %cst_18 = arith.constant 2.000000e-01 : f32
    %21 = vector.broadcast %cst_18 : f32 to vector<34x256xf32>
    %22 = arith.mulf %21, %18 : vector<34x256xf32>
    %23 = arith.select %20, %18, %22 : vector<34x256xi1>, vector<34x256xf32>
    %24 = arith.truncf %23 : vector<34x256xf32> to vector<34x256xbf16>
    %c0_19 = arith.constant 0 : index
    %c0_20 = arith.constant 0 : index
    %25 = vector.load %arg23[%c0_19, %c0_20] : memref<36x34xbf16, #tpu.memory_space<vmem>>, vector<36x34xbf16>
    %cst_21 = arith.constant dense<0.000000e+00> : vector<36x256xf32>
    %26 = tpu.matmul %25, %24, %cst_21 {dimension_numbers = #tpu.dot_dimension_numbers<[1], [0], [0], [1], [0, 0, 1, 1], [], []>} : vector<36x34xbf16>, vector<34x256xbf16>, vector<36x256xf32> -> vector<36x256xf32>
    %27 = arith.truncf %26 : vector<36x256xf32> to vector<36x256xbf16>
    %c0_22 = arith.constant 0 : index
    %c0_23 = arith.constant 0 : index
    %28 = vector.load %arg39[%c0_22, %c0_23] : memref<36x256xbf16, #tpu.memory_space<vmem>>, vector<36x256xbf16>
    tpu.vector_store %arg39[%c0_22, %c0_23], %27 {strides = array<i32>} : memref<36x256xbf16, #tpu.memory_space<vmem>>, vector<36x256xbf16>,
    %29 = arith.truncf %23 : vector<34x256xf32> to vector<34x256xbf16>
    %c0_24 = arith.constant 0 : index
    %c0_25 = arith.constant 0 : index
    %30 = vector.load %arg29[%c0_24, %c0_25] : memref<16x34xbf16, #tpu.memory_space<vmem>>, vector<16x34xbf16>
    %cst_26 = arith.constant dense<0.000000e+00> : vector<16x256xf32>
    %31 = tpu.matmul %30, %29, %cst_26 {dimension_numbers = #tpu.dot_dimension_numbers<[1], [0], [0], [1], [0, 0, 1, 1], [], []>} : vector<16x34xbf16>, vector<34x256xbf16>, vector<16x256xf32> -> vector<16x256xf32>
    %c0_27 = arith.constant 0 : index
    %c0_28 = arith.constant 0 : index
    %32 = vector.load %arg30[%c0_27, %c0_28] : memref<16x34xbf16, #tpu.memory_space<vmem>>, vector<16x34xbf16>
    %cst_29 = arith.constant dense<0.000000e+00> : vector<16x256xf32>
    %33 = tpu.matmul %32, %29, %cst_29 {dimension_numbers = #tpu.dot_dimension_numbers<[1], [0], [0], [1], [0, 0, 1, 1], [], []>} : vector<16x34xbf16>, vector<34x256xbf16>, vector<16x256xf32> -> vector<16x256xf32>
    %34 = arith.maximumf %31, %33 : vector<16x256xf32>
    %35 = vector.extract_strided_slice %34 {offsets = [0, 0], sizes = [16, 128], strides = [1, 1]} : vector<16x256xf32> to vector<16x128xf32>
    %36 = vector.extract_strided_slice %34 {offsets = [0, 128], sizes = [16, 128], strides = [1, 1]} : vector<16x256xf32> to vector<16x128xf32>
    %37 = arith.maximumf %35, %36 : vector<16x128xf32>
    %38 = arith.truncf %37 : vector<16x128xf32> to vector<16x128xbf16>
    %c0_30 = arith.constant 0 : index
    %c0_31 = arith.constant 0 : index
    %39 = vector.load %arg31[%c0_30, %c0_31] : memref<20x16xbf16, #tpu.memory_space<vmem>>, vector<20x16xbf16>
    %cst_32 = arith.constant dense<0.000000e+00> : vector<20x128xf32>
    %40 = tpu.matmul %39, %38, %cst_32 {dimension_numbers = #tpu.dot_dimension_numbers<[1], [0], [0], [1], [0, 0, 1, 1], [], []>} : vector<20x16xbf16>, vector<16x128xbf16>, vector<20x128xf32> -> vector<20x128xf32>
    %41 = arith.truncf %40 : vector<20x128xf32> to vector<20x128xbf16>
    %c0_33 = arith.constant 0 : index
    %c0_34 = arith.constant 0 : index
    %42 = vector.load %arg40[%c0_33, %c0_34] : memref<20x128xbf16, #tpu.memory_space<vmem>>, vector<20x128xbf16>
    tpu.vector_store %arg40[%c0_33, %c0_34], %41 {strides = array<i32>} : memref<20x128xbf16, #tpu.memory_space<vmem>>, vector<20x128xbf16>,
    %cst_35 = arith.constant 0.000000e+00 : f32
    %43 = vector.broadcast %cst_35 : f32 to vector<18x256xf32>
    %c0_36 = arith.constant 0 : index
    %c0_37 = arith.constant 0 : index
    %44 = vector.load %arg40[%c0_36, %c0_37] : memref<20x128xbf16, #tpu.memory_space<vmem>>, vector<18x128xbf16>
    %c0_38 = arith.constant 0 : index
    %c0_39 = arith.constant 0 : index
    %c0_40 = arith.constant 0 : index
    %45 = vector.load %arg3[%c0_38, %c0_39, %c0_40] : memref<3x128x256xbf16, #tpu.memory_space<vmem>>, vector<1x128x256xbf16>
    %46 = vector.shape_cast %45 : vector<1x128x256xbf16> to vector<128x256xbf16>
    %cst_41 = arith.constant dense<0.000000e+00> : vector<18x256xf32>
    %47 = tpu.matmul %44, %46, %cst_41 {dimension_numbers = #tpu.dot_dimension_numbers<[1], [0], [0], [1], [0, 0, 1, 1], [], []>} : vector<18x128xbf16>, vector<128x256xbf16>, vector<18x256xf32> -> vector<18x256xf32>
    %48 = arith.addf %43, %47 : vector<18x256xf32>
    %c1_42 = arith.constant 1 : index
    %c0_43 = arith.constant 0 : index
    %49 = vector.load %arg40[%c1_42, %c0_43] : memref<20x128xbf16, #tpu.memory_space<vmem>>, vector<18x128xbf16>
    %c1_44 = arith.constant 1 : index
    %c0_45 = arith.constant 0 : index
    %c0_46 = arith.constant 0 : index
    %50 = vector.load %arg3[%c1_44, %c0_45, %c0_46] : memref<3x128x256xbf16, #tpu.memory_space<vmem>>, vector<1x128x256xbf16>
    %51 = vector.shape_cast %50 : vector<1x128x256xbf16> to vector<128x256xbf16>
    %cst_47 = arith.constant dense<0.000000e+00> : vector<18x256xf32>
    %52 = tpu.matmul %49, %51, %cst_47 {dimension_numbers = #tpu.dot_dimension_numbers<[1], [0], [0], [1], [0, 0, 1, 1], [], []>} : vector<18x128xbf16>, vector<128x256xbf16>, vector<18x256xf32> -> vector<18x256xf32>
    %53 = arith.addf %48, %52 : vector<18x256xf32>
    %c2_48 = arith.constant 2 : index
    %c0_49 = arith.constant 0 : index
    %54 = vector.load %arg40[%c2_48, %c0_49] : memref<20x128xbf16, #tpu.memory_space<vmem>>, vector<18x128xbf16>
    %c2_50 = arith.constant 2 : index
    %c0_51 = arith.constant 0 : index
    %c0_52 = arith.constant 0 : index
    %55 = vector.load %arg3[%c2_50, %c0_51, %c0_52] : memref<3x128x256xbf16, #tpu.memory_space<vmem>>, vector<1x128x256xbf16>
    %56 = vector.shape_cast %55 : vector<1x128x256xbf16> to vector<128x256xbf16>
    %cst_53 = arith.constant dense<0.000000e+00> : vector<18x256xf32>
    %57 = tpu.matmul %54, %56, %cst_53 {dimension_numbers = #tpu.dot_dimension_numbers<[1], [0], [0], [1], [0, 0, 1, 1], [], []>} : vector<18x128xbf16>, vector<128x256xbf16>, vector<18x256xf32> -> vector<18x256xf32>
    %58 = arith.addf %53, %57 : vector<18x256xf32>
    %c0_54 = arith.constant 0 : index
    %c0_55 = arith.constant 0 : index
    %59 = vector.load %arg15[%c0_54, %c0_55] : memref<1x256xf32, #tpu.memory_space<vmem>>, vector<1x256xf32>
    %60 = vector.broadcast %59 : vector<1x256xf32> to vector<18x256xf32>
    %61 = arith.addf %58, %60 : vector<18x256xf32>
    %cst_56 = arith.constant 0.000000e+00 : f32
    %62 = vector.broadcast %cst_56 : f32 to vector<18x256xf32>
    %63 = arith.cmpf ogt, %61, %62 : vector<18x256xf32>
    %cst_57 = arith.constant 2.000000e-01 : f32
    %64 = vector.broadcast %cst_57 : f32 to vector<18x256xf32>
    %65 = arith.mulf %64, %61 : vector<18x256xf32>
    %66 = arith.select %63, %61, %65 : vector<18x256xi1>, vector<18x256xf32>
    %67 = arith.truncf %66 : vector<18x256xf32> to vector<18x256xbf16>
    %c0_58 = arith.constant 0 : index
    %c0_59 = arith.constant 0 : index
    %68 = vector.load %arg24[%c0_58, %c0_59] : memref<20x18xbf16, #tpu.memory_space<vmem>>, vector<20x18xbf16>
    %cst_60 = arith.constant dense<0.000000e+00> : vector<20x256xf32>
    %69 = tpu.matmul %68, %67, %cst_60 {dimension_numbers = #tpu.dot_dimension_numbers<[1], [0], [0], [1], [0, 0, 1, 1], [], []>} : vector<20x18xbf16>, vector<18x256xbf16>, vector<20x256xf32> -> vector<20x256xf32>
    %70 = arith.truncf %69 : vector<20x256xf32> to vector<20x256xbf16>
    %c0_61 = arith.constant 0 : index
    %c0_62 = arith.constant 0 : index
    %71 = vector.load %arg41[%c0_61, %c0_62] : memref<20x256xbf16, #tpu.memory_space<vmem>>, vector<20x256xbf16>
    tpu.vector_store %arg41[%c0_61, %c0_62], %70 {strides = array<i32>} : memref<20x256xbf16, #tpu.memory_space<vmem>>, vector<20x256xbf16>,
    %72 = arith.truncf %66 : vector<18x256xf32> to vector<18x256xbf16>
    %c0_63 = arith.constant 0 : index
    %c0_64 = arith.constant 0 : index
    %73 = vector.load %arg32[%c0_63, %c0_64] : memref<8x18xbf16, #tpu.memory_space<vmem>>, vector<8x18xbf16>
    %cst_65 = arith.constant dense<0.000000e+00> : vector<8x256xf32>
    %74 = tpu.matmul %73, %72, %cst_65 {dimension_numbers = #tpu.dot_dimension_numbers<[1], [0], [0], [1], [0, 0, 1, 1], [], []>} : vector<8x18xbf16>, vector<18x256xbf16>, vector<8x256xf32> -> vector<8x256xf32>
    %c0_66 = arith.constant 0 : index
    %c0_67 = arith.constant 0 : index
    %75 = vector.load %arg33[%c0_66, %c0_67] : memref<8x18xbf16, #tpu.memory_space<vmem>>, vector<8x18xbf16>
    %cst_68 = arith.constant dense<0.000000e+00> : vector<8x256xf32>
    %76 = tpu.matmul %75, %72, %cst_68 {dimension_numbers = #tpu.dot_dimension_numbers<[1], [0], [0], [1], [0, 0, 1, 1], [], []>} : vector<8x18xbf16>, vector<18x256xbf16>, vector<8x256xf32> -> vector<8x256xf32>
    %77 = arith.maximumf %74, %76 : vector<8x256xf32>
    %78 = vector.extract_strided_slice %77 {offsets = [0, 0], sizes = [8, 128], strides = [1, 1]} : vector<8x256xf32> to vector<8x128xf32>
    %79 = vector.extract_strided_slice %77 {offsets = [0, 128], sizes = [8, 128], strides = [1, 1]} : vector<8x256xf32> to vector<8x128xf32>
    %80 = arith.maximumf %78, %79 : vector<8x128xf32>
    %81 = arith.truncf %80 : vector<8x128xf32> to vector<8x128xbf16>
    %c0_69 = arith.constant 0 : index
    %c0_70 = arith.constant 0 : index
    %82 = vector.load %arg34[%c0_69, %c0_70] : memref<12x8xbf16, #tpu.memory_space<vmem>>, vector<12x8xbf16>
    %cst_71 = arith.constant dense<0.000000e+00> : vector<12x128xf32>
    %83 = tpu.matmul %82, %81, %cst_71 {dimension_numbers = #tpu.dot_dimension_numbers<[1], [0], [0], [1], [0, 0, 1, 1], [], []>} : vector<12x8xbf16>, vector<8x128xbf16>, vector<12x128xf32> -> vector<12x128xf32>
    %84 = arith.truncf %83 : vector<12x128xf32> to vector<12x128xbf16>
    %c0_72 = arith.constant 0 : index
    %c0_73 = arith.constant 0 : index
    %85 = vector.load %arg42[%c0_72, %c0_73] : memref<12x128xbf16, #tpu.memory_space<vmem>>, vector<12x128xbf16>
    tpu.vector_store %arg42[%c0_72, %c0_73], %84 {strides = array<i32>} : memref<12x128xbf16, #tpu.memory_space<vmem>>, vector<12x128xbf16>,
    %cst_74 = arith.constant 0.000000e+00 : f32
    %86 = vector.broadcast %cst_74 : f32 to vector<10x128xf32>
    %c0_75 = arith.constant 0 : index
    %c0_76 = arith.constant 0 : index
    %87 = vector.load %arg42[%c0_75, %c0_76] : memref<12x128xbf16, #tpu.memory_space<vmem>>, vector<10x128xbf16>
    %c0_77 = arith.constant 0 : index
    %c0_78 = arith.constant 0 : index
    %c0_79 = arith.constant 0 : index
    %88 = vector.load %arg4[%c0_77, %c0_78, %c0_79] : memref<3x128x128xbf16, #tpu.memory_space<vmem>>, vector<1x128x128xbf16>
    %89 = vector.shape_cast %88 : vector<1x128x128xbf16> to vector<128x128xbf16>
    %cst_80 = arith.constant dense<0.000000e+00> : vector<10x128xf32>
    %90 = tpu.matmul %87, %89, %cst_80 {dimension_numbers = #tpu.dot_dimension_numbers<[1], [0], [0], [1], [0, 0, 1, 1], [], []>} : vector<10x128xbf16>, vector<128x128xbf16>, vector<10x128xf32> -> vector<10x128xf32>
    %91 = arith.addf %86, %90 : vector<10x128xf32>
    %c1_81 = arith.constant 1 : index
    %c0_82 = arith.constant 0 : index
    %92 = vector.load %arg42[%c1_81, %c0_82] : memref<12x128xbf16, #tpu.memory_space<vmem>>, vector<10x128xbf16>
    %c1_83 = arith.constant 1 : index
    %c0_84 = arith.constant 0 : index
    %c0_85 = arith.constant 0 : index
    %93 = vector.load %arg4[%c1_83, %c0_84, %c0_85] : memref<3x128x128xbf16, #tpu.memory_space<vmem>>, vector<1x128x128xbf16>
    %94 = vector.shape_cast %93 : vector<1x128x128xbf16> to vector<128x128xbf16>
    %cst_86 = arith.constant dense<0.000000e+00> : vector<10x128xf32>
    %95 = tpu.matmul %92, %94, %cst_86 {dimension_numbers = #tpu.dot_dimension_numbers<[1], [0], [0], [1], [0, 0, 1, 1], [], []>} : vector<10x128xbf16>, vector<128x128xbf16>, vector<10x128xf32> -> vector<10x128xf32>
    %96 = arith.addf %91, %95 : vector<10x128xf32>
    %c2_87 = arith.constant 2 : index
    %c0_88 = arith.constant 0 : index
    %97 = vector.load %arg42[%c2_87, %c0_88] : memref<12x128xbf16, #tpu.memory_space<vmem>>, vector<10x128xbf16>
    %c2_89 = arith.constant 2 : index
    %c0_90 = arith.constant 0 : index
    %c0_91 = arith.constant 0 : index
    %98 = vector.load %arg4[%c2_89, %c0_90, %c0_91] : memref<3x128x128xbf16, #tpu.memory_space<vmem>>, vector<1x128x128xbf16>
    %99 = vector.shape_cast %98 : vector<1x128x128xbf16> to vector<128x128xbf16>
    %cst_92 = arith.constant dense<0.000000e+00> : vector<10x128xf32>
    %100 = tpu.matmul %97, %99, %cst_92 {dimension_numbers = #tpu.dot_dimension_numbers<[1], [0], [0], [1], [0, 0, 1, 1], [], []>} : vector<10x128xbf16>, vector<128x128xbf16>, vector<10x128xf32> -> vector<10x128xf32>
    %101 = arith.addf %96, %100 : vector<10x128xf32>
    %c0_93 = arith.constant 0 : index
    %c0_94 = arith.constant 0 : index
    %102 = vector.load %arg16[%c0_93, %c0_94] : memref<1x128xf32, #tpu.memory_space<vmem>>, vector<1x128xf32>
    %103 = vector.broadcast %102 : vector<1x128xf32> to vector<10x128xf32>
    %104 = arith.addf %101, %103 : vector<10x128xf32>
    %cst_95 = arith.constant 0.000000e+00 : f32
    %105 = vector.broadcast %cst_95 : f32 to vector<10x128xf32>
    %106 = arith.cmpf ogt, %104, %105 : vector<10x128xf32>
    %cst_96 = arith.constant 2.000000e-01 : f32
    %107 = vector.broadcast %cst_96 : f32 to vector<10x128xf32>
    %108 = arith.mulf %107, %104 : vector<10x128xf32>
    %109 = arith.select %106, %104, %108 : vector<10x128xi1>, vector<10x128xf32>
    %110 = arith.truncf %109 : vector<10x128xf32> to vector<10x128xbf16>
    %c0_97 = arith.constant 0 : index
    %c0_98 = arith.constant 0 : index
    %111 = vector.load %arg25[%c0_97, %c0_98] : memref<12x10xbf16, #tpu.memory_space<vmem>>, vector<12x10xbf16>
    %cst_99 = arith.constant dense<0.000000e+00> : vector<12x128xf32>
    %112 = tpu.matmul %111, %110, %cst_99 {dimension_numbers = #tpu.dot_dimension_numbers<[1], [0], [0], [1], [0, 0, 1, 1], [], []>} : vector<12x10xbf16>, vector<10x128xbf16>, vector<12x128xf32> -> vector<12x128xf32>
    %113 = arith.truncf %112 : vector<12x128xf32> to vector<12x128xbf16>
    %c0_100 = arith.constant 0 : index
    %c0_101 = arith.constant 0 : index
    %114 = vector.load %arg43[%c0_100, %c0_101] : memref<12x128xbf16, #tpu.memory_space<vmem>>, vector<12x128xbf16>
    tpu.vector_store %arg43[%c0_100, %c0_101], %113 {strides = array<i32>} : memref<12x128xbf16, #tpu.memory_space<vmem>>, vector<12x128xbf16>,
    %115 = arith.truncf %109 : vector<10x128xf32> to vector<10x128xbf16>
    %c0_102 = arith.constant 0 : index
    %c0_103 = arith.constant 0 : index
    %116 = vector.load %arg35[%c0_102, %c0_103] : memref<4x10xbf16, #tpu.memory_space<vmem>>, vector<4x10xbf16>
    %cst_104 = arith.constant dense<0.000000e+00> : vector<4x128xf32>
    %117 = tpu.matmul %116, %115, %cst_104 {dimension_numbers = #tpu.dot_dimension_numbers<[1], [0], [0], [1], [0, 0, 1, 1], [], []>} : vector<4x10xbf16>, vector<10x128xbf16>, vector<4x128xf32> -> vector<4x128xf32>
    %c0_105 = arith.constant 0 : index
    %c0_106 = arith.constant 0 : index
    %118 = vector.load %arg36[%c0_105, %c0_106] : memref<4x10xbf16, #tpu.memory_space<vmem>>, vector<4x10xbf16>
    %cst_107 = arith.constant dense<0.000000e+00> : vector<4x128xf32>
    %119 = tpu.matmul %118, %115, %cst_107 {dimension_numbers = #tpu.dot_dimension_numbers<[1], [0], [0], [1], [0, 0, 1, 1], [], []>} : vector<4x10xbf16>, vector<10x128xbf16>, vector<4x128xf32> -> vector<4x128xf32>
    %120 = arith.maximumf %117, %119 : vector<4x128xf32>
    %121 = vector.extract_strided_slice %120 {offsets = [0, 0], sizes = [4, 64], strides = [1, 1]} : vector<4x128xf32> to vector<4x64xf32>
    %122 = vector.extract_strided_slice %120 {offsets = [0, 64], sizes = [4, 64], strides = [1, 1]} : vector<4x128xf32> to vector<4x64xf32>
    %123 = arith.maximumf %121, %122 : vector<4x64xf32>
    %124 = arith.truncf %123 : vector<4x64xf32> to vector<4x64xbf16>
    %c0_108 = arith.constant 0 : index
    %c0_109 = arith.constant 0 : index
    %125 = vector.load %arg37[%c0_108, %c0_109] : memref<8x4xbf16, #tpu.memory_space<vmem>>, vector<8x4xbf16>
    %cst_110 = arith.constant dense<0.000000e+00> : vector<8x64xf32>
    %126 = tpu.matmul %125, %124, %cst_110 {dimension_numbers = #tpu.dot_dimension_numbers<[1], [0], [0], [1], [0, 0, 1, 1], [], []>} : vector<8x4xbf16>, vector<4x64xbf16>, vector<8x64xf32> -> vector<8x64xf32>
    %127 = arith.truncf %126 : vector<8x64xf32> to vector<8x64xbf16>
    %c0_111 = arith.constant 0 : index
    %c0_112 = arith.constant 0 : index
    %128 = vector.load %arg44[%c0_111, %c0_112] : memref<8x64xbf16, #tpu.memory_space<vmem>>, vector<8x64xbf16>
    tpu.vector_store %arg44[%c0_111, %c0_112], %127 {strides = array<i32>} : memref<8x64xbf16, #tpu.memory_space<vmem>>, vector<8x64xbf16>,
    %cst_113 = arith.constant 0.000000e+00 : f32
    %129 = vector.broadcast %cst_113 : f32 to vector<6x128xf32>
    %c0_114 = arith.constant 0 : index
    %c0_115 = arith.constant 0 : index
    %130 = vector.load %arg44[%c0_114, %c0_115] : memref<8x64xbf16, #tpu.memory_space<vmem>>, vector<6x64xbf16>
    %c0_116 = arith.constant 0 : index
    %c0_117 = arith.constant 0 : index
    %c0_118 = arith.constant 0 : index
    %131 = vector.load %arg5[%c0_116, %c0_117, %c0_118] : memref<3x64x128xbf16, #tpu.memory_space<vmem>>, vector<1x64x128xbf16>
    %132 = vector.shape_cast %131 : vector<1x64x128xbf16> to vector<64x128xbf16>
    %cst_119 = arith.constant dense<0.000000e+00> : vector<6x128xf32>
    %133 = tpu.matmul %130, %132, %cst_119 {dimension_numbers = #tpu.dot_dimension_numbers<[1], [0], [0], [1], [0, 0, 1, 1], [], []>} : vector<6x64xbf16>, vector<64x128xbf16>, vector<6x128xf32> -> vector<6x128xf32>
    %134 = arith.addf %129, %133 : vector<6x128xf32>
    %c1_120 = arith.constant 1 : index
    %c0_121 = arith.constant 0 : index
    %135 = vector.load %arg44[%c1_120, %c0_121] : memref<8x64xbf16, #tpu.memory_space<vmem>>, vector<6x64xbf16>
    %c1_122 = arith.constant 1 : index
    %c0_123 = arith.constant 0 : index
    %c0_124 = arith.constant 0 : index
    %136 = vector.load %arg5[%c1_122, %c0_123, %c0_124] : memref<3x64x128xbf16, #tpu.memory_space<vmem>>, vector<1x64x128xbf16>
    %137 = vector.shape_cast %136 : vector<1x64x128xbf16> to vector<64x128xbf16>
    %cst_125 = arith.constant dense<0.000000e+00> : vector<6x128xf32>
    %138 = tpu.matmul %135, %137, %cst_125 {dimension_numbers = #tpu.dot_dimension_numbers<[1], [0], [0], [1], [0, 0, 1, 1], [], []>} : vector<6x64xbf16>, vector<64x128xbf16>, vector<6x128xf32> -> vector<6x128xf32>
    %139 = arith.addf %134, %138 : vector<6x128xf32>
    %c2_126 = arith.constant 2 : index
    %c0_127 = arith.constant 0 : index
    %140 = vector.load %arg44[%c2_126, %c0_127] : memref<8x64xbf16, #tpu.memory_space<vmem>>, vector<6x64xbf16>
    %c2_128 = arith.constant 2 : index
    %c0_129 = arith.constant 0 : index
    %c0_130 = arith.constant 0 : index
    %141 = vector.load %arg5[%c2_128, %c0_129, %c0_130] : memref<3x64x128xbf16, #tpu.memory_space<vmem>>, vector<1x64x128xbf16>
    %142 = vector.shape_cast %141 : vector<1x64x128xbf16> to vector<64x128xbf16>
    %cst_131 = arith.constant dense<0.000000e+00> : vector<6x128xf32>
    %143 = tpu.matmul %140, %142, %cst_131 {dimension_numbers = #tpu.dot_dimension_numbers<[1], [0], [0], [1], [0, 0, 1, 1], [], []>} : vector<6x64xbf16>, vector<64x128xbf16>, vector<6x128xf32> -> vector<6x128xf32>
    %144 = arith.addf %139, %143 : vector<6x128xf32>
    %c0_132 = arith.constant 0 : index
    %c0_133 = arith.constant 0 : index
    %145 = vector.load %arg17[%c0_132, %c0_133] : memref<1x128xf32, #tpu.memory_space<vmem>>, vector<1x128xf32>
    %146 = vector.broadcast %145 : vector<1x128xf32> to vector<6x128xf32>
    %147 = arith.addf %144, %146 : vector<6x128xf32>
    %cst_134 = arith.constant 0.000000e+00 : f32
    %148 = vector.broadcast %cst_134 : f32 to vector<6x128xf32>
    %149 = arith.cmpf ogt, %147, %148 : vector<6x128xf32>
    %cst_135 = arith.constant 2.000000e-01 : f32
    %150 = vector.broadcast %cst_135 : f32 to vector<6x128xf32>
    %151 = arith.mulf %150, %147 : vector<6x128xf32>
    %152 = arith.select %149, %147, %151 : vector<6x128xi1>, vector<6x128xf32>
    %153 = arith.truncf %152 : vector<6x128xf32> to vector<6x128xbf16>
    %c0_136 = arith.constant 0 : index
    %c0_137 = arith.constant 0 : index
    %154 = vector.load %arg26[%c0_136, %c0_137] : memref<12x6xbf16, #tpu.memory_space<vmem>>, vector<12x6xbf16>
    %cst_138 = arith.constant dense<0.000000e+00> : vector<12x128xf32>
    %155 = tpu.matmul %154, %153, %cst_138 {dimension_numbers = #tpu.dot_dimension_numbers<[1], [0], [0], [1], [0, 0, 1, 1], [], []>} : vector<12x6xbf16>, vector<6x128xbf16>, vector<12x128xf32> -> vector<12x128xf32>
    %156 = arith.truncf %155 : vector<12x128xf32> to vector<12x128xbf16>
    %c0_139 = arith.constant 0 : index
    %c0_140 = arith.constant 0 : index
    %157 = vector.load %arg45[%c0_139, %c0_140] : memref<12x128xbf16, #tpu.memory_space<vmem>>, vector<12x128xbf16>
    tpu.vector_store %arg45[%c0_139, %c0_140], %156 {strides = array<i32>} : memref<12x128xbf16, #tpu.memory_space<vmem>>, vector<12x128xbf16>,
    %cst_141 = arith.constant 0.000000e+00 : f32
    %158 = vector.broadcast %cst_141 : f32 to vector<10x256xf32>
    %c0_142 = arith.constant 0 : index
    %c0_143 = arith.constant 0 : index
    %159 = vector.load %arg45[%c0_142, %c0_143] : memref<12x128xbf16, #tpu.memory_space<vmem>>, vector<10x128xbf16>
    %c0_144 = arith.constant 0 : index
    %c0_145 = arith.constant 0 : index
    %c0_146 = arith.constant 0 : index
    %160 = vector.load %arg6[%c0_144, %c0_145, %c0_146] : memref<3x128x256xbf16, #tpu.memory_space<vmem>>, vector<1x128x256xbf16>
    %161 = vector.shape_cast %160 : vector<1x128x256xbf16> to vector<128x256xbf16>
    %cst_147 = arith.constant dense<0.000000e+00> : vector<10x256xf32>
    %162 = tpu.matmul %159, %161, %cst_147 {dimension_numbers = #tpu.dot_dimension_numbers<[1], [0], [0], [1], [0, 0, 1, 1], [], []>} : vector<10x128xbf16>, vector<128x256xbf16>, vector<10x256xf32> -> vector<10x256xf32>
    %163 = arith.addf %158, %162 : vector<10x256xf32>
    %c1_148 = arith.constant 1 : index
    %c0_149 = arith.constant 0 : index
    %164 = vector.load %arg45[%c1_148, %c0_149] : memref<12x128xbf16, #tpu.memory_space<vmem>>, vector<10x128xbf16>
    %c1_150 = arith.constant 1 : index
    %c0_151 = arith.constant 0 : index
    %c0_152 = arith.constant 0 : index
    %165 = vector.load %arg6[%c1_150, %c0_151, %c0_152] : memref<3x128x256xbf16, #tpu.memory_space<vmem>>, vector<1x128x256xbf16>
    %166 = vector.shape_cast %165 : vector<1x128x256xbf16> to vector<128x256xbf16>
    %cst_153 = arith.constant dense<0.000000e+00> : vector<10x256xf32>
    %167 = tpu.matmul %164, %166, %cst_153 {dimension_numbers = #tpu.dot_dimension_numbers<[1], [0], [0], [1], [0, 0, 1, 1], [], []>} : vector<10x128xbf16>, vector<128x256xbf16>, vector<10x256xf32> -> vector<10x256xf32>
    %168 = arith.addf %163, %167 : vector<10x256xf32>
    %c2_154 = arith.constant 2 : index
    %c0_155 = arith.constant 0 : index
    %169 = vector.load %arg45[%c2_154, %c0_155] : memref<12x128xbf16, #tpu.memory_space<vmem>>, vector<10x128xbf16>
    %c2_156 = arith.constant 2 : index
    %c0_157 = arith.constant 0 : index
    %c0_158 = arith.constant 0 : index
    %170 = vector.load %arg6[%c2_156, %c0_157, %c0_158] : memref<3x128x256xbf16, #tpu.memory_space<vmem>>, vector<1x128x256xbf16>
    %171 = vector.shape_cast %170 : vector<1x128x256xbf16> to vector<128x256xbf16>
    %cst_159 = arith.constant dense<0.000000e+00> : vector<10x256xf32>
    %172 = tpu.matmul %169, %171, %cst_159 {dimension_numbers = #tpu.dot_dimension_numbers<[1], [0], [0], [1], [0, 0, 1, 1], [], []>} : vector<10x128xbf16>, vector<128x256xbf16>, vector<10x256xf32> -> vector<10x256xf32>
    %173 = arith.addf %168, %172 : vector<10x256xf32>
    %c0_160 = arith.constant 0 : index
    %c0_161 = arith.constant 0 : index
    %174 = vector.load %arg43[%c0_160, %c0_161] : memref<12x128xbf16, #tpu.memory_space<vmem>>, vector<10x128xbf16>
    %c0_162 = arith.constant 0 : index
    %c0_163 = arith.constant 0 : index
    %c0_164 = arith.constant 0 : index
    %175 = vector.load %arg7[%c0_162, %c0_163, %c0_164] : memref<3x128x256xbf16, #tpu.memory_space<vmem>>, vector<1x128x256xbf16>
    %176 = vector.shape_cast %175 : vector<1x128x256xbf16> to vector<128x256xbf16>
    %cst_165 = arith.constant dense<0.000000e+00> : vector<10x256xf32>
    %177 = tpu.matmul %174, %176, %cst_165 {dimension_numbers = #tpu.dot_dimension_numbers<[1], [0], [0], [1], [0, 0, 1, 1], [], []>} : vector<10x128xbf16>, vector<128x256xbf16>, vector<10x256xf32> -> vector<10x256xf32>
    %178 = arith.addf %173, %177 : vector<10x256xf32>
    %c1_166 = arith.constant 1 : index
    %c0_167 = arith.constant 0 : index
    %179 = vector.load %arg43[%c1_166, %c0_167] : memref<12x128xbf16, #tpu.memory_space<vmem>>, vector<10x128xbf16>
    %c1_168 = arith.constant 1 : index
    %c0_169 = arith.constant 0 : index
    %c0_170 = arith.constant 0 : index
    %180 = vector.load %arg7[%c1_168, %c0_169, %c0_170] : memref<3x128x256xbf16, #tpu.memory_space<vmem>>, vector<1x128x256xbf16>
    %181 = vector.shape_cast %180 : vector<1x128x256xbf16> to vector<128x256xbf16>
    %cst_171 = arith.constant dense<0.000000e+00> : vector<10x256xf32>
    %182 = tpu.matmul %179, %181, %cst_171 {dimension_numbers = #tpu.dot_dimension_numbers<[1], [0], [0], [1], [0, 0, 1, 1], [], []>} : vector<10x128xbf16>, vector<128x256xbf16>, vector<10x256xf32> -> vector<10x256xf32>
    %183 = arith.addf %178, %182 : vector<10x256xf32>
    %c2_172 = arith.constant 2 : index
    %c0_173 = arith.constant 0 : index
    %184 = vector.load %arg43[%c2_172, %c0_173] : memref<12x128xbf16, #tpu.memory_space<vmem>>, vector<10x128xbf16>
    %c2_174 = arith.constant 2 : index
    %c0_175 = arith.constant 0 : index
    %c0_176 = arith.constant 0 : index
    %185 = vector.load %arg7[%c2_174, %c0_175, %c0_176] : memref<3x128x256xbf16, #tpu.memory_space<vmem>>, vector<1x128x256xbf16>
    %186 = vector.shape_cast %185 : vector<1x128x256xbf16> to vector<128x256xbf16>
    %cst_177 = arith.constant dense<0.000000e+00> : vector<10x256xf32>
    %187 = tpu.matmul %184, %186, %cst_177 {dimension_numbers = #tpu.dot_dimension_numbers<[1], [0], [0], [1], [0, 0, 1, 1], [], []>} : vector<10x128xbf16>, vector<128x256xbf16>, vector<10x256xf32> -> vector<10x256xf32>
    %188 = arith.addf %183, %187 : vector<10x256xf32>
    %c0_178 = arith.constant 0 : index
    %c0_179 = arith.constant 0 : index
    %189 = vector.load %arg18[%c0_178, %c0_179] : memref<1x256xf32, #tpu.memory_space<vmem>>, vector<1x256xf32>
    %190 = vector.broadcast %189 : vector<1x256xf32> to vector<10x256xf32>
    %191 = arith.addf %188, %190 : vector<10x256xf32>
    %cst_180 = arith.constant 0.000000e+00 : f32
    %192 = vector.broadcast %cst_180 : f32 to vector<10x256xf32>
    %193 = arith.cmpf ogt, %191, %192 : vector<10x256xf32>
    %cst_181 = arith.constant 2.000000e-01 : f32
    %194 = vector.broadcast %cst_181 : f32 to vector<10x256xf32>
    %195 = arith.mulf %194, %191 : vector<10x256xf32>
    %196 = arith.select %193, %191, %195 : vector<10x256xi1>, vector<10x256xf32>
    %197 = arith.truncf %196 : vector<10x256xf32> to vector<10x256xbf16>
    %c0_182 = arith.constant 0 : index
    %c0_183 = arith.constant 0 : index
    %198 = vector.load %arg27[%c0_182, %c0_183] : memref<20x10xbf16, #tpu.memory_space<vmem>>, vector<20x10xbf16>
    %cst_184 = arith.constant dense<0.000000e+00> : vector<20x256xf32>
    %199 = tpu.matmul %198, %197, %cst_184 {dimension_numbers = #tpu.dot_dimension_numbers<[1], [0], [0], [1], [0, 0, 1, 1], [], []>} : vector<20x10xbf16>, vector<10x256xbf16>, vector<20x256xf32> -> vector<20x256xf32>
    %200 = arith.truncf %199 : vector<20x256xf32> to vector<20x256xbf16>
    %c0_185 = arith.constant 0 : index
    %c0_186 = arith.constant 0 : index
    %201 = vector.load %arg46[%c0_185, %c0_186] : memref<20x256xbf16, #tpu.memory_space<vmem>>, vector<20x256xbf16>
    tpu.vector_store %arg46[%c0_185, %c0_186], %200 {strides = array<i32>} : memref<20x256xbf16, #tpu.memory_space<vmem>>, vector<20x256xbf16>,
    %cst_187 = arith.constant 0.000000e+00 : f32
    %202 = vector.broadcast %cst_187 : f32 to vector<18x512xf32>
    %c0_188 = arith.constant 0 : index
    %c0_189 = arith.constant 0 : index
    %203 = vector.load %arg46[%c0_188, %c0_189] : memref<20x256xbf16, #tpu.memory_space<vmem>>, vector<18x256xbf16>
    %c0_190 = arith.constant 0 : index
    %c0_191 = arith.constant 0 : index
    %c0_192 = arith.constant 0 : index
    %204 = vector.load %arg8[%c0_190, %c0_191, %c0_192] : memref<3x256x512xbf16, #tpu.memory_space<vmem>>, vector<1x256x512xbf16>
    %205 = vector.shape_cast %204 : vector<1x256x512xbf16> to vector<256x512xbf16>
    %cst_193 = arith.constant dense<0.000000e+00> : vector<18x512xf32>
    %206 = tpu.matmul %203, %205, %cst_193 {dimension_numbers = #tpu.dot_dimension_numbers<[1], [0], [0], [1], [0, 0, 1, 1], [], []>} : vector<18x256xbf16>, vector<256x512xbf16>, vector<18x512xf32> -> vector<18x512xf32>
    %207 = arith.addf %202, %206 : vector<18x512xf32>
    %c1_194 = arith.constant 1 : index
    %c0_195 = arith.constant 0 : index
    %208 = vector.load %arg46[%c1_194, %c0_195] : memref<20x256xbf16, #tpu.memory_space<vmem>>, vector<18x256xbf16>
    %c1_196 = arith.constant 1 : index
    %c0_197 = arith.constant 0 : index
    %c0_198 = arith.constant 0 : index
    %209 = vector.load %arg8[%c1_196, %c0_197, %c0_198] : memref<3x256x512xbf16, #tpu.memory_space<vmem>>, vector<1x256x512xbf16>
    %210 = vector.shape_cast %209 : vector<1x256x512xbf16> to vector<256x512xbf16>
    %cst_199 = arith.constant dense<0.000000e+00> : vector<18x512xf32>
    %211 = tpu.matmul %208, %210, %cst_199 {dimension_numbers = #tpu.dot_dimension_numbers<[1], [0], [0], [1], [0, 0, 1, 1], [], []>} : vector<18x256xbf16>, vector<256x512xbf16>, vector<18x512xf32> -> vector<18x512xf32>
    %212 = arith.addf %207, %211 : vector<18x512xf32>
    %c2_200 = arith.constant 2 : index
    %c0_201 = arith.constant 0 : index
    %213 = vector.load %arg46[%c2_200, %c0_201] : memref<20x256xbf16, #tpu.memory_space<vmem>>, vector<18x256xbf16>
    %c2_202 = arith.constant 2 : index
    %c0_203 = arith.constant 0 : index
    %c0_204 = arith.constant 0 : index
    %214 = vector.load %arg8[%c2_202, %c0_203, %c0_204] : memref<3x256x512xbf16, #tpu.memory_space<vmem>>, vector<1x256x512xbf16>
    %215 = vector.shape_cast %214 : vector<1x256x512xbf16> to vector<256x512xbf16>
    %cst_205 = arith.constant dense<0.000000e+00> : vector<18x512xf32>
    %216 = tpu.matmul %213, %215, %cst_205 {dimension_numbers = #tpu.dot_dimension_numbers<[1], [0], [0], [1], [0, 0, 1, 1], [], []>} : vector<18x256xbf16>, vector<256x512xbf16>, vector<18x512xf32> -> vector<18x512xf32>
    %217 = arith.addf %212, %216 : vector<18x512xf32>
    %c0_206 = arith.constant 0 : index
    %c0_207 = arith.constant 0 : index
    %218 = vector.load %arg41[%c0_206, %c0_207] : memref<20x256xbf16, #tpu.memory_space<vmem>>, vector<18x256xbf16>
    %c0_208 = arith.constant 0 : index
    %c0_209 = arith.constant 0 : index
    %c0_210 = arith.constant 0 : index
    %219 = vector.load %arg9[%c0_208, %c0_209, %c0_210] : memref<3x256x512xbf16, #tpu.memory_space<vmem>>, vector<1x256x512xbf16>
    %220 = vector.shape_cast %219 : vector<1x256x512xbf16> to vector<256x512xbf16>
    %cst_211 = arith.constant dense<0.000000e+00> : vector<18x512xf32>
    %221 = tpu.matmul %218, %220, %cst_211 {dimension_numbers = #tpu.dot_dimension_numbers<[1], [0], [0], [1], [0, 0, 1, 1], [], []>} : vector<18x256xbf16>, vector<256x512xbf16>, vector<18x512xf32> -> vector<18x512xf32>
    %222 = arith.addf %217, %221 : vector<18x512xf32>
    %c1_212 = arith.constant 1 : index
    %c0_213 = arith.constant 0 : index
    %223 = vector.load %arg41[%c1_212, %c0_213] : memref<20x256xbf16, #tpu.memory_space<vmem>>, vector<18x256xbf16>
    %c1_214 = arith.constant 1 : index
    %c0_215 = arith.constant 0 : index
    %c0_216 = arith.constant 0 : index
    %224 = vector.load %arg9[%c1_214, %c0_215, %c0_216] : memref<3x256x512xbf16, #tpu.memory_space<vmem>>, vector<1x256x512xbf16>
    %225 = vector.shape_cast %224 : vector<1x256x512xbf16> to vector<256x512xbf16>
    %cst_217 = arith.constant dense<0.000000e+00> : vector<18x512xf32>
    %226 = tpu.matmul %223, %225, %cst_217 {dimension_numbers = #tpu.dot_dimension_numbers<[1], [0], [0], [1], [0, 0, 1, 1], [], []>} : vector<18x256xbf16>, vector<256x512xbf16>, vector<18x512xf32> -> vector<18x512xf32>
    %227 = arith.addf %222, %226 : vector<18x512xf32>
    %c2_218 = arith.constant 2 : index
    %c0_219 = arith.constant 0 : index
    %228 = vector.load %arg41[%c2_218, %c0_219] : memref<20x256xbf16, #tpu.memory_space<vmem>>, vector<18x256xbf16>
    %c2_220 = arith.constant 2 : index
    %c0_221 = arith.constant 0 : index
    %c0_222 = arith.constant 0 : index
    %229 = vector.load %arg9[%c2_220, %c0_221, %c0_222] : memref<3x256x512xbf16, #tpu.memory_space<vmem>>, vector<1x256x512xbf16>
    %230 = vector.shape_cast %229 : vector<1x256x512xbf16> to vector<256x512xbf16>
    %cst_223 = arith.constant dense<0.000000e+00> : vector<18x512xf32>
    %231 = tpu.matmul %228, %230, %cst_223 {dimension_numbers = #tpu.dot_dimension_numbers<[1], [0], [0], [1], [0, 0, 1, 1], [], []>} : vector<18x256xbf16>, vector<256x512xbf16>, vector<18x512xf32> -> vector<18x512xf32>
    %232 = arith.addf %227, %231 : vector<18x512xf32>
    %c0_224 = arith.constant 0 : index
    %c0_225 = arith.constant 0 : index
    %233 = vector.load %arg19[%c0_224, %c0_225] : memref<1x512xf32, #tpu.memory_space<vmem>>, vector<1x512xf32>
    %234 = vector.broadcast %233 : vector<1x512xf32> to vector<18x512xf32>
    %235 = arith.addf %232, %234 : vector<18x512xf32>
    %cst_226 = arith.constant 0.000000e+00 : f32
    %236 = vector.broadcast %cst_226 : f32 to vector<18x512xf32>
    %237 = arith.cmpf ogt, %235, %236 : vector<18x512xf32>
    %cst_227 = arith.constant 2.000000e-01 : f32
    %238 = vector.broadcast %cst_227 : f32 to vector<18x512xf32>
    %239 = arith.mulf %238, %235 : vector<18x512xf32>
    %240 = arith.select %237, %235, %239 : vector<18x512xi1>, vector<18x512xf32>
    %241 = arith.truncf %240 : vector<18x512xf32> to vector<18x512xbf16>
    %c0_228 = arith.constant 0 : index
    %c0_229 = arith.constant 0 : index
    %242 = vector.load %arg28[%c0_228, %c0_229] : memref<36x18xbf16, #tpu.memory_space<vmem>>, vector<36x18xbf16>
    %cst_230 = arith.constant dense<0.000000e+00> : vector<36x512xf32>
    %243 = tpu.matmul %242, %241, %cst_230 {dimension_numbers = #tpu.dot_dimension_numbers<[1], [0], [0], [1], [0, 0, 1, 1], [], []>} : vector<36x18xbf16>, vector<18x512xbf16>, vector<36x512xf32> -> vector<36x512xf32>
    %244 = arith.truncf %243 : vector<36x512xf32> to vector<36x512xbf16>
    %c0_231 = arith.constant 0 : index
    %c0_232 = arith.constant 0 : index
    %245 = vector.load %arg47[%c0_231, %c0_232] : memref<36x512xbf16, #tpu.memory_space<vmem>>, vector<36x512xbf16>
    tpu.vector_store %arg47[%c0_231, %c0_232], %244 {strides = array<i32>} : memref<36x512xbf16, #tpu.memory_space<vmem>>, vector<36x512xbf16>,
    %cst_233 = arith.constant 0.000000e+00 : f32
    %246 = vector.broadcast %cst_233 : f32 to vector<34x512xf32>
    %c0_234 = arith.constant 0 : index
    %c0_235 = arith.constant 0 : index
    %247 = vector.load %arg47[%c0_234, %c0_235] : memref<36x512xbf16, #tpu.memory_space<vmem>>, vector<34x512xbf16>
    %c0_236 = arith.constant 0 : index
    %c0_237 = arith.constant 0 : index
    %c0_238 = arith.constant 0 : index
    %248 = vector.load %arg10[%c0_236, %c0_237, %c0_238] : memref<3x512x512xbf16, #tpu.memory_space<vmem>>, vector<1x512x512xbf16>
    %249 = vector.shape_cast %248 : vector<1x512x512xbf16> to vector<512x512xbf16>
    %cst_239 = arith.constant dense<0.000000e+00> : vector<34x512xf32>
    %250 = tpu.matmul %247, %249, %cst_239 {dimension_numbers = #tpu.dot_dimension_numbers<[1], [0], [0], [1], [0, 0, 1, 1], [], []>} : vector<34x512xbf16>, vector<512x512xbf16>, vector<34x512xf32> -> vector<34x512xf32>
    %251 = arith.addf %246, %250 : vector<34x512xf32>
    %c1_240 = arith.constant 1 : index
    %c0_241 = arith.constant 0 : index
    %252 = vector.load %arg47[%c1_240, %c0_241] : memref<36x512xbf16, #tpu.memory_space<vmem>>, vector<34x512xbf16>
    %c1_242 = arith.constant 1 : index
    %c0_243 = arith.constant 0 : index
    %c0_244 = arith.constant 0 : index
    %253 = vector.load %arg10[%c1_242, %c0_243, %c0_244] : memref<3x512x512xbf16, #tpu.memory_space<vmem>>, vector<1x512x512xbf16>
    %254 = vector.shape_cast %253 : vector<1x512x512xbf16> to vector<512x512xbf16>
    %cst_245 = arith.constant dense<0.000000e+00> : vector<34x512xf32>
    %255 = tpu.matmul %252, %254, %cst_245 {dimension_numbers = #tpu.dot_dimension_numbers<[1], [0], [0], [1], [0, 0, 1, 1], [], []>} : vector<34x512xbf16>, vector<512x512xbf16>, vector<34x512xf32> -> vector<34x512xf32>
    %256 = arith.addf %251, %255 : vector<34x512xf32>
    %c2_246 = arith.constant 2 : index
    %c0_247 = arith.constant 0 : index
    %257 = vector.load %arg47[%c2_246, %c0_247] : memref<36x512xbf16, #tpu.memory_space<vmem>>, vector<34x512xbf16>
    %c2_248 = arith.constant 2 : index
    %c0_249 = arith.constant 0 : index
    %c0_250 = arith.constant 0 : index
    %258 = vector.load %arg10[%c2_248, %c0_249, %c0_250] : memref<3x512x512xbf16, #tpu.memory_space<vmem>>, vector<1x512x512xbf16>
    %259 = vector.shape_cast %258 : vector<1x512x512xbf16> to vector<512x512xbf16>
    %cst_251 = arith.constant dense<0.000000e+00> : vector<34x512xf32>
    %260 = tpu.matmul %257, %259, %cst_251 {dimension_numbers = #tpu.dot_dimension_numbers<[1], [0], [0], [1], [0, 0, 1, 1], [], []>} : vector<34x512xbf16>, vector<512x512xbf16>, vector<34x512xf32> -> vector<34x512xf32>
    %261 = arith.addf %256, %260 : vector<34x512xf32>
    %c0_252 = arith.constant 0 : index
    %c0_253 = arith.constant 0 : index
    %262 = vector.load %arg39[%c0_252, %c0_253] : memref<36x256xbf16, #tpu.memory_space<vmem>>, vector<34x256xbf16>
    %c0_254 = arith.constant 0 : index
    %c0_255 = arith.constant 0 : index
    %c0_256 = arith.constant 0 : index
    %263 = vector.load %arg11[%c0_254, %c0_255, %c0_256] : memref<3x256x512xbf16, #tpu.memory_space<vmem>>, vector<1x256x512xbf16>
    %264 = vector.shape_cast %263 : vector<1x256x512xbf16> to vector<256x512xbf16>
    %cst_257 = arith.constant dense<0.000000e+00> : vector<34x512xf32>
    %265 = tpu.matmul %262, %264, %cst_257 {dimension_numbers = #tpu.dot_dimension_numbers<[1], [0], [0], [1], [0, 0, 1, 1], [], []>} : vector<34x256xbf16>, vector<256x512xbf16>, vector<34x512xf32> -> vector<34x512xf32>
    %266 = arith.addf %261, %265 : vector<34x512xf32>
    %c1_258 = arith.constant 1 : index
    %c0_259 = arith.constant 0 : index
    %267 = vector.load %arg39[%c1_258, %c0_259] : memref<36x256xbf16, #tpu.memory_space<vmem>>, vector<34x256xbf16>
    %c1_260 = arith.constant 1 : index
    %c0_261 = arith.constant 0 : index
    %c0_262 = arith.constant 0 : index
    %268 = vector.load %arg11[%c1_260, %c0_261, %c0_262] : memref<3x256x512xbf16, #tpu.memory_space<vmem>>, vector<1x256x512xbf16>
    %269 = vector.shape_cast %268 : vector<1x256x512xbf16> to vector<256x512xbf16>
    %cst_263 = arith.constant dense<0.000000e+00> : vector<34x512xf32>
    %270 = tpu.matmul %267, %269, %cst_263 {dimension_numbers = #tpu.dot_dimension_numbers<[1], [0], [0], [1], [0, 0, 1, 1], [], []>} : vector<34x256xbf16>, vector<256x512xbf16>, vector<34x512xf32> -> vector<34x512xf32>
    %271 = arith.addf %266, %270 : vector<34x512xf32>
    %c2_264 = arith.constant 2 : index
    %c0_265 = arith.constant 0 : index
    %272 = vector.load %arg39[%c2_264, %c0_265] : memref<36x256xbf16, #tpu.memory_space<vmem>>, vector<34x256xbf16>
    %c2_266 = arith.constant 2 : index
    %c0_267 = arith.constant 0 : index
    %c0_268 = arith.constant 0 : index
    %273 = vector.load %arg11[%c2_266, %c0_267, %c0_268] : memref<3x256x512xbf16, #tpu.memory_space<vmem>>, vector<1x256x512xbf16>
    %274 = vector.shape_cast %273 : vector<1x256x512xbf16> to vector<256x512xbf16>
    %cst_269 = arith.constant dense<0.000000e+00> : vector<34x512xf32>
    %275 = tpu.matmul %272, %274, %cst_269 {dimension_numbers = #tpu.dot_dimension_numbers<[1], [0], [0], [1], [0, 0, 1, 1], [], []>} : vector<34x256xbf16>, vector<256x512xbf16>, vector<34x512xf32> -> vector<34x512xf32>
    %276 = arith.addf %271, %275 : vector<34x512xf32>
    %c0_270 = arith.constant 0 : index
    %c0_271 = arith.constant 0 : index
    %277 = vector.load %arg20[%c0_270, %c0_271] : memref<1x512xf32, #tpu.memory_space<vmem>>, vector<1x512xf32>
    %278 = vector.broadcast %277 : vector<1x512xf32> to vector<34x512xf32>
    %279 = arith.addf %276, %278 : vector<34x512xf32>
    %cst_272 = arith.constant 0.000000e+00 : f32
    %280 = vector.broadcast %cst_272 : f32 to vector<34x512xf32>
    %281 = arith.cmpf ogt, %279, %280 : vector<34x512xf32>
    %cst_273 = arith.constant 2.000000e-01 : f32
    %282 = vector.broadcast %cst_273 : f32 to vector<34x512xf32>
    %283 = arith.mulf %282, %279 : vector<34x512xf32>
    %284 = arith.select %281, %279, %283 : vector<34x512xi1>, vector<34x512xf32>
    %285 = arith.truncf %284 : vector<34x512xf32> to vector<34x512xbf16>
    %c0_274 = arith.constant 0 : index
    %c0_275 = arith.constant 0 : index
    %286 = vector.load %arg23[%c0_274, %c0_275] : memref<36x34xbf16, #tpu.memory_space<vmem>>, vector<36x34xbf16>
    %cst_276 = arith.constant dense<0.000000e+00> : vector<36x512xf32>
    %287 = tpu.matmul %286, %285, %cst_276 {dimension_numbers = #tpu.dot_dimension_numbers<[1], [0], [0], [1], [0, 0, 1, 1], [], []>} : vector<36x34xbf16>, vector<34x512xbf16>, vector<36x512xf32> -> vector<36x512xf32>
    %288 = arith.truncf %287 : vector<36x512xf32> to vector<36x512xbf16>
    %c0_277 = arith.constant 0 : index
    %c0_278 = arith.constant 0 : index
    %289 = vector.load %arg48[%c0_277, %c0_278] : memref<36x512xbf16, #tpu.memory_space<vmem>>, vector<36x512xbf16>
    tpu.vector_store %arg48[%c0_277, %c0_278], %288 {strides = array<i32>} : memref<36x512xbf16, #tpu.memory_space<vmem>>, vector<36x512xbf16>,
    %cst_279 = arith.constant 0.000000e+00 : f32
    %290 = vector.broadcast %cst_279 : f32 to vector<34x256xf32>
    %c0_280 = arith.constant 0 : index
    %c0_281 = arith.constant 0 : index
    %291 = vector.load %arg48[%c0_280, %c0_281] : memref<36x512xbf16, #tpu.memory_space<vmem>>, vector<34x512xbf16>
    %c0_282 = arith.constant 0 : index
    %c0_283 = arith.constant 0 : index
    %c0_284 = arith.constant 0 : index
    %292 = vector.load %arg12[%c0_282, %c0_283, %c0_284] : memref<3x512x256xbf16, #tpu.memory_space<vmem>>, vector<1x512x256xbf16>
    %293 = vector.shape_cast %292 : vector<1x512x256xbf16> to vector<512x256xbf16>
    %cst_285 = arith.constant dense<0.000000e+00> : vector<34x256xf32>
    %294 = tpu.matmul %291, %293, %cst_285 {dimension_numbers = #tpu.dot_dimension_numbers<[1], [0], [0], [1], [0, 0, 1, 1], [], []>} : vector<34x512xbf16>, vector<512x256xbf16>, vector<34x256xf32> -> vector<34x256xf32>
    %295 = arith.addf %290, %294 : vector<34x256xf32>
    %c1_286 = arith.constant 1 : index
    %c0_287 = arith.constant 0 : index
    %296 = vector.load %arg48[%c1_286, %c0_287] : memref<36x512xbf16, #tpu.memory_space<vmem>>, vector<34x512xbf16>
    %c1_288 = arith.constant 1 : index
    %c0_289 = arith.constant 0 : index
    %c0_290 = arith.constant 0 : index
    %297 = vector.load %arg12[%c1_288, %c0_289, %c0_290] : memref<3x512x256xbf16, #tpu.memory_space<vmem>>, vector<1x512x256xbf16>
    %298 = vector.shape_cast %297 : vector<1x512x256xbf16> to vector<512x256xbf16>
    %cst_291 = arith.constant dense<0.000000e+00> : vector<34x256xf32>
    %299 = tpu.matmul %296, %298, %cst_291 {dimension_numbers = #tpu.dot_dimension_numbers<[1], [0], [0], [1], [0, 0, 1, 1], [], []>} : vector<34x512xbf16>, vector<512x256xbf16>, vector<34x256xf32> -> vector<34x256xf32>
    %300 = arith.addf %295, %299 : vector<34x256xf32>
    %c2_292 = arith.constant 2 : index
    %c0_293 = arith.constant 0 : index
    %301 = vector.load %arg48[%c2_292, %c0_293] : memref<36x512xbf16, #tpu.memory_space<vmem>>, vector<34x512xbf16>
    %c2_294 = arith.constant 2 : index
    %c0_295 = arith.constant 0 : index
    %c0_296 = arith.constant 0 : index
    %302 = vector.load %arg12[%c2_294, %c0_295, %c0_296] : memref<3x512x256xbf16, #tpu.memory_space<vmem>>, vector<1x512x256xbf16>
    %303 = vector.shape_cast %302 : vector<1x512x256xbf16> to vector<512x256xbf16>
    %cst_297 = arith.constant dense<0.000000e+00> : vector<34x256xf32>
    %304 = tpu.matmul %301, %303, %cst_297 {dimension_numbers = #tpu.dot_dimension_numbers<[1], [0], [0], [1], [0, 0, 1, 1], [], []>} : vector<34x512xbf16>, vector<512x256xbf16>, vector<34x256xf32> -> vector<34x256xf32>
    %305 = arith.addf %300, %304 : vector<34x256xf32>
    %c0_298 = arith.constant 0 : index
    %c0_299 = arith.constant 0 : index
    %306 = vector.load %arg21[%c0_298, %c0_299] : memref<1x256xf32, #tpu.memory_space<vmem>>, vector<1x256xf32>
    %307 = vector.broadcast %306 : vector<1x256xf32> to vector<34x256xf32>
    %308 = arith.addf %305, %307 : vector<34x256xf32>
    %cst_300 = arith.constant 0.000000e+00 : f32
    %309 = vector.broadcast %cst_300 : f32 to vector<34x256xf32>
    %310 = arith.cmpf ogt, %308, %309 : vector<34x256xf32>
    %cst_301 = arith.constant 2.000000e-01 : f32
    %311 = vector.broadcast %cst_301 : f32 to vector<34x256xf32>
    %312 = arith.mulf %311, %308 : vector<34x256xf32>
    %313 = arith.select %310, %308, %312 : vector<34x256xi1>, vector<34x256xf32>
    %314 = arith.truncf %313 : vector<34x256xf32> to vector<34x256xbf16>
    %c0_302 = arith.constant 0 : index
    %c0_303 = arith.constant 0 : index
    %315 = vector.load %arg23[%c0_302, %c0_303] : memref<36x34xbf16, #tpu.memory_space<vmem>>, vector<36x34xbf16>
    %cst_304 = arith.constant dense<0.000000e+00> : vector<36x256xf32>
    %316 = tpu.matmul %315, %314, %cst_304 {dimension_numbers = #tpu.dot_dimension_numbers<[1], [0], [0], [1], [0, 0, 1, 1], [], []>} : vector<36x34xbf16>, vector<34x256xbf16>, vector<36x256xf32> -> vector<36x256xf32>
    %317 = arith.truncf %316 : vector<36x256xf32> to vector<36x256xbf16>
    %c0_305 = arith.constant 0 : index
    %c0_306 = arith.constant 0 : index
    %318 = vector.load %arg49[%c0_305, %c0_306] : memref<36x256xbf16, #tpu.memory_space<vmem>>, vector<36x256xbf16>
    tpu.vector_store %arg49[%c0_305, %c0_306], %317 {strides = array<i32>} : memref<36x256xbf16, #tpu.memory_space<vmem>>, vector<36x256xbf16>,
    %cst_307 = arith.constant 0.000000e+00 : f32
    %319 = vector.broadcast %cst_307 : f32 to vector<34x256xf32>
    %c0_308 = arith.constant 0 : index
    %c0_309 = arith.constant 0 : index
    %320 = vector.load %arg49[%c0_308, %c0_309] : memref<36x256xbf16, #tpu.memory_space<vmem>>, vector<34x256xbf16>
    %c0_310 = arith.constant 0 : index
    %c0_311 = arith.constant 0 : index
    %c0_312 = arith.constant 0 : index
    %321 = vector.load %arg13[%c0_310, %c0_311, %c0_312] : memref<3x256x256xbf16, #tpu.memory_space<vmem>>, vector<1x256x256xbf16>
    %322 = vector.shape_cast %321 : vector<1x256x256xbf16> to vector<256x256xbf16>
    %cst_313 = arith.constant dense<0.000000e+00> : vector<34x256xf32>
    %323 = tpu.matmul %320, %322, %cst_313 {dimension_numbers = #tpu.dot_dimension_numbers<[1], [0], [0], [1], [0, 0, 1, 1], [], []>} : vector<34x256xbf16>, vector<256x256xbf16>, vector<34x256xf32> -> vector<34x256xf32>
    %324 = arith.addf %319, %323 : vector<34x256xf32>
    %c1_314 = arith.constant 1 : index
    %c0_315 = arith.constant 0 : index
    %325 = vector.load %arg49[%c1_314, %c0_315] : memref<36x256xbf16, #tpu.memory_space<vmem>>, vector<34x256xbf16>
    %c1_316 = arith.constant 1 : index
    %c0_317 = arith.constant 0 : index
    %c0_318 = arith.constant 0 : index
    %326 = vector.load %arg13[%c1_316, %c0_317, %c0_318] : memref<3x256x256xbf16, #tpu.memory_space<vmem>>, vector<1x256x256xbf16>
    %327 = vector.shape_cast %326 : vector<1x256x256xbf16> to vector<256x256xbf16>
    %cst_319 = arith.constant dense<0.000000e+00> : vector<34x256xf32>
    %328 = tpu.matmul %325, %327, %cst_319 {dimension_numbers = #tpu.dot_dimension_numbers<[1], [0], [0], [1], [0, 0, 1, 1], [], []>} : vector<34x256xbf16>, vector<256x256xbf16>, vector<34x256xf32> -> vector<34x256xf32>
    %329 = arith.addf %324, %328 : vector<34x256xf32>
    %c2_320 = arith.constant 2 : index
    %c0_321 = arith.constant 0 : index
    %330 = vector.load %arg49[%c2_320, %c0_321] : memref<36x256xbf16, #tpu.memory_space<vmem>>, vector<34x256xbf16>
    %c2_322 = arith.constant 2 : index
    %c0_323 = arith.constant 0 : index
    %c0_324 = arith.constant 0 : index
    %331 = vector.load %arg13[%c2_322, %c0_323, %c0_324] : memref<3x256x256xbf16, #tpu.memory_space<vmem>>, vector<1x256x256xbf16>
    %332 = vector.shape_cast %331 : vector<1x256x256xbf16> to vector<256x256xbf16>
    %cst_325 = arith.constant dense<0.000000e+00> : vector<34x256xf32>
    %333 = tpu.matmul %330, %332, %cst_325 {dimension_numbers = #tpu.dot_dimension_numbers<[1], [0], [0], [1], [0, 0, 1, 1], [], []>} : vector<34x256xbf16>, vector<256x256xbf16>, vector<34x256xf32> -> vector<34x256xf32>
    %334 = arith.addf %329, %333 : vector<34x256xf32>
    %c0_326 = arith.constant 0 : index
    %c0_327 = arith.constant 0 : index
    %335 = vector.load %arg22[%c0_326, %c0_327] : memref<1x256xf32, #tpu.memory_space<vmem>>, vector<1x256xf32>
    %336 = vector.broadcast %335 : vector<1x256xf32> to vector<34x256xf32>
    %337 = arith.addf %334, %336 : vector<34x256xf32>
    %cst_328 = arith.constant 0.000000e+00 : f32
    %338 = vector.broadcast %cst_328 : f32 to vector<34x256xf32>
    %339 = arith.cmpf ogt, %337, %338 : vector<34x256xf32>
    %cst_329 = arith.constant 2.000000e-01 : f32
    %340 = vector.broadcast %cst_329 : f32 to vector<34x256xf32>
    %341 = arith.mulf %340, %337 : vector<34x256xf32>
    %342 = arith.select %339, %337, %341 : vector<34x256xi1>, vector<34x256xf32>
    %c0_330 = arith.constant 0 : index
    %c0_331 = arith.constant 0 : index
    %343 = vector.load %arg38[%c0_330, %c0_331] : memref<34x256xf32, #tpu.memory_space<vmem>>, vector<34x256xf32>
    tpu.vector_store %arg38[%c0_330, %c0_331], %342 {strides = array<i32>} : memref<34x256xf32, #tpu.memory_space<vmem>>, vector<34x256xf32>,
    return
  }
  func.func @transform_0(%arg0: i32) -> (i32, i32) {
    %c0_i32 = arith.constant 0 : i32
    %c0_i32_0 = arith.constant 0 : i32
    %c0_i32_1 = arith.constant 0 : i32
    return %c0_i32, %c0_i32_0 : i32, i32
  }
  func.func @transform_1(%arg0: i32) -> (i32, i32, i32) {
    %c0_i32 = arith.constant 0 : i32
    %c0_i32_0 = arith.constant 0 : i32
    %c0_i32_1 = arith.constant 0 : i32
    %c0_i32_2 = arith.constant 0 : i32
    return %c0_i32, %c0_i32_0, %c0_i32_1 : i32, i32, i32
  }
  func.func @transform_2(%arg0: i32) -> (i32, i32, i32) {
    %c0_i32 = arith.constant 0 : i32
    %c0_i32_0 = arith.constant 0 : i32
    %c0_i32_1 = arith.constant 0 : i32
    %c0_i32_2 = arith.constant 0 : i32
    return %c0_i32, %c0_i32_0, %c0_i32_1 : i32, i32, i32
  }
  func.func @transform_3(%arg0: i32) -> (i32, i32, i32) {
    %c0_i32 = arith.constant 0 : i32
    %c0_i32_0 = arith.constant 0 : i32
    %c0_i32_1 = arith.constant 0 : i32
    %c0_i32_2 = arith.constant 0 : i32
    return %c0_i32, %c0_i32_0, %c0_i32_1 : i32, i32, i32
  }
  func.func @transform_4(%arg0: i32) -> (i32, i32, i32) {
    %c0_i32 = arith.constant 0 : i32
    %c0_i32_0 = arith.constant 0 : i32
    %c0_i32_1 = arith.constant 0 : i32
    %c0_i32_2 = arith.constant 0 : i32
    return %c0_i32, %c0_i32_0, %c0_i32_1 : i32, i32, i32
  }
  func.func @transform_5(%arg0: i32) -> (i32, i32, i32) {
    %c0_i32 = arith.constant 0 : i32
    %c0_i32_0 = arith.constant 0 : i32
    %c0_i32_1 = arith.constant 0 : i32
    %c0_i32_2 = arith.constant 0 : i32
    return %c0_i32, %c0_i32_0, %c0_i32_1 : i32, i32, i32
  }
  func.func @transform_6(%arg0: i32) -> (i32, i32, i32) {
    %c0_i32 = arith.constant 0 : i32
    %c0_i32_0 = arith.constant 0 : i32
    %c0_i32_1 = arith.constant 0 : i32
    %c0_i32_2 = arith.constant 0 : i32
    return %c0_i32, %c0_i32_0, %c0_i32_1 : i32, i32, i32
  }
  func.func @transform_7(%arg0: i32) -> (i32, i32, i32) {
    %c0_i32 = arith.constant 0 : i32
    %c0_i32_0 = arith.constant 0 : i32
    %c0_i32_1 = arith.constant 0 : i32
    %c0_i32_2 = arith.constant 0 : i32
    return %c0_i32, %c0_i32_0, %c0_i32_1 : i32, i32, i32
  }
  func.func @transform_8(%arg0: i32) -> (i32, i32, i32) {
    %c0_i32 = arith.constant 0 : i32
    %c0_i32_0 = arith.constant 0 : i32
    %c0_i32_1 = arith.constant 0 : i32
    %c0_i32_2 = arith.constant 0 : i32
    return %c0_i32, %c0_i32_0, %c0_i32_1 : i32, i32, i32
  }
  func.func @transform_9(%arg0: i32) -> (i32, i32, i32) {
    %c0_i32 = arith.constant 0 : i32
    %c0_i32_0 = arith.constant 0 : i32
    %c0_i32_1 = arith.constant 0 : i32
    %c0_i32_2 = arith.constant 0 : i32
    return %c0_i32, %c0_i32_0, %c0_i32_1 : i32, i32, i32
  }
  func.func @transform_10(%arg0: i32) -> (i32, i32, i32) {
    %c0_i32 = arith.constant 0 : i32
    %c0_i32_0 = arith.constant 0 : i32
    %c0_i32_1 = arith.constant 0 : i32
    %c0_i32_2 = arith.constant 0 : i32
    return %c0_i32, %c0_i32_0, %c0_i32_1 : i32, i32, i32
  }
  func.func @transform_11(%arg0: i32) -> (i32, i32, i32) {
    %c0_i32 = arith.constant 0 : i32
    %c0_i32_0 = arith.constant 0 : i32
    %c0_i32_1 = arith.constant 0 : i32
    %c0_i32_2 = arith.constant 0 : i32
    return %c0_i32, %c0_i32_0, %c0_i32_1 : i32, i32, i32
  }
  func.func @transform_12(%arg0: i32) -> (i32, i32, i32) {
    %c0_i32 = arith.constant 0 : i32
    %c0_i32_0 = arith.constant 0 : i32
    %c0_i32_1 = arith.constant 0 : i32
    %c0_i32_2 = arith.constant 0 : i32
    return %c0_i32, %c0_i32_0, %c0_i32_1 : i32, i32, i32
  }
  func.func @transform_13(%arg0: i32) -> (i32, i32) {
    %c0_i32 = arith.constant 0 : i32
    %c0_i32_0 = arith.constant 0 : i32
    %c0_i32_1 = arith.constant 0 : i32
    return %c0_i32, %c0_i32_0 : i32, i32
  }
  func.func @transform_14(%arg0: i32) -> (i32, i32) {
    %c0_i32 = arith.constant 0 : i32
    %c0_i32_0 = arith.constant 0 : i32
    %c0_i32_1 = arith.constant 0 : i32
    return %c0_i32, %c0_i32_0 : i32, i32
  }
  func.func @transform_15(%arg0: i32) -> (i32, i32) {
    %c0_i32 = arith.constant 0 : i32
    %c0_i32_0 = arith.constant 0 : i32
    %c0_i32_1 = arith.constant 0 : i32
    return %c0_i32, %c0_i32_0 : i32, i32
  }
  func.func @transform_16(%arg0: i32) -> (i32, i32) {
    %c0_i32 = arith.constant 0 : i32
    %c0_i32_0 = arith.constant 0 : i32
    %c0_i32_1 = arith.constant 0 : i32
    return %c0_i32, %c0_i32_0 : i32, i32
  }
  func.func @transform_17(%arg0: i32) -> (i32, i32) {
    %c0_i32 = arith.constant 0 : i32
    %c0_i32_0 = arith.constant 0 : i32
    %c0_i32_1 = arith.constant 0 : i32
    return %c0_i32, %c0_i32_0 : i32, i32
  }
  func.func @transform_18(%arg0: i32) -> (i32, i32) {
    %c0_i32 = arith.constant 0 : i32
    %c0_i32_0 = arith.constant 0 : i32
    %c0_i32_1 = arith.constant 0 : i32
    return %c0_i32, %c0_i32_0 : i32, i32
  }
  func.func @transform_19(%arg0: i32) -> (i32, i32) {
    %c0_i32 = arith.constant 0 : i32
    %c0_i32_0 = arith.constant 0 : i32
    %c0_i32_1 = arith.constant 0 : i32
    return %c0_i32, %c0_i32_0 : i32, i32
  }
  func.func @transform_20(%arg0: i32) -> (i32, i32) {
    %c0_i32 = arith.constant 0 : i32
    %c0_i32_0 = arith.constant 0 : i32
    %c0_i32_1 = arith.constant 0 : i32
    return %c0_i32, %c0_i32_0 : i32, i32
  }
  func.func @transform_21(%arg0: i32) -> (i32, i32) {
    %c0_i32 = arith.constant 0 : i32
    %c0_i32_0 = arith.constant 0 : i32
    %c0_i32_1 = arith.constant 0 : i32
    return %c0_i32, %c0_i32_0 : i32, i32
  }
  func.func @transform_22(%arg0: i32) -> (i32, i32) {
    %c0_i32 = arith.constant 0 : i32
    %c0_i32_0 = arith.constant 0 : i32
    %c0_i32_1 = arith.constant 0 : i32
    return %c0_i32, %c0_i32_0 : i32, i32
  }
  func.func @transform_23(%arg0: i32) -> (i32, i32) {
    %c0_i32 = arith.constant 0 : i32
    %c0_i32_0 = arith.constant 0 : i32
    %c0_i32_1 = arith.constant 0 : i32
    return %c0_i32, %c0_i32_0 : i32, i32
  }
  func.func @transform_24(%arg0: i32) -> (i32, i32) {
    %c0_i32 = arith.constant 0 : i32
    %c0_i32_0 = arith.constant 0 : i32
    %c0_i32_1 = arith.constant 0 : i32
    return %c0_i32, %c0_i32_0 : i32, i32
  }
  func.func @transform_25(%arg0: i32) -> (i32, i32) {
    %c0_i32 = arith.constant 0 : i32
    %c0_i32_0 = arith.constant 0 : i32
    %c0_i32_1 = arith.constant 0 : i32
    return %c0_i32, %c0_i32_0 : i32, i32
  }
  func.func @transform_26(%arg0: i32) -> (i32, i32) {
    %c0_i32 = arith.constant 0 : i32
    %c0_i32_0 = arith.constant 0 : i32
    %c0_i32_1 = arith.constant 0 : i32
    return %c0_i32, %c0_i32_0 : i32, i32
  }
  func.func @transform_27(%arg0: i32) -> (i32, i32) {
    %c0_i32 = arith.constant 0 : i32
    %c0_i32_0 = arith.constant 0 : i32
    %c0_i32_1 = arith.constant 0 : i32
    return %c0_i32, %c0_i32_0 : i32, i32
  }
  func.func @transform_28(%arg0: i32) -> (i32, i32) {
    %c0_i32 = arith.constant 0 : i32
    %c0_i32_0 = arith.constant 0 : i32
    %c0_i32_1 = arith.constant 0 : i32
    return %c0_i32, %c0_i32_0 : i32, i32
  }
  func.func @transform_29(%arg0: i32) -> (i32, i32) {
    %c0_i32 = arith.constant 0 : i32
    %c0_i32_0 = arith.constant 0 : i32
    %c0_i32_1 = arith.constant 0 : i32
    return %c0_i32, %c0_i32_0 : i32, i32
  }
  func.func @transform_30(%arg0: i32) -> (i32, i32) {
    %c0_i32 = arith.constant 0 : i32
    %c0_i32_0 = arith.constant 0 : i32
    %c0_i32_1 = arith.constant 0 : i32
    return %c0_i32, %c0_i32_0 : i32, i32
  }
  func.func @transform_31(%arg0: i32) -> (i32, i32) {
    %c0_i32 = arith.constant 0 : i32
    %c0_i32_0 = arith.constant 0 : i32
    %c0_i32_1 = arith.constant 0 : i32
    return %c0_i32, %c0_i32_0 : i32, i32
  }
  func.func @transform_32(%arg0: i32) -> (i32, i32) {
    %c0_i32 = arith.constant 0 : i32
    %c0_i32_0 = arith.constant 0 : i32
    %c0_i32_1 = arith.constant 0 : i32
    return %c0_i32, %c0_i32_0 : i32, i32
  }
  func.func @transform_33(%arg0: i32) -> (i32, i32) {
    %c0_i32 = arith.constant 0 : i32
    %c0_i32_0 = arith.constant 0 : i32
    %c0_i32_1 = arith.constant 0 : i32
    return %c0_i32, %c0_i32_0 : i32, i32
  }
  func.func @transform_34(%arg0: i32) -> (i32, i32) {
    %c0_i32 = arith.constant 0 : i32
    %c0_i32_0 = arith.constant 0 : i32
    %c0_i32_1 = arith.constant 0 : i32
    return %c0_i32, %c0_i32_0 : i32, i32
  }
  func.func @transform_35(%arg0: i32) -> (i32, i32) {
    %c0_i32 = arith.constant 0 : i32
    %c0_i32_0 = arith.constant 0 : i32
    %c0_i32_1 = arith.constant 0 : i32
    return %c0_i32, %c0_i32_0 : i32, i32
  }
  func.func @transform_36(%arg0: i32) -> (i32, i32) {
    %c0_i32 = arith.constant 0 : i32
    %c0_i32_0 = arith.constant 0 : i32
    %c0_i32_1 = arith.constant 0 : i32
    return %c0_i32, %c0_i32_0 : i32, i32
  }
  func.func @transform_37(%arg0: i32) -> (i32, i32) {
    %c0_i32 = arith.constant 0 : i32
    %c0_i32_0 = arith.constant 0 : i32
    %c0_i32_1 = arith.constant 0 : i32
    return %c0_i32, %c0_i32_0 : i32, i32
  }
}

</mosaic_0001>

<bundles_post_ra>
// kernel: unet_forward.1
= control target key start
LH: loop header
LB: loop body
LE: loop exit
PB: predicated region body
PF: predicated region fallthrough
CT: control target
= control target key end

     0   :  { %s21115_s6 = smov 1   ;;  %s21116_s10 = smov 2   ;;  %s22684_s0 = inlined_call_operand.smem [shape: u32[38], index: -1, kind: input, shape index: {}] }
   0x1   :  { %s21205_s5 = sld [smem:[%s22684_s0]]   ;;  %s21117_s14 = smov 3  }
   0x2   :  { %s21210_s9 = sld [smem:[%s22684_s0 + %s21115_s6]]   ;;  %s21118_s18 = smov 4  }
   0x3   :  { %s21215_s13 = sld [smem:[%s22684_s0 + %s21116_s10]]   ;;  %s21119_s22 = smov 5  }
   0x4   :  { %s21220_s17 = sld [smem:[%s22684_s0 + %s21117_s14]]   ;;  %s21120_s26 = smov 6  }
   0x5   :  { %s21225_s21 = sld [smem:[%s22684_s0 + %s21118_s18]]   ;;  %s21121_s30 = smov 7  }
   0x6   :  { %s21230_s25 = sld [smem:[%s22684_s0 + %s21119_s22]]   ;;  %s21122_s4 = smov 8  }
   0x7   :  { %22705 = sst [smem:[#allocation87_spill]] %s21205_s5  ;;  %s21123_s10 = smov 9  }
   0x8   :  { %22706 = sst [smem:[#allocation88_spill]] %s21210_s9  ;;  %s21124_s15 = smov 10  }
   0x9   :  { %s21235_s29 = sld [smem:[%s22684_s0 + %s21120_s26]]   ;;  %s21125_s20 = smov 11  }
   0xa   :  { %22707 = sst [smem:[#allocation89_spill]] %s21220_s17  ;;  %s21126_s26 = smov 12  }
   0xb   :  { %s21240_s3 = sld [smem:[%s22684_s0 + %s21121_s30]]   ;;  %s21127_s1 = smov 13  }
   0xc   :  { %22708 = sst [smem:[#allocation90_spill]] %s21230_s25  ;;  %s21128_s7 = smov 14  }
   0xd   :  { %s21245_s8 = sld [smem:[%s22684_s0 + %s21122_s4]]   ;;  %s21130_s22 = smov 16  }
   0xe   :  { %s21250_s14 = sld [smem:[%s22684_s0 + %s21123_s10]]   ;;  %s21131_s28 = smov 17  }
   0xf   :  { %s21255_s19 = sld [smem:[%s22684_s0 + %s21124_s15]]   ;;  %s21129_s15 = smov 15  }
  0x10   :  { %s21260_s24 = sld [smem:[%s22684_s0 + %s21125_s20]]  }
  0x11   :  { %22709 = sst [smem:[#allocation91_spill]] %s21240_s3 }
  0x12   :  { %s21265_s30 = sld [smem:[%s22684_s0 + %s21126_s26]]  }
  0x13   :  { %s21270_s6 = sld [smem:[%s22684_s0 + %s21127_s1]]  }
  0x14   :  { %22710 = sst [smem:[#allocation92_spill]] %s21250_s14 }
  0x15   :  { %s21275_s12 = sld [smem:[%s22684_s0 + %s21128_s7]]   ;;  %s21132_s7 = smov 18  }
  0x16   :  { %22711 = sst [smem:[#allocation93_spill]] %s21260_s24 }
  0x17   :  { %s21280_s20 = sld [smem:[%s22684_s0 + %s21129_s15]]   ;;  %s21133_s15 = smov 19  }
  0x18   :  { %s21285_s27 = sld [smem:[%s22684_s0 + %s21130_s22]]   ;;  %s21134_s22 = smov 20  }
  0x19   :  { %22712 = sst [smem:[#allocation94_spill]] %s21270_s6 }
  0x1a   :  { %s21290_s4 = sld [smem:[%s22684_s0 + %s21131_s28]]   ;;  %s21135_s28 = smov 21  }
  0x1b   :  { %s21295_s5 = sld [smem:[%s22684_s0 + %s21132_s7]]   ;;  %s21136_s7 = smov 22  }
  0x1c   :  { %s21305_s6 = sld [smem:[%s22684_s0 + %s21134_s22]]   ;;  %s21138_s22 = smov 24  }
  0x1d   :  { %22713 = sst [smem:[#allocation95_spill]] %s21280_s20 }
  0x1e   :  { %s21300_s20 = sld [smem:[%s22684_s0 + %s21133_s15]]   ;;  %s21137_s15 = smov 23  }
  0x1f   :  { %s21315_s24 = sld [smem:[%s22684_s0 + %s21136_s7]]   ;;  %s21140_s7 = smov 26  }
  0x20   :  { %22714 = sst [smem:[#allocation96_spill]] %s21290_s4 }
  0x21   :  { %s21310_s4 = sld [smem:[%s22684_s0 + %s21135_s28]]   ;;  %s21139_s28 = smov 25  }
  0x22   :  { %s21325_s14 = sld [smem:[%s22684_s0 + %s21138_s22]]   ;;  %s21142_s22 = smov 28  }
  0x23   :  { %s21335_s3 = sld [smem:[%s22684_s0 + %s21140_s7]]   ;;  %s21144_s7 = smov 30  }
  0x24   :  { %22715 = sst [smem:[#allocation97_spill]] %s21300_s20 }
  0x25   :  { %s21320_s20 = sld [smem:[%s22684_s0 + %s21137_s15]]   ;;  %s21141_s15 = smov 27  }
  0x26   :  { %s21345_s25 = sld [smem:[%s22684_s0 + %s21142_s22]]   ;;  %s21146_s22 = smov 32  }
  0x27   :  { %22716 = sst [smem:[#allocation98_spill]] %s21310_s4 }
  0x28   :  { %s21330_s4 = sld [smem:[%s22684_s0 + %s21139_s28]]   ;;  %s21143_s28 = smov 29  }
  0x29   :  { %s21355_s17 = sld [smem:[%s22684_s0 + %s21144_s7]]   ;;  %s21148_s7 = smov 34  }
  0x2a   :  { %s21365_s9 = sld [smem:[%s22684_s0 + %s21146_s22]]   ;;  %s21150_s22 = smov 36  }
  0x2b   :  { %22717 = sst [smem:[#allocation99_spill]] %s21320_s20 }
  0x2c   :  { %s21340_s20 = sld [smem:[%s22684_s0 + %s21141_s15]]   ;;  %s21145_s15 = smov 31  }
  0x2e   :  { %22718 = sst [smem:[#allocation100_spill]] %s21330_s4 }
  0x2f   :  { %s21350_s4 = sld [smem:[%s22684_s0 + %s21143_s28]]   ;;  %s21147_s28 = smov 33  }
  0x30   :  { %22721 = sst [smem:[#allocation103_spill]] %s21355_s17 }
  0x31   :  { %22723 = sst [smem:[#allocation105_spill]] %s21365_s9 }
  0x32   :  { %22719 = sst [smem:[#allocation101_spill]] %s21340_s20 }
  0x33   :  { %s21360_s20 = sld [smem:[%s22684_s0 + %s21145_s15]]   ;;  %s21149_s15 = smov 35  }
  0x34   :  { %s21375_s17 = sld [smem:[%s22684_s0 + %s21148_s7]]  }
  0x35   :  { %22720 = sst [smem:[#allocation102_spill]] %s21350_s4 }
  0x36   :  { %s21370_s4 = sld [smem:[%s22684_s0 + %s21147_s28]]   ;;  %s21151_s28 = smov 37  }
  0x37   :  { %s21385_s9 = sld [smem:[%s22684_s0 + %s21150_s22]]  }
  0x39   :  { %22722 = sst [smem:[#allocation104_spill]] %s21360_s20 }
  0x3a   :  { %s21380_s20 = sld [smem:[%s22684_s0 + %s21149_s15]]  }
  0x3c   :  { %22724 = sst [smem:[#allocation106_spill]] %s21370_s4 }
  0x3d   :  { %s21390_s4 = sld [smem:[%s22684_s0 + %s21151_s28]]  }
  0x3e   :  { %80 = vsyncpa [#allocation14], 0 }
  0x3f   :  { %81 = vsyncpa [#allocation16], 0 }
  0x40   :  { %82 = vsyncpa [#allocation19], 0 }
  0x41   :  { %83 = vsyncpa [#allocation22], 0 }
  0x42   :  { %84 = vsyncpa [#allocation25], 0 }
  0x43   :  { %85 = vsyncpa [#allocation28], 0 }
  0x44   :  { %86 = vsyncpa [#allocation31], 0 }
  0x45   :  { %87 = vsyncpa [#allocation34], 0 }
  0x46   :  { %88 = vsyncpa [#allocation37], 0 }
  0x47   :  { %89 = vsyncpa [#allocation40], 0 }
  0x48   :  { %90 = vsyncpa [#allocation43], 0 }
  0x49   :  { %91 = vsyncpa [#allocation46], 0 }
  0x4a   :  { %92 = vsyncpa [#allocation49], 0 }
  0x4b   :  { %93 = vsyncpa [#allocation52], 0 }
  0x4c   :  { %94 = vsyncpa [#allocation55], 0 }
  0x4d   :  { %95 = vsyncpa [#allocation58], 0 }
  0x4e   :  { %96 = vsyncpa [#allocation61], 0 }
  0x4f   :  { %97 = vsyncpa [#allocation64], 0 }
  0x50   :  { %98 = vsyncpa [#allocation67], 0  ;;  %s21152_s0 = smov [#allocation15]   ;;  %s20285_s10 = scalar_lea.hbm %s21215_s13, 6144 }
  0x51   :  { %s118_s7 = sshll.u32 %s21152_s0, 4  ;;  %p20286_p0 = scmp.ne.s32.totalorder %s21215_s13, %s20285_s10  ;;  %s119_s7 = int_to_ptr.vmem [resolvable:$true] %s118_s7 }
  0x52   :  { %p20289_p1 = scmp.lt.u32.totalorder %s20285_s10, %s21215_s13 }
  0x54   :  { %p20291_p2 = pnand %p20289_p1, %p20286_p0 }
  0x56   :  { %20294 = shalt.err (!%p20291_p2)
}
  0x57   :  { %s20295_s11 = scalar_lea.vmem %s119_s7, 6144  ;;  %p20300_p4 = scmp.lt.s32.totalorder %s119_s7, %s119_s7 }
  0x58   :  { %p20296_p3 = scmp.ne.s32.totalorder %s119_s7, %s20295_s11  ;;  %p20301_p5 = scmp.lt.s32.totalorder %s20295_s11, %s20295_s11 }
  0x5a   :  { %p20302_p6 = por %p20301_p5, %p20300_p4 }
  0x5c   :  { %p20303_p7 = pnand %p20302_p6, %p20296_p3 }
  0x5e   :  { %20306 = shalt.err (!%p20303_p7)
}
  0x5f   :  { %s21153_s15 = smov 128   ;;  %s21154_s16 = smov 8  }
  0x60   :  { %124 = dma.hbm_to_vmem [thread:$0]  %s21215_s13, 6144, %s119_s7, [#allocation16], %s21153_s15, %s21153_s15, %s21154_s16  }
  0x61   :  { %s21155_s18 = smov [#allocation18]   ;;  %s21156_s23 = smov [#allocation21]  }
  0x62   :  { %s142_s22 = sshll.u32 %s21155_s18, 4  ;;  %s166_s26 = sshll.u32 %s21156_s23, 4  ;;  %s143_s22 = int_to_ptr.vmem [resolvable:$true] %s142_s22  ;;  %s167_s26 = int_to_ptr.vmem [resolvable:$true] %s166_s26 }
  0x63   :  { %s20307_s28 = scalar_lea.hbm %s21225_s21, 1536 }
  0x64   :  { %p20308_p8 = scmp.ne.s32.totalorder %s21225_s21, %s20307_s28  ;;  %p20311_p9 = scmp.lt.u32.totalorder %s20307_s28, %s21225_s21 }
  0x66   :  { %p20313_p10 = pnand %p20311_p9, %p20308_p8 }
  0x68   :  { %20316 = shalt.err (!%p20313_p10)
}
  0x69   :  { %s20317_s1 = scalar_lea.vmem %s143_s22, 1536  ;;  %p20322_p12 = scmp.lt.s32.totalorder %s143_s22, %s143_s22 }
  0x6a   :  { %p20318_p11 = scmp.ne.s32.totalorder %s143_s22, %s20317_s1  ;;  %p20323_p13 = scmp.lt.s32.totalorder %s20317_s1, %s20317_s1 }
  0x6c   :  { %p20324_p0 = por %p20323_p13, %p20322_p12 }
  0x6e   :  { %p20325_p1 = pnand %p20324_p0, %p20318_p11 }
  0x70   :  { %20328 = shalt.err (!%p20325_p1)
}
  0x71   :  { %s21157_s2 = smov 64   ;;  %s21158_s13 = smov 4  }
  0x72   :  { %148 = dma.hbm_to_vmem [thread:$0]  %s21225_s21, 1536, %s143_s22, [#allocation19], %s21157_s2, %s21157_s2, %s21158_s13  }
  0x73   :  { %s20329_s0 = scalar_lea.hbm %s21235_s29, 6144 }
  0x74   :  { %p20330_p2 = scmp.ne.s32.totalorder %s21235_s29, %s20329_s0  ;;  %p20333_p3 = scmp.lt.u32.totalorder %s20329_s0, %s21235_s29 }
  0x76   :  { %p20335_p4 = pnand %p20333_p3, %p20330_p2 }
  0x78   :  { %20338 = shalt.err (!%p20335_p4)
}
  0x79   :  { %s20339_s7 = scalar_lea.vmem %s167_s26, 6144  ;;  %p20344_p6 = scmp.lt.s32.totalorder %s167_s26, %s167_s26 }
  0x7a   :  { %p20340_p5 = scmp.ne.s32.totalorder %s167_s26, %s20339_s7  ;;  %p20345_p7 = scmp.lt.s32.totalorder %s20339_s7, %s20339_s7 }
  0x7c   :  { %p20346_p8 = por %p20345_p7, %p20344_p6 }
  0x7e   :  { %p20347_p9 = pnand %p20346_p8, %p20340_p5 }
  0x80   :  { %20350 = shalt.err (!%p20347_p9)
}
  0x81   :  { %172 = dma.hbm_to_vmem [thread:$0]  %s21235_s29, 6144, %s167_s26, [#allocation22], %s21153_s15, %s21153_s15, %s21154_s16  }
  0x82   :  { %s21159_s21 = smov [#allocation24]   ;;  %s21160_s11 = smov [#allocation27]  }
  0x83   :  { %s190_s10 = sshll.u32 %s21159_s21, 4  ;;  %s214_s18 = sshll.u32 %s21160_s11, 4  ;;  %s191_s10 = int_to_ptr.vmem [resolvable:$true] %s190_s10  ;;  %s215_s18 = int_to_ptr.vmem [resolvable:$true] %s214_s18 }
  0x84   :  { %s20351_s22 = scalar_lea.hbm %s21245_s8, 24576 }
  0x85   :  { %p20352_p10 = scmp.ne.s32.totalorder %s21245_s8, %s20351_s22  ;;  %p20355_p11 = scmp.lt.u32.totalorder %s20351_s22, %s21245_s8 }
  0x87   :  { %p20357_p12 = pnand %p20355_p11, %p20352_p10 }
  0x89   :  { %20360 = shalt.err (!%p20357_p12)
}
  0x8a   :  { %s20361_s23 = scalar_lea.vmem %s191_s10, 24576  ;;  %p20366_p0 = scmp.lt.s32.totalorder %s191_s10, %s191_s10 }
  0x8b   :  { %p20362_p13 = scmp.ne.s32.totalorder %s191_s10, %s20361_s23  ;;  %p20367_p1 = scmp.lt.s32.totalorder %s20361_s23, %s20361_s23 }
  0x8d   :  { %p20368_p2 = por %p20367_p1, %p20366_p0 }
  0x8f   :  { %p20369_p3 = pnand %p20368_p2, %p20362_p13 }
  0x91   :  { %20372 = shalt.err (!%p20369_p3)
}
  0x92   :  { %s21161_s28 = smov 256   ;;  %s21162_s29 = smov 16  }
  0x93   :  { %196 = dma.hbm_to_vmem [thread:$0]  %s21245_s8, 24576, %s191_s10, [#allocation25], %s21161_s28, %s21161_s28, %s21162_s29  }
  0x94   :  { %s20373_s26 = scalar_lea.hbm %s21255_s19, 24576 }
  0x95   :  { %p20374_p4 = scmp.ne.s32.totalorder %s21255_s19, %s20373_s26  ;;  %p20377_p5 = scmp.lt.u32.totalorder %s20373_s26, %s21255_s19 }
  0x97   :  { %p20379_p6 = pnand %p20377_p5, %p20374_p4 }
  0x99   :  { %20382 = shalt.err (!%p20379_p6)
}
  0x9a   :  { %s20383_s1 = scalar_lea.vmem %s215_s18, 24576  ;;  %p20388_p8 = scmp.lt.s32.totalorder %s215_s18, %s215_s18 }
  0x9b   :  { %p20384_p7 = scmp.ne.s32.totalorder %s215_s18, %s20383_s1  ;;  %p20389_p9 = scmp.lt.s32.totalorder %s20383_s1, %s20383_s1 }
  0x9d   :  { %p20390_p10 = por %p20389_p9, %p20388_p8 }
  0x9f   :  { %p20391_p11 = pnand %p20390_p10, %p20384_p7 }
  0xa1   :  { %20394 = shalt.err (!%p20391_p11)
}
  0xa2   :  { %220 = dma.hbm_to_vmem [thread:$0]  %s21255_s19, 24576, %s215_s18, [#allocation28], %s21161_s28, %s21161_s28, %s21162_s29  }
  0xa3   :  { %s21163_s8 = smov [#allocation30]   ;;  %s21164_s7 = smov [#allocation33]  }
  0xa4   :  { %s238_s0 = sshll.u32 %s21163_s8, 4  ;;  %s261_s21 = sshll.u32 %s21164_s7, 4  ;;  %s239_s0 = int_to_ptr.vmem [resolvable:$true] %s238_s0  ;;  %s262_s21 = int_to_ptr.vmem [resolvable:$true] %s261_s21 }
  0xa5   :  { %s20395_s10 = scalar_lea.hbm %s21265_s30, 12288 }
  0xa6   :  { %p20396_p12 = scmp.ne.s32.totalorder %s21265_s30, %s20395_s10  ;;  %p20399_p13 = scmp.lt.u32.totalorder %s20395_s10, %s21265_s30 }
  0xa8   :  { %p20401_p0 = pnand %p20399_p13, %p20396_p12 }
  0xaa   :  { %20404 = shalt.err (!%p20401_p0)
}
  0xab   :  { %s20405_s11 = scalar_lea.vmem %s239_s0, 12288  ;;  %p20410_p2 = scmp.lt.s32.totalorder %s239_s0, %s239_s0 }
  0xac   :  { %p20406_p1 = scmp.ne.s32.totalorder %s239_s0, %s20405_s11  ;;  %p20411_p3 = scmp.lt.s32.totalorder %s20405_s11, %s20405_s11 }
  0xae   :  { %p20412_p4 = por %p20411_p3, %p20410_p2 }
  0xb0   :  { %p20413_p5 = pnand %p20412_p4, %p20406_p1 }
  0xb2   :  { %20416 = shalt.err (!%p20413_p5)
}
  0xb3   :  { %244 = dma.hbm_to_vmem [thread:$0]  %s21265_s30, 12288, %s239_s0, [#allocation31], %s21153_s15, %s21153_s15, %s21154_s16  }
  0xb4   :  { %s20417_s19 = scalar_lea.hbm %s21275_s12, 32 }
  0xb5   :  { %p20418_p6 = scmp.ne.s32.totalorder %s21275_s12, %s20417_s19  ;;  %p20421_p7 = scmp.lt.u32.totalorder %s20417_s19, %s21275_s12 }
  0xb7   :  { %p20423_p8 = pnand %p20421_p7, %p20418_p6 }
  0xb9   :  { %20426 = shalt.err (!%p20423_p8)
}
  0xba   :  { %s20427_s18 = scalar_lea.vmem %s262_s21, 32  ;;  %p20432_p10 = scmp.lt.s32.totalorder %s262_s21, %s262_s21 }
  0xbb   :  { %p20428_p9 = scmp.ne.s32.totalorder %s262_s21, %s20427_s18  ;;  %p20433_p11 = scmp.lt.s32.totalorder %s20427_s18, %s20427_s18 }
  0xbd   :  { %p20434_p12 = por %p20433_p11, %p20432_p10 }
  0xbf   :  { %p20435_p13 = pnand %p20434_p12, %p20428_p9 }
  0xc1   :  { %20438 = shalt.err (!%p20435_p13)
}
  0xc2   :  { %264 = dma.hbm_to_vmem [thread:$0]  %s21275_s12, 32, %s262_s21, [#allocation34]  }
  0xc3   :  { %s21165_s22 = smov [#allocation36]   ;;  %s21166_s23 = smov [#allocation39]  }
  0xc4   :  { %s281_s30 = sshll.u32 %s21165_s22, 4  ;;  %s301_s26 = sshll.u32 %s21166_s23, 4  ;;  %s282_s30 = int_to_ptr.vmem [resolvable:$true] %s281_s30  ;;  %s302_s26 = int_to_ptr.vmem [resolvable:$true] %s301_s26 }
  0xc5   :  { %s20439_s1 = scalar_lea.hbm %s21285_s27, 16 }
  0xc6   :  { %p20440_p0 = scmp.ne.s32.totalorder %s21285_s27, %s20439_s1  ;;  %p20443_p1 = scmp.lt.u32.totalorder %s20439_s1, %s21285_s27 }
  0xc8   :  { %p20445_p2 = pnand %p20443_p1, %p20440_p0 }
  0xca   :  { %20448 = shalt.err (!%p20445_p2)
}
  0xcb   :  { %s20449_s8 = scalar_lea.vmem %s282_s30, 16  ;;  %s20453_s0 = scalar_lea.vmem %s282_s30, 32 }
  0xcc   :  { %p20450_p3 = scmp.ne.s32.totalorder %s282_s30, %s20449_s8  ;;  %p20454_p4 = scmp.lt.s32.totalorder %s282_s30, %s282_s30 }
  0xcd   :  { %p20455_p5 = scmp.lt.s32.totalorder %s20453_s0, %s20449_s8 }
  0xcf   :  { %p20456_p6 = por %p20455_p5, %p20454_p4 }
  0xd1   :  { %p20457_p7 = pnand %p20456_p6, %p20450_p3 }
  0xd3   :  { %20460 = shalt.err (!%p20457_p7)
}
  0xd4   :  { %284 = dma.hbm_to_vmem [thread:$0]  %s21285_s27, 16, %s282_s30, [#allocation37]  }
  0xd5   :  { %s20461_s12 = scalar_lea.hbm %s21295_s5, 64 }
  0xd6   :  { %p20462_p8 = scmp.ne.s32.totalorder %s21295_s5, %s20461_s12  ;;  %p20465_p9 = scmp.lt.u32.totalorder %s20461_s12, %s21295_s5 }
  0xd8   :  { %p20467_p10 = pnand %p20465_p9, %p20462_p8 }
  0xda   :  { %20470 = shalt.err (!%p20467_p10)
}
  0xdb   :  { %s20471_s7 = scalar_lea.vmem %s302_s26, 64  ;;  %p20476_p12 = scmp.lt.s32.totalorder %s302_s26, %s302_s26 }
  0xdc   :  { %p20472_p11 = scmp.ne.s32.totalorder %s302_s26, %s20471_s7  ;;  %p20477_p13 = scmp.lt.s32.totalorder %s20471_s7, %s20471_s7 }
  0xde   :  { %p20478_p0 = por %p20477_p13, %p20476_p12 }
  0xe0   :  { %p20479_p1 = pnand %p20478_p0, %p20472_p11 }
  0xe2   :  { %20482 = shalt.err (!%p20479_p1)
}
  0xe3   :  { %304 = dma.hbm_to_vmem [thread:$0]  %s21295_s5, 64, %s302_s26, [#allocation40]  }
  0xe4   :  { %s21167_s21 = smov [#allocation42]   ;;  %s21168_s10 = smov [#allocation45]  }
  0xe5   :  { %s321_s27 = sshll.u32 %s21167_s21, 4  ;;  %s340_s11 = sshll.u32 %s21168_s10, 4  ;;  %s322_s27 = int_to_ptr.vmem [resolvable:$true] %s321_s27  ;;  %s341_s11 = int_to_ptr.vmem [resolvable:$true] %s340_s11 }
  0xe6   :  { %s20483_s19 = scalar_lea.hbm %s21305_s6, 32 }
  0xe7   :  { %p20484_p2 = scmp.ne.s32.totalorder %s21305_s6, %s20483_s19  ;;  %p20487_p3 = scmp.lt.u32.totalorder %s20483_s19, %s21305_s6 }
  0xe9   :  { %p20489_p4 = pnand %p20487_p3, %p20484_p2 }
  0xeb   :  { %20492 = shalt.err (!%p20489_p4)
}
  0xec   :  { %s20493_s18 = scalar_lea.vmem %s322_s27, 32  ;;  %p20498_p6 = scmp.lt.s32.totalorder %s322_s27, %s322_s27 }
  0xed   :  { %p20494_p5 = scmp.ne.s32.totalorder %s322_s27, %s20493_s18  ;;  %p20499_p7 = scmp.lt.s32.totalorder %s20493_s18, %s20493_s18 }
  0xef   :  { %p20500_p8 = por %p20499_p7, %p20498_p6 }
  0xf1   :  { %p20501_p9 = pnand %p20500_p8, %p20494_p5 }
  0xf3   :  { %20504 = shalt.err (!%p20501_p9)
}
  0xf4   :  { %324 = dma.hbm_to_vmem [thread:$0]  %s21305_s6, 32, %s322_s27, [#allocation43]  }
  0xf5   :  { %s20505_s5 = scalar_lea.hbm %s21315_s24, 320 }
  0xf6   :  { %p20506_p10 = scmp.ne.s32.totalorder %s21315_s24, %s20505_s5  ;;  %p20509_p11 = scmp.lt.u32.totalorder %s20505_s5, %s21315_s24 }
  0xf8   :  { %p20511_p12 = pnand %p20509_p11, %p20506_p10 }
  0xfa   :  { %20514 = shalt.err (!%p20511_p12)
}
  0xfb   :  { %s20515_s22 = scalar_lea.vmem %s341_s11, 320  ;;  %p20520_p0 = scmp.lt.s32.totalorder %s341_s11, %s341_s11 }
  0xfc   :  { %p20516_p13 = scmp.ne.s32.totalorder %s341_s11, %s20515_s22  ;;  %p20521_p1 = scmp.lt.s32.totalorder %s20515_s22, %s20515_s22 }
  0xfe   :  { %p20522_p2 = por %p20521_p1, %p20520_p0 }
 0x100   :  { %p20523_p3 = pnand %p20522_p2, %p20516_p13 }
 0x102   :  { %20526 = shalt.err (!%p20523_p3)
}
 0x103   :  { %346 = dma.hbm_to_vmem [thread:$0]  %s21315_s24, 320, %s341_s11, [#allocation46], %s21157_s2, %s21157_s2, %s21158_s13  }
 0x104   :  { %s21169_s6 = smov [#allocation48]   ;;  %s21170_s23 = smov [#allocation51]  }
 0x105   :  { %s364_s30 = sshll.u32 %s21169_s6, 4  ;;  %s388_s26 = sshll.u32 %s21170_s23, 4  ;;  %s365_s30 = int_to_ptr.vmem [resolvable:$true] %s364_s30  ;;  %s389_s26 = int_to_ptr.vmem [resolvable:$true] %s388_s26 }
 0x106   :  { %s20527_s1 = scalar_lea.hbm %s21325_s14, 128 }
 0x107   :  { %p20528_p4 = scmp.ne.s32.totalorder %s21325_s14, %s20527_s1  ;;  %p20531_p5 = scmp.lt.u32.totalorder %s20527_s1, %s21325_s14 }
 0x109   :  { %p20533_p6 = pnand %p20531_p5, %p20528_p4 }
 0x10b   :  { %20536 = shalt.err (!%p20533_p6)
}
 0x10c   :  { %s20537_s8 = scalar_lea.vmem %s365_s30, 128  ;;  %p20542_p8 = scmp.lt.s32.totalorder %s365_s30, %s365_s30 }
 0x10d   :  { %p20538_p7 = scmp.ne.s32.totalorder %s365_s30, %s20537_s8  ;;  %p20543_p9 = scmp.lt.s32.totalorder %s20537_s8, %s20537_s8 }
 0x10f   :  { %p20544_p10 = por %p20543_p9, %p20542_p8 }
 0x111   :  { %p20545_p11 = pnand %p20544_p10, %p20538_p7 }
 0x113   :  { %20548 = shalt.err (!%p20545_p11)
}
 0x114   :  { %370 = dma.hbm_to_vmem [thread:$0]  %s21325_s14, 128, %s365_s30, [#allocation49], %s21157_s2, %s21157_s2, %s21158_s13  }
 0x115   :  { %s20549_s24 = scalar_lea.hbm %s21335_s3, 192 }
 0x116   :  { %p20550_p12 = scmp.ne.s32.totalorder %s21335_s3, %s20549_s24  ;;  %p20553_p13 = scmp.lt.u32.totalorder %s20549_s24, %s21335_s3 }
 0x118   :  { %p20555_p0 = pnand %p20553_p13, %p20550_p12 }
 0x11a   :  { %20558 = shalt.err (!%p20555_p0)
}
 0x11b   :  { %s20559_s0 = scalar_lea.vmem %s389_s26, 192  ;;  %p20564_p2 = scmp.lt.s32.totalorder %s389_s26, %s389_s26 }
 0x11c   :  { %p20560_p1 = scmp.ne.s32.totalorder %s389_s26, %s20559_s0  ;;  %p20565_p3 = scmp.lt.s32.totalorder %s20559_s0, %s20559_s0 }
 0x11e   :  { %p20566_p4 = por %p20565_p3, %p20564_p2 }
 0x120   :  { %p20567_p5 = pnand %p20566_p4, %p20560_p1 }
 0x122   :  { %20570 = shalt.err (!%p20567_p5)
}
 0x123   :  { %394 = dma.hbm_to_vmem [thread:$0]  %s21335_s3, 192, %s389_s26, [#allocation52], %s21157_s2, %s21157_s2, %s21158_s13  }
 0x124   :  { %s21171_s14 = smov [#allocation54]   ;;  %s21172_s7 = smov [#allocation57]  }
 0x125   :  { %s412_s12 = sshll.u32 %s21171_s14, 4  ;;  %s436_s21 = sshll.u32 %s21172_s7, 4  ;;  %s413_s12 = int_to_ptr.vmem [resolvable:$true] %s412_s12  ;;  %s437_s21 = int_to_ptr.vmem [resolvable:$true] %s436_s21 }
 0x126   :  { %s20571_s27 = scalar_lea.hbm %s21345_s25, 128 }
 0x127   :  { %p20572_p6 = scmp.ne.s32.totalorder %s21345_s25, %s20571_s27  ;;  %p20575_p7 = scmp.lt.u32.totalorder %s20571_s27, %s21345_s25 }
 0x129   :  { %p20577_p8 = pnand %p20575_p7, %p20572_p6 }
 0x12b   :  { %20580 = shalt.err (!%p20577_p8)
}
 0x12c   :  { %s20581_s10 = scalar_lea.vmem %s413_s12, 128  ;;  %p20586_p10 = scmp.lt.s32.totalorder %s413_s12, %s413_s12 }
 0x12d   :  { %p20582_p9 = scmp.ne.s32.totalorder %s413_s12, %s20581_s10  ;;  %p20587_p11 = scmp.lt.s32.totalorder %s20581_s10, %s20581_s10 }
 0x12f   :  { %p20588_p12 = por %p20587_p11, %p20586_p10 }
 0x131   :  { %p20589_p13 = pnand %p20588_p12, %p20582_p9 }
 0x133   :  { %20592 = shalt.err (!%p20589_p13)
}
 0x134   :  { %s22725_s3 = sld [smem:[#allocation103_spill]] }
 0x135   :  { %418 = dma.hbm_to_vmem [thread:$0]  %s21345_s25, 128, %s413_s12, [#allocation55], %s21157_s2, %s21157_s2, %s21158_s13  }
 0x13a   :  { %s20593_s11 = scalar_lea.hbm %s22725_s3, 192 }
 0x13b   :  { %p20594_p0 = scmp.ne.s32.totalorder %s22725_s3, %s20593_s11  ;;  %p20597_p1 = scmp.lt.u32.totalorder %s20593_s11, %s22725_s3 }
 0x13d   :  { %p20599_p2 = pnand %p20597_p1, %p20594_p0 }
 0x13f   :  { %20602 = shalt.err (!%p20599_p2)
}
 0x140   :  { %s20603_s19 = scalar_lea.vmem %s437_s21, 192  ;;  %p20608_p4 = scmp.lt.s32.totalorder %s437_s21, %s437_s21 }
 0x141   :  { %p20604_p3 = scmp.ne.s32.totalorder %s437_s21, %s20603_s19  ;;  %p20609_p5 = scmp.lt.s32.totalorder %s20603_s19, %s20603_s19 }
 0x143   :  { %p20610_p6 = por %p20609_p5, %p20608_p4 }
 0x145   :  { %p20611_p7 = pnand %p20610_p6, %p20604_p3 }
 0x147   :  { %20614 = shalt.err (!%p20611_p7)
}
 0x148   :  { %s22726_s18 = sld [smem:[#allocation105_spill]]  ;;  %s21173_s25 = smov [#allocation60]  }
 0x149   :  { %442 = dma.hbm_to_vmem [thread:$0]  %s22725_s3, 192, %s437_s21, [#allocation58], %s21157_s2, %s21157_s2, %s21158_s13  }
 0x14a   :  { %s459_s5 = sshll.u32 %s21173_s25, 4  ;;  %s21174_s22 = smov [#allocation63]   ;;  %s460_s5 = int_to_ptr.vmem [resolvable:$true] %s459_s5 }
 0x14b   :  { %s481_s6 = sshll.u32 %s21174_s22, 4  ;;  %s482_s6 = int_to_ptr.vmem [resolvable:$true] %s481_s6 }
 0x14e   :  { %s20615_s30 = scalar_lea.hbm %s22726_s18, 64 }
 0x14f   :  { %p20616_p8 = scmp.ne.s32.totalorder %s22726_s18, %s20615_s30  ;;  %p20619_p9 = scmp.lt.u32.totalorder %s20615_s30, %s22726_s18 }
 0x151   :  { %p20621_p10 = pnand %p20619_p9, %p20616_p8 }
 0x153   :  { %20624 = shalt.err (!%p20621_p10)
}
 0x154   :  { %s20625_s23 = scalar_lea.vmem %s460_s5, 64  ;;  %p20630_p12 = scmp.lt.s32.totalorder %s460_s5, %s460_s5 }
 0x155   :  { %p20626_p11 = scmp.ne.s32.totalorder %s460_s5, %s20625_s23  ;;  %p20631_p13 = scmp.lt.s32.totalorder %s20625_s23, %s20625_s23 }
 0x157   :  { %p20632_p0 = por %p20631_p13, %p20630_p12 }
 0x159   :  { %p20633_p1 = pnand %p20632_p0, %p20626_p11 }
 0x15b   :  { %20636 = shalt.err (!%p20633_p1)
}
 0x15c   :  { %462 = dma.hbm_to_vmem [thread:$0]  %s22726_s18, 64, %s460_s5, [#allocation61]  }
 0x15d   :  { %s20637_s26 = scalar_lea.hbm %s21375_s17, 32 }
 0x15e   :  { %p20638_p2 = scmp.ne.s32.totalorder %s21375_s17, %s20637_s26  ;;  %p20641_p3 = scmp.lt.u32.totalorder %s20637_s26, %s21375_s17 }
 0x160   :  { %p20643_p4 = pnand %p20641_p3, %p20638_p2 }
 0x162   :  { %20646 = shalt.err (!%p20643_p4)
}
 0x163   :  { %s20647_s1 = scalar_lea.vmem %s482_s6, 32  ;;  %p20652_p6 = scmp.lt.s32.totalorder %s482_s6, %s482_s6 }
 0x164   :  { %p20648_p5 = scmp.ne.s32.totalorder %s482_s6, %s20647_s1  ;;  %p20653_p7 = scmp.lt.s32.totalorder %s20647_s1, %s20647_s1 }
 0x166   :  { %p20654_p8 = por %p20653_p7, %p20652_p6 }
 0x168   :  { %p20655_p9 = pnand %p20654_p8, %p20648_p5 }
 0x16a   :  { %20658 = shalt.err (!%p20655_p9)
}
 0x16b   :  { %s22727_s8 = sld [smem:[#allocation88_spill]]  ;;  %s21175_s24 = smov [#allocation13]  }
 0x16c   :  { %484 = dma.hbm_to_vmem [thread:$0]  %s21375_s17, 32, %s482_s6, [#allocation64]  }
 0x16d   :  { %s106_s0 = sshll.u32 %s21175_s24, 4  ;;  %s21176_s14 = smov [#allocation17]   ;;  %s107_s0 = int_to_ptr.vmem [resolvable:$true] %s106_s0 }
 0x16e   :  { %s130_s12 = sshll.u32 %s21176_s14, 4  ;;  %s131_s12 = int_to_ptr.vmem [resolvable:$true] %s130_s12 }
 0x171   :  { %s20659_s7 = scalar_lea.hbm %s22727_s8, 1536 }
 0x172   :  { %p20660_p10 = scmp.ne.s32.totalorder %s22727_s8, %s20659_s7  ;;  %p20663_p11 = scmp.lt.u32.totalorder %s20659_s7, %s22727_s8 }
 0x174   :  { %p20665_p12 = pnand %p20663_p11, %p20660_p10 }
 0x176   :  { %20668 = shalt.err (!%p20665_p12)
}
 0x177   :  { %s20669_s21 = scalar_lea.vmem %s107_s0, 1536  ;;  %p20674_p0 = scmp.lt.s32.totalorder %s107_s0, %s107_s0 }
 0x178   :  { %p20670_p13 = scmp.ne.s32.totalorder %s107_s0, %s20669_s21  ;;  %p20675_p1 = scmp.lt.s32.totalorder %s20669_s21, %s20669_s21 }
 0x17a   :  { %p20676_p2 = por %p20675_p1, %p20674_p0 }
 0x17c   :  { %p20677_p3 = pnand %p20676_p2, %p20670_p13 }
 0x17e   :  { %20680 = shalt.err (!%p20677_p3)
}
 0x17f   :  { %s22728_s17 = sld [smem:[#allocation89_spill]] }
 0x180   :  { %112 = dma.hbm_to_vmem [thread:$0]  %s22727_s8, 1536, %s107_s0, [#allocation14], %s21153_s15, %s21153_s15, %s21154_s16  }
 0x185   :  { %s20681_s27 = scalar_lea.hbm %s22728_s17, 3072 }
 0x186   :  { %p20682_p4 = scmp.ne.s32.totalorder %s22728_s17, %s20681_s27  ;;  %p20685_p5 = scmp.lt.u32.totalorder %s20681_s27, %s22728_s17 }
 0x188   :  { %p20687_p6 = pnand %p20685_p5, %p20682_p4 }
 0x18a   :  { %20690 = shalt.err (!%p20687_p6)
}
 0x18b   :  { %s20691_s10 = scalar_lea.vmem %s131_s12, 3072  ;;  %p20696_p8 = scmp.lt.s32.totalorder %s131_s12, %s131_s12 }
 0x18c   :  { %p20692_p7 = scmp.ne.s32.totalorder %s131_s12, %s20691_s10  ;;  %p20697_p9 = scmp.lt.s32.totalorder %s20691_s10, %s20691_s10 }
 0x18e   :  { %p20698_p10 = por %p20697_p9, %p20696_p8 }
 0x190   :  { %p20699_p11 = pnand %p20698_p10, %p20692_p7 }
 0x192   :  { %20702 = shalt.err (!%p20699_p11)
}
 0x193   :  { %s22729_s3 = sld [smem:[#allocation90_spill]]  ;;  %s21177_s11 = smov [#allocation20]  }
 0x194   :  { %136 = dma.hbm_to_vmem [thread:$0]  %s22728_s17, 3072, %s131_s12, [#allocation16], %s21157_s2, %s21157_s2, %s21158_s13  }
 0x195   :  { %s154_s19 = sshll.u32 %s21177_s11, 4  ;;  %s21178_s18 = smov [#allocation23]   ;;  %s155_s19 = int_to_ptr.vmem [resolvable:$true] %s154_s19 }
 0x196   :  { %s178_s25 = sshll.u32 %s21178_s18, 4  ;;  %s179_s25 = int_to_ptr.vmem [resolvable:$true] %s178_s25 }
 0x199   :  { %s20703_s5 = scalar_lea.hbm %s22729_s3, 6144 }
 0x19a   :  { %p20704_p12 = scmp.ne.s32.totalorder %s22729_s3, %s20703_s5  ;;  %p20707_p13 = scmp.lt.u32.totalorder %s20703_s5, %s22729_s3 }
 0x19c   :  { %p20709_p0 = pnand %p20707_p13, %p20704_p12 }
 0x19e   :  { %20712 = shalt.err (!%p20709_p0)
}
 0x19f   :  { %s20713_s22 = scalar_lea.vmem %s155_s19, 6144  ;;  %p20718_p2 = scmp.lt.s32.totalorder %s155_s19, %s155_s19 }
 0x1a0   :  { %p20714_p1 = scmp.ne.s32.totalorder %s155_s19, %s20713_s22  ;;  %p20719_p3 = scmp.lt.s32.totalorder %s20713_s22, %s20713_s22 }
 0x1a2   :  { %p20720_p4 = por %p20719_p3, %p20718_p2 }
 0x1a4   :  { %p20721_p5 = pnand %p20720_p4, %p20714_p1 }
 0x1a6   :  { %20724 = shalt.err (!%p20721_p5)
}
 0x1a7   :  { %s22730_s6 = sld [smem:[#allocation91_spill]] }
 0x1a8   :  { %160 = dma.hbm_to_vmem [thread:$0]  %s22729_s3, 6144, %s155_s19, [#allocation19], %s21153_s15, %s21153_s15, %s21154_s16  }
 0x1ad   :  { %s20725_s30 = scalar_lea.hbm %s22730_s6, 24576 }
 0x1ae   :  { %p20726_p6 = scmp.ne.s32.totalorder %s22730_s6, %s20725_s30  ;;  %p20729_p7 = scmp.lt.u32.totalorder %s20725_s30, %s22730_s6 }
 0x1b0   :  { %p20731_p8 = pnand %p20729_p7, %p20726_p6 }
 0x1b2   :  { %20734 = shalt.err (!%p20731_p8)
}
 0x1b3   :  { %s20735_s23 = scalar_lea.vmem %s179_s25, 24576  ;;  %p20740_p10 = scmp.lt.s32.totalorder %s179_s25, %s179_s25 }
 0x1b4   :  { %p20736_p9 = scmp.ne.s32.totalorder %s179_s25, %s20735_s23  ;;  %p20741_p11 = scmp.lt.s32.totalorder %s20735_s23, %s20735_s23 }
 0x1b6   :  { %p20742_p12 = por %p20741_p11, %p20740_p10 }
 0x1b8   :  { %p20743_p13 = pnand %p20742_p12, %p20736_p9 }
 0x1ba   :  { %20746 = shalt.err (!%p20743_p13)
}
 0x1bb   :  { %s22731_s26 = sld [smem:[#allocation92_spill]]  ;;  %s21179_s1 = smov [#allocation26]  }
 0x1bc   :  { %184 = dma.hbm_to_vmem [thread:$0]  %s22730_s6, 24576, %s179_s25, [#allocation22], %s21161_s28, %s21161_s28, %s21162_s29  }
 0x1bd   :  { %s202_s8 = sshll.u32 %s21179_s1, 4  ;;  %s21180_s24 = smov [#allocation29]   ;;  %s203_s8 = int_to_ptr.vmem [resolvable:$true] %s202_s8 }
 0x1be   :  { %s226_s0 = sshll.u32 %s21180_s24, 4  ;;  %s227_s0 = int_to_ptr.vmem [resolvable:$true] %s226_s0 }
 0x1c1   :  { %s20747_s14 = scalar_lea.hbm %s22731_s26, 49152 }
 0x1c2   :  { %p20748_p0 = scmp.ne.s32.totalorder %s22731_s26, %s20747_s14  ;;  %p20751_p1 = scmp.lt.u32.totalorder %s20747_s14, %s22731_s26 }
 0x1c4   :  { %p20753_p2 = pnand %p20751_p1, %p20748_p0 }
 0x1c6   :  { %20756 = shalt.err (!%p20753_p2)
}
 0x1c7   :  { %s20757_s12 = scalar_lea.vmem %s203_s8, 49152  ;;  %p20762_p4 = scmp.lt.s32.totalorder %s203_s8, %s203_s8 }
 0x1c8   :  { %p20758_p3 = scmp.ne.s32.totalorder %s203_s8, %s20757_s12  ;;  %p20763_p5 = scmp.lt.s32.totalorder %s20757_s12, %s20757_s12 }
 0x1ca   :  { %p20764_p6 = por %p20763_p5, %p20762_p4 }
 0x1cc   :  { %p20765_p7 = pnand %p20764_p6, %p20758_p3 }
 0x1ce   :  { %20768 = shalt.err (!%p20765_p7)
}
 0x1cf   :  { %s22732_s7 = sld [smem:[#allocation93_spill]] }
 0x1d0   :  { %208 = dma.hbm_to_vmem [thread:$0]  %s22731_s26, 49152, %s203_s8, [#allocation25], %s21161_s28, %s21161_s28, %s21162_s29  }
 0x1d5   :  { %s20769_s21 = scalar_lea.hbm %s22732_s7, 24576 }
 0x1d6   :  { %p20770_p8 = scmp.ne.s32.totalorder %s22732_s7, %s20769_s21  ;;  %p20773_p9 = scmp.lt.u32.totalorder %s20769_s21, %s22732_s7 }
 0x1d8   :  { %p20775_p10 = pnand %p20773_p9, %p20770_p8 }
 0x1da   :  { %20778 = shalt.err (!%p20775_p10)
}
 0x1db   :  { %s20779_s17 = scalar_lea.vmem %s227_s0, 24576  ;;  %p20784_p12 = scmp.lt.s32.totalorder %s227_s0, %s227_s0 }
 0x1dc   :  { %p20780_p11 = scmp.ne.s32.totalorder %s227_s0, %s20779_s17  ;;  %p20785_p13 = scmp.lt.s32.totalorder %s20779_s17, %s20779_s17 }
 0x1de   :  { %p20786_p0 = por %p20785_p13, %p20784_p12 }
 0x1e0   :  { %p20787_p1 = pnand %p20786_p0, %p20780_p11 }
 0x1e2   :  { %20790 = shalt.err (!%p20787_p1)
}
 0x1e3   :  { %s22733_s27 = sld [smem:[#allocation94_spill]]  ;;  %s21181_s28 = smov [#allocation32]  }
 0x1e4   :  { %232 = dma.hbm_to_vmem [thread:$0]  %s22732_s7, 24576, %s227_s0, [#allocation28], %s21153_s15, %s21153_s15, %s21154_s16  }
 0x1e5   :  { %s251_s29 = sshll.u32 %s21181_s28, 4  ;;  %s21182_s10 = smov [#allocation35]   ;;  %s252_s29 = int_to_ptr.vmem [resolvable:$true] %s251_s29 }
 0x1e6   :  { %s271_s3 = sshll.u32 %s21182_s10, 4  ;;  %s272_s3 = int_to_ptr.vmem [resolvable:$true] %s271_s3 }
 0x1e9   :  { %s20791_s11 = scalar_lea.hbm %s22733_s27, 32 }
 0x1ea   :  { %p20792_p2 = scmp.ne.s32.totalorder %s22733_s27, %s20791_s11  ;;  %p20795_p3 = scmp.lt.u32.totalorder %s20791_s11, %s22733_s27 }
 0x1ec   :  { %p20797_p4 = pnand %p20795_p3, %p20792_p2 }
 0x1ee   :  { %20800 = shalt.err (!%p20797_p4)
}
 0x1ef   :  { %s20801_s19 = scalar_lea.vmem %s252_s29, 32  ;;  %p20806_p6 = scmp.lt.s32.totalorder %s252_s29, %s252_s29 }
 0x1f0   :  { %p20802_p5 = scmp.ne.s32.totalorder %s252_s29, %s20801_s19  ;;  %p20807_p7 = scmp.lt.s32.totalorder %s20801_s19, %s20801_s19 }
 0x1f2   :  { %p20808_p8 = por %p20807_p7, %p20806_p6 }
 0x1f4   :  { %p20809_p9 = pnand %p20808_p8, %p20802_p5 }
 0x1f6   :  { %20812 = shalt.err (!%p20809_p9)
}
 0x1f7   :  { %s22734_s18 = sld [smem:[#allocation95_spill]] }
 0x1f8   :  { %254 = dma.hbm_to_vmem [thread:$0]  %s22733_s27, 32, %s252_s29, [#allocation31]  }
 0x1fd   :  { %s20813_s15 = scalar_lea.hbm %s22734_s18, 16 }
 0x1fe   :  { %p20814_p10 = scmp.ne.s32.totalorder %s22734_s18, %s20813_s15  ;;  %p20817_p11 = scmp.lt.u32.totalorder %s20813_s15, %s22734_s18 }
 0x200   :  { %p20819_p12 = pnand %p20817_p11, %p20814_p10 }
 0x202   :  { %20822 = shalt.err (!%p20819_p12)
}
 0x203   :  { %s20823_s16 = scalar_lea.vmem %s272_s3, 16  ;;  %s20827_s25 = scalar_lea.vmem %s272_s3, 32 }
 0x204   :  { %p20824_p13 = scmp.ne.s32.totalorder %s272_s3, %s20823_s16  ;;  %p20828_p0 = scmp.lt.s32.totalorder %s272_s3, %s272_s3 }
 0x205   :  { %p20829_p1 = scmp.lt.s32.totalorder %s20827_s25, %s20823_s16 }
 0x207   :  { %p20830_p2 = por %p20829_p1, %p20828_p0 }
 0x209   :  { %p20831_p3 = pnand %p20830_p2, %p20824_p13 }
 0x20b   :  { %20834 = shalt.err (!%p20831_p3)
}
 0x20c   :  { %s22735_s5 = sld [smem:[#allocation96_spill]]  ;;  %s21183_s22 = smov [#allocation38]  }
 0x20d   :  { %274 = dma.hbm_to_vmem [thread:$0]  %s22734_s18, 16, %s272_s3, [#allocation34]  }
 0x20e   :  { %s291_s6 = sshll.u32 %s21183_s22, 4  ;;  %s21184_s30 = smov [#allocation41]   ;;  %s292_s6 = int_to_ptr.vmem [resolvable:$true] %s291_s6 }
 0x20f   :  { %s311_s23 = sshll.u32 %s21184_s30, 4  ;;  %s312_s23 = int_to_ptr.vmem [resolvable:$true] %s311_s23 }
 0x212   :  { %s20835_s26 = scalar_lea.hbm %s22735_s5, 32 }
 0x213   :  { %p20836_p4 = scmp.ne.s32.totalorder %s22735_s5, %s20835_s26  ;;  %p20839_p5 = scmp.lt.u32.totalorder %s20835_s26, %s22735_s5 }
 0x215   :  { %p20841_p6 = pnand %p20839_p5, %p20836_p4 }
 0x217   :  { %20844 = shalt.err (!%p20841_p6)
}
 0x218   :  { %s20845_s1 = scalar_lea.vmem %s292_s6, 32  ;;  %p20850_p8 = scmp.lt.s32.totalorder %s292_s6, %s292_s6 }
 0x219   :  { %p20846_p7 = scmp.ne.s32.totalorder %s292_s6, %s20845_s1  ;;  %p20851_p9 = scmp.lt.s32.totalorder %s20845_s1, %s20845_s1 }
 0x21b   :  { %p20852_p10 = por %p20851_p9, %p20850_p8 }
 0x21d   :  { %p20853_p11 = pnand %p20852_p10, %p20846_p7 }
 0x21f   :  { %20856 = shalt.err (!%p20853_p11)
}
 0x220   :  { %s22736_s8 = sld [smem:[#allocation97_spill]] }
 0x221   :  { %294 = dma.hbm_to_vmem [thread:$0]  %s22735_s5, 32, %s292_s6, [#allocation37]  }
 0x226   :  { %s20857_s24 = scalar_lea.hbm %s22736_s8, 64 }
 0x227   :  { %p20858_p12 = scmp.ne.s32.totalorder %s22736_s8, %s20857_s24  ;;  %p20861_p13 = scmp.lt.u32.totalorder %s20857_s24, %s22736_s8 }
 0x229   :  { %p20863_p0 = pnand %p20861_p13, %p20858_p12 }
 0x22b   :  { %20866 = shalt.err (!%p20863_p0)
}
 0x22c   :  { %s20867_s0 = scalar_lea.vmem %s312_s23, 64  ;;  %p20872_p2 = scmp.lt.s32.totalorder %s312_s23, %s312_s23 }
 0x22d   :  { %p20868_p1 = scmp.ne.s32.totalorder %s312_s23, %s20867_s0  ;;  %p20873_p3 = scmp.lt.s32.totalorder %s20867_s0, %s20867_s0 }
 0x22f   :  { %p20874_p4 = por %p20873_p3, %p20872_p2 }
 0x231   :  { %p20875_p5 = pnand %p20874_p4, %p20868_p1 }
 0x233   :  { %20878 = shalt.err (!%p20875_p5)
}
 0x234   :  { %s22737_s14 = sld [smem:[#allocation98_spill]]  ;;  %s21185_s12 = smov [#allocation44]  }
 0x235   :  { %314 = dma.hbm_to_vmem [thread:$0]  %s22736_s8, 64, %s312_s23, [#allocation40]  }
 0x236   :  { %s331_s7 = sshll.u32 %s21185_s12, 4  ;;  %s21186_s21 = smov [#allocation47]   ;;  %s332_s7 = int_to_ptr.vmem [resolvable:$true] %s331_s7 }
 0x237   :  { %s352_s17 = sshll.u32 %s21186_s21, 4  ;;  %s353_s17 = int_to_ptr.vmem [resolvable:$true] %s352_s17 }
 0x23a   :  { %s20879_s27 = scalar_lea.hbm %s22737_s14, 32 }
 0x23b   :  { %p20880_p6 = scmp.ne.s32.totalorder %s22737_s14, %s20879_s27  ;;  %p20883_p7 = scmp.lt.u32.totalorder %s20879_s27, %s22737_s14 }
 0x23d   :  { %p20885_p8 = pnand %p20883_p7, %p20880_p6 }
 0x23f   :  { %20888 = shalt.err (!%p20885_p8)
}
 0x240   :  { %s20889_s28 = scalar_lea.vmem %s332_s7, 32  ;;  %p20894_p10 = scmp.lt.s32.totalorder %s332_s7, %s332_s7 }
 0x241   :  { %p20890_p9 = scmp.ne.s32.totalorder %s332_s7, %s20889_s28  ;;  %p20895_p11 = scmp.lt.s32.totalorder %s20889_s28, %s20889_s28 }
 0x243   :  { %p20896_p12 = por %p20895_p11, %p20894_p10 }
 0x245   :  { %p20897_p13 = pnand %p20896_p12, %p20890_p9 }
 0x247   :  { %20900 = shalt.err (!%p20897_p13)
}
 0x248   :  { %s22738_s29 = sld [smem:[#allocation99_spill]] }
 0x249   :  { %334 = dma.hbm_to_vmem [thread:$0]  %s22737_s14, 32, %s332_s7, [#allocation43]  }
 0x24e   :  { %s20901_s10 = scalar_lea.hbm %s22738_s29, 192 }
 0x24f   :  { %p20902_p0 = scmp.ne.s32.totalorder %s22738_s29, %s20901_s10  ;;  %p20905_p1 = scmp.lt.u32.totalorder %s20901_s10, %s22738_s29 }
 0x251   :  { %p20907_p2 = pnand %p20905_p1, %p20902_p0 }
 0x253   :  { %20910 = shalt.err (!%p20907_p2)
}
 0x254   :  { %s20911_s3 = scalar_lea.vmem %s353_s17, 192  ;;  %p20916_p4 = scmp.lt.s32.totalorder %s353_s17, %s353_s17 }
 0x255   :  { %p20912_p3 = scmp.ne.s32.totalorder %s353_s17, %s20911_s3  ;;  %p20917_p5 = scmp.lt.s32.totalorder %s20911_s3, %s20911_s3 }
 0x257   :  { %p20918_p6 = por %p20917_p5, %p20916_p4 }
 0x259   :  { %p20919_p7 = pnand %p20918_p6, %p20912_p3 }
 0x25b   :  { %20922 = shalt.err (!%p20919_p7)
}
 0x25c   :  { %s22739_s11 = sld [smem:[#allocation100_spill]]  ;;  %s21187_s19 = smov [#allocation50]  }
 0x25d   :  { %358 = dma.hbm_to_vmem [thread:$0]  %s22738_s29, 192, %s353_s17, [#allocation46], %s21157_s2, %s21157_s2, %s21158_s13  }
 0x25e   :  { %s376_s18 = sshll.u32 %s21187_s19, 4  ;;  %s21188_s15 = smov [#allocation53]   ;;  %s377_s18 = int_to_ptr.vmem [resolvable:$true] %s376_s18 }
 0x25f   :  { %s400_s16 = sshll.u32 %s21188_s15, 4  ;;  %s401_s16 = int_to_ptr.vmem [resolvable:$true] %s400_s16 }
 0x262   :  { %s20923_s25 = scalar_lea.hbm %s22739_s11, 128 }
 0x263   :  { %p20924_p8 = scmp.ne.s32.totalorder %s22739_s11, %s20923_s25  ;;  %p20927_p9 = scmp.lt.u32.totalorder %s20923_s25, %s22739_s11 }
 0x265   :  { %p20929_p10 = pnand %p20927_p9, %p20924_p8 }
 0x267   :  { %20932 = shalt.err (!%p20929_p10)
}
 0x268   :  { %s20933_s5 = scalar_lea.vmem %s377_s18, 128  ;;  %p20938_p12 = scmp.lt.s32.totalorder %s377_s18, %s377_s18 }
 0x269   :  { %p20934_p11 = scmp.ne.s32.totalorder %s377_s18, %s20933_s5  ;;  %p20939_p13 = scmp.lt.s32.totalorder %s20933_s5, %s20933_s5 }
 0x26b   :  { %p20940_p0 = por %p20939_p13, %p20938_p12 }
 0x26d   :  { %p20941_p1 = pnand %p20940_p0, %p20934_p11 }
 0x26f   :  { %20944 = shalt.err (!%p20941_p1)
}
 0x270   :  { %s22740_s22 = sld [smem:[#allocation101_spill]] }
 0x271   :  { %382 = dma.hbm_to_vmem [thread:$0]  %s22739_s11, 128, %s377_s18, [#allocation49], %s21157_s2, %s21157_s2, %s21158_s13  }
 0x276   :  { %s20945_s6 = scalar_lea.hbm %s22740_s22, 320 }
 0x277   :  { %p20946_p2 = scmp.ne.s32.totalorder %s22740_s22, %s20945_s6  ;;  %p20949_p3 = scmp.lt.u32.totalorder %s20945_s6, %s22740_s22 }
 0x279   :  { %p20951_p4 = pnand %p20949_p3, %p20946_p2 }
 0x27b   :  { %20954 = shalt.err (!%p20951_p4)
}
 0x27c   :  { %s20955_s30 = scalar_lea.vmem %s401_s16, 320  ;;  %p20960_p6 = scmp.lt.s32.totalorder %s401_s16, %s401_s16 }
 0x27d   :  { %p20956_p5 = scmp.ne.s32.totalorder %s401_s16, %s20955_s30  ;;  %p20961_p7 = scmp.lt.s32.totalorder %s20955_s30, %s20955_s30 }
 0x27f   :  { %p20962_p8 = por %p20961_p7, %p20960_p6 }
 0x281   :  { %p20963_p9 = pnand %p20962_p8, %p20956_p5 }
 0x283   :  { %20966 = shalt.err (!%p20963_p9)
}
 0x284   :  { %s22741_s23 = sld [smem:[#allocation102_spill]]  ;;  %s21189_s26 = smov [#allocation56]  }
 0x285   :  { %406 = dma.hbm_to_vmem [thread:$0]  %s22740_s22, 320, %s401_s16, [#allocation52], %s21157_s2, %s21157_s2, %s21158_s13  }
 0x286   :  { %s424_s1 = sshll.u32 %s21189_s26, 4  ;;  %s21190_s8 = smov [#allocation59]   ;;  %s425_s1 = int_to_ptr.vmem [resolvable:$true] %s424_s1 }
 0x287   :  { %s449_s24 = sshll.u32 %s21190_s8, 4  ;;  %s450_s24 = int_to_ptr.vmem [resolvable:$true] %s449_s24 }
 0x28a   :  { %s20967_s0 = scalar_lea.hbm %s22741_s23, 128 }
 0x28b   :  { %p20968_p10 = scmp.ne.s32.totalorder %s22741_s23, %s20967_s0  ;;  %p20971_p11 = scmp.lt.u32.totalorder %s20967_s0, %s22741_s23 }
 0x28d   :  { %p20973_p12 = pnand %p20971_p11, %p20968_p10 }
 0x28f   :  { %20976 = shalt.err (!%p20973_p12)
}
 0x290   :  { %s20977_s14 = scalar_lea.vmem %s425_s1, 128  ;;  %p20982_p0 = scmp.lt.s32.totalorder %s425_s1, %s425_s1 }
 0x291   :  { %p20978_p13 = scmp.ne.s32.totalorder %s425_s1, %s20977_s14  ;;  %p20983_p1 = scmp.lt.s32.totalorder %s20977_s14, %s20977_s14 }
 0x293   :  { %p20984_p2 = por %p20983_p1, %p20982_p0 }
 0x295   :  { %p20985_p3 = pnand %p20984_p2, %p20978_p13 }
 0x297   :  { %20988 = shalt.err (!%p20985_p3)
}
 0x298   :  { %s22742_s12 = sld [smem:[#allocation104_spill]] }
 0x299   :  { %430 = dma.hbm_to_vmem [thread:$0]  %s22741_s23, 128, %s425_s1, [#allocation55], %s21157_s2, %s21157_s2, %s21158_s13  }
 0x29e   :  { %s20989_s7 = scalar_lea.hbm %s22742_s12, 64 }
 0x29f   :  { %p20990_p4 = scmp.ne.s32.totalorder %s22742_s12, %s20989_s7  ;;  %p20993_p5 = scmp.lt.u32.totalorder %s20989_s7, %s22742_s12 }
 0x2a1   :  { %p20995_p6 = pnand %p20993_p5, %p20990_p4 }
 0x2a3   :  { %20998 = shalt.err (!%p20995_p6)
}
 0x2a4   :  { %s20999_s21 = scalar_lea.vmem %s450_s24, 64  ;;  %p21004_p8 = scmp.lt.s32.totalorder %s450_s24, %s450_s24 }
 0x2a5   :  { %p21000_p7 = scmp.ne.s32.totalorder %s450_s24, %s20999_s21  ;;  %p21005_p9 = scmp.lt.s32.totalorder %s20999_s21, %s20999_s21 }
 0x2a7   :  { %p21006_p10 = por %p21005_p9, %p21004_p8 }
 0x2a9   :  { %p21007_p11 = pnand %p21006_p10, %p21000_p7 }
 0x2ab   :  { %21010 = shalt.err (!%p21007_p11)
}
 0x2ac   :  { %s22743_s17 = sld [smem:[#allocation106_spill]]  ;;  %s21191_s27 = smov [#allocation62]  }
 0x2ad   :  { %452 = dma.hbm_to_vmem [thread:$0]  %s22742_s12, 64, %s450_s24, [#allocation58]  }
 0x2ae   :  { %s468_s28 = sshll.u32 %s21191_s27, 4  ;;  %s21192_s29 = smov [#allocation65]   ;;  %s469_s28 = int_to_ptr.vmem [resolvable:$true] %s468_s28 }
 0x2af   :  { %s491_s10 = sshll.u32 %s21192_s29, 4  ;;  %s492_s10 = int_to_ptr.vmem [resolvable:$true] %s491_s10 }
 0x2b2   :  { %s21011_s3 = scalar_lea.hbm %s22743_s17, 128 }
 0x2b3   :  { %p21012_p12 = scmp.ne.s32.totalorder %s22743_s17, %s21011_s3  ;;  %p21015_p13 = scmp.lt.u32.totalorder %s21011_s3, %s22743_s17 }
 0x2b5   :  { %p21017_p0 = pnand %p21015_p13, %p21012_p12 }
 0x2b7   :  { %21020 = shalt.err (!%p21017_p0)
}
 0x2b8   :  { %s21021_s11 = scalar_lea.vmem %s469_s28, 128  ;;  %p21026_p2 = scmp.lt.s32.totalorder %s469_s28, %s469_s28 }
 0x2b9   :  { %p21022_p1 = scmp.ne.s32.totalorder %s469_s28, %s21021_s11  ;;  %p21027_p3 = scmp.lt.s32.totalorder %s21021_s11, %s21021_s11 }
 0x2bb   :  { %p21028_p4 = por %p21027_p3, %p21026_p2 }
 0x2bd   :  { %p21029_p5 = pnand %p21028_p4, %p21022_p1 }
 0x2bf   :  { %21032 = shalt.err (!%p21029_p5)
}
 0x2c0   :  { %474 = dma.hbm_to_vmem [thread:$0]  %s22743_s17, 128, %s469_s28, [#allocation61], %s21157_s2, %s21157_s2, %s21158_s13  }
 0x2c1   :  { %s21033_s19 = scalar_lea.hbm %s21380_s20, 32 }
 0x2c2   :  { %p21034_p6 = scmp.ne.s32.totalorder %s21380_s20, %s21033_s19  ;;  %p21037_p7 = scmp.lt.u32.totalorder %s21033_s19, %s21380_s20 }
 0x2c4   :  { %p21039_p8 = pnand %p21037_p7, %p21034_p6 }
 0x2c6   :  { %21042 = shalt.err (!%p21039_p8)
}
 0x2c7   :  { %s21043_s18 = scalar_lea.vmem %s492_s10, 32  ;;  %p21048_p10 = scmp.lt.s32.totalorder %s492_s10, %s492_s10 }
 0x2c8   :  { %p21044_p9 = scmp.ne.s32.totalorder %s492_s10, %s21043_s18  ;;  %p21049_p11 = scmp.lt.s32.totalorder %s21043_s18, %s21043_s18 }
 0x2ca   :  { %p21050_p12 = por %p21049_p11, %p21048_p10 }
 0x2cc   :  { %p21051_p13 = pnand %p21050_p12, %p21044_p9 }
 0x2ce   :  { %21054 = shalt.err (!%p21051_p13)
}
 0x2cf   :  { %494 = dma.hbm_to_vmem [thread:$0]  %s21380_s20, 32, %s492_s10, [#allocation64]  }
 0x2d0   :  { %s21193_s15 = smov [#allocation66]   ;;  %s21055_s16 = scalar_lea.hbm %s21385_s9, 64 }
 0x2d1   :  { %s501_s13 = sshll.u32 %s21193_s15, 4  ;;  %p21056_p0 = scmp.ne.s32.totalorder %s21385_s9, %s21055_s16  ;;  %s502_s13 = int_to_ptr.vmem [resolvable:$true] %s501_s13 }
 0x2d2   :  { %p21059_p1 = scmp.lt.u32.totalorder %s21055_s16, %s21385_s9 }
 0x2d4   :  { %p21061_p2 = pnand %p21059_p1, %p21056_p0 }
 0x2d6   :  { %21064 = shalt.err (!%p21061_p2)
}
 0x2d7   :  { %s21065_s25 = scalar_lea.vmem %s502_s13, 64  ;;  %p21070_p4 = scmp.lt.s32.totalorder %s502_s13, %s502_s13 }
 0x2d8   :  { %p21066_p3 = scmp.ne.s32.totalorder %s502_s13, %s21065_s25  ;;  %p21071_p5 = scmp.lt.s32.totalorder %s21065_s25, %s21065_s25 }
 0x2da   :  { %p21072_p6 = por %p21071_p5, %p21070_p4 }
 0x2dc   :  { %p21073_p7 = pnand %p21072_p6, %p21066_p3 }
 0x2de   :  { %21076 = shalt.err (!%p21073_p7)
}
 0x2df   :  { %504 = dma.hbm_to_vmem [thread:$0]  %s21385_s9, 64, %s502_s13, [#allocation67]  }
 0x2e0   :  { %21077 = dma.done.wait [#allocation14], 1536  }
 0x2e1   :  { %21078 = vsyncadd [#allocation14], 4294965760 }
 0x2e2   :  { %21079 = dma.done.wait [#allocation16], 9216  }
 0x2e3   :  { %21080 = vsyncadd [#allocation16], 4294958080 }
 0x2e4   :  { %21081 = dma.done.wait [#allocation19], 7680  }
 0x2e5   :  { %21082 = vsyncadd [#allocation19], 4294959616 }
 0x2e6   :  { %21083 = dma.done.wait [#allocation22], 30720  }
 0x2e7   :  { %21084 = vsyncadd [#allocation22], 4294936576 }
 0x2e8   :  { %21085 = dma.done.wait [#allocation25], 73728  }
 0x2e9   :  { %21086 = vsyncadd [#allocation25], 4294893568 }
 0x2ea   :  { %21087 = dma.done.wait [#allocation28], 49152  }
 0x2eb   :  { %21088 = vsyncadd [#allocation28], 4294918144 }
 0x2ec   :  { %21089 = dma.done.wait [#allocation31], 12320  }
 0x2ed   :  { %21090 = vsyncadd [#allocation31], 4294954976 }
 0x2ee   :  { %21091 = dma.done.wait [#allocation34], 48  }
 0x2ef   :  { %21092 = vsyncadd [#allocation34], 4294967248 }
 0x2f0   :  { %21093 = dma.done.wait [#allocation37], 48  }
 0x2f1   :  { %21094 = vsyncadd [#allocation37], 4294967248 }
 0x2f2   :  { %21095 = dma.done.wait [#allocation40], 128  }
 0x2f3   :  { %21096 = vsyncadd [#allocation40], 4294967168 }
 0x2f4   :  { %21097 = dma.done.wait [#allocation43], 64  }
 0x2f5   :  { %21098 = vsyncadd [#allocation43], 4294967232 }
 0x2f6   :  { %21099 = dma.done.wait [#allocation46], 512  }
 0x2f7   :  { %21100 = vsyncadd [#allocation46], 4294966784 }
 0x2f8   :  { %21101 = dma.done.wait [#allocation49], 256  }
 0x2f9   :  { %21102 = vsyncadd [#allocation49], 4294967040 }
 0x2fa   :  { %21103 = dma.done.wait [#allocation52], 512  }
 0x2fb   :  { %21104 = vsyncadd [#allocation52], 4294966784 }
 0x2fc   :  { %21105 = dma.done.wait [#allocation55], 256  }
 0x2fd   :  { %21106 = vsyncadd [#allocation55], 4294967040 }
 0x2fe   :  { %21107 = dma.done.wait [#allocation58], 256  }
 0x2ff   :  { %21108 = vsyncadd [#allocation58], 4294967040 }
 0x300   :  { %21109 = dma.done.wait [#allocation61], 192  }
 0x301   :  { %21110 = vsyncadd [#allocation61], 4294967104 }
 0x302   :  { %21111 = dma.done.wait [#allocation64], 64  }
 0x303   :  { %21112 = vsyncadd [#allocation64], 4294967232 }
 0x304   :  { %21113 = dma.done.wait [#allocation67], 64  }
 0x305   :  { %21114 = vsyncadd [#allocation67], 4294967232  ;;  %s22744_s9 = sld [smem:[#allocation87_spill]]  ;;  %v21194_v0 = vmov 0   ;;  %v18033_v1 = vld [vmem:[#allocation13 + $0x24] ss:$8 sps:$4 sm:$0xff]   ;;  %v965_v44 = vlaneseq }
 0x306   :  { %728 = vmatprep.mubr.bf16.mxu0 %v21194_v0  ;;  %1196 = vmatprep.mubr.bf16.mxu1 %v21194_v0  ;;  %v18035_v2 = vld [vmem:[#allocation13 + $0x20] ss:$8 sps:$4 sm:$0xff]   ;;  %v18036_v3 = vld [vmem:[#allocation13 + $0x34] ss:$8 sps:$4 sm:$0xff]   ;;  %v18038_v4 = vld [vmem:[#allocation13 + $0x30] ss:$8 sps:$4 sm:$0xff]  }
 0x307   :  { %696 = vmatprep.subr.bf16.mxu0 %v18033_v1  ;;  %v18044_v13 = vld [vmem:[#allocation13 + $0x4] ss:$8 sps:$4 sm:$0xff]   ;;  %vm642_vm0 = vsmask.f32 7424  ;;  %v18042_v16 = vld [vmem:[#allocation13] ss:$8 sps:$4 sm:$0xff]  }
 0x308   :  { %697 = vmatpush1.bf16.msra.mxu0 %v18035_v2  ;;  %vm686_vm1 = vcmask 261120   ;;  %v18047_v20 = vld [vmem:[#allocation13 + $0x14] ss:$8 sps:$4 sm:$0xff]   ;;  %v18045_v22 = vld [vmem:[#allocation13 + $0x10] ss:$8 sps:$4 sm:$0xff]   ;;  %vm857_vm2 = vcmask 1046528  }
 0x309   :  { %698 = vmatprep.subr.bf16.mxu0 %v18036_v3  ;;  %v18050_v23 = vld [vmem:[#allocation13 + $0x44] ss:$8 sps:$4 sm:$0xff]   ;;  %v18048_v33 = vld [vmem:[#allocation13 + $0x40] ss:$8 sps:$4 sm:$0xff]   ;;  %v18054_v34 = vld [vmem:[#allocation13 + $0x54] ss:$8 sps:$4 sm:$0xff]  }
 0x30a   :  { %v18052_v35 = vld [vmem:[#allocation13 + $0x50] ss:$8 sps:$4 sm:$0xff]   ;;  %v21632_v45 = vshrl.u32 %v965_v44, 7  ;;  %v963_v47 = vld [vmem:[#allocation32] sm:$0x3]  ;;  %vm1049_vm13 = vcmask 1040384  }
 0x30b   :  { %v614_v5 = vld [vmem:[%s22744_s9] sm:$0xf]  ;;  %v615_v6 = vld [vmem:[%s22744_s9 + $0x4] sm:$0xf]  ;;  %v18040_v8 = vld [vmem:[%s22744_s9 + $0x8] sm:$0xff]   ;;  %vm1039_vm14 = vcmask 277504  }
 0x30c   :  { %v15774_v7 = vcombine.low %v614_v5, %v615_v6  ;;  %v18041_v9 = vld [vmem:[%s22744_s9 + $0x10] ss:$0 sps:$4 sm:$0x33]   ;;  %v651_v12 = vshll.u32 %v18040_v8, 16  ;;  %699 = vmatpush1.bf16.msra.mxu0 %v18038_v4  ;;  %v655_v18 = vshrl.u32 %v18040_v8, 16  ;;  %v859_v32 = vrot.slane %v18040_v8, 1 }
 0x30d   :  { %787 = vmatprep.subr.bf16.mxu0 %v18044_v13  ;;  %v659_v19 = vshll.u32 %v18041_v9, 16  ;;  %v663_v27 = vshrl.u32 %v18041_v9, 16  ;;  %v848_v28 = vld [vmem:[%s22744_s9] sm:$0xe]  ;;  %v861_v38 = vrot.slane %v18041_v9, 1  ;;  %v21635_v50 = vsub.s32 0, %v21632_v45 }
 0x30e   :  { %v644_v10 = vshrl.u32 %v15774_v7, 16  ;;  %v646_v11 = vshll.u32 %v15774_v7, 16  ;;  %v653_v15 = vrot.slane %v651_v12, 1  ;;  %v15792_v30 = vcombine.low %v848_v28, %v615_v6  ;;  %v18051_v36 = vld [vmem:[%s22744_s9 + $0x10] ss:$0 sps:$4 sm:$0x11]  }
 0x30f   :  { %v661_v25 = vrot.slane %v659_v19, 1  ;;  %v862_v39 = vsel %vm857_vm2, %v859_v32, %v861_v38  ;;  %v21638_v53 = vsub.s32 1, %v21632_v45  ;;  %v968_v55 = vrot.slane %v963_v47, %v21635_v50  ;;  %v18056_v44 = vld [vmem:[#allocation54] sm:$0xff]  }
 0x310   :  { %v648_v14 = vrot.slane %v646_v11, 1  ;;  %v657_v24 = vor.u32 %v655_v18, %v653_v15  ;;  %v858_v31 = vrot.slane %v15792_v30, 1  ;;  %vm1278_vm15 = vcmask 130048  }
 0x311   :  { %v665_v29 = vor.u32 %v663_v27, %v661_v25  ;;  %v972_v56 = vrot.slane %v963_v47, %v21638_v53  ;;  %v18057_v47 = vld [vmem:[#allocation56] sm:$0xff]  }
 0x312   :  { %v649_v17 = vor.u32 %v648_v14, %v644_v10  ;;  %v662_v26 = vsel %vm642_vm0, %v657_v24, %v661_v25  ;;  %v860_v37 = vsel %vm857_vm2, %v858_v31, %v859_v32 }
 0x314   :  { %v654_v21 = vsel %vm642_vm0, %v649_v17, %v653_v15 }
 0x315   :  { %15781 = vmatmul.mubr.msk.bf16.vlgmr.msra.gmra.mrb[0].mxu0 %vm686_vm1, %v654_v21 }
 0x316   :  { %738 = vmatprep.mubr.bf16.mxu0 %v21194_v0  ;;  %788 = vmatpush1.bf16.msra.mxu0 %v18042_v16 }
 0x317   :  { %789 = vmatprep.subr.bf16.mxu0 %v18047_v20 }
 0x31a   :  { %790 = vmatpush1.bf16.msra.mxu0 %v18045_v22 }
 0x31b   :  { %892 = vmatprep.subr.bf16.mxu0 %v18050_v23 }
 0x31d   :  { %15782 = vmatmul.mubr.msk.bf16.gmra.mrb[4].mxu0 %vm686_vm1, %v662_v26 }
 0x31e   :  { %748 = vmatprep.mubr.bf16.mxu0 %v21194_v0 }
 0x325   :  { %15783 = vmatmul.mubr.msk.bf16.gmra.mrb[8].mxu0 %vm686_vm1, %v665_v29 }
 0x326   :  { %819 = vmatprep.mubr.bf16.mxu0 %v21194_v0 }
 0x32d   :  { %15789 = vmatmul.mubr.msk.bf16.vlgmr.msra.gmra.mrb[0].mxu0 %vm686_vm1, %v15774_v7 }
 0x32e   :  { %829 = vmatprep.mubr.bf16.mxu0 %v21194_v0  ;;  %893 = vmatpush1.bf16.msra.mxu0 %v18048_v33 }
 0x32f   :  { %894 = vmatprep.subr.bf16.mxu0 %v18054_v34 }
 0x332   :  { %895 = vmatpush1.bf16.msra.mxu0 %v18052_v35 }
 0x335   :  { %15790 = vmatmul.mubr.msk.bf16.gmra.mrb[4].mxu0 %vm686_vm1, %v18040_v8 }
 0x336   :  { %839 = vmatprep.mubr.bf16.mxu0 %v21194_v0 }
 0x33d   :  { %15791 = vmatmul.mubr.msk.bf16.gmra.mrb[12].mxu0 %vm686_vm1, %v18051_v36 }
 0x33e   :  { %924 = vmatprep.mubr.bf16.mxu0 %v21194_v0 }
 0x345   :  { %15797 = vmatmul.mubr.msk.bf16.vlgmr.msra.gmra.mrb[0].mxu0 %vm686_vm1, %v860_v37 }
 0x346   :  { %934 = vmatprep.mubr.bf16.mxu0 %v21194_v0 }
 0x34d   :  { %15798 = vmatmul.mubr.msk.bf16.gmra.mrb[4].mxu0 %vm686_vm1, %v862_v39 }
 0x34e   :  { %944 = vmatprep.mubr.bf16.mxu0 %v21194_v0 }
 0x355   :  { %15799 = vmatmul.mubr.msk.bf16.gmra.mrb[16].mxu0 %vm686_vm1, %v861_v38 }
 0x356   :  { %1088 = vmatprep.mubr.bf16.mxu0 %v21194_v0 }
 0x3f8   :  { %v750_v40 = vpop.f32.mrb[8].mxu0 }
 0x3f9   :  { %v752_v41 = vpop.f32.mrb[9].mxu0 }
 0x3fa   :  { %v754_v42 = vpop.f32.mrb[10].mxu0 }
 0x3fb   :  { %v755_v43 = vpop.f32.mrb[11].mxu0 }
 0x410   :  { %v841_v46 = vpop.f32.mrb[12].mxu0 }
 0x411   :  { %v842_v48 = vadd.f32 %v841_v46, %v750_v40  ;;  %v843_v49 = vpop.f32.mrb[13].mxu0 }
 0x412   :  { %v844_v51 = vadd.f32 %v843_v49, %v752_v41  ;;  %v845_v52 = vpop.f32.mrb[14].mxu0  ;;  %v18060_v49 = vld [vmem:[#allocation45] sm:$0xff]  }
 0x413   :  { %v846_v54 = vpop.f32.mrb[15].mxu0  ;;  %v18064_v52 = vld [vmem:[#allocation15 + $0x84] ss:$8 sps:$4 sm:$0xff]  }
 0x414   :  { %v18067_v54 = vld [vmem:[#allocation15 + $0x94] ss:$8 sps:$4 sm:$0xff]  }
 0x418   :  { %v926_v57 = vpop.f32.mrb[0].mxu0 }
 0x419   :  { %v975_v58 = vadd.f32 %v968_v55, %v926_v57  ;;  %v928_v59 = vpop.f32.mrb[1].mxu0  ;;  %v18061_v57 = vld [vmem:[#allocation45 + $0x8] sm:$0xff]  }
 0x41a   :  { %v976_v60 = vadd.f32 %v972_v56, %v928_v59  ;;  %v930_v61 = vpop.f32.mrb[2].mxu0 }
 0x41b   :  { %vm985_vm3 = vcmp.gt.f32.partialorder %v975_v58, 0.0  ;;  %v995_v62 = vmul.f32 0.2, %v975_v58  ;;  %v977_v63 = vadd.f32 %v968_v55, %v930_v61  ;;  %v932_v1 = vpop.f32.mrb[3].mxu0 }
 0x41c   :  { %vm986_vm4 = vcmp.gt.f32.partialorder %v976_v60, 0.0  ;;  %v996_v2 = vmul.f32 0.2, %v976_v60  ;;  %v978_v3 = vadd.f32 %v972_v56, %v932_v1 }
 0x41d   :  { %vm987_vm5 = vcmp.gt.f32.partialorder %v977_v63, 0.0  ;;  %v997_v4 = vmul.f32 0.2, %v977_v63  ;;  %v1005_v6 = vsel %vm985_vm3, %v975_v58, %v995_v62  ;;  %v18068_v58 = vld [vmem:[#allocation15 + $0xa0] ss:$8 sps:$4 sm:$0xff]  }
 0x41e   :  { %vm988_vm6 = vcmp.gt.f32.partialorder %v978_v3, 0.0  ;;  %v998_v5 = vmul.f32 0.2, %v978_v3  ;;  %v1006_v10 = vsel %vm986_vm4, %v976_v60, %v996_v2 }
 0x41f   :  { %v1007_v7 = vsel %vm987_vm5, %v977_v63, %v997_v4 }
 0x420   :  { %v1015_v8 = vpack.c.bf16 %v1007_v7, %v1005_v6  ;;  %v936_v9 = vpop.f32.mrb[4].mxu0  ;;  %v1008_v11 = vsel %vm988_vm6, %v978_v3, %v998_v5 }
 0x421   :  { %v979_v12 = vadd.f32 %v968_v55, %v936_v9  ;;  %v938_v13 = vpop.f32.mrb[5].mxu0  ;;  %v1016_v14 = vpack.c.bf16 %v1008_v11, %v1006_v10  ;;  %v18059_v11 = vld [vmem:[#allocation57 + $0x8] ss:$0 sps:$4 sm:$0x33]  }
 0x422   :  { %v980_v15 = vadd.f32 %v972_v56, %v938_v13  ;;  %v940_v16 = vpop.f32.mrb[6].mxu0  ;;  %v18071_v13 = vld [vmem:[#allocation15 + $0xb0] ss:$8 sps:$4 sm:$0xff]  }
 0x423   :  { %vm989_vm7 = vcmp.gt.f32.partialorder %v979_v12, 0.0  ;;  %v999_v17 = vmul.f32 0.2, %v979_v12  ;;  %v981_v18 = vadd.f32 %v968_v55, %v940_v16  ;;  %v942_v19 = vpop.f32.mrb[7].mxu0  ;;  %1056 = vmatprep.subr.bf16.mxu0 %v1016_v14  ;;  %1164 = vmatprep.subr.bf16.mxu1 %v1016_v14  ;;  %v18075_v16 = vld [vmem:[#allocation15 + $0xc0] ss:$8 sps:$4 sm:$0xff]  }
 0x424   :  { %vm990_vm8 = vcmp.gt.f32.partialorder %v980_v15, 0.0  ;;  %v1000_v20 = vmul.f32 0.2, %v980_v15  ;;  %v982_v21 = vadd.f32 %v972_v56, %v942_v19  ;;  %1057 = vmatpush1.bf16.msra.mxu0 %v1015_v8  ;;  %1165 = vmatpush1.bf16.msra.mxu1 %v1015_v8  ;;  %v18083_v19 = vld [vmem:[#allocation15 + $0xe4] ss:$8 sps:$4 sm:$0xff]  }
 0x425   :  { %vm991_vm9 = vcmp.gt.f32.partialorder %v981_v18, 0.0  ;;  %v1001_v22 = vmul.f32 0.2, %v981_v18  ;;  %v1009_v24 = vsel %vm989_vm7, %v979_v12, %v999_v17  ;;  %v18073_v12 = vld [vmem:[#allocation15 + $0xb4] ss:$8 sps:$4 sm:$0xff]  }
 0x426   :  { %vm992_vm10 = vcmp.gt.f32.partialorder %v982_v21, 0.0  ;;  %v1002_v23 = vmul.f32 0.2, %v982_v21  ;;  %v1010_v28 = vsel %vm990_vm8, %v980_v15, %v1000_v20  ;;  %v18077_v15 = vld [vmem:[#allocation15 + $0xc4] ss:$8 sps:$4 sm:$0xff]   ;;  %vm1892_vm8 = vcmask 146432  }
 0x427   :  { %v1011_v25 = vsel %vm991_vm9, %v981_v18, %v1001_v22  ;;  %v18080_v17 = vld [vmem:[#allocation15 + $0xd4] ss:$8 sps:$4 sm:$0xff]   ;;  %v18078_v18 = vld [vmem:[#allocation15 + $0xd0] ss:$8 sps:$4 sm:$0xff]   ;;  %v18081_v20 = vld [vmem:[#allocation15 + $0xe0] ss:$8 sps:$4 sm:$0xff]  }
 0x428   :  { %v1017_v26 = vpack.c.bf16 %v1011_v25, %v1009_v24  ;;  %v946_v27 = vpop.f32.mrb[16].mxu0  ;;  %v1012_v29 = vsel %vm992_vm10, %v982_v21, %v1002_v23  ;;  %v18086_v21 = vld [vmem:[#allocation15 + $0xf4] ss:$8 sps:$4 sm:$0xff]   ;;  %v18084_v22 = vld [vmem:[#allocation15 + $0xf0] ss:$8 sps:$4 sm:$0xff]   ;;  %vm21196_vm9 = vmmov 0  }
 0x429   :  { %v961_v30 = vadd.f32 %v946_v27, %v842_v48  ;;  %v948_v31 = vpop.f32.mrb[17].mxu0  ;;  %v1018_v32 = vpack.c.bf16 %v1012_v29, %v1010_v28  ;;  %v18058_v48 = vld [vmem:[#allocation57] sm:$0xff]   ;;  %v18089_v23 = vld [vmem:[#allocation15 + $0x4] ss:$8 sps:$4 sm:$0xff]   ;;  %vm2084_vm10 = vcmask 1043456  }
 0x42a   :  { %v962_v33 = vadd.f32 %v948_v31, %v844_v51  ;;  %v950_v34 = vpop.f32.mrb[18].mxu0  ;;  %v18062_v51 = vld [vmem:[#allocation15 + $0x80] ss:$8 sps:$4 sm:$0xff]  }
 0x42b   :  { %v983_v35 = vadd.f32 %v968_v55, %v961_v30  ;;  %v951_v36 = vpop.f32.mrb[19].mxu0  ;;  %1058 = vmatprep.subr.bf16.mxu0 %v1018_v32  ;;  %1166 = vmatprep.subr.bf16.mxu1 %v1018_v32  ;;  %v18065_v55 = vld [vmem:[#allocation15 + $0x90] ss:$8 sps:$4 sm:$0xff]  }
 0x42c   :  { %v984_v37 = vadd.f32 %v972_v56, %v962_v33  ;;  %1059 = vmatpush1.bf16.msra.mxu0 %v1017_v26  ;;  %1167 = vmatpush1.bf16.msra.mxu1 %v1017_v26  ;;  %v18070_v56 = vld [vmem:[#allocation15 + $0xa4] ss:$8 sps:$4 sm:$0xff]  }
 0x42d   :  { %vm993_vm11 = vcmp.gt.f32.partialorder %v983_v35, 0.0  ;;  %v1003_v38 = vmul.f32 0.2, %v983_v35 }
 0x42e   :  { %vm994_vm12 = vcmp.gt.f32.partialorder %v984_v37, 0.0  ;;  %v1004_v39 = vmul.f32 0.2, %v984_v37 }
 0x42f   :  { %v1013_v40 = vsel %vm993_vm11, %v983_v35, %v1003_v38  ;;  %vm2080_vm11 = vcmask 64512  }
 0x430   :  { %v1014_v41 = vsel %vm994_vm12, %v984_v37, %v1004_v39  ;;  %v1019_v42 = vpack.c.bf16 %v1013_v40, %v1013_v40 }
 0x431   :  { %v1020_v43 = vpack.c.bf16 %v1014_v41, %v1014_v41 }
 0x432   :  { %v1051_v46 = vsel %vm1049_vm13, %v1019_v42, 0 }
 0x433   :  { %15803 = vmatprep.subr.msk.bf16.mxu0 %vm1049_vm13, %v1020_v43  ;;  %15813 = vmatprep.subr.msk.bf16.mxu1 %vm1049_vm13, %v1020_v43 }
 0x434   :  { %1061 = vmatpush1.bf16.msra.mxu0 %v1051_v46  ;;  %1169 = vmatpush1.bf16.msra.mxu1 %v1051_v46 }
 0x435   :  { %1217 = vmatprep.subr.bf16.mxu1 %v1016_v14  ;;  %1491 = vmatprep.subr.bf16.mxu0 %v18064_v52  ;;  %v18074_v14 = vld [vmem:[#allocation45 + $0x10] ss:$0 sps:$4 sm:$0x33]  }
 0x437   :  { %15814 = vmatmul.mubr.msk.bf16.vlgmr.msra.gmra.mrb[0].mxu1 %vm1039_vm14, %v18056_v44  ;;  %15804 = vmatmul.mubr.msk.bf16.vlgmr.msra.gmra.mrb[20].mxu0 %vm1039_vm14, %v18060_v49 }
 0x438   :  { %1218 = vmatpush1.bf16.msra.mxu1 %v1015_v8  ;;  %1249 = vmatprep.mubr.bf16.mxu1 %v21194_v0 }
 0x439   :  { %1219 = vmatprep.subr.bf16.mxu1 %v1018_v32  ;;  %1098 = vmatprep.mubr.bf16.mxu0 %v21194_v0 }
 0x43a   :  { %1492 = vmatpush1.bf16.msra.mxu0 %v18062_v51 }
 0x43b   :  { %1493 = vmatprep.subr.bf16.mxu0 %v18067_v54 }
 0x43c   :  { %1220 = vmatpush1.bf16.msra.mxu1 %v1017_v26 }
 0x43d   :  { %15816 = vmatprep.subr.msk.bf16.mxu1 %vm1049_vm13, %v1020_v43 }
 0x43e   :  { %1494 = vmatpush1.bf16.msra.mxu0 %v18065_v55 }
 0x43f   :  { %1495 = vmatprep.subr.bf16.mxu0 %v18070_v56  ;;  %15805 = vmatmul.mubr.msk.bf16.gmra.mrb[24].mxu0 %vm1039_vm14, %v18061_v57 }
 0x440   :  { %1222 = vmatpush1.bf16.msra.mxu1 %v1051_v46  ;;  %1108 = vmatprep.mubr.bf16.mxu0 %v21194_v0 }
 0x442   :  { %1496 = vmatpush1.bf16.msra.mxu0 %v18068_v58  ;;  %v18087_v58 = vld [vmem:[#allocation15] ss:$8 sps:$4 sm:$0xff]  }
 0x443   :  { %15817 = vmatmul.mubr.msk.bf16.vlgmr.msra.gmra.mrb[4].mxu1 %vm1039_vm14, %v18057_v47  ;;  %1497 = vmatprep.subr.bf16.mxu0 %v18073_v12  ;;  %v18107_v12 = vld [vmem:[#allocation15 + $0x60] ss:$8 sps:$4 sm:$0xff]  }
 0x444   :  { %17547 = vmatprep.mubr.msk.bf16.mxu1 %vm1278_vm15, %v18058_v48 }
 0x446   :  { %1498 = vmatpush1.bf16.msra.mxu0 %v18071_v13  ;;  %v18112_v13 = vld [vmem:[#allocation15 + $0x74] ss:$8 sps:$4 sm:$0xff]  }
 0x447   :  { %15806 = vmatmul.mubr.msk.bf16.gmra.mrb[28].mxu0 %vm1039_vm14, %v18074_v14  ;;  %1499 = vmatprep.subr.bf16.mxu0 %v18077_v15  ;;  %v18110_v14 = vld [vmem:[#allocation15 + $0x70] ss:$8 sps:$4 sm:$0xff]   ;;  %v18115_v15 = vld [vmem:[#allocation15 + $0x104] ss:$8 sps:$4 sm:$0xff]  }
 0x448   :  { %1523 = vmatprep.mubr.bf16.mxu0 %v21194_v0 }
 0x44a   :  { %1500 = vmatpush1.bf16.msra.mxu0 %v18075_v16  ;;  %v18113_v16 = vld [vmem:[#allocation15 + $0x100] ss:$8 sps:$4 sm:$0xff]  }
 0x44b   :  { %1501 = vmatprep.subr.bf16.mxu0 %v18080_v17  ;;  %v18118_v17 = vld [vmem:[#allocation15 + $0x114] ss:$8 sps:$4 sm:$0xff]  }
 0x44e   :  { %1502 = vmatpush1.bf16.msra.mxu0 %v18078_v18  ;;  %v18116_v18 = vld [vmem:[#allocation15 + $0x110] ss:$8 sps:$4 sm:$0xff]  }
 0x44f   :  { %1503 = vmatprep.subr.bf16.mxu0 %v18083_v19  ;;  %v18122_v19 = vld [vmem:[#allocation15 + $0x124] ss:$8 sps:$4 sm:$0xff]  }
 0x452   :  { %1504 = vmatpush1.bf16.msra.mxu0 %v18081_v20  ;;  %v18120_v20 = vld [vmem:[#allocation15 + $0x120] ss:$8 sps:$4 sm:$0xff]  }
 0x453   :  { %1505 = vmatprep.subr.bf16.mxu0 %v18086_v21 }
 0x456   :  { %1506 = vmatpush1.bf16.msra.mxu0 %v18084_v22  ;;  %v18125_v22 = vld [vmem:[#allocation15 + $0x134] ss:$8 sps:$4 sm:$0xff]  }
 0x457   :  { %1627 = vmatprep.subr.bf16.mxu0 %v18089_v23  ;;  %v18123_v23 = vld [vmem:[#allocation15 + $0x130] ss:$8 sps:$4 sm:$0xff]  }
 0x50a   :  { %v1198_v59 = vpop.f32.mrb[0].mxu1  ;;  %v1090_v24 = vpop.f32.mrb[20].mxu0 }
 0x50b   :  { %v1200_v60 = vpop.f32.mrb[1].mxu1  ;;  %v1092_v25 = vpop.f32.mrb[21].mxu0 }
 0x50c   :  { %v1202_v61 = vpop.f32.mrb[2].mxu1  ;;  %v17438_v26 = vpack.c.bf16 %v1092_v25, %v1090_v24  ;;  %v1094_v27 = vpop.f32.mrb[22].mxu0  ;;  %v18128_v24 = vld [vmem:[#allocation15 + $0x144] ss:$8 sps:$4 sm:$0xff]   ;;  %v18126_v25 = vld [vmem:[#allocation15 + $0x140] ss:$8 sps:$4 sm:$0xff]  }
 0x50d   :  { %v1204_v62 = vpop.f32.mrb[3].mxu1  ;;  %v1096_v28 = vpop.f32.mrb[23].mxu0 }
 0x50e   :  { %1149 = vst [vmem:[#allocation2] sm:$0xff] %v17438_v26  ;;  %v17439_v29 = vpack.c.bf16 %v1096_v28, %v1094_v27  ;;  %v18131_v26 = vld [vmem:[#allocation15 + $0x154] ss:$8 sps:$4 sm:$0xff]   ;;  %v18129_v27 = vld [vmem:[#allocation15 + $0x150] ss:$8 sps:$4 sm:$0xff]  }
 0x50f   :  { %v18134_v28 = vld [vmem:[#allocation15 + $0x164] ss:$8 sps:$4 sm:$0xff]  }
 0x510   :  { %1150 = vst [vmem:[#allocation2 + $0x8] sm:$0xff] %v17439_v29  ;;  %v18132_v29 = vld [vmem:[#allocation15 + $0x160] ss:$8 sps:$4 sm:$0xff]  }
 0x512   :  { %v1100_v30 = vpop.f32.mrb[24].mxu0 }
 0x513   :  { %v1102_v31 = vpop.f32.mrb[25].mxu0 }
 0x514   :  { %v17440_v32 = vpack.c.bf16 %v1102_v31, %v1100_v30  ;;  %v1104_v33 = vpop.f32.mrb[26].mxu0  ;;  %v18137_v30 = vld [vmem:[#allocation15 + $0x174] ss:$8 sps:$4 sm:$0xff]   ;;  %v18135_v31 = vld [vmem:[#allocation15 + $0x170] ss:$8 sps:$4 sm:$0xff]  }
 0x515   :  { %v1106_v34 = vpop.f32.mrb[27].mxu0 }
 0x516   :  { %v1251_v63 = vpop.f32.mrb[4].mxu1  ;;  %1151 = vst [vmem:[#allocation2 + $0x10] sm:$0xff] %v17440_v32  ;;  %v17441_v35 = vpack.c.bf16 %v1106_v34, %v1104_v33 }
 0x517   :  { %v1260_v1 = vmax.f32 %v1198_v59, %v1251_v63  ;;  %v1253_v2 = vpop.f32.mrb[5].mxu1  ;;  %v18092_v63 = vld [vmem:[#allocation15 + $0x10] ss:$8 sps:$4 sm:$0xff]  }
 0x518   :  { %v1261_v3 = vmax.f32 %v1200_v60, %v1253_v2  ;;  %v1255_v4 = vpop.f32.mrb[6].mxu1  ;;  %1152 = vst [vmem:[#allocation2 + $0x18] sm:$0xff] %v17441_v35 }
 0x519   :  { %v1262_v5 = vmax.f32 %v1202_v61, %v1255_v4  ;;  %v1257_v6 = vpop.f32.mrb[7].mxu1  ;;  %v18094_v61 = vld [vmem:[#allocation15 + $0x14] ss:$8 sps:$4 sm:$0xff]  }
 0x51a   :  { %v1264_v7 = vmax.f32 %v1260_v1, %v1261_v3  ;;  %v1263_v8 = vmax.f32 %v1204_v62, %v1257_v6  ;;  %v18097_v1 = vld [vmem:[#allocation15 + $0x24] ss:$8 sps:$4 sm:$0xff]   ;;  %v18095_v3 = vld [vmem:[#allocation15 + $0x20] ss:$8 sps:$4 sm:$0xff]   ;;  %v18098_v6 = vld [vmem:[#allocation15 + $0x30] ss:$8 sps:$4 sm:$0xff]  }
 0x51b   :  { %v1110_v32 = vpop.f32.mrb[28].mxu0 }
 0x51c   :  { %v1265_v9 = vmax.f32 %v1262_v5, %v1263_v8  ;;  %v18100_v5 = vld [vmem:[#allocation15 + $0x34] ss:$8 sps:$4 sm:$0xff]   ;;  %v18101_v8 = vld [vmem:[#allocation15 + $0x40] ss:$8 sps:$4 sm:$0xff]   ;;  %v1112_v33 = vpop.f32.mrb[29].mxu0 }
 0x51d   :  { %v17442_v34 = vpack.c.bf16 %v1112_v33, %v1110_v32  ;;  %v1114_v35 = vpop.f32.mrb[30].mxu0 }
 0x51e   :  { %v1266_v10 = vpack.c.bf16 %v1265_v9, %v1264_v7  ;;  %v18103_v7 = vld [vmem:[#allocation15 + $0x44] ss:$8 sps:$4 sm:$0xff]   ;;  %v18106_v9 = vld [vmem:[#allocation15 + $0x54] ss:$8 sps:$4 sm:$0xff]  }
 0x51f   :  { %1153 = vst [vmem:[#allocation2 + $0x20] sm:$0x33] %v17442_v34 }
 0x520   :  { %17545 = vmatprep.subr.bf16.mxu1 %v1266_v10 }
 0x521   :  { %17546 = vmatpush3.bf16.msra.mxu1 %v1266_v10  ;;  %v18104_v10 = vld [vmem:[#allocation15 + $0x50] ss:$8 sps:$4 sm:$0xff]  }
 0x524   :  { %17548 = vmatmul.mubr.msk.bf16.vlgmr.msra.gmra.mrb[8].mxu1 %vm1278_vm15, %v18059_v11  ;;  %v18109_v11 = vld [vmem:[#allocation15 + $0x64] ss:$8 sps:$4 sm:$0xff]  }
 0x525   :  { %1937 = vmatprep.mubr.bf16.mxu1 %v21194_v0 }
 0x5f7   :  { %v17549_v36 = vpop.f32.mrb[8].mxu1 }
 0x5f8   :  { %v17445_v37 = vpack.c.bf16 %v17549_v36, %v17549_v36  ;;  %v1319_v38 = vpop.f32.mrb[9].mxu1  ;;  %v1115_v36 = vpop.f32.mrb[31].mxu0 }
 0x5f9   :  { %v17550_v39 = vpop.f32.mrb[10].mxu1 }
 0x5fa   :  { %1348 = vst [vmem:[#allocation3 + $0x8] sm:$0x3] %v17445_v37  ;;  %v1322_v40 = vpop.f32.mrb[11].mxu1 }
 0x5fb   :  { %v17486_v41 = vpack.c.bf16 %v1322_v40, %v1319_v38 }
 0x5fd   :  { %17487 = vst [vmem:[#allocation3] sm:$0xff] %v17486_v41  }
 0x601   :  { %v21658_v42 = vld [vmem:[#allocation3 + $0x8] ss:$0 sps:$4 sm:$0x33]  }
 0x602   :  { %v1402_v51 = vshll.u32 %v21658_v42, 16  ;;  %v1700_v54 = vrot.slane %v21658_v42, 1  ;;  %v1406_v2 = vshrl.u32 %v21658_v42, 16  ;;  %v18119_v21 = vld [vmem:[#allocation3 + $0x8] ss:$0 sps:$4 sm:$0x11]  }
 0x604   :  { %v1349_v43 = vld [vmem:[#allocation3] sm:$0xf]  ;;  %v1350_v44 = vld [vmem:[#allocation3 + $0x4] sm:$0xf]  ;;  %v1404_v60 = vrot.slane %v1402_v51, 1 }
 0x605   :  { %v1678_v46 = vld [vmem:[#allocation3] sm:$0xe]  ;;  %v15825_v47 = vcombine.low %v1349_v43, %v1350_v44 }
 0x606   :  { %v15860_v48 = vcombine.low %v1678_v46, %v1350_v44  ;;  %v1408_v4 = vor.u32 %v1406_v2, %v1404_v60 }
 0x607   :  { %v1397_v49 = vshll.u32 %v15825_v47, 16  ;;  %v1395_v55 = vshrl.u32 %v15825_v47, 16 }
 0x608   :  { %v1699_v52 = vrot.slane %v15860_v48, 1 }
 0x609   :  { %v1399_v56 = vrot.slane %v1397_v49, 1  ;;  %v1841_v49 = vld [vmem:[#allocation33] sm:$0x3] }
 0x60a   :  { %v21665_v57 = vsel %vm857_vm2, %v1699_v52, %v1700_v54  ;;  %v1846_v51 = vrot.slane %v1841_v49, %v21635_v50  ;;  %v1850_v52 = vrot.slane %v1841_v49, %v21638_v53 }
 0x60b   :  { %v1400_v59 = vor.u32 %v1399_v56, %v1395_v55 }
 0x60d   :  { %v1405_v62 = vsel %vm642_vm0, %v1400_v59, %v1404_v60 }
 0x60e   :  { %1524 = vmatmul.mubr.bf16.vlgmr.msra.gmra.mrb[32].mxu0 %v1405_v62 }
 0x60f   :  { %1628 = vmatpush1.bf16.msra.mxu0 %v18087_v58  ;;  %1533 = vmatprep.mubr.bf16.mxu0 %v21194_v0 }
 0x610   :  { %1629 = vmatprep.subr.bf16.mxu0 %v18094_v61 }
 0x613   :  { %1630 = vmatpush1.bf16.msra.mxu0 %v18092_v63 }
 0x614   :  { %1631 = vmatprep.subr.bf16.mxu0 %v18097_v1 }
 0x616   :  { %1534 = vmatmul.mubr.bf16.gmra.mrb[36].mxu0 %v1408_v4 }
 0x617   :  { %1632 = vmatpush1.bf16.msra.mxu0 %v18095_v3  ;;  %1659 = vmatprep.mubr.bf16.mxu0 %v21194_v0 }
 0x618   :  { %1633 = vmatprep.subr.bf16.mxu0 %v18100_v5 }
 0x61b   :  { %1634 = vmatpush1.bf16.msra.mxu0 %v18098_v6 }
 0x61c   :  { %1635 = vmatprep.subr.bf16.mxu0 %v18103_v7 }
 0x61f   :  { %1636 = vmatpush1.bf16.msra.mxu0 %v18101_v8 }
 0x620   :  { %1637 = vmatprep.subr.bf16.mxu0 %v18106_v9 }
 0x623   :  { %1638 = vmatpush1.bf16.msra.mxu0 %v18104_v10 }
 0x624   :  { %1639 = vmatprep.subr.bf16.mxu0 %v18109_v11 }
 0x627   :  { %1640 = vmatpush1.bf16.msra.mxu0 %v18107_v12 }
 0x628   :  { %1641 = vmatprep.subr.bf16.mxu0 %v18112_v13 }
 0x62b   :  { %1642 = vmatpush1.bf16.msra.mxu0 %v18110_v14 }
 0x62c   :  { %1784 = vmatprep.subr.bf16.mxu0 %v18115_v15 }
 0x62e   :  { %1660 = vmatmul.mubr.bf16.vlgmr.msra.gmra.mrb[32].mxu0 %v15825_v47 }
 0x62f   :  { %1785 = vmatpush1.bf16.msra.mxu0 %v18113_v16  ;;  %1669 = vmatprep.mubr.bf16.mxu0 %v21194_v0 }
 0x630   :  { %1786 = vmatprep.subr.bf16.mxu0 %v18118_v17 }
 0x633   :  { %1787 = vmatpush1.bf16.msra.mxu0 %v18116_v18 }
 0x634   :  { %1788 = vmatprep.subr.bf16.mxu0 %v18122_v19 }
 0x636   :  { %1670 = vmatmul.mubr.bf16.gmra.mrb[40].mxu0 %v18119_v21 }
 0x637   :  { %1789 = vmatpush1.bf16.msra.mxu0 %v18120_v20  ;;  %1816 = vmatprep.mubr.bf16.mxu0 %v21194_v0 }
 0x638   :  { %1790 = vmatprep.subr.bf16.mxu0 %v18125_v22 }
 0x63b   :  { %1791 = vmatpush1.bf16.msra.mxu0 %v18123_v23  ;;  %v18139_v23 = vld [vmem:[#allocation47] sm:$0xff]  }
 0x63c   :  { %1792 = vmatprep.subr.bf16.mxu0 %v18128_v24  ;;  %v18140_v24 = vld [vmem:[#allocation47 + $0x8] ss:$0 sps:$4 sm:$0x33]  }
 0x63f   :  { %1793 = vmatpush1.bf16.msra.mxu0 %v18126_v25  ;;  %v1979_v25 = vld [vmem:[#allocation59] sm:$0xf] }
 0x640   :  { %1794 = vmatprep.subr.bf16.mxu0 %v18131_v26  ;;  %v2024_v26 = vld [vmem:[#allocation60] sm:$0xf] }
 0x643   :  { %1795 = vmatpush1.bf16.msra.mxu0 %v18129_v27  ;;  %v21195_v27 = vmov 0.0  }
 0x644   :  { %1796 = vmatprep.subr.bf16.mxu0 %v18134_v28  ;;  %v18142_v28 = vld [vmem:[#allocation17 + $0x80] sm:$0xff]  }
 0x647   :  { %1797 = vmatpush1.bf16.msra.mxu0 %v18132_v29  ;;  %v18144_v29 = vld [vmem:[#allocation17 + $0x88] sm:$0xff]  }
 0x648   :  { %1798 = vmatprep.subr.bf16.mxu0 %v18137_v30  ;;  %v18146_v30 = vld [vmem:[#allocation17 + $0x90] sm:$0xff]  }
 0x64b   :  { %1799 = vmatpush1.bf16.msra.mxu0 %v18135_v31  ;;  %v18148_v31 = vld [vmem:[#allocation17 + $0x98] sm:$0xff]  }
 0x64c   :  { %17597 = vmatprep.subr.bf16.mxu0 %v21195_v27 }
 0x64e   :  { %1817 = vmatmul.mubr.bf16.vlgmr.msra.gmra.mrb[32].mxu0 %v21665_v57 }
 0x64f   :  { %1826 = vmatprep.mubr.bf16.mxu0 %v21194_v0  ;;  %17598 = vmatpush3.bf16.msra.mxu0 %v18142_v28  ;;  %v18162_v28 = vld [vmem:[#allocation17 + $0x10] sm:$0xff]  }
 0x650   :  { %17599 = vmatprep.subr.bf16.mxu0 %v21195_v27 }
 0x653   :  { %17600 = vmatpush3.bf16.msra.mxu0 %v18144_v29  ;;  %v18163_v29 = vld [vmem:[#allocation17 + $0x18] sm:$0xff]  }
 0x654   :  { %17601 = vmatprep.subr.bf16.mxu0 %v21195_v27 }
 0x656   :  { %1827 = vmatmul.mubr.bf16.gmra.mrb[44].mxu0 %v1700_v54 }
 0x657   :  { %17613 = vmatprep.mubr.msk.bf16.mxu0 %vm21196_vm9, %v21195_v27  ;;  %17602 = vmatpush3.bf16.msra.mxu0 %v18146_v30  ;;  %v18164_v30 = vld [vmem:[#allocation17 + $0x20] sm:$0xff]  }
 0x658   :  { %17603 = vmatprep.subr.bf16.mxu0 %v21195_v27 }
 0x65b   :  { %17604 = vmatpush3.bf16.msra.mxu0 %v18148_v31  ;;  %v18165_v31 = vld [vmem:[#allocation17 + $0x28] sm:$0xff]  }
 0x65c   :  { %17605 = vmatprep.subr.bf16.mxu0 %v21195_v27 }
 0x6e9   :  { %v1535_v37 = vpop.f32.mrb[36].mxu0 }
 0x6ea   :  { %v1537_v38 = vpop.f32.mrb[37].mxu0 }
 0x6eb   :  { %v1539_v39 = vpop.f32.mrb[38].mxu0 }
 0x6ec   :  { %v1540_v40 = vpop.f32.mrb[39].mxu0 }
 0x709   :  { %v1671_v41 = vpop.f32.mrb[40].mxu0 }
 0x70a   :  { %v1672_v43 = vadd.f32 %v1671_v41, %v1535_v37  ;;  %v1673_v44 = vpop.f32.mrb[41].mxu0 }
 0x70b   :  { %v1674_v46 = vadd.f32 %v1673_v44, %v1537_v38  ;;  %v1675_v47 = vpop.f32.mrb[42].mxu0 }
 0x70c   :  { %v1676_v48 = vpop.f32.mrb[43].mxu0 }
 0x721   :  { %v1818_v55 = vpop.f32.mrb[32].mxu0 }
 0x722   :  { %v1853_v56 = vadd.f32 %v1846_v51, %v1818_v55  ;;  %v1820_v57 = vpop.f32.mrb[33].mxu0 }
 0x723   :  { %v1854_v42 = vadd.f32 %v1850_v52, %v1820_v57  ;;  %v1822_v54 = vpop.f32.mrb[34].mxu0 }
 0x724   :  { %v1865_v58 = vmul.f32 0.2, %v1853_v56  ;;  %v1855_v59 = vadd.f32 %v1846_v51, %v1822_v54  ;;  %v1824_v60 = vpop.f32.mrb[35].mxu0  ;;  %vm1859_vm1 = vcmp.gt.f32.partialorder %v1853_v56, 0.0 }
 0x725   :  { %v1866_v61 = vmul.f32 0.2, %v1854_v42  ;;  %v1856_v62 = vadd.f32 %v1850_v52, %v1824_v60  ;;  %vm1860_vm3 = vcmp.gt.f32.partialorder %v1854_v42, 0.0  ;;  %v18143_v60 = vld [vmem:[#allocation17 + $0x40] sm:$0xff]  }
 0x726   :  { %vm1861_vm4 = vcmp.gt.f32.partialorder %v1855_v59, 0.0  ;;  %v1867_v63 = vmul.f32 0.2, %v1855_v59  ;;  %v1871_v2 = vsel %vm1859_vm1, %v1853_v56, %v1865_v58  ;;  %vm2511_vm1 = vcmask 1044480  }
 0x727   :  { %vm1862_vm5 = vcmp.gt.f32.partialorder %v1856_v62, 0.0  ;;  %v1868_v1 = vmul.f32 0.2, %v1856_v62  ;;  %v1872_v6 = vsel %vm1860_vm3, %v1854_v42, %v1866_v61  ;;  %v18145_v61 = vld [vmem:[#allocation17 + $0x48] sm:$0xff]   ;;  %vm2507_vm3 = vcmask 80896  }
 0x728   :  { %v1873_v3 = vsel %vm1861_vm4, %v1855_v59, %v1867_v63  ;;  %v18141_v59 = vld [vmem:[#allocation62] sm:$0x3f]   ;;  %v18149_v63 = vld [vmem:[#allocation17 + $0x58] sm:$0xff]   ;;  %vm2666_vm4 = vcmask 1041408  }
 0x729   :  { %v1877_v4 = vpack.c.bf16 %v1873_v3, %v1871_v2  ;;  %v1828_v5 = vpop.f32.mrb[44].mxu0  ;;  %v1874_v7 = vsel %vm1862_vm5, %v1856_v62, %v1868_v1  ;;  %v18147_v62 = vld [vmem:[#allocation17 + $0x50] sm:$0xff]   ;;  %v18150_v1 = vld [vmem:[#allocation17 + $0xa0] sm:$0xff]   ;;  %v18152_v3 = vld [vmem:[#allocation17 + $0xa8] sm:$0xff]   ;;  %vm2662_vm5 = vcmask 31744  }
 0x72a   :  { %v1839_v8 = vadd.f32 %v1828_v5, %v1672_v43  ;;  %v1830_v9 = vpop.f32.mrb[45].mxu0  ;;  %v1878_v10 = vpack.c.bf16 %v1874_v7, %v1872_v6  ;;  %17606 = vmatpush3.bf16.msra.mxu0 %v18150_v1  ;;  %v18151_v2 = vld [vmem:[#allocation17 + $0x60] sm:$0xff]   ;;  %v18154_v5 = vld [vmem:[#allocation17 + $0xb0] sm:$0xff]   ;;  %v18156_v7 = vld [vmem:[#allocation17 + $0xb8] sm:$0xff]  }
 0x72b   :  { %v1840_v11 = vadd.f32 %v1830_v9, %v1674_v46  ;;  %v1832_v12 = vpop.f32.mrb[46].mxu0  ;;  %17607 = vmatprep.subr.bf16.mxu0 %v21195_v27  ;;  %v18155_v6 = vld [vmem:[#allocation17 + $0x70] sm:$0xff]  }
 0x72c   :  { %v1857_v13 = vadd.f32 %v1846_v51, %v1839_v8  ;;  %v1833_v14 = vpop.f32.mrb[47].mxu0  ;;  %1905 = vmatprep.subr.bf16.mxu1 %v1878_v10  ;;  %v18157_v8 = vld [vmem:[#allocation17 + $0x78] sm:$0xff]  }
 0x72d   :  { %v1858_v15 = vadd.f32 %v1850_v52, %v1840_v11  ;;  %1906 = vmatpush1.bf16.msra.mxu1 %v1877_v4  ;;  %v18169_v1 = vld [vmem:[#allocation48] sm:$0x3f]  }
 0x72e   :  { %vm1863_vm6 = vcmp.gt.f32.partialorder %v1857_v13, 0.0  ;;  %v1869_v16 = vmul.f32 0.2, %v1857_v13  ;;  %17608 = vmatpush3.bf16.msra.mxu0 %v18152_v3  ;;  %v2610_v3 = vld [vmem:[#allocation65] sm:$0x3] }
 0x72f   :  { %vm1864_vm7 = vcmp.gt.f32.partialorder %v1858_v15, 0.0  ;;  %v1870_v17 = vmul.f32 0.2, %v1858_v15  ;;  %17609 = vmatprep.subr.bf16.mxu0 %v21195_v27 }
 0x730   :  { %v1875_v18 = vsel %vm1863_vm6, %v1857_v13, %v1869_v16  ;;  %vm2711_vm6 = vcmask 519168  }
 0x731   :  { %v1876_v19 = vsel %vm1864_vm7, %v1858_v15, %v1870_v17  ;;  %v1879_v20 = vpack.c.bf16 %v1875_v18, %v1875_v18  ;;  %vm2766_vm7 = vcmask 523264  }
 0x732   :  { %v1880_v21 = vpack.c.bf16 %v1876_v19, %v1876_v19  ;;  %17610 = vmatpush3.bf16.msra.mxu0 %v18154_v5 }
 0x733   :  { %v1900_v22 = vsel %vm1049_vm13, %v1879_v20, 0  ;;  %17611 = vmatprep.subr.bf16.mxu0 %v21195_v27 }
 0x734   :  { %15879 = vmatprep.subr.msk.bf16.mxu1 %vm1049_vm13, %v1880_v21 }
 0x735   :  { %1908 = vmatpush1.bf16.msra.mxu1 %v1900_v22 }
 0x736   :  { %1983 = vmatprep.subr.bf16.mxu1 %v1878_v10  ;;  %17612 = vmatpush3.bf16.msra.mxu0 %v18156_v7 }
 0x737   :  { %17635 = vmatprep.subr.bf16.mxu0 %v21195_v27 }
 0x738   :  { %15880 = vmatmul.mubr.msk.bf16.vlgmr.msra.gmra.mrb[12].mxu1 %vm1892_vm8, %v18139_v23 }
 0x739   :  { %1984 = vmatpush1.bf16.msra.mxu1 %v1877_v4  ;;  %1947 = vmatprep.mubr.bf16.mxu1 %v21194_v0 }
 0x73a   :  { %15885 = vmatprep.subr.msk.bf16.mxu1 %vm1049_vm13, %v1880_v21 }
 0x73d   :  { %1986 = vmatpush1.bf16.msra.mxu1 %v1900_v22 }
 0x73e   :  { %2028 = vmatprep.subr.bf16.mxu1 %v1878_v10 }
 0x740   :  { %15881 = vmatmul.mubr.msk.bf16.gmra.mrb[16].mxu1 %vm1892_vm8, %v18140_v24  ;;  %v18160_v24 = vld [vmem:[#allocation17] sm:$0xff]  }
 0x741   :  { %2015 = vmatprep.mubr.bf16.mxu1 %v21194_v0 }
 0x748   :  { %15886 = vmatmul.mubr.msk.bf16.vlgmr.msra.gmra.mrb[20].mxu1 %vm1892_vm8, %v1979_v25 }
 0x749   :  { %2029 = vmatpush1.bf16.msra.mxu1 %v1877_v4  ;;  %2060 = vmatprep.mubr.bf16.mxu1 %v21194_v0  ;;  %v18153_v4 = vld [vmem:[#allocation17 + $0x68] sm:$0xff]  }
 0x74a   :  { %15887 = vmatprep.subr.msk.bf16.mxu1 %vm1049_vm13, %v1880_v21 }
 0x74d   :  { %2031 = vmatpush1.bf16.msra.mxu1 %v1900_v22 }
 0x74e   :  { %17551 = vmatprep.subr.bf16.mxu1 %v21195_v27 }
 0x750   :  { %15888 = vmatmul.mubr.msk.bf16.vlgmr.msra.gmra.mrb[24].mxu1 %vm1892_vm8, %v2024_v26  ;;  %v18161_v26 = vld [vmem:[#allocation17 + $0x8] sm:$0xff]  }
 0x751   :  { %17553 = vmatprep.mubr.msk.bf16.mxu1 %vm21196_vm9, %v21195_v27 }
 0x80b   :  { %v1939_v32 = vpop.f32.mrb[12].mxu1 }
 0x80c   :  { %v1941_v33 = vpop.f32.mrb[13].mxu1 }
 0x80d   :  { %v17446_v34 = vpack.c.bf16 %v1941_v33, %v1939_v32  ;;  %v1943_v35 = vpop.f32.mrb[14].mxu1  ;;  %v18166_v32 = vld [vmem:[#allocation17 + $0x30] sm:$0xff]   ;;  %v18167_v33 = vld [vmem:[#allocation17 + $0x38] sm:$0xff]  }
 0x80e   :  { %v1945_v36 = vpop.f32.mrb[15].mxu1 }
 0x80f   :  { %1976 = vst [vmem:[#allocation4] sm:$0xff] %v17446_v34  ;;  %v17447_v37 = vpack.c.bf16 %v1945_v36, %v1943_v35 }
 0x811   :  { %1977 = vst [vmem:[#allocation4 + $0x8] sm:$0xff] %v17447_v37 }
 0x813   :  { %v1949_v38 = vpop.f32.mrb[16].mxu1 }
 0x814   :  { %v1951_v39 = vpop.f32.mrb[17].mxu1 }
 0x815   :  { %v17448_v40 = vpack.c.bf16 %v1951_v39, %v1949_v38  ;;  %v1953_v41 = vpop.f32.mrb[18].mxu1 }
 0x816   :  { %v1954_v43 = vpop.f32.mrb[19].mxu1 }
 0x817   :  { %1978 = vst [vmem:[#allocation4 + $0x10] sm:$0x33] %v17448_v40 }
 0x81b   :  { %v2017_v44 = vpop.f32.mrb[20].mxu1 }
 0x81c   :  { %v2019_v46 = vpop.f32.mrb[21].mxu1 }
 0x81d   :  { %v2021_v47 = vpop.f32.mrb[22].mxu1 }
 0x81e   :  { %v2022_v48 = vpop.f32.mrb[23].mxu1 }
 0x823   :  { %v2062_v49 = vpop.f32.mrb[24].mxu1 }
 0x824   :  { %v2069_v51 = vmax.f32 %v2017_v44, %v2062_v49  ;;  %v2064_v52 = vpop.f32.mrb[25].mxu1  ;;  %v15920_v49 = vld [vmem:[#allocation35] ss:$0 sm:$0xff] }
 0x825   :  { %v2070_v55 = vmax.f32 %v2019_v46, %v2064_v52  ;;  %v2066_v56 = vpop.f32.mrb[26].mxu1 }
 0x826   :  { %v2067_v57 = vpop.f32.mrb[27].mxu1 }
 0x827   :  { %v2071_v42 = vmax.f32 %v2069_v51, %v2070_v55 }
 0x829   :  { %v2072_v54 = vpack.c.bf16 %v2071_v42, %v2071_v42 }
 0x82b   :  { %v2086_v58 = vsel %vm2084_vm10, %v2072_v54, 0  ;;  %vm2982_vm10 = vcmask 1042432  }
 0x82c   :  { %17552 = vmatpush3.bf16.msra.mxu1 %v2086_v58 }
 0x82d   :  { %17557 = vmatprep.subr.bf16.mxu1 %v21195_v27 }
 0x82f   :  { %17554 = vmatmul.mubr.msk.bf16.vlgmr.msra.gmra.mrb[28].mxu1 %vm2080_vm11, %v18141_v59  ;;  %vm2978_vm11 = vcmask 48128  }
 0x830   :  { %17558 = vmatpush3.bf16.msra.mxu1 %v18143_v60  ;;  %17573 = vmatprep.mubr.msk.bf16.mxu1 %vm21196_vm9, %v21195_v27 }
 0x831   :  { %17559 = vmatprep.subr.bf16.mxu1 %v21195_v27 }
 0x834   :  { %17560 = vmatpush3.bf16.msra.mxu1 %v18145_v61 }
 0x835   :  { %17561 = vmatprep.subr.bf16.mxu1 %v21195_v27 }
 0x838   :  { %17562 = vmatpush3.bf16.msra.mxu1 %v18147_v62 }
 0x839   :  { %17563 = vmatprep.subr.bf16.mxu1 %v21195_v27 }
 0x83c   :  { %17564 = vmatpush3.bf16.msra.mxu1 %v18149_v63 }
 0x83d   :  { %17565 = vmatprep.subr.bf16.mxu1 %v21195_v27 }
 0x840   :  { %17566 = vmatpush3.bf16.msra.mxu1 %v18151_v2  ;;  %v2566_v2 = vld [vmem:[#allocation63] sm:$0x3] }
 0x841   :  { %17567 = vmatprep.subr.bf16.mxu1 %v21195_v27 }
 0x844   :  { %17568 = vmatpush3.bf16.msra.mxu1 %v18153_v4 }
 0x845   :  { %17569 = vmatprep.subr.bf16.mxu1 %v21195_v27 }
 0x848   :  { %17570 = vmatpush3.bf16.msra.mxu1 %v18155_v6 }
 0x849   :  { %17571 = vmatprep.subr.bf16.mxu1 %v21195_v27 }
 0x84c   :  { %17572 = vmatpush3.bf16.msra.mxu1 %v18157_v8 }
 0x84d   :  { %17577 = vmatprep.subr.bf16.mxu1 %v21195_v27 }
 0x902   :  { %v2122_v9 = vpop.f32.mrb[28].mxu1 }
 0x903   :  { %v17449_v10 = vpack.c.bf16 %v2122_v9, %v2122_v9  ;;  %v17555_v11 = vpop.f32.mrb[29].mxu1 }
 0x904   :  { %v2125_v12 = vpop.f32.mrb[30].mxu1 }
 0x905   :  { %2137 = vst [vmem:[#allocation5] sm:$0xf] %v17449_v10  ;;  %v17450_v13 = vpack.c.bf16 %v2125_v12, %v2125_v12  ;;  %v17556_v14 = vpop.f32.mrb[31].mxu1 }
 0x907   :  { %2138 = vst [vmem:[#allocation5 + $0x4] sm:$0x3] %v17450_v13 }
 0x90c   :  { %v2370_v16 = vld [vmem:[#allocation5] sm:$0xe] }
 0x90d   :  { %v2139_v17 = vld [vmem:[#allocation5] sm:$0xf] }
 0x90e   :  { %v2157_v15 = vld [vmem:[#allocation5 + $0x4] sm:$0x3] }
 0x90f   :  { %v15911_v18 = vcombine.low %v2370_v16, %v2157_v15  ;;  %v15893_v19 = vcombine.low %v2139_v17, %v2157_v15  ;;  %v2140_v34 = vld [vmem:[#allocation5 + $0x4] sm:$0x1] }
 0x910   :  { %v15902_v35 = vcombine.low %v2139_v17, %v2140_v34 }
 0x911   :  { %v2391_v20 = vrot.slane %v15911_v18, 1  ;;  %v2183_v21 = vshll.u32 %v15893_v19, 16  ;;  %v2181_v22 = vshrl.u32 %v15893_v19, 16 }
 0x913   :  { %17614 = vmatmul.mubr.bf16.vlgmr.msra.gmra.mrb[48].mxu0 %v2391_v20  ;;  %v2185_v23 = vrot.slane %v2183_v21, 1 }
 0x914   :  { %17637 = vmatprep.mubr.msk.bf16.mxu0 %vm21196_vm9, %v21195_v27 }
 0x915   :  { %v2186_v25 = vor.u32 %v2185_v23, %v2181_v22  ;;  %v2661_v23 = vld [vmem:[#allocation66] sm:$0xf] }
 0x917   :  { %17574 = vmatmul.mubr.bf16.vlgmr.msra.gmra.mrb[32].mxu1 %v2186_v25  ;;  %v18171_v25 = vld [vmem:[#allocation18 + $0x8] sm:$0xff]  }
 0x918   :  { %17578 = vmatpush3.bf16.msra.mxu1 %v18160_v24  ;;  %17593 = vmatprep.mubr.msk.bf16.mxu1 %vm21196_vm9, %v21195_v27  ;;  %v18170_v24 = vld [vmem:[#allocation18] sm:$0xff]  }
 0x919   :  { %17579 = vmatprep.subr.bf16.mxu1 %v21195_v27 }
 0x91c   :  { %17580 = vmatpush3.bf16.msra.mxu1 %v18161_v26  ;;  %v18172_v26 = vld [vmem:[#allocation18 + $0x20] sm:$0xff]  }
 0x91d   :  { %17581 = vmatprep.subr.bf16.mxu1 %v21195_v27 }
 0x920   :  { %17582 = vmatpush3.bf16.msra.mxu1 %v18162_v28  ;;  %v18173_v28 = vld [vmem:[#allocation18 + $0x10] sm:$0xff]  }
 0x921   :  { %17583 = vmatprep.subr.bf16.mxu1 %v21195_v27 }
 0x924   :  { %17584 = vmatpush3.bf16.msra.mxu1 %v18163_v29  ;;  %v18174_v29 = vld [vmem:[#allocation18 + $0x28] sm:$0xff]  }
 0x925   :  { %17585 = vmatprep.subr.bf16.mxu1 %v21195_v27 }
 0x928   :  { %17586 = vmatpush3.bf16.msra.mxu1 %v18164_v30  ;;  %v18175_v30 = vld [vmem:[#allocation18 + $0x18] sm:$0xff]  }
 0x929   :  { %17587 = vmatprep.subr.bf16.mxu1 %v21195_v27 }
 0x92c   :  { %17588 = vmatpush3.bf16.msra.mxu1 %v18165_v31  ;;  %v18176_v31 = vld [vmem:[#allocation18 + $0x30] sm:$0xff]  }
 0x92d   :  { %17589 = vmatprep.subr.bf16.mxu1 %v21195_v27 }
 0x930   :  { %17590 = vmatpush3.bf16.msra.mxu1 %v18166_v32  ;;  %v18177_v32 = vld [vmem:[#allocation18 + $0x38] sm:$0xff]  }
 0x931   :  { %17591 = vmatprep.subr.bf16.mxu1 %v21195_v27 }
 0x934   :  { %17592 = vmatpush3.bf16.msra.mxu1 %v18167_v33 }
 0x935   :  { %17617 = vmatprep.subr.bf16.mxu1 %v21195_v27 }
 0x937   :  { %17594 = vmatmul.mubr.bf16.vlgmr.msra.gmra.mrb[36].mxu1 %v15902_v35 }
 0x938   :  { %17619 = vmatprep.mubr.msk.bf16.mxu1 %vm21196_vm9, %v21195_v27 }
 0x9e6   :  { %v2475_v36 = vpop.f32.mrb[48].mxu0 }
 0x9e7   :  { %v17615_v37 = vpop.f32.mrb[49].mxu0 }
 0x9e8   :  { %v2478_v38 = vpop.f32.mrb[50].mxu0 }
 0x9e9   :  { %v17616_v39 = vpop.f32.mrb[51].mxu0 }
 0x9ea   :  { %v2270_v40 = vpop.f32.mrb[32].mxu1 }
 0x9eb   :  { %v17575_v41 = vpop.f32.mrb[33].mxu1 }
 0x9ec   :  { %v2273_v43 = vpop.f32.mrb[34].mxu1 }
 0x9ed   :  { %v17576_v44 = vpop.f32.mrb[35].mxu1 }
 0x9ee   :  { %v18179_v44 = vld [vmem:[#allocation18 + $0x40] sm:$0xff]  }
 0xa0a   :  { %v2363_v46 = vpop.f32.mrb[36].mxu1 }
 0xa0b   :  { %v2364_v47 = vadd.f32 %v2363_v46, %v2270_v40  ;;  %v17595_v48 = vpop.f32.mrb[37].mxu1 }
 0xa0c   :  { %v2366_v51 = vpop.f32.mrb[38].mxu1  ;;  %v18181_v48 = vld [vmem:[#allocation18 + $0x50] sm:$0xff]  }
 0xa0d   :  { %v2482_v52 = vadd.f32 %v2475_v36, %v2364_v47  ;;  %v2367_v55 = vadd.f32 %v2366_v51, %v2273_v43  ;;  %v17596_v56 = vpop.f32.mrb[39].mxu1  ;;  %v18180_v47 = vld [vmem:[#allocation18 + $0x48] sm:$0xff]  }
 0xa0f   :  { %v2491_v57 = vadd.f32 %v15920_v49, %v2482_v52  ;;  %v2483_v42 = vadd.f32 %v2478_v38, %v2367_v55 }
 0xa11   :  { %v2495_v54 = vmul.f32 0.2, %v2491_v57  ;;  %v2492_v58 = vadd.f32 %v15920_v49, %v2483_v42  ;;  %vm2493_vm12 = vcmp.gt.f32.partialorder %v2491_v57, 0.0  ;;  %v18182_v49 = vld [vmem:[#allocation18 + $0x58] sm:$0xff]  }
 0xa13   :  { %v2496_v59 = vmul.f32 0.2, %v2492_v58  ;;  %vm2494_vm15 = vcmp.gt.f32.partialorder %v2492_v58, 0.0  ;;  %v2497_v60 = vsel %vm2493_vm12, %v2491_v57, %v2495_v54 }
 0xa15   :  { %v2498_v61 = vsel %vm2494_vm15, %v2492_v58, %v2496_v59 }
 0xa16   :  { %v2499_v62 = vpack.c.bf16 %v2498_v61, %v2497_v60 }
 0xa18   :  { %v2513_v63 = vsel %vm2511_vm1, %v2499_v62, 0 }
 0xa19   :  { %17618 = vmatpush3.bf16.msra.mxu1 %v2513_v63 }
 0xa1a   :  { %17623 = vmatprep.subr.bf16.mxu1 %v21195_v27 }
 0xa1c   :  { %17620 = vmatmul.mubr.msk.bf16.vlgmr.msra.gmra.mrb[40].mxu1 %vm2507_vm3, %v18169_v1 }
 0xa1d   :  { %17624 = vmatpush3.bf16.msra.mxu1 %v2513_v63  ;;  %17625 = vmatprep.mubr.msk.bf16.mxu1 %vm21196_vm9, %v21195_v27 }
 0xa1e   :  { %17629 = vmatprep.subr.bf16.mxu1 %v21195_v27 }
 0xa24   :  { %17626 = vmatmul.mubr.msk.bf16.vlgmr.msra.gmra.mrb[44].mxu1 %vm2507_vm3, %v2566_v2 }
 0xa25   :  { %17630 = vmatpush3.bf16.msra.mxu1 %v2513_v63  ;;  %17631 = vmatprep.mubr.msk.bf16.mxu1 %vm21196_vm9, %v21195_v27  ;;  %v15945_v63 = vld [vmem:[#allocation36] ss:$0 sm:$0xff] }
 0xa26   :  { %17641 = vmatprep.subr.bf16.mxu1 %v21195_v27 }
 0xa2c   :  { %17632 = vmatmul.mubr.msk.bf16.vlgmr.msra.gmra.mrb[48].mxu1 %vm2507_vm3, %v2610_v3 }
 0xa2d   :  { %17649 = vmatprep.mubr.msk.bf16.mxu1 %vm21196_vm9, %v21195_v27  ;;  %17642 = vmatpush3.bf16.msra.mxu1 %v18172_v26  ;;  %v18211_v26 = vld [vmem:[#allocation20 + $0x4] ss:$8 sps:$4 sm:$0xff]  }
 0xa2e   :  { %17643 = vmatprep.subr.bf16.mxu1 %v21195_v27 }
 0xa31   :  { %17644 = vmatpush3.bf16.msra.mxu1 %v18174_v29 }
 0xa32   :  { %17645 = vmatprep.subr.bf16.mxu1 %v21195_v27 }
 0xa35   :  { %17646 = vmatpush3.bf16.msra.mxu1 %v18176_v31 }
 0xa36   :  { %17647 = vmatprep.subr.bf16.mxu1 %v21195_v27 }
 0xa39   :  { %17648 = vmatpush3.bf16.msra.mxu1 %v18177_v32 }
 0xa3a   :  { %17665 = vmatprep.subr.bf16.mxu1 %v21195_v27 }
 0xaef   :  { %v2549_v4 = vpop.f32.mrb[40].mxu1 }
 0xaf0   :  { %v17451_v5 = vpack.c.bf16 %v2549_v4, %v2549_v4  ;;  %v17621_v6 = vpop.f32.mrb[41].mxu1 }
 0xaf1   :  { %v2552_v7 = vpop.f32.mrb[42].mxu1 }
 0xaf2   :  { %2564 = vst [vmem:[#allocation6] sm:$0xf] %v17451_v5  ;;  %v17452_v8 = vpack.c.bf16 %v2552_v7, %v2552_v7  ;;  %v17622_v9 = vpop.f32.mrb[43].mxu1 }
 0xaf4   :  { %2565 = vst [vmem:[#allocation6 + $0x4] sm:$0x3] %v17452_v8  ;;  %v18187_v8 = vld [vmem:[#allocation20 + $0x84] ss:$8 sps:$4 sm:$0xff]  }
 0xaf7   :  { %v2604_v10 = vpop.f32.mrb[44].mxu1 }
 0xaf8   :  { %v17627_v11 = vpop.f32.mrb[45].mxu1 }
 0xaf9   :  { %v2607_v12 = vpop.f32.mrb[46].mxu1  ;;  %v18185_v11 = vld [vmem:[#allocation20 + $0x80] ss:$8 sps:$4 sm:$0xff]  }
 0xafa   :  { %v17628_v13 = vpop.f32.mrb[47].mxu1  ;;  %v18190_v12 = vld [vmem:[#allocation20 + $0x94] ss:$8 sps:$4 sm:$0xff]  }
 0xafb   :  { %v18188_v13 = vld [vmem:[#allocation20 + $0x90] ss:$8 sps:$4 sm:$0xff]  }
 0xaff   :  { %v2648_v14 = vpop.f32.mrb[48].mxu1 }
 0xb00   :  { %v2654_v15 = vmax.f32 %v2604_v10, %v2648_v14  ;;  %v17633_v16 = vpop.f32.mrb[49].mxu1  ;;  %v18184_v10 = vld [vmem:[#allocation50] sm:$0x3f]   ;;  %v18193_v14 = vld [vmem:[#allocation20 + $0xa4] ss:$8 sps:$4 sm:$0xff]  }
 0xb01   :  { %v2651_v17 = vpop.f32.mrb[50].mxu1  ;;  %v18196_v16 = vld [vmem:[#allocation20 + $0xb4] ss:$8 sps:$4 sm:$0xff]  }
 0xb02   :  { %v17634_v18 = vpop.f32.mrb[51].mxu1  ;;  %2656 = vrot.lane.b32.xlu0 %v2654_v15, %s21157_s2  ;;  %v18194_v17 = vld [vmem:[#allocation20 + $0xb0] ss:$8 sps:$4 sm:$0xff]  }
 0xb03   :  { %v18199_v18 = vld [vmem:[#allocation20 + $0xc4] ss:$8 sps:$4 sm:$0xff]  }
 0xb74   :  { %v2657_v19 = vpop.permute.xlu0 %2656 }
 0xb75   :  { %v2659_v20 = vmax.f32 %v2654_v15, %v2657_v19  ;;  %v18191_v15 = vld [vmem:[#allocation20 + $0xa0] ss:$8 sps:$4 sm:$0xff]  }
 0xb76   :  { %v18197_v19 = vld [vmem:[#allocation20 + $0xc0] ss:$8 sps:$4 sm:$0xff]  }
 0xb77   :  { %v2660_v21 = vpack.c.bf16 %v2659_v20, %v2659_v20  ;;  %v18200_v20 = vld [vmem:[#allocation20 + $0xd0] ss:$8 sps:$4 sm:$0xff]  }
 0xb79   :  { %v2668_v22 = vsel %vm2666_vm4, %v2660_v21, 0  ;;  %v18202_v21 = vld [vmem:[#allocation20 + $0xd4] ss:$8 sps:$4 sm:$0xff]  }
 0xb7a   :  { %17636 = vmatpush3.bf16.msra.mxu0 %v2668_v22  ;;  %v18205_v22 = vld [vmem:[#allocation20 + $0xe4] ss:$8 sps:$4 sm:$0xff]  }
 0xb7b   :  { %17653 = vmatprep.subr.bf16.mxu0 %v21195_v27 }
 0xb7d   :  { %17638 = vmatmul.mubr.msk.bf16.vlgmr.msra.gmra.mrb[52].mxu0 %vm2662_vm5, %v2661_v23  ;;  %v18203_v23 = vld [vmem:[#allocation20 + $0xe0] ss:$8 sps:$4 sm:$0xff]  }
 0xb7e   :  { %17654 = vmatpush3.bf16.msra.mxu0 %v18170_v24  ;;  %17661 = vmatprep.mubr.msk.bf16.mxu0 %vm21196_vm9, %v21195_v27  ;;  %v18208_v24 = vld [vmem:[#allocation20 + $0xf4] ss:$8 sps:$4 sm:$0xff]  }
 0xb7f   :  { %17655 = vmatprep.subr.bf16.mxu0 %v21195_v27 }
 0xb82   :  { %17656 = vmatpush3.bf16.msra.mxu0 %v18171_v25  ;;  %v18206_v25 = vld [vmem:[#allocation20 + $0xf0] ss:$8 sps:$4 sm:$0xff]  }
 0xb83   :  { %17657 = vmatprep.subr.bf16.mxu0 %v21195_v27 }
 0xb86   :  { %17658 = vmatpush3.bf16.msra.mxu0 %v18173_v28 }
 0xb87   :  { %17659 = vmatprep.subr.bf16.mxu0 %v21195_v27 }
 0xb8a   :  { %17660 = vmatpush3.bf16.msra.mxu0 %v18175_v30 }
 0xb8b   :  { %17677 = vmatprep.subr.bf16.mxu0 %v21195_v27 }
 0xc50   :  { %v2704_v33 = vpop.f32.mrb[52].mxu0 }
 0xc51   :  { %v2710_v34 = vpack.c.bf16 %v2704_v33, %v2704_v33  ;;  %v17639_v35 = vpop.f32.mrb[53].mxu0 }
 0xc52   :  { %v2707_v36 = vpop.f32.mrb[54].mxu0 }
 0xc53   :  { %2712 = vst.msk [vmem:[#allocation7] sm:$0xf] %vm2711_vm6, %v2710_v34  ;;  %v17640_v37 = vpop.f32.mrb[55].mxu0 }
 0xc5a   :  { %v2713_v38 = vld [vmem:[#allocation7] sm:$0x7] }
 0xc5b   :  { %v18178_v39 = vld [vmem:[#allocation7] ss:$0 sps:$4 sm:$0xff]   ;;  %17662 = vmatmul.mubr.msk.bf16.vlgmr.msra.gmra.mrb[56].mxu0 %vm2766_vm7, %v2713_v38 }
 0xc5c   :  { %v2738_v40 = vshll.u32 %v18178_v39, 16  ;;  %17679 = vmatprep.mubr.msk.bf16.mxu0 %vm21196_vm9, %v21195_v27  ;;  %v2736_v41 = vshrl.u32 %v18178_v39, 16  ;;  %v18183_v51 = vld [vmem:[#allocation7] ss:$0 sps:$4 sm:$0xee]  }
 0xc5d   :  { %v2890_v52 = vrot.slane %v18183_v51, 1  ;;  %v18224_v51 = vld [vmem:[#allocation20 + $0x44] ss:$8 sps:$4 sm:$0xff]  }
 0xc5e   :  { %v2740_v43 = vrot.slane %v2738_v40, 1  ;;  %v18209_v40 = vld [vmem:[#allocation20] ss:$8 sps:$4 sm:$0xff]  }
 0xc60   :  { %v2741_v46 = vor.u32 %v2740_v43, %v2736_v41  ;;  %v18215_v43 = vld [vmem:[#allocation20 + $0x14] ss:$8 sps:$4 sm:$0xff]  }
 0xc62   :  { %17650 = vmatmul.mubr.msk.bf16.vlgmr.msra.gmra.mrb[52].mxu1 %vm2766_vm7, %v2741_v46  ;;  %v18218_v46 = vld [vmem:[#allocation20 + $0x24] ss:$8 sps:$4 sm:$0xff]  }
 0xc63   :  { %17666 = vmatpush3.bf16.msra.mxu1 %v18179_v44  ;;  %17673 = vmatprep.mubr.msk.bf16.mxu1 %vm21196_vm9, %v21195_v27  ;;  %v18213_v44 = vld [vmem:[#allocation20 + $0x10] ss:$8 sps:$4 sm:$0xff]  }
 0xc64   :  { %17667 = vmatprep.subr.bf16.mxu1 %v21195_v27 }
 0xc67   :  { %17668 = vmatpush3.bf16.msra.mxu1 %v18180_v47  ;;  %v18216_v47 = vld [vmem:[#allocation20 + $0x20] ss:$8 sps:$4 sm:$0xff]  }
 0xc68   :  { %17669 = vmatprep.subr.bf16.mxu1 %v21195_v27 }
 0xc6b   :  { %17670 = vmatpush3.bf16.msra.mxu1 %v18181_v48  ;;  %v18221_v48 = vld [vmem:[#allocation20 + $0x34] ss:$8 sps:$4 sm:$0xff]  }
 0xc6c   :  { %17671 = vmatprep.subr.bf16.mxu1 %v21195_v27 }
 0xc6f   :  { %17672 = vmatpush3.bf16.msra.mxu1 %v18182_v49  ;;  %v18219_v49 = vld [vmem:[#allocation20 + $0x30] ss:$8 sps:$4 sm:$0xff]  }
 0xc72   :  { %17674 = vmatmul.mubr.msk.bf16.vlgmr.msra.gmra.mrb[56].mxu1 %vm2766_vm7, %v2890_v52  ;;  %v18222_v52 = vld [vmem:[#allocation20 + $0x40] ss:$8 sps:$4 sm:$0xff]  }
 0xc73   :  { %4028 = vmatprep.mubr.bf16.mxu1 %v21194_v0 }
 0xd2e   :  { %v2871_v55 = vpop.f32.mrb[56].mxu0 }
 0xd2f   :  { %v17663_v56 = vpop.f32.mrb[57].mxu0 }
 0xd30   :  { %v2874_v57 = vpop.f32.mrb[58].mxu0  ;;  %v18225_v56 = vld [vmem:[#allocation20 + $0x50] ss:$8 sps:$4 sm:$0xff]  }
 0xd31   :  { %v17664_v42 = vpop.f32.mrb[59].mxu0  ;;  %v18230_v57 = vld [vmem:[#allocation20 + $0x64] ss:$8 sps:$4 sm:$0xff]  }
 0xd32   :  { %v18228_v42 = vld [vmem:[#allocation20 + $0x60] ss:$8 sps:$4 sm:$0xff]  }
 0xd35   :  { %v2804_v54 = vpop.f32.mrb[52].mxu1 }
 0xd36   :  { %v2872_v58 = vadd.f32 %v2871_v55, %v2804_v54  ;;  %v17651_v59 = vpop.f32.mrb[53].mxu1  ;;  %v18227_v55 = vld [vmem:[#allocation20 + $0x54] ss:$8 sps:$4 sm:$0xff]  }
 0xd37   :  { %v2807_v60 = vpop.f32.mrb[54].mxu1  ;;  %v18233_v54 = vld [vmem:[#allocation20 + $0x74] ss:$8 sps:$4 sm:$0xff]   ;;  %v18237_v59 = vld [vmem:[#allocation20 + $0x104] ss:$8 sps:$4 sm:$0xff]  }
 0xd38   :  { %v17652_v61 = vpop.f32.mrb[55].mxu1 }
 0xd39   :  { %v18235_v61 = vld [vmem:[#allocation20 + $0x100] ss:$8 sps:$4 sm:$0xff]  }
 0xd45   :  { %v2952_v62 = vpop.f32.mrb[56].mxu1 }
 0xd46   :  { %v2958_v1 = vadd.f32 %v2952_v62, %v2872_v58  ;;  %v17675_v27 = vpop.f32.mrb[57].mxu1  ;;  %v18231_v58 = vld [vmem:[#allocation20 + $0x70] ss:$8 sps:$4 sm:$0xff]  }
 0xd47   :  { %v2955_v2 = vpop.f32.mrb[58].mxu1  ;;  %v18243_v27 = vld [vmem:[#allocation20 + $0x124] ss:$8 sps:$4 sm:$0xff]  }
 0xd48   :  { %v2966_v3 = vadd.f32 %v15945_v63, %v2958_v1  ;;  %v17676_v4 = vpop.f32.mrb[59].mxu1  ;;  %v18240_v63 = vld [vmem:[#allocation20 + $0x114] ss:$8 sps:$4 sm:$0xff]   ;;  %v18238_v1 = vld [vmem:[#allocation20 + $0x110] ss:$8 sps:$4 sm:$0xff]  }
 0xd49   :  { %v18241_v2 = vld [vmem:[#allocation20 + $0x120] ss:$8 sps:$4 sm:$0xff]   ;;  %v18244_v4 = vld [vmem:[#allocation20 + $0x130] ss:$8 sps:$4 sm:$0xff]  }
 0xd4a   :  { %vm2967_vm9 = vcmp.gt.f32.partialorder %v2966_v3, 0.0  ;;  %v2968_v5 = vmul.f32 0.2, %v2966_v3 }
 0xd4c   :  { %v2969_v6 = vsel %vm2967_vm9, %v2966_v3, %v2968_v5  ;;  %v18246_v3 = vld [vmem:[#allocation20 + $0x134] ss:$8 sps:$4 sm:$0xff]   ;;  %v18249_v5 = vld [vmem:[#allocation20 + $0x144] ss:$8 sps:$4 sm:$0xff]  }
 0xd4d   :  { %v2970_v7 = vpack.c.bf16 %v2969_v6, %v2969_v6  ;;  %v18247_v6 = vld [vmem:[#allocation20 + $0x140] ss:$8 sps:$4 sm:$0xff]  }
 0xd4f   :  { %v2984_v9 = vsel %vm2982_vm10, %v2970_v7, 0  ;;  %v18252_v7 = vld [vmem:[#allocation20 + $0x154] ss:$8 sps:$4 sm:$0xff]  }
 0xd50   :  { %17678 = vmatpush3.bf16.msra.mxu0 %v2984_v9  ;;  %v18255_v9 = vld [vmem:[#allocation20 + $0x164] ss:$8 sps:$4 sm:$0xff]  }
 0xd51   :  { %3166 = vmatprep.subr.bf16.mxu0 %v18187_v8  ;;  %v18250_v8 = vld [vmem:[#allocation20 + $0x150] ss:$8 sps:$4 sm:$0xff]  }
 0xd53   :  { %17680 = vmatmul.mubr.msk.bf16.vlgmr.msra.gmra.mrb[60].mxu0 %vm2978_vm11, %v18184_v10  ;;  %v18253_v10 = vld [vmem:[#allocation20 + $0x160] ss:$8 sps:$4 sm:$0xff]  }
 0xd54   :  { %3167 = vmatpush1.bf16.msra.mxu0 %v18185_v11  ;;  %3198 = vmatprep.mubr.bf16.mxu0 %v21194_v0  ;;  %v18258_v11 = vld [vmem:[#allocation20 + $0x174] ss:$8 sps:$4 sm:$0xff]  }
 0xd55   :  { %3168 = vmatprep.subr.bf16.mxu0 %v18190_v12  ;;  %v18256_v12 = vld [vmem:[#allocation20 + $0x170] ss:$8 sps:$4 sm:$0xff]  }
 0xd58   :  { %3169 = vmatpush1.bf16.msra.mxu0 %v18188_v13 }
 0xd59   :  { %3170 = vmatprep.subr.bf16.mxu0 %v18193_v14 }
 0xd5c   :  { %3171 = vmatpush1.bf16.msra.mxu0 %v18191_v15  ;;  %v18262_v15 = vld [vmem:[#allocation21 + $0x4] ss:$8 sps:$4 sm:$0xff]  }
 0xd5d   :  { %3172 = vmatprep.subr.bf16.mxu0 %v18196_v16  ;;  %v18260_v16 = vld [vmem:[#allocation21] ss:$8 sps:$4 sm:$0xff]  }
 0xd60   :  { %3173 = vmatpush1.bf16.msra.mxu0 %v18194_v17 }
 0xd61   :  { %3174 = vmatprep.subr.bf16.mxu0 %v18199_v18  ;;  %v18265_v18 = vld [vmem:[#allocation21 + $0x14] ss:$8 sps:$4 sm:$0xff]  }
 0xd64   :  { %3175 = vmatpush1.bf16.msra.mxu0 %v18197_v19  ;;  %v18263_v19 = vld [vmem:[#allocation21 + $0x10] ss:$8 sps:$4 sm:$0xff]  }
 0xd65   :  { %3176 = vmatprep.subr.bf16.mxu0 %v18202_v21  ;;  %v18266_v21 = vld [vmem:[#allocation21 + $0x20] ss:$8 sps:$4 sm:$0xff]  }
 0xd68   :  { %3177 = vmatpush1.bf16.msra.mxu0 %v18200_v20  ;;  %v18268_v20 = vld [vmem:[#allocation21 + $0x24] ss:$8 sps:$4 sm:$0xff]  }
 0xd69   :  { %3178 = vmatprep.subr.bf16.mxu0 %v18205_v22  ;;  %v18271_v22 = vld [vmem:[#allocation21 + $0x34] ss:$8 sps:$4 sm:$0xff]  }
 0xd6c   :  { %3179 = vmatpush1.bf16.msra.mxu0 %v18203_v23  ;;  %v18269_v23 = vld [vmem:[#allocation21 + $0x30] ss:$8 sps:$4 sm:$0xff]  }
 0xd6d   :  { %3180 = vmatprep.subr.bf16.mxu0 %v18208_v24  ;;  %v18274_v24 = vld [vmem:[#allocation21 + $0x44] ss:$8 sps:$4 sm:$0xff]  }
 0xd70   :  { %3181 = vmatpush1.bf16.msra.mxu0 %v18206_v25  ;;  %v18272_v25 = vld [vmem:[#allocation21 + $0x40] ss:$8 sps:$4 sm:$0xff]  }
 0xd71   :  { %3293 = vmatprep.subr.bf16.mxu0 %v18211_v26  ;;  %v18277_v26 = vld [vmem:[#allocation21 + $0x54] ss:$8 sps:$4 sm:$0xff]  }
 0xe26   :  { %v3020_v28 = vpop.f32.mrb[60].mxu0 }
 0xe27   :  { %v17453_v29 = vpack.c.bf16 %v3020_v28, %v3020_v28  ;;  %v17681_v30 = vpop.f32.mrb[61].mxu0  ;;  %v18275_v28 = vld [vmem:[#allocation21 + $0x50] ss:$8 sps:$4 sm:$0xff]  }
 0xe28   :  { %v3023_v31 = vpop.f32.mrb[62].mxu0  ;;  %v18278_v30 = vld [vmem:[#allocation21 + $0x60] ss:$8 sps:$4 sm:$0xff]  }
 0xe29   :  { %3035 = vst [vmem:[#allocation8] sm:$0xf] %v17453_v29  ;;  %v17454_v32 = vpack.c.bf16 %v3023_v31, %v3023_v31  ;;  %v17682_v33 = vpop.f32.mrb[63].mxu0  ;;  %v18280_v29 = vld [vmem:[#allocation21 + $0x64] ss:$8 sps:$4 sm:$0xff]  }
 0xe2a   :  { %v18283_v31 = vld [vmem:[#allocation21 + $0x74] ss:$8 sps:$4 sm:$0xff]   ;;  %v18288_v33 = vld [vmem:[#allocation21 + $0x84] ss:$8 sps:$4 sm:$0xff]  }
 0xe2b   :  { %3036 = vst [vmem:[#allocation8 + $0x4] sm:$0x3] %v17454_v32  ;;  %v18281_v32 = vld [vmem:[#allocation21 + $0x70] ss:$8 sps:$4 sm:$0xff]  }
 0xe30   :  { %v3037_v34 = vld [vmem:[#allocation8] sm:$0xf] }
 0xe31   :  { %v3336_v13 = vld [vmem:[#allocation8] sm:$0xe] }
 0xe32   :  { %v21766_v35 = vld [vmem:[#allocation8 + $0x4] sm:$0x3] }
 0xe33   :  { %v15950_v36 = vcombine.low %v3037_v34, %v21766_v35  ;;  %v3038_v60 = vld [vmem:[#allocation8 + $0x4] sm:$0x1]  ;;  %v15984_v14 = vcombine.low %v3336_v13, %v21766_v35  ;;  %v3486_v35 = vld [vmem:[#allocation6] sm:$0xf] }
 0xe34   :  { %v15967_v62 = vcombine.low %v3037_v34, %v3038_v60  ;;  %v3487_v34 = vld [vmem:[#allocation6 + $0x4] sm:$0x1]  ;;  %v3793_v13 = vld [vmem:[#allocation6] sm:$0xe] }
 0xe35   :  { %v3081_v37 = vshll.u32 %v15950_v36, 16  ;;  %v3079_v38 = vshrl.u32 %v15950_v36, 16  ;;  %v3357_v17 = vrot.slane %v15984_v14, 1  ;;  %v18286_v36 = vld [vmem:[#allocation21 + $0x80] ss:$8 sps:$4 sm:$0xff]  }
 0xe37   :  { %v3083_v39 = vrot.slane %v3081_v37, 1  ;;  %v16001_v37 = vcombine.low %v3486_v35, %v3487_v34 }
 0xe39   :  { %v3084_v41 = vor.u32 %v3083_v39, %v3079_v38  ;;  %v18291_v38 = vld [vmem:[#allocation21 + $0x94] ss:$8 sps:$4 sm:$0xff]   ;;  %v18289_v39 = vld [vmem:[#allocation21 + $0x90] ss:$8 sps:$4 sm:$0xff]  }
 0xe3b   :  { %3199 = vmatmul.mubr.bf16.vlgmr.msra.gmra.mrb[64].mxu0 %v3084_v41  ;;  %v18292_v41 = vld [vmem:[#allocation21 + $0xa0] ss:$8 sps:$4 sm:$0xff]  }
 0xe3c   :  { %3294 = vmatpush1.bf16.msra.mxu0 %v18209_v40  ;;  %3325 = vmatprep.mubr.bf16.mxu0 %v21194_v0  ;;  %v18294_v40 = vld [vmem:[#allocation21 + $0xa4] ss:$8 sps:$4 sm:$0xff]  }
 0xe3d   :  { %3295 = vmatprep.subr.bf16.mxu0 %v18215_v43  ;;  %v18297_v43 = vld [vmem:[#allocation21 + $0xb4] ss:$8 sps:$4 sm:$0xff]  }
 0xe40   :  { %3296 = vmatpush1.bf16.msra.mxu0 %v18213_v44  ;;  %v18295_v44 = vld [vmem:[#allocation21 + $0xb0] ss:$8 sps:$4 sm:$0xff]  }
 0xe41   :  { %3297 = vmatprep.subr.bf16.mxu0 %v18218_v46  ;;  %v18300_v46 = vld [vmem:[#allocation21 + $0xc4] ss:$8 sps:$4 sm:$0xff]  }
 0xe44   :  { %3298 = vmatpush1.bf16.msra.mxu0 %v18216_v47  ;;  %v18298_v47 = vld [vmem:[#allocation21 + $0xc0] ss:$8 sps:$4 sm:$0xff]  }
 0xe45   :  { %3299 = vmatprep.subr.bf16.mxu0 %v18221_v48  ;;  %v18303_v48 = vld [vmem:[#allocation21 + $0xd4] ss:$8 sps:$4 sm:$0xff]  }
 0xe48   :  { %3300 = vmatpush1.bf16.msra.mxu0 %v18219_v49  ;;  %v3637_v49 = vld [vmem:[#allocation6 + $0x4] sm:$0x3] }
 0xe49   :  { %3301 = vmatprep.subr.bf16.mxu0 %v18224_v51  ;;  %v18301_v51 = vld [vmem:[#allocation21 + $0xd0] ss:$8 sps:$4 sm:$0xff]   ;;  %v16035_v14 = vcombine.low %v3793_v13, %v3637_v49 }
 0xe4c   :  { %3302 = vmatpush1.bf16.msra.mxu0 %v18222_v52  ;;  %v16018_v52 = vcombine.low %v3486_v35, %v3637_v49  ;;  %v18348_v49 = vld [vmem:[#allocation23 + $0x264] ss:$16 sps:$4 sm:$0xff]  }
 0xe4d   :  { %3303 = vmatprep.subr.bf16.mxu0 %v18227_v55  ;;  %v18306_v55 = vld [vmem:[#allocation21 + $0xe4] ss:$8 sps:$4 sm:$0xff]  }
 0xe4e   :  { %v3659_v60 = vshrl.u32 %v16018_v52, 16 }
 0xe50   :  { %3304 = vmatpush1.bf16.msra.mxu0 %v18225_v56  ;;  %v18304_v56 = vld [vmem:[#allocation21 + $0xe0] ss:$8 sps:$4 sm:$0xff]  }
 0xe51   :  { %3305 = vmatprep.subr.bf16.mxu0 %v18230_v57  ;;  %v18309_v57 = vld [vmem:[#allocation21 + $0xf4] ss:$8 sps:$4 sm:$0xff]  }
 0xe54   :  { %3306 = vmatpush1.bf16.msra.mxu0 %v18228_v42  ;;  %v3661_v42 = vshll.u32 %v16018_v52, 16  ;;  %v18351_v52 = vld [vmem:[#allocation23 + $0x284] ss:$16 sps:$4 sm:$0xff]  }
 0xe55   :  { %3307 = vmatprep.subr.bf16.mxu0 %v18233_v54  ;;  %v18307_v54 = vld [vmem:[#allocation21 + $0xf0] ss:$8 sps:$4 sm:$0xff]  }
 0xe58   :  { %3308 = vmatpush1.bf16.msra.mxu0 %v18231_v58  ;;  %v3663_v58 = vrot.slane %v3661_v42, 1  ;;  %v18357_v42 = vld [vmem:[#allocation23 + $0x2c4] ss:$16 sps:$4 sm:$0xff]  }
 0xe59   :  { %3439 = vmatprep.subr.bf16.mxu0 %v18237_v59  ;;  %v18312_v59 = vld [vmem:[#allocation21 + $0x104] ss:$8 sps:$4 sm:$0xff]  }
 0xe5b   :  { %3326 = vmatmul.mubr.bf16.vlgmr.msra.gmra.mrb[64].mxu0 %v15967_v62  ;;  %v3664_v62 = vor.u32 %v3663_v58, %v3659_v60  ;;  %v18360_v58 = vld [vmem:[#allocation23 + $0x2e4] ss:$16 sps:$4 sm:$0xff]  }
 0xe5c   :  { %3440 = vmatpush1.bf16.msra.mxu0 %v18235_v61  ;;  %3471 = vmatprep.mubr.bf16.mxu0 %v21194_v0  ;;  %v18310_v61 = vld [vmem:[#allocation21 + $0x100] ss:$8 sps:$4 sm:$0xff]   ;;  %v18363_v60 = vld [vmem:[#allocation23 + $0x304] ss:$16 sps:$4 sm:$0xff]  }
 0xe5d   :  { %3441 = vmatprep.subr.bf16.mxu0 %v18240_v63  ;;  %v18315_v63 = vld [vmem:[#allocation21 + $0x114] ss:$8 sps:$4 sm:$0xff]  }
 0xe60   :  { %3442 = vmatpush1.bf16.msra.mxu0 %v18238_v1  ;;  %v18313_v1 = vld [vmem:[#allocation21 + $0x110] ss:$8 sps:$4 sm:$0xff]  }
 0xe61   :  { %3443 = vmatprep.subr.bf16.mxu0 %v18243_v27  ;;  %v18318_v27 = vld [vmem:[#allocation21 + $0x124] ss:$8 sps:$4 sm:$0xff]  }
 0xe64   :  { %3444 = vmatpush1.bf16.msra.mxu0 %v18241_v2  ;;  %v18316_v2 = vld [vmem:[#allocation21 + $0x120] ss:$8 sps:$4 sm:$0xff]  }
 0xe65   :  { %3445 = vmatprep.subr.bf16.mxu0 %v18246_v3  ;;  %v18321_v3 = vld [vmem:[#allocation21 + $0x134] ss:$8 sps:$4 sm:$0xff]  }
 0xe68   :  { %3446 = vmatpush1.bf16.msra.mxu0 %v18244_v4  ;;  %v18319_v4 = vld [vmem:[#allocation21 + $0x130] ss:$8 sps:$4 sm:$0xff]  }
 0xe69   :  { %3447 = vmatprep.subr.bf16.mxu0 %v18249_v5  ;;  %v18324_v5 = vld [vmem:[#allocation21 + $0x144] ss:$8 sps:$4 sm:$0xff]  }
 0xe6c   :  { %3448 = vmatpush1.bf16.msra.mxu0 %v18247_v6  ;;  %v18322_v6 = vld [vmem:[#allocation21 + $0x140] ss:$8 sps:$4 sm:$0xff]  }
 0xe6d   :  { %3449 = vmatprep.subr.bf16.mxu0 %v18252_v7  ;;  %v18327_v7 = vld [vmem:[#allocation21 + $0x154] ss:$8 sps:$4 sm:$0xff]  }
 0xe70   :  { %3450 = vmatpush1.bf16.msra.mxu0 %v18250_v8  ;;  %v18325_v8 = vld [vmem:[#allocation21 + $0x150] ss:$8 sps:$4 sm:$0xff]  }
 0xe71   :  { %3451 = vmatprep.subr.bf16.mxu0 %v18255_v9  ;;  %v18330_v9 = vld [vmem:[#allocation21 + $0x164] ss:$8 sps:$4 sm:$0xff]  }
 0xe74   :  { %3452 = vmatpush1.bf16.msra.mxu0 %v18253_v10  ;;  %v18328_v10 = vld [vmem:[#allocation21 + $0x160] ss:$8 sps:$4 sm:$0xff]  }
 0xe75   :  { %3453 = vmatprep.subr.bf16.mxu0 %v18258_v11  ;;  %v18333_v11 = vld [vmem:[#allocation21 + $0x174] ss:$8 sps:$4 sm:$0xff]  }
 0xe78   :  { %3454 = vmatpush1.bf16.msra.mxu0 %v18256_v12  ;;  %v18331_v12 = vld [vmem:[#allocation21 + $0x170] ss:$8 sps:$4 sm:$0xff]  }
 0xe79   :  { %3590 = vmatprep.subr.bf16.mxu0 %v18262_v15  ;;  %v3814_v15 = vrot.slane %v16035_v14, 1 }
 0xe7b   :  { %3472 = vmatmul.mubr.bf16.vlgmr.msra.gmra.mrb[64].mxu0 %v3357_v17 }
 0xe7c   :  { %3591 = vmatpush1.bf16.msra.mxu0 %v18260_v16  ;;  %3622 = vmatprep.mubr.bf16.mxu0 %v21194_v0  ;;  %v3943_v16 = vld [vmem:[#allocation38] sm:$0x3] }
 0xe7d   :  { %3592 = vmatprep.subr.bf16.mxu0 %v18265_v18  ;;  %v3948_v17 = vrot.slane %v3943_v16, %v21635_v50  ;;  %v3952_v18 = vrot.slane %v3943_v16, %v21638_v53 }
 0xe80   :  { %3593 = vmatpush1.bf16.msra.mxu0 %v18263_v19 }
 0xe81   :  { %3594 = vmatprep.subr.bf16.mxu0 %v18268_v20 }
 0xe84   :  { %3595 = vmatpush1.bf16.msra.mxu0 %v18266_v21 }
 0xe85   :  { %3596 = vmatprep.subr.bf16.mxu0 %v18271_v22 }
 0xe88   :  { %3597 = vmatpush1.bf16.msra.mxu0 %v18269_v23 }
 0xe89   :  { %3598 = vmatprep.subr.bf16.mxu0 %v18274_v24 }
 0xe8c   :  { %3599 = vmatpush1.bf16.msra.mxu0 %v18272_v25 }
 0xe8d   :  { %3600 = vmatprep.subr.bf16.mxu0 %v18277_v26 }
 0xe90   :  { %3601 = vmatpush1.bf16.msra.mxu0 %v18275_v28 }
 0xe91   :  { %3602 = vmatprep.subr.bf16.mxu0 %v18280_v29 }
 0xe94   :  { %3603 = vmatpush1.bf16.msra.mxu0 %v18278_v30 }
 0xe95   :  { %3604 = vmatprep.subr.bf16.mxu0 %v18283_v31 }
 0xe98   :  { %3605 = vmatpush1.bf16.msra.mxu0 %v18281_v32 }
 0xe99   :  { %3746 = vmatprep.subr.bf16.mxu0 %v18288_v33 }
 0xe9b   :  { %3623 = vmatmul.mubr.bf16.vlgmr.msra.gmra.mrb[64].mxu0 %v16001_v37 }
 0xe9c   :  { %3747 = vmatpush1.bf16.msra.mxu0 %v18286_v36  ;;  %3778 = vmatprep.mubr.bf16.mxu0 %v21194_v0 }
 0xe9d   :  { %3748 = vmatprep.subr.bf16.mxu0 %v18291_v38  ;;  %v18339_v38 = vld [vmem:[#allocation23 + $0x204] ss:$16 sps:$4 sm:$0xff]  }
 0xea0   :  { %3749 = vmatpush1.bf16.msra.mxu0 %v18289_v39 }
 0xea1   :  { %3750 = vmatprep.subr.bf16.mxu0 %v18294_v40  ;;  %v18335_v40 = vld [vmem:[#allocation51] sm:$0xff]  }
 0xea4   :  { %3751 = vmatpush1.bf16.msra.mxu0 %v18292_v41  ;;  %v18337_v41 = vld [vmem:[#allocation23 + $0x200] ss:$16 sps:$4 sm:$0xff]  }
 0xea5   :  { %3752 = vmatprep.subr.bf16.mxu0 %v18297_v43  ;;  %v18342_v43 = vld [vmem:[#allocation23 + $0x224] ss:$16 sps:$4 sm:$0xff]  }
 0xea8   :  { %3753 = vmatpush1.bf16.msra.mxu0 %v18295_v44  ;;  %v18340_v44 = vld [vmem:[#allocation23 + $0x220] ss:$16 sps:$4 sm:$0xff]  }
 0xea9   :  { %3754 = vmatprep.subr.bf16.mxu0 %v18300_v46  ;;  %v18345_v46 = vld [vmem:[#allocation23 + $0x244] ss:$16 sps:$4 sm:$0xff]  }
 0xeac   :  { %3755 = vmatpush1.bf16.msra.mxu0 %v18298_v47  ;;  %v18336_v47 = vld [vmem:[#allocation51 + $0x8] ss:$0 sps:$4 sm:$0x33]  }
 0xead   :  { %3756 = vmatprep.subr.bf16.mxu0 %v18303_v48  ;;  %v18343_v48 = vld [vmem:[#allocation23 + $0x240] ss:$16 sps:$4 sm:$0xff]  }
 0xeb0   :  { %3757 = vmatpush1.bf16.msra.mxu0 %v18301_v51  ;;  %v18346_v51 = vld [vmem:[#allocation23 + $0x260] ss:$16 sps:$4 sm:$0xff]  }
 0xeb1   :  { %3758 = vmatprep.subr.bf16.mxu0 %v18306_v55  ;;  %v18349_v55 = vld [vmem:[#allocation23 + $0x280] ss:$16 sps:$4 sm:$0xff]  }
 0xeb4   :  { %3759 = vmatpush1.bf16.msra.mxu0 %v18304_v56  ;;  %v18354_v56 = vld [vmem:[#allocation23 + $0x2a4] ss:$16 sps:$4 sm:$0xff]  }
 0xeb5   :  { %3760 = vmatprep.subr.bf16.mxu0 %v18309_v57  ;;  %v18352_v57 = vld [vmem:[#allocation23 + $0x2a0] ss:$16 sps:$4 sm:$0xff]  }
 0xeb8   :  { %3761 = vmatpush1.bf16.msra.mxu0 %v18307_v54  ;;  %v18355_v54 = vld [vmem:[#allocation23 + $0x2c0] ss:$16 sps:$4 sm:$0xff]  }
 0xeb9   :  { %3896 = vmatprep.subr.bf16.mxu0 %v18312_v59  ;;  %v18358_v59 = vld [vmem:[#allocation23 + $0x2e0] ss:$16 sps:$4 sm:$0xff]  }
 0xebb   :  { %3779 = vmatmul.mubr.bf16.vlgmr.msra.gmra.mrb[64].mxu0 %v3664_v62  ;;  %v18366_v62 = vld [vmem:[#allocation23 + $0x324] ss:$16 sps:$4 sm:$0xff]  }
 0xebc   :  { %3897 = vmatpush1.bf16.msra.mxu0 %v18310_v61  ;;  %3928 = vmatprep.mubr.bf16.mxu0 %v21194_v0  ;;  %v18361_v61 = vld [vmem:[#allocation23 + $0x300] ss:$16 sps:$4 sm:$0xff]  }
 0xebd   :  { %3898 = vmatprep.subr.bf16.mxu0 %v18315_v63  ;;  %v18364_v63 = vld [vmem:[#allocation23 + $0x320] ss:$16 sps:$4 sm:$0xff]  }
 0xec0   :  { %3899 = vmatpush1.bf16.msra.mxu0 %v18313_v1  ;;  %v18369_v1 = vld [vmem:[#allocation23 + $0x344] ss:$16 sps:$4 sm:$0xff]  }
 0xec1   :  { %3900 = vmatprep.subr.bf16.mxu0 %v18318_v27  ;;  %v18367_v27 = vld [vmem:[#allocation23 + $0x340] ss:$16 sps:$4 sm:$0xff]  }
 0xec4   :  { %3901 = vmatpush1.bf16.msra.mxu0 %v18316_v2  ;;  %v18372_v2 = vld [vmem:[#allocation23 + $0x364] ss:$16 sps:$4 sm:$0xff]  }
 0xec5   :  { %3902 = vmatprep.subr.bf16.mxu0 %v18321_v3  ;;  %v18370_v3 = vld [vmem:[#allocation23 + $0x360] ss:$16 sps:$4 sm:$0xff]  }
 0xec8   :  { %3903 = vmatpush1.bf16.msra.mxu0 %v18319_v4  ;;  %v18375_v4 = vld [vmem:[#allocation23 + $0x384] ss:$16 sps:$4 sm:$0xff]  }
 0xec9   :  { %3904 = vmatprep.subr.bf16.mxu0 %v18324_v5  ;;  %v18373_v5 = vld [vmem:[#allocation23 + $0x380] ss:$16 sps:$4 sm:$0xff]  }
 0xecc   :  { %3905 = vmatpush1.bf16.msra.mxu0 %v18322_v6  ;;  %v18376_v6 = vld [vmem:[#allocation23 + $0x3a0] ss:$16 sps:$4 sm:$0xff]  }
 0xecd   :  { %3906 = vmatprep.subr.bf16.mxu0 %v18327_v7  ;;  %v18378_v7 = vld [vmem:[#allocation23 + $0x3a4] ss:$16 sps:$4 sm:$0xff]  }
 0xed0   :  { %3907 = vmatpush1.bf16.msra.mxu0 %v18325_v8  ;;  %v18381_v8 = vld [vmem:[#allocation23 + $0x3c4] ss:$16 sps:$4 sm:$0xff]  }
 0xed1   :  { %3908 = vmatprep.subr.bf16.mxu0 %v18330_v9  ;;  %v18379_v9 = vld [vmem:[#allocation23 + $0x3c0] ss:$16 sps:$4 sm:$0xff]  }
 0xed4   :  { %3909 = vmatpush1.bf16.msra.mxu0 %v18328_v10  ;;  %v18384_v10 = vld [vmem:[#allocation23 + $0x3e4] ss:$16 sps:$4 sm:$0xff]  }
 0xed5   :  { %3910 = vmatprep.subr.bf16.mxu0 %v18333_v11  ;;  %v18382_v11 = vld [vmem:[#allocation23 + $0x3e0] ss:$16 sps:$4 sm:$0xff]  }
 0xed8   :  { %3911 = vmatpush1.bf16.msra.mxu0 %v18331_v12  ;;  %v18389_v12 = vld [vmem:[#allocation23 + $0x20c] ss:$16 sps:$4 sm:$0xff]  }
 0xedb   :  { %3929 = vmatmul.mubr.bf16.vlgmr.msra.gmra.mrb[64].mxu0 %v3814_v15 }
 0xedc   :  { %7339 = vmatprep.mubr.bf16.mxu0 %v21194_v0 }
 0xfae   :  { %v3930_v19 = vpop.f32.mrb[64].mxu0 }
 0xfaf   :  { %v3955_v20 = vadd.f32 %v3948_v17, %v3930_v19  ;;  %v3932_v21 = vpop.f32.mrb[65].mxu0 }
 0xfb0   :  { %v3956_v22 = vadd.f32 %v3952_v18, %v3932_v21  ;;  %v3934_v23 = vpop.f32.mrb[66].mxu0 }
 0xfb1   :  { %v3963_v24 = vmul.f32 0.2, %v3955_v20  ;;  %v3957_v25 = vadd.f32 %v3948_v17, %v3934_v23  ;;  %v3936_v26 = vpop.f32.mrb[67].mxu0  ;;  %vm3959_vm12 = vcmp.gt.f32.partialorder %v3955_v20, 0.0 }
 0xfb2   :  { %v3964_v28 = vmul.f32 0.2, %v3956_v22  ;;  %v3958_v29 = vadd.f32 %v3952_v18, %v3936_v26  ;;  %vm3960_vm15 = vcmp.gt.f32.partialorder %v3956_v22, 0.0 }
 0xfb3   :  { %vm3961_vm4 = vcmp.gt.f32.partialorder %v3957_v25, 0.0  ;;  %v3965_v30 = vmul.f32 0.2, %v3957_v25  ;;  %v3967_v32 = vsel %vm3959_vm12, %v3955_v20, %v3963_v24 }
 0xfb4   :  { %vm3962_vm5 = vcmp.gt.f32.partialorder %v3958_v29, 0.0  ;;  %v3966_v31 = vmul.f32 0.2, %v3958_v29  ;;  %v3968_v34 = vsel %vm3960_vm15, %v3956_v22, %v3964_v28 }
 0xfb5   :  { %v3969_v33 = vsel %vm3961_vm4, %v3957_v25, %v3965_v30 }
 0xfb6   :  { %v3970_v35 = vsel %vm3962_vm5, %v3958_v29, %v3966_v31  ;;  %v3971_v36 = vpack.c.bf16 %v3969_v33, %v3967_v32 }
 0xfb7   :  { %v3972_v37 = vpack.c.bf16 %v3970_v35, %v3968_v34 }
 0xfb8   :  { %v3991_v39 = vsel %vm2511_vm1, %v3971_v36, 0 }
 0xfb9   :  { %16054 = vmatprep.subr.msk.bf16.mxu1 %vm2511_vm1, %v3972_v37 }
 0xfba   :  { %3997 = vmatpush1.bf16.msra.mxu1 %v3991_v39 }
 0xfbb   :  { %4570 = vmatprep.subr.bf16.mxu1 %v18339_v38 }
 0xfbd   :  { %16055 = vmatmul.mubr.msk.bf16.vlgmr.msra.gmra.mrb[60].mxu1 %vm2507_vm3, %v18335_v40 }
 0xfbe   :  { %4038 = vmatprep.mubr.bf16.mxu1 %v21194_v0  ;;  %4571 = vmatpush1.bf16.msra.mxu1 %v18337_v41 }
 0xfbf   :  { %4572 = vmatprep.subr.bf16.mxu1 %v18342_v43 }
 0xfc2   :  { %4573 = vmatpush1.bf16.msra.mxu1 %v18340_v44  ;;  %v18387_v44 = vld [vmem:[#allocation23 + $0x208] ss:$16 sps:$4 sm:$0xff]  }
 0xfc3   :  { %4574 = vmatprep.subr.bf16.mxu1 %v18345_v46 }
 0xfc5   :  { %16056 = vmatmul.mubr.msk.bf16.gmra.mrb[64].mxu1 %vm2507_vm3, %v18336_v47 }
 0xfc6   :  { %4575 = vmatpush1.bf16.msra.mxu1 %v18343_v48 }
 0xfc7   :  { %4576 = vmatprep.subr.bf16.mxu1 %v18348_v49  ;;  %v18392_v49 = vld [vmem:[#allocation23 + $0x22c] ss:$16 sps:$4 sm:$0xff]  }
 0xfca   :  { %4577 = vmatpush1.bf16.msra.mxu1 %v18346_v51  ;;  %v18390_v51 = vld [vmem:[#allocation23 + $0x228] ss:$16 sps:$4 sm:$0xff]  }
 0xfcb   :  { %4578 = vmatprep.subr.bf16.mxu1 %v18351_v52  ;;  %v18395_v52 = vld [vmem:[#allocation23 + $0x24c] ss:$16 sps:$4 sm:$0xff]  }
 0xfce   :  { %4579 = vmatpush1.bf16.msra.mxu1 %v18349_v55 }
 0xfcf   :  { %4580 = vmatprep.subr.bf16.mxu1 %v18354_v56  ;;  %v18393_v56 = vld [vmem:[#allocation23 + $0x248] ss:$16 sps:$4 sm:$0xff]  }
 0xfd2   :  { %4581 = vmatpush1.bf16.msra.mxu1 %v18352_v57 }
 0xfd3   :  { %4582 = vmatprep.subr.bf16.mxu1 %v18357_v42  ;;  %v18398_v42 = vld [vmem:[#allocation23 + $0x26c] ss:$16 sps:$4 sm:$0xff]  }
 0xfd6   :  { %4583 = vmatpush1.bf16.msra.mxu1 %v18355_v54  ;;  %v18396_v54 = vld [vmem:[#allocation23 + $0x268] ss:$16 sps:$4 sm:$0xff]  }
 0xfd7   :  { %4584 = vmatprep.subr.bf16.mxu1 %v18360_v58  ;;  %v18401_v58 = vld [vmem:[#allocation23 + $0x28c] ss:$16 sps:$4 sm:$0xff]  }
 0xfda   :  { %4585 = vmatpush1.bf16.msra.mxu1 %v18358_v59  ;;  %v18399_v59 = vld [vmem:[#allocation23 + $0x288] ss:$16 sps:$4 sm:$0xff]  }
 0xfdb   :  { %4586 = vmatprep.subr.bf16.mxu1 %v18363_v60  ;;  %v18404_v60 = vld [vmem:[#allocation23 + $0x2ac] ss:$16 sps:$4 sm:$0xff]  }
 0xfde   :  { %4587 = vmatpush1.bf16.msra.mxu1 %v18361_v61  ;;  %v18402_v61 = vld [vmem:[#allocation23 + $0x2a8] ss:$16 sps:$4 sm:$0xff]  }
 0xfdf   :  { %4588 = vmatprep.subr.bf16.mxu1 %v18366_v62  ;;  %v18407_v62 = vld [vmem:[#allocation23 + $0x2cc] ss:$16 sps:$4 sm:$0xff]  }
 0xfe2   :  { %4589 = vmatpush1.bf16.msra.mxu1 %v18364_v63  ;;  %v18405_v63 = vld [vmem:[#allocation23 + $0x2c8] ss:$16 sps:$4 sm:$0xff]  }
 0xfe3   :  { %4590 = vmatprep.subr.bf16.mxu1 %v18369_v1  ;;  %v18410_v1 = vld [vmem:[#allocation23 + $0x2ec] ss:$16 sps:$4 sm:$0xff]  }
 0xfe6   :  { %4591 = vmatpush1.bf16.msra.mxu1 %v18367_v27  ;;  %v18408_v27 = vld [vmem:[#allocation23 + $0x2e8] ss:$16 sps:$4 sm:$0xff]  }
 0xfe7   :  { %4592 = vmatprep.subr.bf16.mxu1 %v18372_v2  ;;  %v18413_v2 = vld [vmem:[#allocation23 + $0x30c] ss:$16 sps:$4 sm:$0xff]  }
 0xfea   :  { %4593 = vmatpush1.bf16.msra.mxu1 %v18370_v3  ;;  %v18411_v3 = vld [vmem:[#allocation23 + $0x308] ss:$16 sps:$4 sm:$0xff]  }
 0xfeb   :  { %4594 = vmatprep.subr.bf16.mxu1 %v18375_v4  ;;  %v18416_v4 = vld [vmem:[#allocation23 + $0x32c] ss:$16 sps:$4 sm:$0xff]  }
 0xfee   :  { %4595 = vmatpush1.bf16.msra.mxu1 %v18373_v5  ;;  %v18414_v5 = vld [vmem:[#allocation23 + $0x328] ss:$16 sps:$4 sm:$0xff]  }
 0xfef   :  { %4596 = vmatprep.subr.bf16.mxu1 %v18378_v7  ;;  %v18417_v7 = vld [vmem:[#allocation23 + $0x348] ss:$16 sps:$4 sm:$0xff]  }
 0xff2   :  { %4597 = vmatpush1.bf16.msra.mxu1 %v18376_v6  ;;  %v18419_v6 = vld [vmem:[#allocation23 + $0x34c] ss:$16 sps:$4 sm:$0xff]  }
 0xff3   :  { %4598 = vmatprep.subr.bf16.mxu1 %v18381_v8  ;;  %v18422_v8 = vld [vmem:[#allocation23 + $0x36c] ss:$16 sps:$4 sm:$0xff]  }
 0xff6   :  { %4599 = vmatpush1.bf16.msra.mxu1 %v18379_v9  ;;  %v18420_v9 = vld [vmem:[#allocation23 + $0x368] ss:$16 sps:$4 sm:$0xff]  }
 0xff7   :  { %4600 = vmatprep.subr.bf16.mxu1 %v18384_v10  ;;  %v18425_v10 = vld [vmem:[#allocation23 + $0x38c] ss:$16 sps:$4 sm:$0xff]  }
 0xffa   :  { %4601 = vmatpush1.bf16.msra.mxu1 %v18382_v11  ;;  %v18423_v11 = vld [vmem:[#allocation23 + $0x388] ss:$16 sps:$4 sm:$0xff]  }
 0xffb   :  { %4621 = vmatprep.subr.bf16.mxu1 %v18389_v12  ;;  %v18428_v12 = vld [vmem:[#allocation23 + $0x3ac] ss:$16 sps:$4 sm:$0xff]  }
0x1090   :  { %v4030_v13 = vpop.f32.mrb[60].mxu1 }
0x1091   :  { %v4032_v14 = vpop.f32.mrb[61].mxu1 }
0x1092   :  { %v17455_v15 = vpack.c.bf16 %v4032_v14, %v4030_v13  ;;  %v4034_v16 = vpop.f32.mrb[62].mxu1 }
0x1093   :  { %v4036_v17 = vpop.f32.mrb[63].mxu1  ;;  %v21785_v19 = vpack.c.bf16 %v4034_v16, %v4030_v13  ;;  %v18426_v13 = vld [vmem:[#allocation23 + $0x3a8] ss:$16 sps:$4 sm:$0xff]  }
0x1094   :  { %4067 = vst [vmem:[#allocation9] sm:$0xff] %v17455_v15  ;;  %v21783_v18 = vpack.c.bf16 %v4036_v17, %v4034_v16  ;;  %v21787_v20 = vpack.c.bf16 %v4036_v17, %v4032_v14  ;;  %v18431_v14 = vld [vmem:[#allocation23 + $0x3cc] ss:$16 sps:$4 sm:$0xff]   ;;  %v18429_v15 = vld [vmem:[#allocation23 + $0x3c8] ss:$16 sps:$4 sm:$0xff]  }
0x1095   :  { %v4219_v28 = vshll.u32 %v21785_v19, 16  ;;  %v4217_v36 = vshrl.u32 %v21785_v19, 16  ;;  %v18434_v16 = vld [vmem:[#allocation23 + $0x3ec] ss:$16 sps:$4 sm:$0xff]   ;;  %v18432_v17 = vld [vmem:[#allocation23 + $0x3e8] ss:$16 sps:$4 sm:$0xff]  }
0x1096   :  { %v4231_v26 = vshll.u32 %v21787_v20, 16  ;;  %v4229_v34 = vshrl.u32 %v21787_v20, 16 }
0x1097   :  { %v4221_v33 = vrot.slane %v4219_v28, 1  ;;  %v18446_v28 = vld [vmem:[#allocation23 + $0x64] ss:$16 sps:$4 sm:$0xff]  }
0x1098   :  { %v4040_v21 = vpop.f32.mrb[64].mxu1  ;;  %v4233_v30 = vrot.slane %v4231_v26, 1  ;;  %v18441_v26 = vld [vmem:[#allocation23 + $0x40] ss:$16 sps:$4 sm:$0xff]  }
0x1099   :  { %v4042_v22 = vpop.f32.mrb[65].mxu1  ;;  %v4222_v40 = vor.u32 %v4221_v33, %v4217_v36  ;;  %v18447_v33 = vld [vmem:[#allocation23 + $0x80] ss:$16 sps:$4 sm:$0xff]   ;;  %v18455_v36 = vld [vmem:[#allocation23 + $0xc4] ss:$16 sps:$4 sm:$0xff]  }
0x109a   :  { %v17457_v23 = vpack.c.bf16 %v4042_v22, %v4040_v21  ;;  %v4044_v24 = vpop.f32.mrb[66].mxu1  ;;  %v4234_v38 = vor.u32 %v4233_v30, %v4229_v34  ;;  %v18437_v21 = vld [vmem:[#allocation23 + $0x4] ss:$16 sps:$4 sm:$0xff]   ;;  %v18435_v22 = vld [vmem:[#allocation23] ss:$16 sps:$4 sm:$0xff]  }
0x109b   :  { %v4045_v25 = vpop.f32.mrb[67].mxu1  ;;  %v18438_v24 = vld [vmem:[#allocation23 + $0x20] ss:$16 sps:$4 sm:$0xff]   ;;  %v18449_v30 = vld [vmem:[#allocation23 + $0x84] ss:$16 sps:$4 sm:$0xff]  }
0x109c   :  { %4069 = vst [vmem:[#allocation9 + $0x10] sm:$0x33] %v17457_v23  ;;  %v18440_v23 = vld [vmem:[#allocation23 + $0x24] ss:$16 sps:$4 sm:$0xff]  }
0x109d   :  { %v18443_v25 = vld [vmem:[#allocation23 + $0x44] ss:$16 sps:$4 sm:$0xff]  }
0x109e   :  { %v18452_v34 = vld [vmem:[#allocation23 + $0xa4] ss:$16 sps:$4 sm:$0xff]  }
0x10a3   :  { %v4137_v29 = vld [vmem:[#allocation9 + $0x10] sm:$0x33] }
0x10a4   :  { %v21791_v31 = vcombine.low %v4137_v29, %v4137_v29  ;;  %v21793_v32 = vcombine.high %v4137_v29, %v4137_v29  ;;  %v18444_v29 = vld [vmem:[#allocation23 + $0x60] ss:$16 sps:$4 sm:$0xff]  }
0x10a6   :  { %v4236_v35 = vshll.u32 %v21793_v32, 16  ;;  %v4224_v37 = vshll.u32 %v21791_v31, 16  ;;  %v4243_v43 = vshrl.u32 %v21793_v32, 16  ;;  %v4240_v55 = vshrl.u32 %v21791_v31, 16 }
0x10a8   :  { %v4238_v39 = vrot.slane %v4236_v35, 1  ;;  %v4226_v41 = vrot.slane %v4224_v37, 1  ;;  %v18450_v35 = vld [vmem:[#allocation23 + $0xa0] ss:$16 sps:$4 sm:$0xff]  }
0x10a9   :  { %v18453_v37 = vld [vmem:[#allocation23 + $0xc0] ss:$16 sps:$4 sm:$0xff]  }
0x10aa   :  { %v4239_v46 = vsel %vm642_vm0, %v4234_v38, %v4238_v39  ;;  %v21802_v47 = vsel %vm642_vm0, %v4222_v40, %v4226_v41  ;;  %v21804_v48 = vor.u32 %v4243_v43, %v4238_v39  ;;  %v21809_v57 = vor.u32 %v4240_v55, %v4226_v41  ;;  %v18458_v38 = vld [vmem:[#allocation23 + $0xe4] ss:$16 sps:$4 sm:$0xff]   ;;  %v18456_v39 = vld [vmem:[#allocation23 + $0xe0] ss:$16 sps:$4 sm:$0xff]  }
0x10ab   :  { %4602 = vmatprep.mubr.bf16.mxu1 %v4239_v46  ;;  %v18461_v40 = vld [vmem:[#allocation23 + $0x104] ss:$16 sps:$4 sm:$0xff]   ;;  %v18459_v41 = vld [vmem:[#allocation23 + $0x100] ss:$16 sps:$4 sm:$0xff]  }
0x10ac   :  { %4603 = vmatmul.mubr.bf16.vlgmr.msra.gmra.mrb[68].mxu1 %v21802_v47  ;;  %v18464_v43 = vld [vmem:[#allocation23 + $0x124] ss:$16 sps:$4 sm:$0xff]  }
0x10ad   :  { %4622 = vmatpush1.bf16.msra.mxu1 %v18387_v44  ;;  %4612 = vmatprep.mubr.bf16.mxu1 %v21804_v48  ;;  %v18462_v44 = vld [vmem:[#allocation23 + $0x120] ss:$16 sps:$4 sm:$0xff]   ;;  %v18476_v55 = vld [vmem:[#allocation23 + $0x1a4] ss:$16 sps:$4 sm:$0xff]  }
0x10ae   :  { %4623 = vmatprep.subr.bf16.mxu1 %v18392_v49  ;;  %v18468_v49 = vld [vmem:[#allocation23 + $0x160] ss:$16 sps:$4 sm:$0xff]  }
0x10b1   :  { %4624 = vmatpush1.bf16.msra.mxu1 %v18390_v51  ;;  %v18473_v51 = vld [vmem:[#allocation23 + $0x184] ss:$16 sps:$4 sm:$0xff]  }
0x10b2   :  { %4625 = vmatprep.subr.bf16.mxu1 %v18395_v52  ;;  %v18471_v52 = vld [vmem:[#allocation23 + $0x180] ss:$16 sps:$4 sm:$0xff]  }
0x10b4   :  { %4613 = vmatmul.mubr.bf16.gmra.mrb[72].mxu1 %v21809_v57 }
0x10b5   :  { %4626 = vmatpush1.bf16.msra.mxu1 %v18393_v56  ;;  %4653 = vmatprep.mubr.bf16.mxu1 %v4239_v46  ;;  %v18467_v46 = vld [vmem:[#allocation23 + $0x144] ss:$16 sps:$4 sm:$0xff]   ;;  %v18474_v56 = vld [vmem:[#allocation23 + $0x1a0] ss:$16 sps:$4 sm:$0xff]  }
0x10b6   :  { %4627 = vmatprep.subr.bf16.mxu1 %v18398_v42  ;;  %v18477_v42 = vld [vmem:[#allocation23 + $0x1c0] ss:$16 sps:$4 sm:$0xff]  }
0x10b9   :  { %4628 = vmatpush1.bf16.msra.mxu1 %v18396_v54  ;;  %v18482_v54 = vld [vmem:[#allocation23 + $0x1e4] ss:$16 sps:$4 sm:$0xff]  }
0x10ba   :  { %4629 = vmatprep.subr.bf16.mxu1 %v18401_v58  ;;  %v18480_v58 = vld [vmem:[#allocation23 + $0x1e0] ss:$16 sps:$4 sm:$0xff]  }
0x10bd   :  { %4630 = vmatpush1.bf16.msra.mxu1 %v18399_v59  ;;  %v18485_v59 = vld [vmem:[#allocation23 + $0xc] ss:$16 sps:$4 sm:$0xff]  }
0x10be   :  { %4631 = vmatprep.subr.bf16.mxu1 %v18404_v60  ;;  %v4072_v60 = vld [vmem:[#allocation9 + $0x10] sm:$0x11] }
0x10c1   :  { %4632 = vmatpush1.bf16.msra.mxu1 %v18402_v61  ;;  %v18483_v61 = vld [vmem:[#allocation23 + $0x8] ss:$16 sps:$4 sm:$0xff]  }
0x10c2   :  { %4633 = vmatprep.subr.bf16.mxu1 %v18407_v62  ;;  %v18489_v62 = vld [vmem:[#allocation23 + $0x2c] ss:$16 sps:$4 sm:$0xff]  }
0x10c5   :  { %4634 = vmatpush1.bf16.msra.mxu1 %v18405_v63  ;;  %v21816_v63 = vcombine.high %v4072_v60, %v4072_v60 }
0x10c6   :  { %4635 = vmatprep.subr.bf16.mxu1 %v18410_v1  ;;  %v18487_v1 = vld [vmem:[#allocation23 + $0x28] ss:$16 sps:$4 sm:$0xff]  }
0x10c9   :  { %4636 = vmatpush1.bf16.msra.mxu1 %v18408_v27  ;;  %v18493_v27 = vld [vmem:[#allocation23 + $0x4c] ss:$16 sps:$4 sm:$0xff]  }
0x10ca   :  { %4637 = vmatprep.subr.bf16.mxu1 %v18413_v2  ;;  %v18491_v2 = vld [vmem:[#allocation23 + $0x48] ss:$16 sps:$4 sm:$0xff]  }
0x10cd   :  { %4638 = vmatpush1.bf16.msra.mxu1 %v18411_v3  ;;  %v21820_v3 = vcombine.low %v4072_v60, %v4072_v60 }
0x10ce   :  { %4639 = vmatprep.subr.bf16.mxu1 %v18416_v4  ;;  %v18496_v4 = vld [vmem:[#allocation23 + $0x6c] ss:$16 sps:$4 sm:$0xff]  }
0x10d1   :  { %4640 = vmatpush1.bf16.msra.mxu1 %v18414_v5  ;;  %v18494_v5 = vld [vmem:[#allocation23 + $0x68] ss:$16 sps:$4 sm:$0xff]  }
0x10d2   :  { %4641 = vmatprep.subr.bf16.mxu1 %v18419_v6  ;;  %v18499_v6 = vld [vmem:[#allocation23 + $0x8c] ss:$16 sps:$4 sm:$0xff]  }
0x10d5   :  { %4642 = vmatpush1.bf16.msra.mxu1 %v18417_v7  ;;  %v18497_v7 = vld [vmem:[#allocation23 + $0x88] ss:$16 sps:$4 sm:$0xff]  }
0x10d6   :  { %4643 = vmatprep.subr.bf16.mxu1 %v18422_v8  ;;  %v18502_v8 = vld [vmem:[#allocation23 + $0xac] ss:$16 sps:$4 sm:$0xff]  }
0x10d9   :  { %4644 = vmatpush1.bf16.msra.mxu1 %v18420_v9  ;;  %v18500_v9 = vld [vmem:[#allocation23 + $0xa8] ss:$16 sps:$4 sm:$0xff]  }
0x10da   :  { %4645 = vmatprep.subr.bf16.mxu1 %v18425_v10  ;;  %v18505_v10 = vld [vmem:[#allocation23 + $0xcc] ss:$16 sps:$4 sm:$0xff]  }
0x10dd   :  { %4646 = vmatpush1.bf16.msra.mxu1 %v18423_v11  ;;  %v18503_v11 = vld [vmem:[#allocation23 + $0xc8] ss:$16 sps:$4 sm:$0xff]  }
0x10de   :  { %4647 = vmatprep.subr.bf16.mxu1 %v18428_v12  ;;  %v18508_v12 = vld [vmem:[#allocation23 + $0xec] ss:$16 sps:$4 sm:$0xff]  }
0x10e1   :  { %4648 = vmatpush1.bf16.msra.mxu1 %v18426_v13  ;;  %v18506_v13 = vld [vmem:[#allocation23 + $0xe8] ss:$16 sps:$4 sm:$0xff]  }
0x10e2   :  { %4649 = vmatprep.subr.bf16.mxu1 %v18431_v14  ;;  %v18511_v14 = vld [vmem:[#allocation23 + $0x10c] ss:$16 sps:$4 sm:$0xff]  }
0x10e5   :  { %4650 = vmatpush1.bf16.msra.mxu1 %v18429_v15  ;;  %v18514_v15 = vld [vmem:[#allocation23 + $0x12c] ss:$16 sps:$4 sm:$0xff]  }
0x10e6   :  { %4651 = vmatprep.subr.bf16.mxu1 %v18434_v16  ;;  %v18512_v16 = vld [vmem:[#allocation23 + $0x128] ss:$16 sps:$4 sm:$0xff]  }
0x10e9   :  { %4652 = vmatpush1.bf16.msra.mxu1 %v18432_v17  ;;  %v18517_v17 = vld [vmem:[#allocation23 + $0x14c] ss:$16 sps:$4 sm:$0xff]  }
0x10ea   :  { %5001 = vmatprep.subr.bf16.mxu1 %v18437_v21  ;;  %v18515_v21 = vld [vmem:[#allocation23 + $0x148] ss:$16 sps:$4 sm:$0xff]  }
0x10ec   :  { %4654 = vmatmul.mubr.bf16.vlgmr.msra.gmra.mrb[76].mxu1 %v21802_v47  ;;  %v18465_v47 = vld [vmem:[#allocation23 + $0x140] ss:$16 sps:$4 sm:$0xff]  }
0x10ed   :  { %4663 = vmatprep.mubr.bf16.mxu1 %v21804_v48  ;;  %5002 = vmatpush1.bf16.msra.mxu1 %v18435_v22  ;;  %v18470_v48 = vld [vmem:[#allocation23 + $0x164] ss:$16 sps:$4 sm:$0xff]   ;;  %v18520_v22 = vld [vmem:[#allocation23 + $0x16c] ss:$16 sps:$4 sm:$0xff]  }
0x10ee   :  { %5003 = vmatprep.subr.bf16.mxu1 %v18440_v23  ;;  %v18518_v23 = vld [vmem:[#allocation23 + $0x168] ss:$16 sps:$4 sm:$0xff]  }
0x10f1   :  { %5004 = vmatpush1.bf16.msra.mxu1 %v18438_v24  ;;  %v18523_v24 = vld [vmem:[#allocation23 + $0x18c] ss:$16 sps:$4 sm:$0xff]  }
0x10f2   :  { %5005 = vmatprep.subr.bf16.mxu1 %v18443_v25  ;;  %v18521_v25 = vld [vmem:[#allocation23 + $0x188] ss:$16 sps:$4 sm:$0xff]  }
0x10f4   :  { %4664 = vmatmul.mubr.bf16.gmra.mrb[80].mxu1 %v21809_v57  ;;  %v18479_v57 = vld [vmem:[#allocation23 + $0x1c4] ss:$16 sps:$4 sm:$0xff]  }
0x10f5   :  { %5006 = vmatpush1.bf16.msra.mxu1 %v18441_v26  ;;  %5033 = vmatprep.mubr.bf16.mxu1 %v21787_v20  ;;  %v18526_v26 = vld [vmem:[#allocation23 + $0x1ac] ss:$16 sps:$4 sm:$0xff]  }
0x10f6   :  { %5007 = vmatprep.subr.bf16.mxu1 %v18446_v28  ;;  %v18524_v28 = vld [vmem:[#allocation23 + $0x1a8] ss:$16 sps:$4 sm:$0xff]  }
0x10f9   :  { %5008 = vmatpush1.bf16.msra.mxu1 %v18444_v29  ;;  %v18529_v29 = vld [vmem:[#allocation23 + $0x1cc] ss:$16 sps:$4 sm:$0xff]  }
0x10fa   :  { %5009 = vmatprep.subr.bf16.mxu1 %v18449_v30  ;;  %v18527_v30 = vld [vmem:[#allocation23 + $0x1c8] ss:$16 sps:$4 sm:$0xff]  }
0x10fd   :  { %5010 = vmatpush1.bf16.msra.mxu1 %v18447_v33  ;;  %v18532_v33 = vld [vmem:[#allocation23 + $0x1ec] ss:$16 sps:$4 sm:$0xff]  }
0x10fe   :  { %5011 = vmatprep.subr.bf16.mxu1 %v18452_v34  ;;  %v18530_v34 = vld [vmem:[#allocation23 + $0x1e8] ss:$16 sps:$4 sm:$0xff]  }
0x1101   :  { %5012 = vmatpush1.bf16.msra.mxu1 %v18450_v35  ;;  %v18535_v35 = vld [vmem:[#allocation23 + $0x404] ss:$16 sps:$4 sm:$0xff]  }
0x1102   :  { %5013 = vmatprep.subr.bf16.mxu1 %v18455_v36  ;;  %v18533_v36 = vld [vmem:[#allocation23 + $0x400] ss:$16 sps:$4 sm:$0xff]  }
0x1105   :  { %5014 = vmatpush1.bf16.msra.mxu1 %v18453_v37  ;;  %v18538_v37 = vld [vmem:[#allocation23 + $0x424] ss:$16 sps:$4 sm:$0xff]  }
0x1106   :  { %5015 = vmatprep.subr.bf16.mxu1 %v18458_v38  ;;  %v21824_v38 = vld [vmem:[#allocation9] sm:$0xee] }
0x1109   :  { %5016 = vmatpush1.bf16.msra.mxu1 %v18456_v39  ;;  %v18536_v39 = vld [vmem:[#allocation23 + $0x420] ss:$16 sps:$4 sm:$0xff]  }
0x110a   :  { %5017 = vmatprep.subr.bf16.mxu1 %v18461_v40  ;;  %v18541_v40 = vld [vmem:[#allocation23 + $0x444] ss:$16 sps:$4 sm:$0xff]  }
0x110d   :  { %5018 = vmatpush1.bf16.msra.mxu1 %v18459_v41  ;;  %v16195_v41 = vcombine.high %v21824_v38, %v21783_v18 }
0x110e   :  { %5019 = vmatprep.subr.bf16.mxu1 %v18464_v43  ;;  %v21831_v43 = vrot.slane %v21793_v32, 1  ;;  %v18545_v32 = vld [vmem:[#allocation23 + $0x480] ss:$16 sps:$4 sm:$0xff]  }
0x1111   :  { %5020 = vmatpush1.bf16.msra.mxu1 %v18462_v44  ;;  %v18539_v44 = vld [vmem:[#allocation23 + $0x440] ss:$16 sps:$4 sm:$0xff]  }
0x1112   :  { %5021 = vmatprep.subr.bf16.mxu1 %v18467_v46  ;;  %v5177_v46 = vrot.slane %v16195_v41, 1 }
0x1115   :  { %5022 = vmatpush1.bf16.msra.mxu1 %v18465_v47  ;;  %v18544_v47 = vld [vmem:[#allocation23 + $0x464] ss:$16 sps:$4 sm:$0xff]  }
0x1116   :  { %5023 = vmatprep.subr.bf16.mxu1 %v18470_v48  ;;  %v18542_v48 = vld [vmem:[#allocation23 + $0x460] ss:$16 sps:$4 sm:$0xff]  }
0x1119   :  { %5024 = vmatpush1.bf16.msra.mxu1 %v18468_v49  ;;  %v18547_v49 = vld [vmem:[#allocation23 + $0x484] ss:$16 sps:$4 sm:$0xff]  }
0x111a   :  { %5025 = vmatprep.subr.bf16.mxu1 %v18473_v51  ;;  %v18550_v51 = vld [vmem:[#allocation23 + $0x4a4] ss:$16 sps:$4 sm:$0xff]  }
0x111d   :  { %5026 = vmatpush1.bf16.msra.mxu1 %v18471_v52  ;;  %v18548_v52 = vld [vmem:[#allocation23 + $0x4a0] ss:$16 sps:$4 sm:$0xff]  }
0x111e   :  { %5027 = vmatprep.subr.bf16.mxu1 %v18476_v55  ;;  %v18553_v55 = vld [vmem:[#allocation23 + $0x4c4] ss:$16 sps:$4 sm:$0xff]  }
0x1121   :  { %5028 = vmatpush1.bf16.msra.mxu1 %v18474_v56  ;;  %v18551_v56 = vld [vmem:[#allocation23 + $0x4c0] ss:$16 sps:$4 sm:$0xff]  }
0x1122   :  { %5029 = vmatprep.subr.bf16.mxu1 %v18479_v57  ;;  %v18556_v57 = vld [vmem:[#allocation23 + $0x4e4] ss:$16 sps:$4 sm:$0xff]  }
0x1125   :  { %5030 = vmatpush1.bf16.msra.mxu1 %v18477_v42  ;;  %v18554_v42 = vld [vmem:[#allocation23 + $0x4e0] ss:$16 sps:$4 sm:$0xff]  }
0x1126   :  { %5031 = vmatprep.subr.bf16.mxu1 %v18482_v54  ;;  %v18559_v54 = vld [vmem:[#allocation23 + $0x504] ss:$16 sps:$4 sm:$0xff]  }
0x1129   :  { %5032 = vmatpush1.bf16.msra.mxu1 %v18480_v58 }
0x112a   :  { %5052 = vmatprep.subr.bf16.mxu1 %v18485_v59 }
0x112c   :  { %5034 = vmatmul.mubr.bf16.vlgmr.msra.gmra.mrb[68].mxu1 %v21785_v19 }
0x112d   :  { %5043 = vmatprep.mubr.bf16.mxu1 %v21816_v63  ;;  %5053 = vmatpush1.bf16.msra.mxu1 %v18483_v61  ;;  %v18557_v61 = vld [vmem:[#allocation23 + $0x500] ss:$16 sps:$4 sm:$0xff]  }
0x112e   :  { %5054 = vmatprep.subr.bf16.mxu1 %v18489_v62 }
0x1131   :  { %5055 = vmatpush1.bf16.msra.mxu1 %v18487_v1  ;;  %v18560_v1 = vld [vmem:[#allocation23 + $0x520] ss:$16 sps:$4 sm:$0xff]  }
0x1132   :  { %5056 = vmatprep.subr.bf16.mxu1 %v18493_v27  ;;  %v18565_v27 = vld [vmem:[#allocation23 + $0x544] ss:$16 sps:$4 sm:$0xff]  }
0x1134   :  { %5044 = vmatmul.mubr.bf16.gmra.mrb[84].mxu1 %v21820_v3 }
0x1135   :  { %5057 = vmatpush1.bf16.msra.mxu1 %v18491_v2  ;;  %5084 = vmatprep.mubr.bf16.mxu1 %v21787_v20  ;;  %v18509_v20 = vld [vmem:[#allocation23 + $0x108] ss:$16 sps:$4 sm:$0xff]   ;;  %v18563_v2 = vld [vmem:[#allocation23 + $0x540] ss:$16 sps:$4 sm:$0xff]  }
0x1136   :  { %5058 = vmatprep.subr.bf16.mxu1 %v18496_v4  ;;  %v18566_v4 = vld [vmem:[#allocation23 + $0x560] ss:$16 sps:$4 sm:$0xff]  }
0x1139   :  { %5059 = vmatpush1.bf16.msra.mxu1 %v18494_v5  ;;  %v18571_v5 = vld [vmem:[#allocation23 + $0x584] ss:$16 sps:$4 sm:$0xff]  }
0x113a   :  { %5060 = vmatprep.subr.bf16.mxu1 %v18499_v6  ;;  %v18569_v6 = vld [vmem:[#allocation23 + $0x580] ss:$16 sps:$4 sm:$0xff]  }
0x113d   :  { %5061 = vmatpush1.bf16.msra.mxu1 %v18497_v7  ;;  %v18574_v7 = vld [vmem:[#allocation23 + $0x5a4] ss:$16 sps:$4 sm:$0xff]  }
0x113e   :  { %5062 = vmatprep.subr.bf16.mxu1 %v18502_v8  ;;  %v18572_v8 = vld [vmem:[#allocation23 + $0x5a0] ss:$16 sps:$4 sm:$0xff]  }
0x1141   :  { %5063 = vmatpush1.bf16.msra.mxu1 %v18500_v9  ;;  %v18577_v9 = vld [vmem:[#allocation23 + $0x5c4] ss:$16 sps:$4 sm:$0xff]  }
0x1142   :  { %5064 = vmatprep.subr.bf16.mxu1 %v18505_v10  ;;  %v18575_v10 = vld [vmem:[#allocation23 + $0x5c0] ss:$16 sps:$4 sm:$0xff]  }
0x1145   :  { %5065 = vmatpush1.bf16.msra.mxu1 %v18503_v11  ;;  %v18580_v11 = vld [vmem:[#allocation23 + $0x5e4] ss:$16 sps:$4 sm:$0xff]  }
0x1146   :  { %5066 = vmatprep.subr.bf16.mxu1 %v18508_v12  ;;  %v16194_v12 = vcombine.low %v21824_v38, %v21783_v18  ;;  %v18584_v18 = vld [vmem:[#allocation23 + $0x428] ss:$16 sps:$4 sm:$0xff]  }
0x1149   :  { %5067 = vmatpush1.bf16.msra.mxu1 %v18506_v13  ;;  %v18578_v13 = vld [vmem:[#allocation23 + $0x5e0] ss:$16 sps:$4 sm:$0xff]  }
0x114a   :  { %5068 = vmatprep.subr.bf16.mxu1 %v18511_v14  ;;  %v18583_v14 = vld [vmem:[#allocation23 + $0x40c] ss:$16 sps:$4 sm:$0xff]  }
0x114d   :  { %5069 = vmatpush1.bf16.msra.mxu1 %v18509_v20  ;;  %v21846_v20 = vrot.slane %v21791_v31, 1  ;;  %v18587_v31 = vld [vmem:[#allocation23 + $0x448] ss:$16 sps:$4 sm:$0xff]  }
0x114e   :  { %5070 = vmatprep.subr.bf16.mxu1 %v18514_v15  ;;  %v5174_v15 = vrot.slane %v16194_v12, 1  ;;  %v18654_v12 = vld [vmem:[#allocation24 + $0xe4] ss:$16 sps:$4 sm:$0xff]  }
0x1151   :  { %5071 = vmatpush1.bf16.msra.mxu1 %v18512_v16  ;;  %v18581_v16 = vld [vmem:[#allocation23 + $0x408] ss:$16 sps:$4 sm:$0xff]  }
0x1152   :  { %5072 = vmatprep.subr.bf16.mxu1 %v18517_v17  ;;  %v18586_v17 = vld [vmem:[#allocation23 + $0x42c] ss:$16 sps:$4 sm:$0xff]  }
0x1155   :  { %5073 = vmatpush1.bf16.msra.mxu1 %v18515_v21  ;;  %v21850_v21 = vsel %vm857_vm2, %v5174_v15, %v21846_v20 }
0x1156   :  { %5074 = vmatprep.subr.bf16.mxu1 %v18520_v22  ;;  %v18589_v22 = vld [vmem:[#allocation23 + $0x44c] ss:$16 sps:$4 sm:$0xff]  }
0x1159   :  { %5075 = vmatpush1.bf16.msra.mxu1 %v18518_v23  ;;  %v18592_v23 = vld [vmem:[#allocation23 + $0x46c] ss:$16 sps:$4 sm:$0xff]  }
0x115a   :  { %5076 = vmatprep.subr.bf16.mxu1 %v18523_v24  ;;  %v18590_v24 = vld [vmem:[#allocation23 + $0x468] ss:$16 sps:$4 sm:$0xff]  }
0x115d   :  { %5077 = vmatpush1.bf16.msra.mxu1 %v18521_v25  ;;  %v18595_v25 = vld [vmem:[#allocation23 + $0x48c] ss:$16 sps:$4 sm:$0xff]  }
0x115e   :  { %5078 = vmatprep.subr.bf16.mxu1 %v18526_v26  ;;  %v18593_v26 = vld [vmem:[#allocation23 + $0x488] ss:$16 sps:$4 sm:$0xff]  }
0x1161   :  { %5079 = vmatpush1.bf16.msra.mxu1 %v18524_v28  ;;  %v18598_v28 = vld [vmem:[#allocation23 + $0x4ac] ss:$16 sps:$4 sm:$0xff]  }
0x1162   :  { %5080 = vmatprep.subr.bf16.mxu1 %v18529_v29  ;;  %v18596_v29 = vld [vmem:[#allocation23 + $0x4a8] ss:$16 sps:$4 sm:$0xff]  }
0x1165   :  { %5081 = vmatpush1.bf16.msra.mxu1 %v18527_v30  ;;  %v18601_v30 = vld [vmem:[#allocation23 + $0x4cc] ss:$16 sps:$4 sm:$0xff]  }
0x1166   :  { %5082 = vmatprep.subr.bf16.mxu1 %v18532_v33  ;;  %v18599_v33 = vld [vmem:[#allocation23 + $0x4c8] ss:$16 sps:$4 sm:$0xff]  }
0x1169   :  { %5083 = vmatpush1.bf16.msra.mxu1 %v18530_v34  ;;  %v18604_v34 = vld [vmem:[#allocation23 + $0x4ec] ss:$16 sps:$4 sm:$0xff]  }
0x116a   :  { %5504 = vmatprep.subr.bf16.mxu1 %v18535_v35  ;;  %v18602_v35 = vld [vmem:[#allocation23 + $0x4e8] ss:$16 sps:$4 sm:$0xff]  }
0x116c   :  { %5085 = vmatmul.mubr.bf16.vlgmr.msra.gmra.mrb[76].mxu1 %v21785_v19  ;;  %v21836_v19 = vsel %vm857_vm2, %v5177_v46, %v21831_v43  ;;  %v18608_v46 = vld [vmem:[#allocation23 + $0x528] ss:$16 sps:$4 sm:$0xff]  }
0x116d   :  { %5094 = vmatprep.mubr.bf16.mxu1 %v21816_v63  ;;  %5505 = vmatpush1.bf16.msra.mxu1 %v18533_v36  ;;  %v18562_v63 = vld [vmem:[#allocation23 + $0x524] ss:$16 sps:$4 sm:$0xff]   ;;  %v18607_v36 = vld [vmem:[#allocation23 + $0x50c] ss:$16 sps:$4 sm:$0xff]  }
0x116e   :  { %5506 = vmatprep.subr.bf16.mxu1 %v18538_v37 }
0x1171   :  { %5507 = vmatpush1.bf16.msra.mxu1 %v18536_v39 }
0x1172   :  { %5508 = vmatprep.subr.bf16.mxu1 %v18541_v40  ;;  %v18605_v40 = vld [vmem:[#allocation23 + $0x508] ss:$16 sps:$4 sm:$0xff]  }
0x1174   :  { %5095 = vmatmul.mubr.bf16.gmra.mrb[88].mxu1 %v21820_v3  ;;  %v18568_v3 = vld [vmem:[#allocation23 + $0x564] ss:$16 sps:$4 sm:$0xff]  }
0x1175   :  { %5509 = vmatpush1.bf16.msra.mxu1 %v18539_v44  ;;  %5536 = vmatprep.mubr.bf16.mxu1 %v21836_v19  ;;  %v18610_v44 = vld [vmem:[#allocation23 + $0x52c] ss:$16 sps:$4 sm:$0xff]  }
0x1176   :  { %5510 = vmatprep.subr.bf16.mxu1 %v18544_v47  ;;  %v18613_v47 = vld [vmem:[#allocation23 + $0x54c] ss:$16 sps:$4 sm:$0xff]  }
0x1179   :  { %5511 = vmatpush1.bf16.msra.mxu1 %v18542_v48  ;;  %v18616_v48 = vld [vmem:[#allocation23 + $0x56c] ss:$16 sps:$4 sm:$0xff]  }
0x117a   :  { %5512 = vmatprep.subr.bf16.mxu1 %v18547_v49  ;;  %v18614_v49 = vld [vmem:[#allocation23 + $0x568] ss:$16 sps:$4 sm:$0xff]  }
0x117d   :  { %5513 = vmatpush1.bf16.msra.mxu1 %v18545_v32  ;;  %v18619_v32 = vld [vmem:[#allocation23 + $0x58c] ss:$16 sps:$4 sm:$0xff]  }
0x117e   :  { %5514 = vmatprep.subr.bf16.mxu1 %v18550_v51  ;;  %v18617_v51 = vld [vmem:[#allocation23 + $0x588] ss:$16 sps:$4 sm:$0xff]  }
0x1181   :  { %5515 = vmatpush1.bf16.msra.mxu1 %v18548_v52  ;;  %v18622_v52 = vld [vmem:[#allocation23 + $0x5ac] ss:$16 sps:$4 sm:$0xff]  }
0x1182   :  { %5516 = vmatprep.subr.bf16.mxu1 %v18553_v55  ;;  %v18620_v55 = vld [vmem:[#allocation23 + $0x5a8] ss:$16 sps:$4 sm:$0xff]  }
0x1185   :  { %5517 = vmatpush1.bf16.msra.mxu1 %v18551_v56  ;;  %v18625_v56 = vld [vmem:[#allocation23 + $0x5cc] ss:$16 sps:$4 sm:$0xff]  }
0x1186   :  { %5518 = vmatprep.subr.bf16.mxu1 %v18556_v57  ;;  %v18623_v57 = vld [vmem:[#allocation23 + $0x5c8] ss:$16 sps:$4 sm:$0xff]  }
0x1187   :  { %v21839_v58 = vpop.f32.mrb[72].mxu1 }
0x1188   :  { %v21841_v59 = vpop.f32.mrb[73].mxu1 }
0x1189   :  { %5519 = vmatpush1.bf16.msra.mxu1 %v18554_v42  ;;  %v4618_v60 = vpop.f32.mrb[74].mxu1  ;;  %v18628_v42 = vld [vmem:[#allocation23 + $0x5ec] ss:$16 sps:$4 sm:$0xff]  }
0x118a   :  { %v4619_v62 = vpop.f32.mrb[75].mxu1  ;;  %5520 = vmatprep.subr.bf16.mxu1 %v18559_v54  ;;  %v18626_v54 = vld [vmem:[#allocation23 + $0x5e8] ss:$16 sps:$4 sm:$0xff]   ;;  %v18631_v60 = vld [vmem:[#allocation24 + $0x4] ss:$16 sps:$4 sm:$0xff]  }
0x118b   :  { %v18634_v62 = vld [vmem:[#allocation24 + $0x24] ss:$16 sps:$4 sm:$0xff]  }
0x118d   :  { %5521 = vmatpush1.bf16.msra.mxu1 %v18557_v61  ;;  %v18629_v61 = vld [vmem:[#allocation24] ss:$16 sps:$4 sm:$0xff]  }
0x118e   :  { %5522 = vmatprep.subr.bf16.mxu1 %v18562_v63  ;;  %v18632_v63 = vld [vmem:[#allocation24 + $0x20] ss:$16 sps:$4 sm:$0xff]  }
0x1191   :  { %5523 = vmatpush1.bf16.msra.mxu1 %v18560_v1  ;;  %v18637_v1 = vld [vmem:[#allocation24 + $0x44] ss:$16 sps:$4 sm:$0xff]  }
0x1192   :  { %5524 = vmatprep.subr.bf16.mxu1 %v18565_v27  ;;  %v21862_v27 = vld [vmem:[#allocation4 + $0x8] sm:$0xff] }
0x1195   :  { %5525 = vmatpush1.bf16.msra.mxu1 %v18563_v2  ;;  %v18635_v2 = vld [vmem:[#allocation24 + $0x40] ss:$16 sps:$4 sm:$0xff]  }
0x1196   :  { %5526 = vmatprep.subr.bf16.mxu1 %v18568_v3  ;;  %v21864_v3 = vld [vmem:[#allocation4] sm:$0xff] }
0x1199   :  { %5527 = vmatpush1.bf16.msra.mxu1 %v18566_v4  ;;  %v18642_v4 = vld [vmem:[#allocation24 + $0x64] ss:$16 sps:$4 sm:$0xff]  }
0x119a   :  { %5528 = vmatprep.subr.bf16.mxu1 %v18571_v5  ;;  %v21868_v5 = vcombine.high %v21864_v3, %v21862_v27 }
0x119d   :  { %5529 = vmatpush1.bf16.msra.mxu1 %v18569_v6  ;;  %v18645_v6 = vld [vmem:[#allocation24 + $0x84] ss:$16 sps:$4 sm:$0xff]  }
0x119e   :  { %5530 = vmatprep.subr.bf16.mxu1 %v18574_v7  ;;  %v18643_v7 = vld [vmem:[#allocation24 + $0x80] ss:$16 sps:$4 sm:$0xff]  }
0x11a1   :  { %5531 = vmatpush1.bf16.msra.mxu1 %v18572_v8  ;;  %v18648_v8 = vld [vmem:[#allocation24 + $0xa4] ss:$16 sps:$4 sm:$0xff]  }
0x11a2   :  { %5532 = vmatprep.subr.bf16.mxu1 %v18577_v9  ;;  %v18646_v9 = vld [vmem:[#allocation24 + $0xa0] ss:$16 sps:$4 sm:$0xff]  }
0x11a5   :  { %5533 = vmatpush1.bf16.msra.mxu1 %v18575_v10  ;;  %v18651_v10 = vld [vmem:[#allocation24 + $0xc4] ss:$16 sps:$4 sm:$0xff]  }
0x11a6   :  { %5534 = vmatprep.subr.bf16.mxu1 %v18580_v11  ;;  %v18649_v11 = vld [vmem:[#allocation24 + $0xc0] ss:$16 sps:$4 sm:$0xff]  }
0x11a9   :  { %5535 = vmatpush1.bf16.msra.mxu1 %v18578_v13  ;;  %v18652_v13 = vld [vmem:[#allocation24 + $0xe0] ss:$16 sps:$4 sm:$0xff]  }
0x11aa   :  { %5555 = vmatprep.subr.bf16.mxu1 %v18583_v14  ;;  %v18657_v14 = vld [vmem:[#allocation24 + $0x104] ss:$16 sps:$4 sm:$0xff]  }
0x11ac   :  { %5537 = vmatmul.mubr.bf16.vlgmr.msra.gmra.mrb[68].mxu1 %v21850_v21 }
0x11ad   :  { %5546 = vmatprep.mubr.bf16.mxu1 %v21831_v43  ;;  %5556 = vmatpush1.bf16.msra.mxu1 %v18581_v16 }
0x11ae   :  { %5557 = vmatprep.subr.bf16.mxu1 %v18586_v17 }
0x11b1   :  { %5558 = vmatpush1.bf16.msra.mxu1 %v18584_v18  ;;  %v18655_v18 = vld [vmem:[#allocation24 + $0x100] ss:$16 sps:$4 sm:$0xff]  }
0x11b2   :  { %5559 = vmatprep.subr.bf16.mxu1 %v18589_v22 }
0x11b4   :  { %5547 = vmatmul.mubr.bf16.gmra.mrb[92].mxu1 %v21846_v20 }
0x11b5   :  { %5560 = vmatpush1.bf16.msra.mxu1 %v18587_v31  ;;  %5587 = vmatprep.mubr.bf16.mxu1 %v21836_v19  ;;  %v18611_v19 = vld [vmem:[#allocation23 + $0x548] ss:$16 sps:$4 sm:$0xff]   ;;  %v18660_v31 = vld [vmem:[#allocation24 + $0x124] ss:$16 sps:$4 sm:$0xff]  }
0x11b6   :  { %5561 = vmatprep.subr.bf16.mxu1 %v18592_v23  ;;  %v18658_v23 = vld [vmem:[#allocation24 + $0x120] ss:$16 sps:$4 sm:$0xff]  }
0x11b9   :  { %5562 = vmatpush1.bf16.msra.mxu1 %v18590_v24  ;;  %v18663_v24 = vld [vmem:[#allocation24 + $0x144] ss:$16 sps:$4 sm:$0xff]  }
0x11ba   :  { %5563 = vmatprep.subr.bf16.mxu1 %v18595_v25  ;;  %v18661_v25 = vld [vmem:[#allocation24 + $0x140] ss:$16 sps:$4 sm:$0xff]  }
0x11bd   :  { %5564 = vmatpush1.bf16.msra.mxu1 %v18593_v26  ;;  %v18666_v26 = vld [vmem:[#allocation24 + $0x164] ss:$16 sps:$4 sm:$0xff]  }
0x11be   :  { %5565 = vmatprep.subr.bf16.mxu1 %v18598_v28  ;;  %v18669_v28 = vld [vmem:[#allocation24 + $0x184] ss:$16 sps:$4 sm:$0xff]  }
0x11c1   :  { %5566 = vmatpush1.bf16.msra.mxu1 %v18596_v29  ;;  %v18672_v29 = vld [vmem:[#allocation24 + $0x1a4] ss:$16 sps:$4 sm:$0xff]  }
0x11c2   :  { %5567 = vmatprep.subr.bf16.mxu1 %v18601_v30  ;;  %v18670_v30 = vld [vmem:[#allocation24 + $0x1a0] ss:$16 sps:$4 sm:$0xff]  }
0x11c5   :  { %5568 = vmatpush1.bf16.msra.mxu1 %v18599_v33  ;;  %v18675_v33 = vld [vmem:[#allocation24 + $0x1c4] ss:$16 sps:$4 sm:$0xff]  }
0x11c6   :  { %5569 = vmatprep.subr.bf16.mxu1 %v18604_v34  ;;  %v18673_v34 = vld [vmem:[#allocation24 + $0x1c0] ss:$16 sps:$4 sm:$0xff]  }
0x11c7   :  { %v21856_v37 = vpop.f32.mrb[80].mxu1 }
0x11c8   :  { %v21858_v38 = vpop.f32.mrb[81].mxu1 }
0x11c9   :  { %v4669_v39 = vpop.f32.mrb[82].mxu1  ;;  %5570 = vmatpush1.bf16.msra.mxu1 %v18602_v35  ;;  %v18678_v35 = vld [vmem:[#allocation24 + $0x1e4] ss:$16 sps:$4 sm:$0xff]  }
0x11ca   :  { %v4670_v41 = vpop.f32.mrb[83].mxu1  ;;  %5571 = vmatprep.subr.bf16.mxu1 %v18607_v36  ;;  %v18676_v36 = vld [vmem:[#allocation24 + $0x1e0] ss:$16 sps:$4 sm:$0xff]   ;;  %v18681_v39 = vld [vmem:[#allocation24 + $0xc] ss:$16 sps:$4 sm:$0xff]  }
0x11cb   :  { %v18679_v41 = vld [vmem:[#allocation24 + $0x8] ss:$16 sps:$4 sm:$0xff]  }
0x11cd   :  { %5572 = vmatpush1.bf16.msra.mxu1 %v18605_v40  ;;  %v5620_v40 = vld [vmem:[#allocation4 + $0x10] sm:$0x11] }
0x11ce   :  { %5573 = vmatprep.subr.bf16.mxu1 %v18610_v44  ;;  %v21880_v44 = vcombine.low %v21864_v3, %v21862_v27 }
0x11d1   :  { %5574 = vmatpush1.bf16.msra.mxu1 %v18608_v46  ;;  %v18685_v46 = vld [vmem:[#allocation24 + $0x2c] ss:$16 sps:$4 sm:$0xff]  }
0x11d2   :  { %5575 = vmatprep.subr.bf16.mxu1 %v18613_v47  ;;  %v21882_v47 = vcombine.high %v5620_v40, %v5620_v40 }
0x11d5   :  { %5576 = vmatpush1.bf16.msra.mxu1 %v18611_v19  ;;  %v18683_v19 = vld [vmem:[#allocation24 + $0x28] ss:$16 sps:$4 sm:$0xff]  }
0x11d6   :  { %5577 = vmatprep.subr.bf16.mxu1 %v18616_v48  ;;  %v18689_v48 = vld [vmem:[#allocation24 + $0x4c] ss:$16 sps:$4 sm:$0xff]  }
0x11d9   :  { %5578 = vmatpush1.bf16.msra.mxu1 %v18614_v49  ;;  %v18687_v49 = vld [vmem:[#allocation24 + $0x48] ss:$16 sps:$4 sm:$0xff]  }
0x11da   :  { %5579 = vmatprep.subr.bf16.mxu1 %v18619_v32  ;;  %v21886_v32 = vcombine.low %v5620_v40, %v5620_v40 }
0x11dd   :  { %5580 = vmatpush1.bf16.msra.mxu1 %v18617_v51  ;;  %v18692_v51 = vld [vmem:[#allocation24 + $0x6c] ss:$16 sps:$4 sm:$0xff]  }
0x11de   :  { %5581 = vmatprep.subr.bf16.mxu1 %v18622_v52  ;;  %v18690_v52 = vld [vmem:[#allocation24 + $0x68] ss:$16 sps:$4 sm:$0xff]  }
0x11e1   :  { %5582 = vmatpush1.bf16.msra.mxu1 %v18620_v55  ;;  %v18695_v55 = vld [vmem:[#allocation24 + $0x8c] ss:$16 sps:$4 sm:$0xff]  }
0x11e2   :  { %5583 = vmatprep.subr.bf16.mxu1 %v18625_v56  ;;  %v18693_v56 = vld [vmem:[#allocation24 + $0x88] ss:$16 sps:$4 sm:$0xff]  }
0x11e5   :  { %5584 = vmatpush1.bf16.msra.mxu1 %v18623_v57  ;;  %v18698_v57 = vld [vmem:[#allocation24 + $0xac] ss:$16 sps:$4 sm:$0xff]  }
0x11e6   :  { %5585 = vmatprep.subr.bf16.mxu1 %v18628_v42  ;;  %v18696_v42 = vld [vmem:[#allocation24 + $0xa8] ss:$16 sps:$4 sm:$0xff]  }
0x11e9   :  { %5586 = vmatpush1.bf16.msra.mxu1 %v18626_v54  ;;  %v18701_v54 = vld [vmem:[#allocation24 + $0xcc] ss:$16 sps:$4 sm:$0xff]  }
0x11ea   :  { %6022 = vmatprep.subr.bf16.mxu1 %v18631_v60  ;;  %v18699_v60 = vld [vmem:[#allocation24 + $0xc8] ss:$16 sps:$4 sm:$0xff]  }
0x11ec   :  { %5588 = vmatmul.mubr.bf16.vlgmr.msra.gmra.mrb[76].mxu1 %v21850_v21 }
0x11ed   :  { %5597 = vmatprep.mubr.bf16.mxu1 %v21831_v43  ;;  %6023 = vmatpush1.bf16.msra.mxu1 %v18629_v61  ;;  %v18640_v43 = vld [vmem:[#allocation24 + $0x60] ss:$16 sps:$4 sm:$0xff]   ;;  %v18704_v61 = vld [vmem:[#allocation24 + $0xec] ss:$16 sps:$4 sm:$0xff]  }
0x11ee   :  { %6024 = vmatprep.subr.bf16.mxu1 %v18634_v62  ;;  %v18702_v62 = vld [vmem:[#allocation24 + $0xe8] ss:$16 sps:$4 sm:$0xff]  }
0x11f1   :  { %6025 = vmatpush1.bf16.msra.mxu1 %v18632_v63  ;;  %v18707_v63 = vld [vmem:[#allocation24 + $0x10c] ss:$16 sps:$4 sm:$0xff]  }
0x11f2   :  { %6026 = vmatprep.subr.bf16.mxu1 %v18637_v1 }
0x11f4   :  { %5598 = vmatmul.mubr.bf16.gmra.mrb[96].mxu1 %v21846_v20 }
0x11f5   :  { %6027 = vmatpush1.bf16.msra.mxu1 %v18635_v2  ;;  %6054 = vmatprep.mubr.bf16.mxu1 %v21868_v5 }
0x11f6   :  { %6028 = vmatprep.subr.bf16.mxu1 %v18642_v4 }
0x11f9   :  { %6029 = vmatpush1.bf16.msra.mxu1 %v18640_v43 }
0x11fa   :  { %6030 = vmatprep.subr.bf16.mxu1 %v18645_v6  ;;  %v18705_v6 = vld [vmem:[#allocation24 + $0x108] ss:$16 sps:$4 sm:$0xff]  }
0x11fd   :  { %6031 = vmatpush1.bf16.msra.mxu1 %v18643_v7 }
0x11fe   :  { %6032 = vmatprep.subr.bf16.mxu1 %v18648_v8  ;;  %v18710_v8 = vld [vmem:[#allocation24 + $0x12c] ss:$16 sps:$4 sm:$0xff]  }
0x1201   :  { %6033 = vmatpush1.bf16.msra.mxu1 %v18646_v9  ;;  %v18708_v9 = vld [vmem:[#allocation24 + $0x128] ss:$16 sps:$4 sm:$0xff]  }
0x1202   :  { %6034 = vmatprep.subr.bf16.mxu1 %v18651_v10  ;;  %v18713_v10 = vld [vmem:[#allocation24 + $0x14c] ss:$16 sps:$4 sm:$0xff]  }
0x1205   :  { %6035 = vmatpush1.bf16.msra.mxu1 %v18649_v11  ;;  %v18711_v11 = vld [vmem:[#allocation24 + $0x148] ss:$16 sps:$4 sm:$0xff]  }
0x1206   :  { %6036 = vmatprep.subr.bf16.mxu1 %v18654_v12  ;;  %v18716_v12 = vld [vmem:[#allocation24 + $0x16c] ss:$16 sps:$4 sm:$0xff]  }
0x1207   :  { %v5045_v20 = vpop.f32.mrb[84].mxu1 }
0x1208   :  { %v21873_v15 = vadd.f32 %v5045_v20, %v21839_v58  ;;  %v5047_v16 = vpop.f32.mrb[85].mxu1  ;;  %v18664_v58 = vld [vmem:[#allocation24 + $0x160] ss:$16 sps:$4 sm:$0xff]   ;;  %v18720_v20 = vld [vmem:[#allocation24 + $0x1a8] ss:$16 sps:$4 sm:$0xff]  }
0x1209   :  { %v21876_v17 = vadd.f32 %v5047_v16, %v21841_v59  ;;  %v5049_v21 = vpop.f32.mrb[86].mxu1  ;;  %6037 = vmatpush1.bf16.msra.mxu1 %v18652_v13  ;;  %v18667_v59 = vld [vmem:[#allocation24 + $0x180] ss:$16 sps:$4 sm:$0xff]   ;;  %v18719_v13 = vld [vmem:[#allocation24 + $0x18c] ss:$16 sps:$4 sm:$0xff]  }
0x120a   :  { %v5050_v22 = vpop.f32.mrb[87].mxu1  ;;  %6038 = vmatprep.subr.bf16.mxu1 %v18657_v14  ;;  %v18722_v14 = vld [vmem:[#allocation24 + $0x1ac] ss:$16 sps:$4 sm:$0xff]   ;;  %v18723_v21 = vld [vmem:[#allocation24 + $0x1c8] ss:$16 sps:$4 sm:$0xff]  }
0x120b   :  { %v18725_v16 = vld [vmem:[#allocation24 + $0x1cc] ss:$16 sps:$4 sm:$0xff]   ;;  %v18726_v22 = vld [vmem:[#allocation24 + $0x1e8] ss:$16 sps:$4 sm:$0xff]  }
0x120d   :  { %6039 = vmatpush1.bf16.msra.mxu1 %v18655_v18  ;;  %v18728_v18 = vld [vmem:[#allocation24 + $0x1ec] ss:$16 sps:$4 sm:$0xff]  }
0x120e   :  { %6040 = vmatprep.subr.bf16.mxu1 %v18660_v31  ;;  %v21896_v31 = vld [vmem:[#allocation4 + $0x10] sm:$0x33] }
0x1211   :  { %6041 = vmatpush1.bf16.msra.mxu1 %v18658_v23  ;;  %v18731_v23 = vld [vmem:[#allocation24 + $0x204] ss:$16 sps:$4 sm:$0xff]  }
0x1212   :  { %6042 = vmatprep.subr.bf16.mxu1 %v18663_v24  ;;  %v21900_v24 = vcombine.high %v21896_v31, %v21896_v31 }
0x1215   :  { %6043 = vmatpush1.bf16.msra.mxu1 %v18661_v25  ;;  %v18729_v25 = vld [vmem:[#allocation24 + $0x200] ss:$16 sps:$4 sm:$0xff]  }
0x1216   :  { %6044 = vmatprep.subr.bf16.mxu1 %v18666_v26  ;;  %v18734_v26 = vld [vmem:[#allocation24 + $0x224] ss:$16 sps:$4 sm:$0xff]  }
0x1219   :  { %6045 = vmatpush1.bf16.msra.mxu1 %v18664_v58  ;;  %v6222_v58 = vshll.u32 %v21868_v5, 16 }
0x121a   :  { %6046 = vmatprep.subr.bf16.mxu1 %v18669_v28  ;;  %v6227_v28 = vshll.u32 %v21900_v24, 16 }
0x121d   :  { %6047 = vmatpush1.bf16.msra.mxu1 %v18667_v59  ;;  %v18732_v59 = vld [vmem:[#allocation24 + $0x220] ss:$16 sps:$4 sm:$0xff]  }
0x121e   :  { %6048 = vmatprep.subr.bf16.mxu1 %v18672_v29  ;;  %v18737_v29 = vld [vmem:[#allocation24 + $0x244] ss:$16 sps:$4 sm:$0xff]  }
0x1221   :  { %6049 = vmatpush1.bf16.msra.mxu1 %v18670_v30  ;;  %v6224_v30 = vrot.slane %v6222_v58, 1  ;;  %v18787_v58 = vld [vmem:[#allocation24 + $0x24c] ss:$16 sps:$4 sm:$0xff]  }
0x1222   :  { %6050 = vmatprep.subr.bf16.mxu1 %v18675_v33  ;;  %v6220_v33 = vshrl.u32 %v21868_v5, 16 }
0x1225   :  { %6051 = vmatpush1.bf16.msra.mxu1 %v18673_v34  ;;  %v21907_v34 = vrot.slane %v6227_v28, 1 }
0x1226   :  { %6052 = vmatprep.subr.bf16.mxu1 %v18678_v35  ;;  %v18735_v35 = vld [vmem:[#allocation24 + $0x240] ss:$16 sps:$4 sm:$0xff]  }
0x1229   :  { %6053 = vmatpush1.bf16.msra.mxu1 %v18676_v36  ;;  %v6225_v36 = vor.u32 %v6224_v30, %v6220_v33  ;;  %v18790_v30 = vld [vmem:[#allocation24 + $0x26c] ss:$16 sps:$4 sm:$0xff]   ;;  %v18788_v33 = vld [vmem:[#allocation24 + $0x268] ss:$16 sps:$4 sm:$0xff]  }
0x122a   :  { %6073 = vmatprep.subr.bf16.mxu1 %v18681_v39  ;;  %v18742_v39 = vld [vmem:[#allocation24 + $0x264] ss:$16 sps:$4 sm:$0xff]  }
0x122b   :  { %v21912_v40 = vsel %vm642_vm0, %v6225_v36, %v21907_v34  ;;  %v18796_v36 = vld [vmem:[#allocation24 + $0x2ac] ss:$16 sps:$4 sm:$0xff]  }
0x122c   :  { %6055 = vmatmul.mubr.bf16.vlgmr.msra.gmra.mrb[68].mxu1 %v21880_v44 }
0x122d   :  { %6064 = vmatprep.mubr.bf16.mxu1 %v21882_v47  ;;  %6074 = vmatpush1.bf16.msra.mxu1 %v18679_v41  ;;  %v18740_v41 = vld [vmem:[#allocation24 + $0x260] ss:$16 sps:$4 sm:$0xff]  }
0x122e   :  { %6075 = vmatprep.subr.bf16.mxu1 %v18685_v46  ;;  %v18745_v46 = vld [vmem:[#allocation24 + $0x284] ss:$16 sps:$4 sm:$0xff]  }
0x1231   :  { %6076 = vmatpush1.bf16.msra.mxu1 %v18683_v19  ;;  %v18746_v19 = vld [vmem:[#allocation24 + $0x2a0] ss:$16 sps:$4 sm:$0xff]  }
0x1232   :  { %6077 = vmatprep.subr.bf16.mxu1 %v18689_v48  ;;  %v18751_v48 = vld [vmem:[#allocation24 + $0x2c4] ss:$16 sps:$4 sm:$0xff]  }
0x1234   :  { %6065 = vmatmul.mubr.bf16.gmra.mrb[100].mxu1 %v21886_v32 }
0x1235   :  { %6078 = vmatpush1.bf16.msra.mxu1 %v18687_v49  ;;  %6105 = vmatprep.mubr.bf16.mxu1 %v21868_v5  ;;  %v18743_v5 = vld [vmem:[#allocation24 + $0x280] ss:$16 sps:$4 sm:$0xff]  }
0x1236   :  { %6079 = vmatprep.subr.bf16.mxu1 %v18692_v51  ;;  %v18749_v49 = vld [vmem:[#allocation24 + $0x2c0] ss:$16 sps:$4 sm:$0xff]  }
0x1237   :  { %v18752_v51 = vld [vmem:[#allocation24 + $0x2e0] ss:$16 sps:$4 sm:$0xff]  }
0x1239   :  { %6080 = vmatpush1.bf16.msra.mxu1 %v18690_v52  ;;  %v18757_v52 = vld [vmem:[#allocation24 + $0x304] ss:$16 sps:$4 sm:$0xff]  }
0x123a   :  { %6081 = vmatprep.subr.bf16.mxu1 %v18695_v55 }
0x123d   :  { %6082 = vmatpush1.bf16.msra.mxu1 %v18693_v56 }
0x123e   :  { %6083 = vmatprep.subr.bf16.mxu1 %v18698_v57 }
0x1241   :  { %6084 = vmatpush1.bf16.msra.mxu1 %v18696_v42 }
0x1242   :  { %6085 = vmatprep.subr.bf16.mxu1 %v18701_v54 }
0x1245   :  { %6086 = vmatpush1.bf16.msra.mxu1 %v18699_v60  ;;  %v18755_v60 = vld [vmem:[#allocation24 + $0x300] ss:$16 sps:$4 sm:$0xff]  }
0x1246   :  { %6087 = vmatprep.subr.bf16.mxu1 %v18704_v61 }
0x1247   :  { %v5096_v1 = vpop.f32.mrb[88].mxu1 }
0x1248   :  { %v21891_v2 = vadd.f32 %v5096_v1, %v21856_v37  ;;  %v5098_v3 = vpop.f32.mrb[89].mxu1  ;;  %v18714_v37 = vld [vmem:[#allocation24 + $0x168] ss:$16 sps:$4 sm:$0xff]   ;;  %v18763_v1 = vld [vmem:[#allocation24 + $0x344] ss:$16 sps:$4 sm:$0xff]  }
0x1249   :  { %v21894_v4 = vadd.f32 %v5098_v3, %v21858_v38  ;;  %v5100_v43 = vpop.f32.mrb[90].mxu1  ;;  %6088 = vmatpush1.bf16.msra.mxu1 %v18702_v62  ;;  %v18717_v38 = vld [vmem:[#allocation24 + $0x188] ss:$16 sps:$4 sm:$0xff]   ;;  %v18760_v62 = vld [vmem:[#allocation24 + $0x324] ss:$16 sps:$4 sm:$0xff]  }
0x124a   :  { %v5101_v7 = vpop.f32.mrb[91].mxu1  ;;  %6089 = vmatprep.subr.bf16.mxu1 %v18707_v63  ;;  %v18758_v63 = vld [vmem:[#allocation24 + $0x320] ss:$16 sps:$4 sm:$0xff]   ;;  %v18766_v43 = vld [vmem:[#allocation24 + $0x364] ss:$16 sps:$4 sm:$0xff]  }
0x124b   :  { %v18761_v3 = vld [vmem:[#allocation24 + $0x340] ss:$16 sps:$4 sm:$0xff]   ;;  %v18772_v7 = vld [vmem:[#allocation24 + $0x3a4] ss:$16 sps:$4 sm:$0xff]  }
0x124d   :  { %6090 = vmatpush1.bf16.msra.mxu1 %v18705_v6  ;;  %v18769_v6 = vld [vmem:[#allocation24 + $0x384] ss:$16 sps:$4 sm:$0xff]  }
0x124e   :  { %6091 = vmatprep.subr.bf16.mxu1 %v18710_v8  ;;  %v18770_v8 = vld [vmem:[#allocation24 + $0x3a0] ss:$16 sps:$4 sm:$0xff]  }
0x1251   :  { %6092 = vmatpush1.bf16.msra.mxu1 %v18708_v9  ;;  %v18775_v9 = vld [vmem:[#allocation24 + $0x3c4] ss:$16 sps:$4 sm:$0xff]  }
0x1252   :  { %6093 = vmatprep.subr.bf16.mxu1 %v18713_v10  ;;  %v21923_v10 = vcombine.low %v21896_v31, %v21896_v31  ;;  %v6234_v31 = vshrl.u32 %v21900_v24, 16 }
0x1254   :  { %v6231_v28 = vshrl.u32 %v21923_v10, 16 }
0x1255   :  { %6094 = vmatpush1.bf16.msra.mxu1 %v18711_v11  ;;  %v18773_v11 = vld [vmem:[#allocation24 + $0x3c0] ss:$16 sps:$4 sm:$0xff]  }
0x1256   :  { %6095 = vmatprep.subr.bf16.mxu1 %v18716_v12  ;;  %v6210_v12 = vshll.u32 %v21880_v44, 16 }
0x1259   :  { %6096 = vmatpush1.bf16.msra.mxu1 %v18714_v37  ;;  %v18778_v37 = vld [vmem:[#allocation24 + $0x3e4] ss:$16 sps:$4 sm:$0xff]  }
0x125a   :  { %6097 = vmatprep.subr.bf16.mxu1 %v18719_v13  ;;  %v6215_v13 = vshll.u32 %v21923_v10, 16 }
0x125d   :  { %6098 = vmatpush1.bf16.msra.mxu1 %v18717_v38  ;;  %v18776_v38 = vld [vmem:[#allocation24 + $0x3e0] ss:$16 sps:$4 sm:$0xff]  }
0x125e   :  { %6099 = vmatprep.subr.bf16.mxu1 %v18722_v14  ;;  %v6212_v14 = vrot.slane %v6210_v12, 1  ;;  %v21950_v12 = vld [vmem:[#allocation4] sm:$0xee] }
0x1261   :  { %6100 = vmatpush1.bf16.msra.mxu1 %v18720_v20  ;;  %v18781_v20 = vld [vmem:[#allocation24 + $0x20c] ss:$16 sps:$4 sm:$0xff]  }
0x1262   :  { %6101 = vmatprep.subr.bf16.mxu1 %v18725_v16  ;;  %v6208_v16 = vshrl.u32 %v21880_v44, 16 }
0x1265   :  { %6102 = vmatpush1.bf16.msra.mxu1 %v18723_v21  ;;  %v6217_v21 = vrot.slane %v6215_v13, 1  ;;  %v16395_v13 = vcombine.high %v21950_v12, %v21862_v27 }
0x1266   :  { %6103 = vmatprep.subr.bf16.mxu1 %v18728_v18  ;;  %v6213_v18 = vor.u32 %v6212_v14, %v6208_v16  ;;  %v18833_v14 = vld [vmem:[#allocation24 + $0x440] ss:$16 sps:$4 sm:$0xff]   ;;  %v18840_v16 = vld [vmem:[#allocation24 + $0x464] ss:$16 sps:$4 sm:$0xff]  }
0x1269   :  { %6104 = vmatpush1.bf16.msra.mxu1 %v18726_v22  ;;  %v18779_v22 = vld [vmem:[#allocation24 + $0x208] ss:$16 sps:$4 sm:$0xff]  }
0x126a   :  { %6561 = vmatprep.subr.bf16.mxu1 %v18731_v23  ;;  %v18784_v23 = vld [vmem:[#allocation24 + $0x22c] ss:$16 sps:$4 sm:$0xff]  }
0x126c   :  { %6106 = vmatmul.mubr.bf16.vlgmr.msra.gmra.mrb[76].mxu1 %v21880_v44  ;;  %v18782_v44 = vld [vmem:[#allocation24 + $0x228] ss:$16 sps:$4 sm:$0xff]  }
0x126d   :  { %6115 = vmatprep.mubr.bf16.mxu1 %v21882_v47  ;;  %6562 = vmatpush1.bf16.msra.mxu1 %v18729_v25  ;;  %v18748_v47 = vld [vmem:[#allocation24 + $0x2a4] ss:$16 sps:$4 sm:$0xff]   ;;  %v21930_v25 = vsel %vm642_vm0, %v6213_v18, %v6217_v21  ;;  %v18838_v18 = vld [vmem:[#allocation24 + $0x460] ss:$16 sps:$4 sm:$0xff]  }
0x126e   :  { %6563 = vmatprep.subr.bf16.mxu1 %v18734_v26  ;;  %v21933_v26 = vor.u32 %v6234_v31, %v21907_v34  ;;  %v18793_v34 = vld [vmem:[#allocation24 + $0x28c] ss:$16 sps:$4 sm:$0xff]   ;;  %v18846_v31 = vld [vmem:[#allocation24 + $0x4a4] ss:$16 sps:$4 sm:$0xff]  }
0x1271   :  { %6564 = vmatpush1.bf16.msra.mxu1 %v18732_v59  ;;  %v18785_v59 = vld [vmem:[#allocation24 + $0x248] ss:$16 sps:$4 sm:$0xff]  }
0x1272   :  { %6565 = vmatprep.subr.bf16.mxu1 %v18737_v29  ;;  %v21938_v29 = vor.u32 %v6231_v28, %v6217_v21  ;;  %v18855_v28 = vld [vmem:[#allocation24 + $0x504] ss:$16 sps:$4 sm:$0xff]  }
0x1274   :  { %6116 = vmatmul.mubr.bf16.gmra.mrb[104].mxu1 %v21886_v32  ;;  %v18754_v32 = vld [vmem:[#allocation24 + $0x2e4] ss:$16 sps:$4 sm:$0xff]  }
0x1275   :  { %6566 = vmatpush1.bf16.msra.mxu1 %v18735_v35  ;;  %6593 = vmatprep.mubr.bf16.mxu1 %v21912_v40  ;;  %v18791_v35 = vld [vmem:[#allocation24 + $0x288] ss:$16 sps:$4 sm:$0xff]  }
0x1276   :  { %6567 = vmatprep.subr.bf16.mxu1 %v18742_v39  ;;  %v18794_v39 = vld [vmem:[#allocation24 + $0x2a8] ss:$16 sps:$4 sm:$0xff]  }
0x1279   :  { %6568 = vmatpush1.bf16.msra.mxu1 %v18740_v41  ;;  %v18799_v41 = vld [vmem:[#allocation24 + $0x2cc] ss:$16 sps:$4 sm:$0xff]  }
0x127a   :  { %6569 = vmatprep.subr.bf16.mxu1 %v18745_v46  ;;  %v18797_v46 = vld [vmem:[#allocation24 + $0x2c8] ss:$16 sps:$4 sm:$0xff]  }
0x127d   :  { %6570 = vmatpush1.bf16.msra.mxu1 %v18743_v5  ;;  %v18802_v5 = vld [vmem:[#allocation24 + $0x2ec] ss:$16 sps:$4 sm:$0xff]  }
0x127e   :  { %6571 = vmatprep.subr.bf16.mxu1 %v18748_v47  ;;  %v18800_v47 = vld [vmem:[#allocation24 + $0x2e8] ss:$16 sps:$4 sm:$0xff]  }
0x1281   :  { %6572 = vmatpush1.bf16.msra.mxu1 %v18746_v19  ;;  %v18805_v19 = vld [vmem:[#allocation24 + $0x30c] ss:$16 sps:$4 sm:$0xff]  }
0x1282   :  { %6573 = vmatprep.subr.bf16.mxu1 %v18751_v48 }
0x1285   :  { %6574 = vmatpush1.bf16.msra.mxu1 %v18749_v49 }
0x1286   :  { %6575 = vmatprep.subr.bf16.mxu1 %v18754_v32 }
0x1287   :  { %v5548_v55 = vpop.f32.mrb[92].mxu1 }
0x1288   :  { %v21916_v56 = vadd.f32 %v5548_v55, %v21873_v15  ;;  %v5550_v57 = vpop.f32.mrb[93].mxu1  ;;  %v18764_v15 = vld [vmem:[#allocation24 + $0x360] ss:$16 sps:$4 sm:$0xff]  }
0x1289   :  { %v21919_v42 = vadd.f32 %v5550_v57, %v21876_v17  ;;  %v5552_v54 = vpop.f32.mrb[94].mxu1  ;;  %6576 = vmatpush1.bf16.msra.mxu1 %v18752_v51  ;;  %v18767_v17 = vld [vmem:[#allocation24 + $0x380] ss:$16 sps:$4 sm:$0xff]   ;;  %v18808_v57 = vld [vmem:[#allocation24 + $0x32c] ss:$16 sps:$4 sm:$0xff]  }
0x128a   :  { %v5553_v61 = vpop.f32.mrb[95].mxu1  ;;  %6577 = vmatprep.subr.bf16.mxu1 %v18757_v52  ;;  %v18803_v52 = vld [vmem:[#allocation24 + $0x308] ss:$16 sps:$4 sm:$0xff]  }
0x128b   :  { %v18806_v54 = vld [vmem:[#allocation24 + $0x328] ss:$16 sps:$4 sm:$0xff]  }
0x128c   :  { %v18809_v61 = vld [vmem:[#allocation24 + $0x348] ss:$16 sps:$4 sm:$0xff]  }
0x128d   :  { %6578 = vmatpush1.bf16.msra.mxu1 %v18755_v60  ;;  %v18811_v60 = vld [vmem:[#allocation24 + $0x34c] ss:$16 sps:$4 sm:$0xff]  }
0x128e   :  { %6579 = vmatprep.subr.bf16.mxu1 %v18760_v62  ;;  %v18814_v62 = vld [vmem:[#allocation24 + $0x36c] ss:$16 sps:$4 sm:$0xff]  }
0x1291   :  { %6580 = vmatpush1.bf16.msra.mxu1 %v18758_v63  ;;  %v18817_v63 = vld [vmem:[#allocation24 + $0x38c] ss:$16 sps:$4 sm:$0xff]  }
0x1292   :  { %6581 = vmatprep.subr.bf16.mxu1 %v18763_v1  ;;  %v18820_v1 = vld [vmem:[#allocation24 + $0x3ac] ss:$16 sps:$4 sm:$0xff]  }
0x1295   :  { %6582 = vmatpush1.bf16.msra.mxu1 %v18761_v3  ;;  %v18818_v3 = vld [vmem:[#allocation24 + $0x3a8] ss:$16 sps:$4 sm:$0xff]  }
0x1296   :  { %6583 = vmatprep.subr.bf16.mxu1 %v18766_v43  ;;  %v18823_v43 = vld [vmem:[#allocation24 + $0x3cc] ss:$16 sps:$4 sm:$0xff]  }
0x1299   :  { %6584 = vmatpush1.bf16.msra.mxu1 %v18764_v15  ;;  %v18821_v15 = vld [vmem:[#allocation24 + $0x3c8] ss:$16 sps:$4 sm:$0xff]  }
0x129a   :  { %6585 = vmatprep.subr.bf16.mxu1 %v18769_v6  ;;  %v18826_v6 = vld [vmem:[#allocation24 + $0x3ec] ss:$16 sps:$4 sm:$0xff]  }
0x129d   :  { %6586 = vmatpush1.bf16.msra.mxu1 %v18767_v17  ;;  %v18824_v17 = vld [vmem:[#allocation24 + $0x3e8] ss:$16 sps:$4 sm:$0xff]  }
0x129e   :  { %6587 = vmatprep.subr.bf16.mxu1 %v18772_v7  ;;  %v18829_v7 = vld [vmem:[#allocation24 + $0x404] ss:$16 sps:$4 sm:$0xff]  }
0x12a1   :  { %6588 = vmatpush1.bf16.msra.mxu1 %v18770_v8  ;;  %v18827_v8 = vld [vmem:[#allocation24 + $0x400] ss:$16 sps:$4 sm:$0xff]  }
0x12a2   :  { %6589 = vmatprep.subr.bf16.mxu1 %v18775_v9  ;;  %v18832_v9 = vld [vmem:[#allocation24 + $0x424] ss:$16 sps:$4 sm:$0xff]  }
0x12a5   :  { %6590 = vmatpush1.bf16.msra.mxu1 %v18773_v11  ;;  %v18830_v11 = vld [vmem:[#allocation24 + $0x420] ss:$16 sps:$4 sm:$0xff]  }
0x12a6   :  { %6591 = vmatprep.subr.bf16.mxu1 %v18778_v37  ;;  %v18835_v37 = vld [vmem:[#allocation24 + $0x444] ss:$16 sps:$4 sm:$0xff]  }
0x12a9   :  { %6592 = vmatpush1.bf16.msra.mxu1 %v18776_v38  ;;  %v21955_v38 = vrot.slane %v21900_v24, 1  ;;  %v18841_v24 = vld [vmem:[#allocation24 + $0x480] ss:$16 sps:$4 sm:$0xff]  }
0x12aa   :  { %6612 = vmatprep.subr.bf16.mxu1 %v18781_v20  ;;  %v6749_v20 = vrot.slane %v16395_v13, 1 }
0x12ac   :  { %6594 = vmatmul.mubr.bf16.vlgmr.msra.gmra.mrb[68].mxu1 %v21930_v25  ;;  %v21960_v21 = vsel %vm857_vm2, %v6749_v20, %v21955_v38 }
0x12ad   :  { %6603 = vmatprep.mubr.bf16.mxu1 %v21933_v26  ;;  %6613 = vmatpush1.bf16.msra.mxu1 %v18779_v22  ;;  %v18843_v22 = vld [vmem:[#allocation24 + $0x484] ss:$16 sps:$4 sm:$0xff]  }
0x12ae   :  { %6614 = vmatprep.subr.bf16.mxu1 %v18784_v23  ;;  %v18844_v23 = vld [vmem:[#allocation24 + $0x4a0] ss:$16 sps:$4 sm:$0xff]  }
0x12b1   :  { %6615 = vmatpush1.bf16.msra.mxu1 %v18782_v44  ;;  %v18852_v44 = vld [vmem:[#allocation24 + $0x4e4] ss:$16 sps:$4 sm:$0xff]  }
0x12b2   :  { %6616 = vmatprep.subr.bf16.mxu1 %v18787_v58  ;;  %v18850_v58 = vld [vmem:[#allocation24 + $0x4e0] ss:$16 sps:$4 sm:$0xff]  }
0x12b4   :  { %6604 = vmatmul.mubr.bf16.gmra.mrb[108].mxu1 %v21938_v29 }
0x12b5   :  { %6617 = vmatpush1.bf16.msra.mxu1 %v18785_v59  ;;  %6644 = vmatprep.mubr.bf16.mxu1 %v21912_v40 }
0x12b6   :  { %6618 = vmatprep.subr.bf16.mxu1 %v18790_v30 }
0x12b9   :  { %6619 = vmatpush1.bf16.msra.mxu1 %v18788_v33 }
0x12ba   :  { %6620 = vmatprep.subr.bf16.mxu1 %v18793_v34 }
0x12bd   :  { %6621 = vmatpush1.bf16.msra.mxu1 %v18791_v35  ;;  %v18853_v35 = vld [vmem:[#allocation24 + $0x500] ss:$16 sps:$4 sm:$0xff]  }
0x12be   :  { %6622 = vmatprep.subr.bf16.mxu1 %v18796_v36 }
0x12c1   :  { %6623 = vmatpush1.bf16.msra.mxu1 %v18794_v39  ;;  %v18858_v39 = vld [vmem:[#allocation24 + $0x524] ss:$16 sps:$4 sm:$0xff]  }
0x12c2   :  { %6624 = vmatprep.subr.bf16.mxu1 %v18799_v41  ;;  %v18856_v41 = vld [vmem:[#allocation24 + $0x520] ss:$16 sps:$4 sm:$0xff]  }
0x12c5   :  { %6625 = vmatpush1.bf16.msra.mxu1 %v18797_v46  ;;  %v18861_v46 = vld [vmem:[#allocation24 + $0x544] ss:$16 sps:$4 sm:$0xff]  }
0x12c6   :  { %6626 = vmatprep.subr.bf16.mxu1 %v18802_v5  ;;  %v18859_v5 = vld [vmem:[#allocation24 + $0x540] ss:$16 sps:$4 sm:$0xff]  }
0x12c7   :  { %v5599_v40 = vpop.f32.mrb[96].mxu1 }
0x12c8   :  { %v21943_v48 = vadd.f32 %v5599_v40, %v21891_v2  ;;  %v5601_v49 = vpop.f32.mrb[97].mxu1  ;;  %v18812_v2 = vld [vmem:[#allocation24 + $0x368] ss:$16 sps:$4 sm:$0xff]   ;;  %v18870_v40 = vld [vmem:[#allocation24 + $0x5a4] ss:$16 sps:$4 sm:$0xff]  }
0x12c9   :  { %v21946_v32 = vadd.f32 %v5601_v49, %v21894_v4  ;;  %v5603_v51 = vpop.f32.mrb[98].mxu1  ;;  %6627 = vmatpush1.bf16.msra.mxu1 %v18800_v47  ;;  %v18815_v4 = vld [vmem:[#allocation24 + $0x388] ss:$16 sps:$4 sm:$0xff]   ;;  %v18864_v47 = vld [vmem:[#allocation24 + $0x564] ss:$16 sps:$4 sm:$0xff]  }
0x12ca   :  { %v5604_v55 = vpop.f32.mrb[99].mxu1  ;;  %6628 = vmatprep.subr.bf16.mxu1 %v18805_v19  ;;  %v18867_v19 = vld [vmem:[#allocation24 + $0x584] ss:$16 sps:$4 sm:$0xff]   ;;  %v18868_v49 = vld [vmem:[#allocation24 + $0x5a0] ss:$16 sps:$4 sm:$0xff]  }
0x12cb   :  { %v18873_v51 = vld [vmem:[#allocation24 + $0x5c4] ss:$16 sps:$4 sm:$0xff]  }
0x12cc   :  { %v18876_v55 = vld [vmem:[#allocation24 + $0x5e4] ss:$16 sps:$4 sm:$0xff]  }
0x12cd   :  { %6629 = vmatpush1.bf16.msra.mxu1 %v18803_v52  ;;  %v18871_v52 = vld [vmem:[#allocation24 + $0x5c0] ss:$16 sps:$4 sm:$0xff]  }
0x12ce   :  { %6630 = vmatprep.subr.bf16.mxu1 %v18808_v57  ;;  %v16394_v57 = vcombine.low %v21950_v12, %v21862_v27  ;;  %v18880_v27 = vld [vmem:[#allocation24 + $0x428] ss:$16 sps:$4 sm:$0xff]  }
0x12cf   :  { %v18898_v12 = vld [vmem:[#allocation24 + $0x4e8] ss:$16 sps:$4 sm:$0xff]  }
0x12d1   :  { %6631 = vmatpush1.bf16.msra.mxu1 %v18806_v54  ;;  %v18874_v54 = vld [vmem:[#allocation24 + $0x5e0] ss:$16 sps:$4 sm:$0xff]  }
0x12d2   :  { %6632 = vmatprep.subr.bf16.mxu1 %v18811_v60  ;;  %v18879_v60 = vld [vmem:[#allocation24 + $0x40c] ss:$16 sps:$4 sm:$0xff]  }
0x12d5   :  { %6633 = vmatpush1.bf16.msra.mxu1 %v18809_v61  ;;  %v21972_v61 = vrot.slane %v21923_v10, 1  ;;  %v18883_v10 = vld [vmem:[#allocation24 + $0x448] ss:$16 sps:$4 sm:$0xff]  }
0x12d6   :  { %6634 = vmatprep.subr.bf16.mxu1 %v18814_v62  ;;  %v6746_v62 = vrot.slane %v16394_v57, 1 }
0x12d9   :  { %6635 = vmatpush1.bf16.msra.mxu1 %v18812_v2  ;;  %v18877_v2 = vld [vmem:[#allocation24 + $0x408] ss:$16 sps:$4 sm:$0xff]  }
0x12da   :  { %6636 = vmatprep.subr.bf16.mxu1 %v18817_v63  ;;  %v18882_v63 = vld [vmem:[#allocation24 + $0x42c] ss:$16 sps:$4 sm:$0xff]  }
0x12dd   :  { %6637 = vmatpush1.bf16.msra.mxu1 %v18815_v4  ;;  %v21976_v4 = vsel %vm857_vm2, %v6746_v62, %v21972_v61 }
0x12de   :  { %6638 = vmatprep.subr.bf16.mxu1 %v18820_v1  ;;  %v18885_v1 = vld [vmem:[#allocation24 + $0x44c] ss:$16 sps:$4 sm:$0xff]  }
0x12e1   :  { %6639 = vmatpush1.bf16.msra.mxu1 %v18818_v3  ;;  %v18888_v3 = vld [vmem:[#allocation24 + $0x46c] ss:$16 sps:$4 sm:$0xff]  }
0x12e2   :  { %6640 = vmatprep.subr.bf16.mxu1 %v18823_v43  ;;  %v18886_v43 = vld [vmem:[#allocation24 + $0x468] ss:$16 sps:$4 sm:$0xff]  }
0x12e5   :  { %6641 = vmatpush1.bf16.msra.mxu1 %v18821_v15  ;;  %v18891_v15 = vld [vmem:[#allocation24 + $0x48c] ss:$16 sps:$4 sm:$0xff]  }
0x12e6   :  { %6642 = vmatprep.subr.bf16.mxu1 %v18826_v6  ;;  %v18889_v6 = vld [vmem:[#allocation24 + $0x488] ss:$16 sps:$4 sm:$0xff]  }
0x12e9   :  { %6643 = vmatpush1.bf16.msra.mxu1 %v18824_v17  ;;  %v18894_v17 = vld [vmem:[#allocation24 + $0x4ac] ss:$16 sps:$4 sm:$0xff]  }
0x12ea   :  { %7076 = vmatprep.subr.bf16.mxu1 %v18829_v7  ;;  %v18892_v7 = vld [vmem:[#allocation24 + $0x4a8] ss:$16 sps:$4 sm:$0xff]  }
0x12ec   :  { %6645 = vmatmul.mubr.bf16.vlgmr.msra.gmra.mrb[76].mxu1 %v21930_v25  ;;  %v18849_v25 = vld [vmem:[#allocation24 + $0x4c4] ss:$16 sps:$4 sm:$0xff]  }
0x12ed   :  { %6654 = vmatprep.mubr.bf16.mxu1 %v21933_v26  ;;  %7077 = vmatpush1.bf16.msra.mxu1 %v18827_v8  ;;  %v18847_v26 = vld [vmem:[#allocation24 + $0x4c0] ss:$16 sps:$4 sm:$0xff]   ;;  %v18897_v8 = vld [vmem:[#allocation24 + $0x4cc] ss:$16 sps:$4 sm:$0xff]  }
0x12ee   :  { %7078 = vmatprep.subr.bf16.mxu1 %v18832_v9  ;;  %v18895_v9 = vld [vmem:[#allocation24 + $0x4c8] ss:$16 sps:$4 sm:$0xff]  }
0x12f1   :  { %7079 = vmatpush1.bf16.msra.mxu1 %v18830_v11  ;;  %v18900_v11 = vld [vmem:[#allocation24 + $0x4ec] ss:$16 sps:$4 sm:$0xff]  }
0x12f2   :  { %7080 = vmatprep.subr.bf16.mxu1 %v18835_v37  ;;  %v18903_v37 = vld [vmem:[#allocation24 + $0x50c] ss:$16 sps:$4 sm:$0xff]  }
0x12f4   :  { %6655 = vmatmul.mubr.bf16.gmra.mrb[112].mxu1 %v21938_v29 }
0x12f5   :  { %7081 = vmatpush1.bf16.msra.mxu1 %v18833_v14  ;;  %7108 = vmatprep.mubr.bf16.mxu1 %v21960_v21 }
0x12f6   :  { %7082 = vmatprep.subr.bf16.mxu1 %v18840_v16 }
0x12f9   :  { %7083 = vmatpush1.bf16.msra.mxu1 %v18838_v18  ;;  %v18901_v18 = vld [vmem:[#allocation24 + $0x508] ss:$16 sps:$4 sm:$0xff]  }
0x12fa   :  { %7084 = vmatprep.subr.bf16.mxu1 %v18843_v22 }
0x12fd   :  { %7085 = vmatpush1.bf16.msra.mxu1 %v18841_v24  ;;  %v18906_v24 = vld [vmem:[#allocation24 + $0x52c] ss:$16 sps:$4 sm:$0xff]  }
0x12fe   :  { %7086 = vmatprep.subr.bf16.mxu1 %v18846_v31  ;;  %v18904_v31 = vld [vmem:[#allocation24 + $0x528] ss:$16 sps:$4 sm:$0xff]  }
0x1301   :  { %7087 = vmatpush1.bf16.msra.mxu1 %v18844_v23  ;;  %v18909_v23 = vld [vmem:[#allocation24 + $0x54c] ss:$16 sps:$4 sm:$0xff]  }
0x1302   :  { %7088 = vmatprep.subr.bf16.mxu1 %v18849_v25  ;;  %v18907_v25 = vld [vmem:[#allocation24 + $0x548] ss:$16 sps:$4 sm:$0xff]  }
0x1305   :  { %7089 = vmatpush1.bf16.msra.mxu1 %v18847_v26  ;;  %v18912_v26 = vld [vmem:[#allocation24 + $0x56c] ss:$16 sps:$4 sm:$0xff]  }
0x1306   :  { %7090 = vmatprep.subr.bf16.mxu1 %v18852_v44  ;;  %v18910_v44 = vld [vmem:[#allocation24 + $0x568] ss:$16 sps:$4 sm:$0xff]  }
0x1307   :  { %v6066_v59 = vpop.f32.mrb[100].mxu1 }
0x1308   :  { %v21964_v29 = vadd.f32 %v6066_v59, %v21916_v56  ;;  %v6068_v30 = vpop.f32.mrb[101].mxu1  ;;  %v18862_v56 = vld [vmem:[#allocation24 + $0x560] ss:$16 sps:$4 sm:$0xff]   ;;  %v18921_v59 = vld [vmem:[#allocation24 + $0x5cc] ss:$16 sps:$4 sm:$0xff]  }
0x1309   :  { %v21967_v33 = vadd.f32 %v6068_v30, %v21919_v42  ;;  %v6070_v34 = vpop.f32.mrb[102].mxu1  ;;  %7091 = vmatpush1.bf16.msra.mxu1 %v18850_v58  ;;  %v18865_v42 = vld [vmem:[#allocation24 + $0x580] ss:$16 sps:$4 sm:$0xff]   ;;  %v18918_v58 = vld [vmem:[#allocation24 + $0x5ac] ss:$16 sps:$4 sm:$0xff]  }
0x130a   :  { %v6071_v36 = vpop.f32.mrb[103].mxu1  ;;  %7092 = vmatprep.subr.bf16.mxu1 %v18855_v28  ;;  %v18916_v28 = vld [vmem:[#allocation24 + $0x5a8] ss:$16 sps:$4 sm:$0xff]   ;;  %v18924_v34 = vld [vmem:[#allocation24 + $0x5ec] ss:$16 sps:$4 sm:$0xff]  }
0x130b   :  { %v18919_v30 = vld [vmem:[#allocation24 + $0x5c8] ss:$16 sps:$4 sm:$0xff]  }
0x130d   :  { %7093 = vmatpush1.bf16.msra.mxu1 %v18853_v35  ;;  %v18922_v35 = vld [vmem:[#allocation24 + $0x5e8] ss:$16 sps:$4 sm:$0xff]  }
0x130e   :  { %7094 = vmatprep.subr.bf16.mxu1 %v18858_v39 }
0x1311   :  { %7095 = vmatpush1.bf16.msra.mxu1 %v18856_v41 }
0x1312   :  { %7096 = vmatprep.subr.bf16.mxu1 %v18861_v46 }
0x1315   :  { %7097 = vmatpush1.bf16.msra.mxu1 %v18859_v5 }
0x1316   :  { %7098 = vmatprep.subr.bf16.mxu1 %v18864_v47 }
0x1319   :  { %7099 = vmatpush1.bf16.msra.mxu1 %v18862_v56 }
0x131a   :  { %7100 = vmatprep.subr.bf16.mxu1 %v18867_v19 }
0x131d   :  { %7101 = vmatpush1.bf16.msra.mxu1 %v18865_v42 }
0x131e   :  { %7102 = vmatprep.subr.bf16.mxu1 %v18870_v40 }
0x1321   :  { %7103 = vmatpush1.bf16.msra.mxu1 %v18868_v49 }
0x1322   :  { %7104 = vmatprep.subr.bf16.mxu1 %v18873_v51  ;;  %v7190_v51 = vld [vmem:[#allocation39] sm:$0xf] }
0x1325   :  { %7105 = vmatpush1.bf16.msra.mxu1 %v18871_v52  ;;  %v7195_v52 = vrot.slane %v7190_v51, %v21635_v50 }
0x1326   :  { %7106 = vmatprep.subr.bf16.mxu1 %v18876_v55  ;;  %v7199_v55 = vrot.slane %v7190_v51, %v21638_v53 }
0x1329   :  { %7107 = vmatpush1.bf16.msra.mxu1 %v18874_v54 }
0x132a   :  { %7127 = vmatprep.subr.bf16.mxu1 %v18879_v60 }
0x132c   :  { %7109 = vmatmul.mubr.bf16.vlgmr.msra.gmra.mrb[68].mxu1 %v21976_v4 }
0x132d   :  { %7118 = vmatprep.mubr.bf16.mxu1 %v21955_v38  ;;  %7128 = vmatpush1.bf16.msra.mxu1 %v18877_v2 }
0x132e   :  { %7129 = vmatprep.subr.bf16.mxu1 %v18882_v63 }
0x1331   :  { %7130 = vmatpush1.bf16.msra.mxu1 %v18880_v27 }
0x1332   :  { %7131 = vmatprep.subr.bf16.mxu1 %v18885_v1 }
0x1334   :  { %7119 = vmatmul.mubr.bf16.gmra.mrb[116].mxu1 %v21972_v61 }
0x1335   :  { %7132 = vmatpush1.bf16.msra.mxu1 %v18883_v10  ;;  %7159 = vmatprep.mubr.bf16.mxu1 %v21960_v21 }
0x1336   :  { %7133 = vmatprep.subr.bf16.mxu1 %v18888_v3 }
0x1339   :  { %7134 = vmatpush1.bf16.msra.mxu1 %v18886_v43 }
0x133a   :  { %7135 = vmatprep.subr.bf16.mxu1 %v18891_v15 }
0x133d   :  { %7136 = vmatpush1.bf16.msra.mxu1 %v18889_v6 }
0x133e   :  { %7137 = vmatprep.subr.bf16.mxu1 %v18894_v17 }
0x1341   :  { %7138 = vmatpush1.bf16.msra.mxu1 %v18892_v7 }
0x1342   :  { %7139 = vmatprep.subr.bf16.mxu1 %v18897_v8 }
0x1345   :  { %7140 = vmatpush1.bf16.msra.mxu1 %v18895_v9 }
0x1346   :  { %7141 = vmatprep.subr.bf16.mxu1 %v18900_v11 }
0x1347   :  { %v6117_v13 = vpop.f32.mrb[104].mxu1 }
0x1348   :  { %v6134_v14 = vadd.f32 %v6117_v13, %v21943_v48  ;;  %v6119_v20 = vpop.f32.mrb[105].mxu1  ;;  %v18915_v48 = vld [vmem:[#allocation24 + $0x58c] ss:$16 sps:$4 sm:$0xff]  }
0x1349   :  { %v6135_v16 = vadd.f32 %v6119_v20, %v21946_v32  ;;  %v6121_v21 = vpop.f32.mrb[106].mxu1  ;;  %7142 = vmatpush1.bf16.msra.mxu1 %v18898_v12  ;;  %v18913_v32 = vld [vmem:[#allocation24 + $0x588] ss:$16 sps:$4 sm:$0xff]  }
0x134a   :  { %v6122_v22 = vpop.f32.mrb[107].mxu1  ;;  %7143 = vmatprep.subr.bf16.mxu1 %v18903_v37 }
0x134d   :  { %7144 = vmatpush1.bf16.msra.mxu1 %v18901_v18 }
0x134e   :  { %7145 = vmatprep.subr.bf16.mxu1 %v18906_v24 }
0x1351   :  { %7146 = vmatpush1.bf16.msra.mxu1 %v18904_v31 }
0x1352   :  { %7147 = vmatprep.subr.bf16.mxu1 %v18909_v23  ;;  %v18925_v23 = vld [vmem:[#allocation53] sm:$0xff]  }
0x1355   :  { %7148 = vmatpush1.bf16.msra.mxu1 %v18907_v25  ;;  %v22000_v25 = vld [vmem:[#allocation53 + $0x8] sm:$0xff]  }
0x1356   :  { %7149 = vmatprep.subr.bf16.mxu1 %v18912_v26  ;;  %v22005_v26 = vld [vmem:[#allocation53 + $0x10] ss:$0 sps:$4 sm:$0x33]  }
0x1359   :  { %7150 = vmatpush1.bf16.msra.mxu1 %v18910_v44  ;;  %v7202_v44 = vsub.s32 2, %v21632_v45 }
0x135a   :  { %7151 = vmatprep.subr.bf16.mxu1 %v18915_v48  ;;  %v7206_v48 = vsub.s32 3, %v21632_v45 }
0x135d   :  { %7152 = vmatpush1.bf16.msra.mxu1 %v18913_v32  ;;  %v7203_v32 = vrot.slane %v7190_v51, %v7202_v44 }
0x135e   :  { %7153 = vmatprep.subr.bf16.mxu1 %v18918_v58  ;;  %v7207_v58 = vrot.slane %v7190_v51, %v7206_v48 }
0x1361   :  { %7154 = vmatpush1.bf16.msra.mxu1 %v18916_v28 }
0x1362   :  { %7155 = vmatprep.subr.bf16.mxu1 %v18921_v59 }
0x1365   :  { %7156 = vmatpush1.bf16.msra.mxu1 %v18919_v30 }
0x1366   :  { %7157 = vmatprep.subr.bf16.mxu1 %v18924_v34 }
0x1369   :  { %7158 = vmatpush1.bf16.msra.mxu1 %v18922_v35 }
0x136c   :  { %7160 = vmatmul.mubr.bf16.vlgmr.msra.gmra.mrb[76].mxu1 %v21976_v4 }
0x136d   :  { %7169 = vmatprep.mubr.bf16.mxu1 %v21955_v38 }
0x1374   :  { %7170 = vmatmul.mubr.bf16.gmra.mrb[120].mxu1 %v21972_v61 }
0x1375   :  { %12662 = vmatprep.mubr.bf16.mxu1 %v21194_v0 }
0x1387   :  { %v6605_v36 = vpop.f32.mrb[108].mxu1 }
0x1388   :  { %v6671_v39 = vadd.f32 %v6605_v36, %v21964_v29  ;;  %v6607_v41 = vpop.f32.mrb[109].mxu1 }
0x1389   :  { %v6672_v46 = vadd.f32 %v6607_v41, %v21967_v33  ;;  %v6609_v5 = vpop.f32.mrb[110].mxu1 }
0x138a   :  { %v6610_v47 = vpop.f32.mrb[111].mxu1 }
0x13c7   :  { %v6656_v56 = vpop.f32.mrb[112].mxu1 }
0x13c8   :  { %v21990_v19 = vadd.f32 %v6656_v56, %v6134_v14  ;;  %v6658_v42 = vpop.f32.mrb[113].mxu1 }
0x13c9   :  { %v21992_v40 = vadd.f32 %v6658_v42, %v6135_v16  ;;  %v6660_v49 = vpop.f32.mrb[114].mxu1 }
0x13ca   :  { %v6661_v38 = vpop.f32.mrb[115].mxu1 }
0x13ff   :  { %v7110_v57 = vpop.f32.mrb[68].mxu1 }
0x1400   :  { %v7212_v29 = vadd.f32 %v7195_v52, %v7110_v57  ;;  %v7112_v54 = vpop.f32.mrb[69].mxu1 }
0x1401   :  { %v7213_v60 = vadd.f32 %v7199_v55, %v7112_v54  ;;  %v7114_v33 = vpop.f32.mrb[70].mxu1 }
0x1402   :  { %v7236_v61 = vmul.f32 0.2, %v7212_v29  ;;  %v7216_v62 = vadd.f32 %v7195_v52, %v7114_v33  ;;  %v7116_v2 = vpop.f32.mrb[71].mxu1  ;;  %vm7224_vm1 = vcmp.gt.f32.partialorder %v7212_v29, 0.0 }
0x1403   :  { %v7237_v63 = vmul.f32 0.2, %v7213_v60  ;;  %v7217_v4 = vadd.f32 %v7199_v55, %v7116_v2  ;;  %vm7225_vm3 = vcmp.gt.f32.partialorder %v7213_v60, 0.0 }
0x1404   :  { %vm7228_vm6 = vcmp.gt.f32.partialorder %v7216_v62, 0.0  ;;  %v7240_v27 = vmul.f32 0.2, %v7216_v62  ;;  %v7248_v10 = vsel %vm7224_vm1, %v7212_v29, %v7236_v61 }
0x1405   :  { %vm7229_vm7 = vcmp.gt.f32.partialorder %v7217_v4, 0.0  ;;  %v7241_v1 = vmul.f32 0.2, %v7217_v4  ;;  %v7249_v6 = vsel %vm7225_vm3, %v7213_v60, %v7237_v63 }
0x1406   :  { %v7252_v3 = vsel %vm7228_vm6, %v7216_v62, %v7240_v27 }
0x1407   :  { %v7260_v43 = vpack.c.bf16 %v7252_v3, %v7248_v10  ;;  %v7120_v15 = vpop.f32.mrb[116].mxu1  ;;  %v7253_v17 = vsel %vm7229_vm7, %v7217_v4, %v7241_v1 }
0x1408   :  { %v7186_v7 = vadd.f32 %v7120_v15, %v6671_v39  ;;  %v7122_v8 = vpop.f32.mrb[117].mxu1  ;;  %v7261_v9 = vpack.c.bf16 %v7253_v17, %v7249_v6  ;;  %v18933_v15 = vld [vmem:[#allocation26 + $0x424] ss:$16 sps:$4 sm:$0xff]   ;;  %v18931_v6 = vld [vmem:[#allocation26 + $0x420] ss:$16 sps:$4 sm:$0xff]  }
0x1409   :  { %v7187_v11 = vadd.f32 %v7122_v8, %v6672_v46  ;;  %v7124_v12 = vpop.f32.mrb[118].mxu1  ;;  %v18936_v17 = vld [vmem:[#allocation26 + $0x444] ss:$16 sps:$4 sm:$0xff]  }
0x140a   :  { %v7220_v37 = vadd.f32 %v7195_v52, %v7186_v7  ;;  %v7125_v13 = vpop.f32.mrb[119].mxu1  ;;  %7307 = vmatprep.subr.bf16.mxu0 %v7261_v9  ;;  %v18934_v7 = vld [vmem:[#allocation26 + $0x440] ss:$16 sps:$4 sm:$0xff]   ;;  %v18939_v8 = vld [vmem:[#allocation26 + $0x464] ss:$16 sps:$4 sm:$0xff]  }
0x140b   :  { %v7221_v14 = vadd.f32 %v7199_v55, %v7187_v11  ;;  %7308 = vmatpush1.bf16.msra.mxu0 %v7260_v43  ;;  %v18930_v43 = vld [vmem:[#allocation26 + $0x404] ss:$16 sps:$4 sm:$0xff]   ;;  %v18937_v9 = vld [vmem:[#allocation26 + $0x460] ss:$16 sps:$4 sm:$0xff]  }
0x140c   :  { %vm7232_vm9 = vcmp.gt.f32.partialorder %v7220_v37, 0.0  ;;  %v7244_v20 = vmul.f32 0.2, %v7220_v37  ;;  %v18942_v11 = vld [vmem:[#allocation26 + $0x484] ss:$16 sps:$4 sm:$0xff]  }
0x140d   :  { %vm7233_vm10 = vcmp.gt.f32.partialorder %v7221_v14, 0.0  ;;  %v7245_v16 = vmul.f32 0.2, %v7221_v14  ;;  %v18940_v12 = vld [vmem:[#allocation26 + $0x480] ss:$16 sps:$4 sm:$0xff]  }
0x140e   :  { %v7256_v21 = vsel %vm7232_vm9, %v7220_v37, %v7244_v20  ;;  %v18945_v37 = vld [vmem:[#allocation26 + $0x4a4] ss:$16 sps:$4 sm:$0xff]   ;;  %v18943_v13 = vld [vmem:[#allocation26 + $0x4a0] ss:$16 sps:$4 sm:$0xff]  }
0x140f   :  { %v7257_v18 = vsel %vm7233_vm10, %v7221_v14, %v7245_v16  ;;  %v7264_v22 = vpack.c.bf16 %v7256_v21, %v7256_v21  ;;  %v18948_v14 = vld [vmem:[#allocation26 + $0x4c4] ss:$16 sps:$4 sm:$0xff]   ;;  %v18946_v20 = vld [vmem:[#allocation26 + $0x4c0] ss:$16 sps:$4 sm:$0xff]  }
0x1410   :  { %v7265_v24 = vpack.c.bf16 %v7257_v18, %v7257_v18  ;;  %v18951_v16 = vld [vmem:[#allocation26 + $0x4e4] ss:$16 sps:$4 sm:$0xff]   ;;  %v18949_v21 = vld [vmem:[#allocation26 + $0x4e0] ss:$16 sps:$4 sm:$0xff]  }
0x1411   :  { %v7296_v31 = vsel %vm1049_vm13, %v7264_v22, 0  ;;  %v18954_v18 = vld [vmem:[#allocation26 + $0x504] ss:$16 sps:$4 sm:$0xff]   ;;  %v18952_v22 = vld [vmem:[#allocation26 + $0x500] ss:$16 sps:$4 sm:$0xff]  }
0x1412   :  { %16463 = vmatprep.subr.msk.bf16.mxu0 %vm1049_vm13, %v7265_v24  ;;  %v18957_v24 = vld [vmem:[#allocation26 + $0x524] ss:$16 sps:$4 sm:$0xff]  }
0x1413   :  { %7310 = vmatpush1.bf16.msra.mxu0 %v7296_v31  ;;  %v18955_v31 = vld [vmem:[#allocation26 + $0x520] ss:$16 sps:$4 sm:$0xff]  }
0x1416   :  { %16464 = vmatmul.mubr.msk.bf16.vlgmr.msra.gmra.mrb[68].mxu0 %vm1892_vm8, %v18925_v23 }
0x1417   :  { %7349 = vmatprep.mubr.bf16.mxu0 %v21194_v0 }
0x141e   :  { %16465 = vmatmul.mubr.msk.bf16.gmra.mrb[72].mxu0 %vm1892_vm8, %v22000_v25 }
0x141f   :  { %7359 = vmatprep.mubr.bf16.mxu0 %v21194_v0 }
0x1426   :  { %16466 = vmatmul.mubr.msk.bf16.gmra.mrb[76].mxu0 %vm1892_vm8, %v22005_v26 }
0x1427   :  { %7400 = vmatprep.mubr.bf16.mxu0 %v21194_v0 }
0x143f   :  { %v7161_v28 = vpop.f32.mrb[76].mxu1 }
0x1440   :  { %v7214_v59 = vadd.f32 %v7203_v32, %v7161_v28  ;;  %v7163_v30 = vpop.f32.mrb[77].mxu1  ;;  %v18964_v28 = vld [vmem:[#allocation26 + $0x580] ss:$16 sps:$4 sm:$0xff]  }
0x1441   :  { %v7215_v34 = vadd.f32 %v7207_v58, %v7163_v30  ;;  %v7165_v35 = vpop.f32.mrb[78].mxu1  ;;  %v18967_v30 = vld [vmem:[#allocation26 + $0x5a0] ss:$16 sps:$4 sm:$0xff]  }
0x1442   :  { %v7238_v36 = vmul.f32 0.2, %v7214_v59  ;;  %v7218_v39 = vadd.f32 %v7203_v32, %v7165_v35  ;;  %v7167_v41 = vpop.f32.mrb[79].mxu1  ;;  %vm7226_vm11 = vcmp.gt.f32.partialorder %v7214_v59, 0.0  ;;  %v18970_v35 = vld [vmem:[#allocation26 + $0x5c0] ss:$16 sps:$4 sm:$0xff]  }
0x1443   :  { %v7239_v46 = vmul.f32 0.2, %v7215_v34  ;;  %v7219_v5 = vadd.f32 %v7207_v58, %v7167_v41  ;;  %vm7227_vm12 = vcmp.gt.f32.partialorder %v7215_v34, 0.0  ;;  %v18978_v41 = vld [vmem:[#allocation26 + $0x604] ss:$16 sps:$4 sm:$0xff]  }
0x1444   :  { %vm7230_vm15 = vcmp.gt.f32.partialorder %v7218_v39, 0.0  ;;  %v7242_v47 = vmul.f32 0.2, %v7218_v39  ;;  %v7250_v42 = vsel %vm7226_vm11, %v7214_v59, %v7238_v36  ;;  %v18969_v59 = vld [vmem:[#allocation26 + $0x5a4] ss:$16 sps:$4 sm:$0xff]  }
0x1445   :  { %vm7231_vm4 = vcmp.gt.f32.partialorder %v7219_v5, 0.0  ;;  %v7243_v56 = vmul.f32 0.2, %v7219_v5  ;;  %v7251_v52 = vsel %vm7227_vm12, %v7215_v34, %v7239_v46  ;;  %v18972_v34 = vld [vmem:[#allocation26 + $0x5c4] ss:$16 sps:$4 sm:$0xff]  }
0x1446   :  { %v7254_v49 = vsel %vm7230_vm15, %v7218_v39, %v7242_v47  ;;  %v18975_v36 = vld [vmem:[#allocation26 + $0x5e4] ss:$16 sps:$4 sm:$0xff]   ;;  %v18973_v39 = vld [vmem:[#allocation26 + $0x5e0] ss:$16 sps:$4 sm:$0xff]  }
0x1447   :  { %v7262_v38 = vpack.c.bf16 %v7254_v49, %v7250_v42  ;;  %v7171_v51 = vpop.f32.mrb[120].mxu1  ;;  %v7255_v55 = vsel %vm7231_vm4, %v7219_v5, %v7243_v56 }
0x1448   :  { %v7188_v57 = vadd.f32 %v7171_v51, %v21990_v19  ;;  %v7173_v29 = vpop.f32.mrb[121].mxu1  ;;  %v7263_v54 = vpack.c.bf16 %v7255_v55, %v7251_v52 }
0x1449   :  { %v7189_v60 = vadd.f32 %v7173_v29, %v21992_v40  ;;  %v7175_v33 = vpop.f32.mrb[122].mxu1  ;;  %v18928_v40 = vld [vmem:[#allocation26 + $0x400] ss:$16 sps:$4 sm:$0xff]  }
0x144a   :  { %v7222_v61 = vadd.f32 %v7203_v32, %v7188_v57  ;;  %v7176_v62 = vpop.f32.mrb[123].mxu1  ;;  %7368 = vmatprep.subr.bf16.mxu0 %v7263_v54  ;;  %v18961_v32 = vld [vmem:[#allocation26 + $0x560] ss:$16 sps:$4 sm:$0xff]  }
0x144b   :  { %v7223_v2 = vadd.f32 %v7207_v58, %v7189_v60  ;;  %7369 = vmatpush1.bf16.msra.mxu0 %v7262_v38  ;;  %v18966_v58 = vld [vmem:[#allocation26 + $0x584] ss:$16 sps:$4 sm:$0xff]  }
0x144c   :  { %vm7234_vm5 = vcmp.gt.f32.partialorder %v7222_v61, 0.0  ;;  %v7246_v63 = vmul.f32 0.2, %v7222_v61 }
0x144d   :  { %vm7235_vm1 = vcmp.gt.f32.partialorder %v7223_v2, 0.0  ;;  %v7247_v4 = vmul.f32 0.2, %v7223_v2 }
0x144e   :  { %v7258_v27 = vsel %vm7234_vm5, %v7222_v61, %v7246_v63 }
0x144f   :  { %v7259_v1 = vsel %vm7235_vm1, %v7223_v2, %v7247_v4  ;;  %v7266_v10 = vpack.c.bf16 %v7258_v27, %v7258_v27 }
0x1450   :  { %v7267_v3 = vpack.c.bf16 %v7259_v1, %v7259_v1 }
0x1451   :  { %v7302_v19 = vsel %vm1049_vm13, %v7266_v10, 0 }
0x1452   :  { %16467 = vmatprep.subr.msk.bf16.mxu0 %vm1049_vm13, %v7267_v3 }
0x1453   :  { %7371 = vmatpush1.bf16.msra.mxu0 %v7302_v19 }
0x1454   :  { %8558 = vmatprep.subr.bf16.mxu0 %v18930_v43 }
0x1456   :  { %16468 = vmatmul.mubr.msk.bf16.vlgmr.msra.gmra.mrb[80].mxu0 %vm1892_vm8, %v18925_v23  ;;  %v18960_v23 = vld [vmem:[#allocation26 + $0x544] ss:$16 sps:$4 sm:$0xff]  }
0x1457   :  { %7410 = vmatprep.mubr.bf16.mxu0 %v21194_v0  ;;  %8559 = vmatpush1.bf16.msra.mxu0 %v18928_v40 }
0x1458   :  { %8560 = vmatprep.subr.bf16.mxu0 %v18933_v15 }
0x145b   :  { %8561 = vmatpush1.bf16.msra.mxu0 %v18931_v6 }
0x145c   :  { %8562 = vmatprep.subr.bf16.mxu0 %v18936_v17 }
0x145e   :  { %16469 = vmatmul.mubr.msk.bf16.gmra.mrb[84].mxu0 %vm1892_vm8, %v22000_v25  ;;  %v18958_v25 = vld [vmem:[#allocation26 + $0x540] ss:$16 sps:$4 sm:$0xff]  }
0x145f   :  { %7420 = vmatprep.mubr.bf16.mxu0 %v21194_v0  ;;  %8563 = vmatpush1.bf16.msra.mxu0 %v18934_v7  ;;  %v18976_v7 = vld [vmem:[#allocation26 + $0x600] ss:$16 sps:$4 sm:$0xff]  }
0x1460   :  { %8564 = vmatprep.subr.bf16.mxu0 %v18939_v8 }
0x1463   :  { %8565 = vmatpush1.bf16.msra.mxu0 %v18937_v9 }
0x1464   :  { %8566 = vmatprep.subr.bf16.mxu0 %v18942_v11 }
0x1466   :  { %16470 = vmatmul.mubr.msk.bf16.gmra.mrb[88].mxu0 %vm1892_vm8, %v22005_v26  ;;  %v18963_v26 = vld [vmem:[#allocation26 + $0x564] ss:$16 sps:$4 sm:$0xff]  }
0x1467   :  { %8567 = vmatpush1.bf16.msra.mxu0 %v18940_v12  ;;  %v18981_v12 = vld [vmem:[#allocation26 + $0x624] ss:$16 sps:$4 sm:$0xff]  }
0x1468   :  { %8568 = vmatprep.subr.bf16.mxu0 %v18945_v37  ;;  %v18979_v37 = vld [vmem:[#allocation26 + $0x620] ss:$16 sps:$4 sm:$0xff]  }
0x146b   :  { %8569 = vmatpush1.bf16.msra.mxu0 %v18943_v13  ;;  %v18985_v13 = vld [vmem:[#allocation26 + $0x644] ss:$16 sps:$4 sm:$0xff]  }
0x146c   :  { %8570 = vmatprep.subr.bf16.mxu0 %v18948_v14 }
0x146f   :  { %8571 = vmatpush1.bf16.msra.mxu0 %v18946_v20  ;;  %v18983_v20 = vld [vmem:[#allocation26 + $0x640] ss:$16 sps:$4 sm:$0xff]  }
0x1470   :  { %8572 = vmatprep.subr.bf16.mxu0 %v18951_v16 }
0x1473   :  { %8573 = vmatpush1.bf16.msra.mxu0 %v18949_v21 }
0x1474   :  { %8574 = vmatprep.subr.bf16.mxu0 %v18954_v18  ;;  %v18989_v18 = vld [vmem:[#allocation26 + $0x664] ss:$16 sps:$4 sm:$0xff]  }
0x1477   :  { %8575 = vmatpush1.bf16.msra.mxu0 %v18952_v22 }
0x1478   :  { %8576 = vmatprep.subr.bf16.mxu0 %v18957_v24 }
0x147b   :  { %8577 = vmatpush1.bf16.msra.mxu0 %v18955_v31 }
0x147c   :  { %8578 = vmatprep.subr.bf16.mxu0 %v18960_v23 }
0x147f   :  { %8579 = vmatpush1.bf16.msra.mxu0 %v18958_v25 }
0x1480   :  { %8580 = vmatprep.subr.bf16.mxu0 %v18963_v26  ;;  %v18987_v26 = vld [vmem:[#allocation26 + $0x660] ss:$16 sps:$4 sm:$0xff]  }
0x1483   :  { %8581 = vmatpush1.bf16.msra.mxu0 %v18961_v32 }
0x1484   :  { %8582 = vmatprep.subr.bf16.mxu0 %v18966_v58 }
0x1487   :  { %8583 = vmatpush1.bf16.msra.mxu0 %v18964_v28 }
0x1488   :  { %8584 = vmatprep.subr.bf16.mxu0 %v18969_v59 }
0x148b   :  { %8585 = vmatpush1.bf16.msra.mxu0 %v18967_v30  ;;  %v18992_v30 = vld [vmem:[#allocation26 + $0x684] ss:$16 sps:$4 sm:$0xff]  }
0x148c   :  { %8586 = vmatprep.subr.bf16.mxu0 %v18972_v34 }
0x148f   :  { %8587 = vmatpush1.bf16.msra.mxu0 %v18970_v35 }
0x1490   :  { %8588 = vmatprep.subr.bf16.mxu0 %v18975_v36 }
0x1493   :  { %8589 = vmatpush1.bf16.msra.mxu0 %v18973_v39  ;;  %v18990_v39 = vld [vmem:[#allocation26 + $0x680] ss:$16 sps:$4 sm:$0xff]  }
0x1494   :  { %8619 = vmatprep.subr.bf16.mxu0 %v18978_v41  ;;  %v18995_v41 = vld [vmem:[#allocation26 + $0x6a4] ss:$16 sps:$4 sm:$0xff]  }
0x14e9   :  { %v7341_v46 = vpop.f32.mrb[68].mxu0 }
0x14ea   :  { %v7343_v5 = vpop.f32.mrb[69].mxu0 }
0x14eb   :  { %v17458_v47 = vpack.c.bf16 %v7343_v5, %v7341_v46  ;;  %v7345_v56 = vpop.f32.mrb[70].mxu0 }
0x14ec   :  { %v7347_v42 = vpop.f32.mrb[71].mxu0  ;;  %v22027_v38 = vpack.c.bf16 %v7345_v56, %v7341_v46 }
0x14ed   :  { %7493 = vst [vmem:[#allocation10] sm:$0xff] %v17458_v47  ;;  %v17460_v49 = vpack.c.bf16 %v7347_v42, %v7345_v56  ;;  %v22029_v51 = vpack.c.bf16 %v7347_v42, %v7343_v5  ;;  %v18993_v5 = vld [vmem:[#allocation26 + $0x6a0] ss:$16 sps:$4 sm:$0xff]   ;;  %v18998_v47 = vld [vmem:[#allocation26 + $0x6c4] ss:$16 sps:$4 sm:$0xff]  }
0x14ee   :  { %v7817_v54 = vshll.u32 %v22027_v38, 16  ;;  %v7815_v1 = vshrl.u32 %v22027_v38, 16  ;;  %v18996_v42 = vld [vmem:[#allocation26 + $0x6c0] ss:$16 sps:$4 sm:$0xff]  }
0x14ef   :  { %7495 = vst [vmem:[#allocation10 + $0x10] sm:$0xff] %v17460_v49  ;;  %v7829_v57 = vshll.u32 %v22029_v51, 16  ;;  %v7827_v63 = vshrl.u32 %v22029_v51, 16  ;;  %v19001_v49 = vld [vmem:[#allocation26 + $0x6e4] ss:$16 sps:$4 sm:$0xff]  }
0x14f0   :  { %v7819_v2 = vrot.slane %v7817_v54, 1  ;;  %v19005_v54 = vld [vmem:[#allocation26 + $0x720] ss:$16 sps:$4 sm:$0xff]  }
0x14f1   :  { %v7351_v52 = vpop.f32.mrb[72].mxu0  ;;  %v7831_v33 = vrot.slane %v7829_v57, 1  ;;  %v19002_v57 = vld [vmem:[#allocation26 + $0x700] ss:$16 sps:$4 sm:$0xff]  }
0x14f2   :  { %v7353_v55 = vpop.f32.mrb[73].mxu0  ;;  %v7820_v15 = vor.u32 %v7819_v2, %v7815_v1  ;;  %v19013_v2 = vld [vmem:[#allocation26 + $0x764] ss:$16 sps:$4 sm:$0xff]  }
0x14f3   :  { %v7355_v29 = vpop.f32.mrb[74].mxu0  ;;  %v7832_v43 = vor.u32 %v7831_v33, %v7827_v63  ;;  %v19008_v33 = vld [vmem:[#allocation26 + $0x740] ss:$16 sps:$4 sm:$0xff]  }
0x14f4   :  { %v7357_v60 = vpop.f32.mrb[75].mxu0  ;;  %v22033_v61 = vpack.c.bf16 %v7355_v29, %v7351_v52  ;;  %v18999_v52 = vld [vmem:[#allocation26 + $0x6e0] ss:$16 sps:$4 sm:$0xff]   ;;  %v19007_v29 = vld [vmem:[#allocation26 + $0x724] ss:$16 sps:$4 sm:$0xff]  }
0x14f5   :  { %v22035_v62 = vpack.c.bf16 %v7357_v60, %v7353_v55  ;;  %v19004_v55 = vld [vmem:[#allocation26 + $0x704] ss:$16 sps:$4 sm:$0xff]   ;;  %v19011_v63 = vld [vmem:[#allocation26 + $0x760] ss:$16 sps:$4 sm:$0xff]  }
0x14f6   :  { %v7822_v10 = vshll.u32 %v22033_v61, 16  ;;  %v7862_v31 = vshrl.u32 %v22033_v61, 16  ;;  %v19010_v60 = vld [vmem:[#allocation26 + $0x744] ss:$16 sps:$4 sm:$0xff]  }
0x14f7   :  { %v7834_v27 = vshll.u32 %v22035_v62, 16  ;;  %v7870_v22 = vshrl.u32 %v22035_v62, 16 }
0x14f8   :  { %v7824_v6 = vrot.slane %v7822_v10, 1 }
0x14f9   :  { %v7361_v4 = vpop.f32.mrb[76].mxu0  ;;  %v7836_v40 = vrot.slane %v7834_v27, 1  ;;  %v19016_v27 = vld [vmem:[#allocation26 + $0x784] ss:$16 sps:$4 sm:$0xff]  }
0x14fa   :  { %v7363_v3 = vpop.f32.mrb[77].mxu0  ;;  %v22045_v11 = vsel %vm642_vm0, %v7820_v15, %v7824_v6  ;;  %v7864_v28 = vor.u32 %v7862_v31, %v7824_v6  ;;  %v19019_v15 = vld [vmem:[#allocation26 + $0x7a4] ss:$16 sps:$4 sm:$0xff]  }
0x14fb   :  { %v17466_v19 = vpack.c.bf16 %v7363_v3, %v7361_v4  ;;  %v7365_v17 = vpop.f32.mrb[78].mxu0  ;;  %v22042_v9 = vsel %vm642_vm0, %v7832_v43, %v7836_v40  ;;  %v7872_v32 = vor.u32 %v7870_v22, %v7836_v40  ;;  %v19020_v22 = vld [vmem:[#allocation26 + $0x7c0] ss:$16 sps:$4 sm:$0xff]  }
0x14fc   :  { %v7366_v8 = vpop.f32.mrb[79].mxu0  ;;  %8590 = vmatprep.mubr.bf16.mxu0 %v22042_v9 }
0x14fd   :  { %7501 = vst [vmem:[#allocation10 + $0x40] sm:$0x33] %v17466_v19  ;;  %8591 = vmatmul.mubr.bf16.vlgmr.msra.gmra.mrb[92].mxu0 %v22045_v11  ;;  %v19014_v19 = vld [vmem:[#allocation26 + $0x780] ss:$16 sps:$4 sm:$0xff]  }
0x14fe   :  { %8620 = vmatpush1.bf16.msra.mxu0 %v18976_v7  ;;  %v19017_v7 = vld [vmem:[#allocation26 + $0x7a0] ss:$16 sps:$4 sm:$0xff]  }
0x14ff   :  { %8621 = vmatprep.subr.bf16.mxu0 %v18981_v12  ;;  %v19022_v12 = vld [vmem:[#allocation26 + $0x7c4] ss:$16 sps:$4 sm:$0xff]  }
0x1502   :  { %8622 = vmatpush1.bf16.msra.mxu0 %v18979_v37 }
0x1503   :  { %8623 = vmatprep.subr.bf16.mxu0 %v18985_v13 }
0x1504   :  { %v7641_v14 = vld [vmem:[#allocation10 + $0x40] sm:$0x33] }
0x1505   :  { %v22049_v16 = vcombine.high %v7641_v14, %v7641_v14  ;;  %v22051_v21 = vcombine.low %v7641_v14, %v7641_v14 }
0x1506   :  { %8624 = vmatpush1.bf16.msra.mxu0 %v18983_v20 }
0x1507   :  { %v7874_v24 = vshll.u32 %v22049_v16, 16  ;;  %v7866_v23 = vshll.u32 %v22051_v21, 16  ;;  %v7897_v25 = vshrl.u32 %v22049_v16, 16  ;;  %8625 = vmatprep.subr.bf16.mxu0 %v18989_v18  ;;  %v7894_v46 = vshrl.u32 %v22051_v21, 16 }
0x1509   :  { %v7876_v58 = vrot.slane %v7874_v24, 1  ;;  %v7868_v59 = vrot.slane %v7866_v23, 1  ;;  %v19025_v24 = vld [vmem:[#allocation26 + $0x7e4] ss:$16 sps:$4 sm:$0xff]  }
0x150a   :  { %8626 = vmatpush1.bf16.msra.mxu0 %v18987_v26 }
0x150b   :  { %v22059_v34 = vsel %vm642_vm0, %v7872_v32, %v7876_v58  ;;  %v22062_v35 = vsel %vm642_vm0, %v7864_v28, %v7868_v59  ;;  %v22064_v36 = vor.u32 %v7897_v25, %v7876_v58  ;;  %8627 = vmatprep.subr.bf16.mxu0 %v18992_v30  ;;  %v22070_v56 = vor.u32 %v7894_v46, %v7868_v59  ;;  %v19023_v32 = vld [vmem:[#allocation26 + $0x7e0] ss:$16 sps:$4 sm:$0xff]   ;;  %v19028_v30 = vld [vmem:[#allocation26 + $0x40c] ss:$16 sps:$4 sm:$0xff]  }
0x150c   :  { %8600 = vmatprep.mubr.bf16.mxu0 %v22059_v34 }
0x150d   :  { %8601 = vmatmul.mubr.bf16.gmra.mrb[96].mxu0 %v22062_v35 }
0x150e   :  { %8610 = vmatprep.mubr.bf16.mxu0 %v22064_v36  ;;  %8628 = vmatpush1.bf16.msra.mxu0 %v18990_v39 }
0x150f   :  { %8629 = vmatprep.subr.bf16.mxu0 %v18995_v41 }
0x1512   :  { %8630 = vmatpush1.bf16.msra.mxu0 %v18993_v5 }
0x1513   :  { %8631 = vmatprep.subr.bf16.mxu0 %v18998_v47 }
0x1515   :  { %8611 = vmatmul.mubr.bf16.gmra.mrb[100].mxu0 %v22070_v56 }
0x1516   :  { %8632 = vmatpush1.bf16.msra.mxu0 %v18996_v42 }
0x1517   :  { %8633 = vmatprep.subr.bf16.mxu0 %v19001_v49 }
0x151a   :  { %8634 = vmatpush1.bf16.msra.mxu0 %v18999_v52 }
0x151b   :  { %8635 = vmatprep.subr.bf16.mxu0 %v19004_v55 }
0x151e   :  { %8636 = vmatpush1.bf16.msra.mxu0 %v19002_v57  ;;  %v19026_v57 = vld [vmem:[#allocation26 + $0x408] ss:$16 sps:$4 sm:$0xff]  }
0x151f   :  { %8637 = vmatprep.subr.bf16.mxu0 %v19007_v29 }
0x1522   :  { %8638 = vmatpush1.bf16.msra.mxu0 %v19005_v54 }
0x1523   :  { %8639 = vmatprep.subr.bf16.mxu0 %v19010_v60 }
0x1526   :  { %8640 = vmatpush1.bf16.msra.mxu0 %v19008_v33  ;;  %v19031_v33 = vld [vmem:[#allocation26 + $0x42c] ss:$16 sps:$4 sm:$0xff]  }
0x1527   :  { %8641 = vmatprep.subr.bf16.mxu0 %v19013_v2  ;;  %v19029_v2 = vld [vmem:[#allocation26 + $0x428] ss:$16 sps:$4 sm:$0xff]  }
0x1529   :  { %v7402_v4 = vpop.f32.mrb[80].mxu0 }
0x152a   :  { %v7404_v1 = vpop.f32.mrb[81].mxu0  ;;  %8642 = vmatpush1.bf16.msra.mxu0 %v19011_v63  ;;  %v19035_v63 = vld [vmem:[#allocation26 + $0x44c] ss:$16 sps:$4 sm:$0xff]  }
0x152b   :  { %v17459_v10 = vpack.c.bf16 %v7404_v1, %v7402_v4  ;;  %v7406_v3 = vpop.f32.mrb[82].mxu0  ;;  %8643 = vmatprep.subr.bf16.mxu0 %v19016_v27  ;;  %v19033_v27 = vld [vmem:[#allocation26 + $0x448] ss:$16 sps:$4 sm:$0xff]  }
0x152c   :  { %v7408_v43 = vpop.f32.mrb[83].mxu0  ;;  %v22073_v6 = vpack.c.bf16 %v7406_v3, %v7402_v4 }
0x152d   :  { %7494 = vst [vmem:[#allocation10 + $0x8] sm:$0xff] %v17459_v10  ;;  %v17461_v40 = vpack.c.bf16 %v7408_v43, %v7406_v3  ;;  %v22075_v17 = vpack.c.bf16 %v7408_v43, %v7404_v1  ;;  %v19039_v3 = vld [vmem:[#allocation26 + $0x46c] ss:$16 sps:$4 sm:$0xff]  }
0x152e   :  { %8644 = vmatpush1.bf16.msra.mxu0 %v19014_v19  ;;  %v7841_v20 = vshll.u32 %v22073_v6, 16  ;;  %v7839_v39 = vshrl.u32 %v22073_v6, 16 }
0x152f   :  { %7496 = vst [vmem:[#allocation10 + $0x18] sm:$0xff] %v17461_v40  ;;  %8645 = vmatprep.subr.bf16.mxu0 %v19019_v15  ;;  %v7853_v13 = vshll.u32 %v22075_v17, 16  ;;  %v7851_v58 = vshrl.u32 %v22075_v17, 16 }
0x1530   :  { %v7843_v26 = vrot.slane %v7841_v20, 1  ;;  %v19042_v20 = vld [vmem:[#allocation26 + $0x48c] ss:$16 sps:$4 sm:$0xff]  }
0x1531   :  { %v7412_v8 = vpop.f32.mrb[84].mxu0  ;;  %v7855_v31 = vrot.slane %v7853_v13, 1 }
0x1532   :  { %v7414_v37 = vpop.f32.mrb[85].mxu0  ;;  %8646 = vmatpush1.bf16.msra.mxu0 %v19017_v7  ;;  %v7844_v49 = vor.u32 %v7843_v26, %v7839_v39  ;;  %v19051_v39 = vld [vmem:[#allocation26 + $0x4ec] ss:$16 sps:$4 sm:$0xff]  }
0x1533   :  { %v7416_v14 = vpop.f32.mrb[86].mxu0  ;;  %8647 = vmatprep.subr.bf16.mxu0 %v19022_v12  ;;  %v7856_v5 = vor.u32 %v7855_v31, %v7851_v58  ;;  %v19040_v31 = vld [vmem:[#allocation26 + $0x488] ss:$16 sps:$4 sm:$0xff]  }
0x1534   :  { %v7418_v18 = vpop.f32.mrb[87].mxu0  ;;  %v22079_v23 = vpack.c.bf16 %v7416_v14, %v7412_v8  ;;  %v19037_v8 = vld [vmem:[#allocation26 + $0x468] ss:$16 sps:$4 sm:$0xff]  }
0x1535   :  { %v22081_v25 = vpack.c.bf16 %v7418_v18, %v7414_v37  ;;  %v19043_v58 = vld [vmem:[#allocation26 + $0x4a8] ss:$16 sps:$4 sm:$0xff]  }
0x1536   :  { %8648 = vmatpush1.bf16.msra.mxu0 %v19020_v22  ;;  %v7846_v41 = vshll.u32 %v22079_v23, 16  ;;  %v7878_v40 = vshrl.u32 %v22079_v23, 16 }
0x1537   :  { %8649 = vmatprep.subr.bf16.mxu0 %v19025_v24  ;;  %v7858_v59 = vshll.u32 %v22081_v25, 16  ;;  %v7886_v43 = vshrl.u32 %v22081_v25, 16 }
0x1538   :  { %v7848_v52 = vrot.slane %v7846_v41, 1  ;;  %v19049_v41 = vld [vmem:[#allocation26 + $0x4e8] ss:$16 sps:$4 sm:$0xff]  }
0x1539   :  { %v7422_v28 = vpop.f32.mrb[88].mxu0  ;;  %v7860_v42 = vrot.slane %v7858_v59, 1  ;;  %v19048_v59 = vld [vmem:[#allocation26 + $0x4cc] ss:$16 sps:$4 sm:$0xff]  }
0x153a   :  { %v7424_v46 = vpop.f32.mrb[89].mxu0  ;;  %8650 = vmatpush1.bf16.msra.mxu0 %v19023_v32  ;;  %v22091_v60 = vsel %vm642_vm0, %v7844_v49, %v7848_v52  ;;  %v7880_v13 = vor.u32 %v7878_v40, %v7848_v52  ;;  %v19045_v32 = vld [vmem:[#allocation26 + $0x4ac] ss:$16 sps:$4 sm:$0xff]   ;;  %v19058_v52 = vld [vmem:[#allocation26 + $0x548] ss:$16 sps:$4 sm:$0xff]  }
0x153b   :  { %v17467_v47 = vpack.c.bf16 %v7424_v46, %v7422_v28  ;;  %v7426_v55 = vpop.f32.mrb[90].mxu0  ;;  %v22088_v54 = vsel %vm642_vm0, %v7856_v5, %v7860_v42  ;;  %8680 = vmatprep.subr.bf16.mxu0 %v19028_v30  ;;  %v7888_v12 = vor.u32 %v7886_v43, %v7860_v42  ;;  %v19046_v30 = vld [vmem:[#allocation26 + $0x4c8] ss:$16 sps:$4 sm:$0xff]   ;;  %v19054_v46 = vld [vmem:[#allocation26 + $0x50c] ss:$16 sps:$4 sm:$0xff]  }
0x153c   :  { %v7427_v29 = vpop.f32.mrb[91].mxu0  ;;  %8651 = vmatprep.mubr.bf16.mxu0 %v22088_v54  ;;  %v19052_v5 = vld [vmem:[#allocation26 + $0x508] ss:$16 sps:$4 sm:$0xff]   ;;  %v19060_v49 = vld [vmem:[#allocation26 + $0x54c] ss:$16 sps:$4 sm:$0xff]  }
0x153d   :  { %7502 = vst [vmem:[#allocation10 + $0x48] sm:$0x33] %v17467_v47  ;;  %8652 = vmatmul.mubr.bf16.vlgmr.msra.gmra.mrb[92].mxu0 %v22091_v60  ;;  %v19057_v47 = vld [vmem:[#allocation26 + $0x52c] ss:$16 sps:$4 sm:$0xff]   ;;  %v19055_v42 = vld [vmem:[#allocation26 + $0x528] ss:$16 sps:$4 sm:$0xff]  }
0x153e   :  { %8681 = vmatpush1.bf16.msra.mxu0 %v19026_v57  ;;  %v19063_v55 = vld [vmem:[#allocation26 + $0x56c] ss:$16 sps:$4 sm:$0xff]   ;;  %v19061_v57 = vld [vmem:[#allocation26 + $0x568] ss:$16 sps:$4 sm:$0xff]  }
0x153f   :  { %8682 = vmatprep.subr.bf16.mxu0 %v19031_v33  ;;  %v19064_v29 = vld [vmem:[#allocation26 + $0x588] ss:$16 sps:$4 sm:$0xff]   ;;  %v19069_v33 = vld [vmem:[#allocation26 + $0x5ac] ss:$16 sps:$4 sm:$0xff]  }
0x1540   :  { %v19078_v43 = vld [vmem:[#allocation26 + $0x60c] ss:$16 sps:$4 sm:$0xff]  }
0x1541   :  { %v19081_v40 = vld [vmem:[#allocation26 + $0x62c] ss:$16 sps:$4 sm:$0xff]  }
0x1542   :  { %8683 = vmatpush1.bf16.msra.mxu0 %v19029_v2  ;;  %v19067_v2 = vld [vmem:[#allocation26 + $0x5a8] ss:$16 sps:$4 sm:$0xff]  }
0x1543   :  { %8684 = vmatprep.subr.bf16.mxu0 %v19035_v63  ;;  %v19072_v63 = vld [vmem:[#allocation26 + $0x5cc] ss:$16 sps:$4 sm:$0xff]  }
0x1544   :  { %v7642_v4 = vld [vmem:[#allocation10 + $0x48] sm:$0x33] }
0x1545   :  { %v22095_v1 = vcombine.high %v7642_v4, %v7642_v4  ;;  %v22097_v10 = vcombine.low %v7642_v4, %v7642_v4  ;;  %v19070_v4 = vld [vmem:[#allocation26 + $0x5c8] ss:$16 sps:$4 sm:$0xff]  }
0x1546   :  { %8685 = vmatpush1.bf16.msra.mxu0 %v19033_v27  ;;  %v19075_v27 = vld [vmem:[#allocation26 + $0x5ec] ss:$16 sps:$4 sm:$0xff]  }
0x1547   :  { %v7890_v19 = vshll.u32 %v22095_v1, 16  ;;  %v7882_v15 = vshll.u32 %v22097_v10, 16  ;;  %v7903_v7 = vshrl.u32 %v22095_v1, 16  ;;  %8686 = vmatprep.subr.bf16.mxu0 %v19039_v3  ;;  %v7900_v26 = vshrl.u32 %v22097_v10, 16  ;;  %v19073_v3 = vld [vmem:[#allocation26 + $0x5e8] ss:$16 sps:$4 sm:$0xff]  }
0x1549   :  { %v7892_v37 = vrot.slane %v7890_v19, 1  ;;  %v7884_v14 = vrot.slane %v7882_v15, 1  ;;  %v19076_v19 = vld [vmem:[#allocation26 + $0x608] ss:$16 sps:$4 sm:$0xff]  }
0x154a   :  { %8687 = vmatpush1.bf16.msra.mxu0 %v19037_v8  ;;  %v19079_v15 = vld [vmem:[#allocation26 + $0x628] ss:$16 sps:$4 sm:$0xff]  }
0x154b   :  { %v22105_v18 = vsel %vm642_vm0, %v7888_v12, %v7892_v37  ;;  %v22108_v22 = vsel %vm642_vm0, %v7880_v13, %v7884_v14  ;;  %v22110_v24 = vor.u32 %v7903_v7, %v7892_v37  ;;  %8688 = vmatprep.subr.bf16.mxu0 %v19042_v20  ;;  %v22116_v28 = vor.u32 %v7900_v26, %v7884_v14  ;;  %v19084_v7 = vld [vmem:[#allocation26 + $0x64c] ss:$16 sps:$4 sm:$0xff]   ;;  %v19082_v8 = vld [vmem:[#allocation26 + $0x648] ss:$16 sps:$4 sm:$0xff]  }
0x154c   :  { %8661 = vmatprep.mubr.bf16.mxu0 %v22105_v18  ;;  %v19087_v12 = vld [vmem:[#allocation26 + $0x66c] ss:$16 sps:$4 sm:$0xff]   ;;  %v19085_v37 = vld [vmem:[#allocation26 + $0x668] ss:$16 sps:$4 sm:$0xff]  }
0x154d   :  { %8662 = vmatmul.mubr.bf16.gmra.mrb[96].mxu0 %v22108_v22  ;;  %v19090_v13 = vld [vmem:[#allocation26 + $0x68c] ss:$16 sps:$4 sm:$0xff]   ;;  %v19091_v14 = vld [vmem:[#allocation26 + $0x6a8] ss:$16 sps:$4 sm:$0xff]  }
0x154e   :  { %8671 = vmatprep.mubr.bf16.mxu0 %v22110_v24  ;;  %8689 = vmatpush1.bf16.msra.mxu0 %v19040_v31  ;;  %v19096_v20 = vld [vmem:[#allocation26 + $0x6cc] ss:$16 sps:$4 sm:$0xff]   ;;  %v19097_v31 = vld [vmem:[#allocation26 + $0x6e8] ss:$16 sps:$4 sm:$0xff]  }
0x154f   :  { %8690 = vmatprep.subr.bf16.mxu0 %v19045_v32  ;;  %v19102_v26 = vld [vmem:[#allocation26 + $0x70c] ss:$16 sps:$4 sm:$0xff]   ;;  %v19100_v32 = vld [vmem:[#allocation26 + $0x708] ss:$16 sps:$4 sm:$0xff]  }
0x1552   :  { %8691 = vmatpush1.bf16.msra.mxu0 %v19043_v58  ;;  %v19105_v58 = vld [vmem:[#allocation26 + $0x72c] ss:$16 sps:$4 sm:$0xff]  }
0x1553   :  { %8692 = vmatprep.subr.bf16.mxu0 %v19048_v59  ;;  %v19108_v59 = vld [vmem:[#allocation26 + $0x74c] ss:$16 sps:$4 sm:$0xff]  }
0x1555   :  { %8672 = vmatmul.mubr.bf16.gmra.mrb[104].mxu0 %v22116_v28 }
0x1556   :  { %8712 = vmatprep.mubr.bf16.mxu0 %v22042_v9  ;;  %8693 = vmatpush1.bf16.msra.mxu0 %v19046_v30  ;;  %v19066_v9 = vld [vmem:[#allocation26 + $0x58c] ss:$16 sps:$4 sm:$0xff]  }
0x1557   :  { %8694 = vmatprep.subr.bf16.mxu0 %v19051_v39  ;;  %v19111_v30 = vld [vmem:[#allocation26 + $0x76c] ss:$16 sps:$4 sm:$0xff]   ;;  %v19109_v39 = vld [vmem:[#allocation26 + $0x768] ss:$16 sps:$4 sm:$0xff]  }
0x155a   :  { %8695 = vmatpush1.bf16.msra.mxu0 %v19049_v41  ;;  %v19114_v41 = vld [vmem:[#allocation26 + $0x78c] ss:$16 sps:$4 sm:$0xff]  }
0x155b   :  { %8696 = vmatprep.subr.bf16.mxu0 %v19054_v46  ;;  %v19112_v46 = vld [vmem:[#allocation26 + $0x788] ss:$16 sps:$4 sm:$0xff]  }
0x155e   :  { %8697 = vmatpush1.bf16.msra.mxu0 %v19052_v5  ;;  %v19117_v5 = vld [vmem:[#allocation26 + $0x7ac] ss:$16 sps:$4 sm:$0xff]  }
0x155f   :  { %8698 = vmatprep.subr.bf16.mxu0 %v19057_v47  ;;  %v19115_v47 = vld [vmem:[#allocation26 + $0x7a8] ss:$16 sps:$4 sm:$0xff]  }
0x1562   :  { %8699 = vmatpush1.bf16.msra.mxu0 %v19055_v42  ;;  %v19120_v42 = vld [vmem:[#allocation26 + $0x7cc] ss:$16 sps:$4 sm:$0xff]  }
0x1563   :  { %8700 = vmatprep.subr.bf16.mxu0 %v19060_v49  ;;  %v19118_v49 = vld [vmem:[#allocation26 + $0x7c8] ss:$16 sps:$4 sm:$0xff]  }
0x1566   :  { %8701 = vmatpush1.bf16.msra.mxu0 %v19058_v52  ;;  %v19123_v52 = vld [vmem:[#allocation26 + $0x7ec] ss:$16 sps:$4 sm:$0xff]  }
0x1567   :  { %8702 = vmatprep.subr.bf16.mxu0 %v19063_v55  ;;  %v19121_v55 = vld [vmem:[#allocation26 + $0x7e8] ss:$16 sps:$4 sm:$0xff]  }
0x156a   :  { %8703 = vmatpush1.bf16.msra.mxu0 %v19061_v57  ;;  %v19126_v57 = vld [vmem:[#allocation26 + $0x4] ss:$16 sps:$4 sm:$0xff]  }
0x156b   :  { %8704 = vmatprep.subr.bf16.mxu0 %v19066_v9  ;;  %v19124_v9 = vld [vmem:[#allocation26] ss:$16 sps:$4 sm:$0xff]  }
0x156e   :  { %8705 = vmatpush1.bf16.msra.mxu0 %v19064_v29  ;;  %v19129_v29 = vld [vmem:[#allocation26 + $0x24] ss:$16 sps:$4 sm:$0xff]  }
0x156f   :  { %8706 = vmatprep.subr.bf16.mxu0 %v19069_v33  ;;  %v19127_v33 = vld [vmem:[#allocation26 + $0x20] ss:$16 sps:$4 sm:$0xff]  }
0x1572   :  { %8707 = vmatpush1.bf16.msra.mxu0 %v19067_v2  ;;  %v19132_v2 = vld [vmem:[#allocation26 + $0x44] ss:$16 sps:$4 sm:$0xff]  }
0x1573   :  { %8708 = vmatprep.subr.bf16.mxu0 %v19072_v63  ;;  %v19130_v63 = vld [vmem:[#allocation26 + $0x40] ss:$16 sps:$4 sm:$0xff]  }
0x1576   :  { %8709 = vmatpush1.bf16.msra.mxu0 %v19070_v4  ;;  %v19135_v4 = vld [vmem:[#allocation26 + $0x64] ss:$16 sps:$4 sm:$0xff]  }
0x1577   :  { %8710 = vmatprep.subr.bf16.mxu0 %v19075_v27  ;;  %v19133_v27 = vld [vmem:[#allocation26 + $0x60] ss:$16 sps:$4 sm:$0xff]  }
0x157a   :  { %8711 = vmatpush1.bf16.msra.mxu0 %v19073_v3  ;;  %v19138_v3 = vld [vmem:[#allocation26 + $0x84] ss:$16 sps:$4 sm:$0xff]  }
0x157b   :  { %8741 = vmatprep.subr.bf16.mxu0 %v19078_v43  ;;  %v19139_v43 = vld [vmem:[#allocation26 + $0xa0] ss:$16 sps:$4 sm:$0xff]  }
0x157d   :  { %8713 = vmatmul.mubr.bf16.vlgmr.msra.gmra.mrb[108].mxu0 %v22045_v11  ;;  %v19088_v11 = vld [vmem:[#allocation26 + $0x688] ss:$16 sps:$4 sm:$0xff]  }
0x157e   :  { %8722 = vmatprep.mubr.bf16.mxu0 %v22059_v34  ;;  %8742 = vmatpush1.bf16.msra.mxu0 %v19076_v19  ;;  %v19093_v34 = vld [vmem:[#allocation26 + $0x6ac] ss:$16 sps:$4 sm:$0xff]   ;;  %v19144_v19 = vld [vmem:[#allocation26 + $0xc4] ss:$16 sps:$4 sm:$0xff]  }
0x157f   :  { %8743 = vmatprep.subr.bf16.mxu0 %v19081_v40  ;;  %v19145_v40 = vld [vmem:[#allocation26 + $0xe0] ss:$16 sps:$4 sm:$0xff]  }
0x1582   :  { %8744 = vmatpush1.bf16.msra.mxu0 %v19079_v15  ;;  %v19150_v15 = vld [vmem:[#allocation26 + $0x104] ss:$16 sps:$4 sm:$0xff]  }
0x1583   :  { %8745 = vmatprep.subr.bf16.mxu0 %v19084_v7  ;;  %v19148_v7 = vld [vmem:[#allocation26 + $0x100] ss:$16 sps:$4 sm:$0xff]  }
0x1585   :  { %8723 = vmatmul.mubr.bf16.gmra.mrb[112].mxu0 %v22062_v35  ;;  %v19094_v35 = vld [vmem:[#allocation26 + $0x6c8] ss:$16 sps:$4 sm:$0xff]  }
0x1586   :  { %8732 = vmatprep.mubr.bf16.mxu0 %v22064_v36  ;;  %8746 = vmatpush1.bf16.msra.mxu0 %v19082_v8  ;;  %v19099_v36 = vld [vmem:[#allocation26 + $0x6ec] ss:$16 sps:$4 sm:$0xff]   ;;  %v19153_v8 = vld [vmem:[#allocation26 + $0x124] ss:$16 sps:$4 sm:$0xff]  }
0x1587   :  { %8747 = vmatprep.subr.bf16.mxu0 %v19087_v12  ;;  %v19156_v12 = vld [vmem:[#allocation26 + $0x144] ss:$16 sps:$4 sm:$0xff]  }
0x158a   :  { %8748 = vmatpush1.bf16.msra.mxu0 %v19085_v37  ;;  %v19154_v37 = vld [vmem:[#allocation26 + $0x140] ss:$16 sps:$4 sm:$0xff]  }
0x158b   :  { %8749 = vmatprep.subr.bf16.mxu0 %v19090_v13  ;;  %v19159_v13 = vld [vmem:[#allocation26 + $0x164] ss:$16 sps:$4 sm:$0xff]  }
0x158d   :  { %8733 = vmatmul.mubr.bf16.gmra.mrb[116].mxu0 %v22070_v56  ;;  %v19103_v56 = vld [vmem:[#allocation26 + $0x728] ss:$16 sps:$4 sm:$0xff]  }
0x158e   :  { %8750 = vmatpush1.bf16.msra.mxu0 %v19088_v11  ;;  %8773 = vmatprep.mubr.bf16.mxu0 %v22088_v54  ;;  %v19106_v54 = vld [vmem:[#allocation26 + $0x748] ss:$16 sps:$4 sm:$0xff]   ;;  %v19157_v11 = vld [vmem:[#allocation26 + $0x160] ss:$16 sps:$4 sm:$0xff]  }
0x158f   :  { %8751 = vmatprep.subr.bf16.mxu0 %v19093_v34 }
0x1592   :  { %8752 = vmatpush1.bf16.msra.mxu0 %v19091_v14  ;;  %v19162_v14 = vld [vmem:[#allocation26 + $0x184] ss:$16 sps:$4 sm:$0xff]  }
0x1593   :  { %8753 = vmatprep.subr.bf16.mxu0 %v19096_v20 }
0x1596   :  { %8754 = vmatpush1.bf16.msra.mxu0 %v19094_v35 }
0x1597   :  { %8755 = vmatprep.subr.bf16.mxu0 %v19099_v36 }
0x159a   :  { %8756 = vmatpush1.bf16.msra.mxu0 %v19097_v31  ;;  %v19160_v31 = vld [vmem:[#allocation26 + $0x180] ss:$16 sps:$4 sm:$0xff]  }
0x159b   :  { %8757 = vmatprep.subr.bf16.mxu0 %v19102_v26  ;;  %v19165_v26 = vld [vmem:[#allocation26 + $0x1a4] ss:$16 sps:$4 sm:$0xff]  }
0x159e   :  { %8758 = vmatpush1.bf16.msra.mxu0 %v19100_v32  ;;  %v19163_v32 = vld [vmem:[#allocation26 + $0x1a0] ss:$16 sps:$4 sm:$0xff]  }
0x159f   :  { %8759 = vmatprep.subr.bf16.mxu0 %v19105_v58  ;;  %v19168_v58 = vld [vmem:[#allocation26 + $0x1c4] ss:$16 sps:$4 sm:$0xff]  }
0x15a2   :  { %8760 = vmatpush1.bf16.msra.mxu0 %v19103_v56  ;;  %v19166_v56 = vld [vmem:[#allocation26 + $0x1c0] ss:$16 sps:$4 sm:$0xff]  }
0x15a3   :  { %8761 = vmatprep.subr.bf16.mxu0 %v19108_v59  ;;  %v19171_v59 = vld [vmem:[#allocation26 + $0x1e4] ss:$16 sps:$4 sm:$0xff]  }
0x15a6   :  { %8762 = vmatpush1.bf16.msra.mxu0 %v19106_v54  ;;  %v19169_v54 = vld [vmem:[#allocation26 + $0x1e0] ss:$16 sps:$4 sm:$0xff]  }
0x15a7   :  { %8763 = vmatprep.subr.bf16.mxu0 %v19111_v30  ;;  %v19174_v30 = vld [vmem:[#allocation26 + $0x204] ss:$16 sps:$4 sm:$0xff]  }
0x15aa   :  { %8764 = vmatpush1.bf16.msra.mxu0 %v19109_v39  ;;  %v19172_v39 = vld [vmem:[#allocation26 + $0x200] ss:$16 sps:$4 sm:$0xff]  }
0x15ab   :  { %8765 = vmatprep.subr.bf16.mxu0 %v19114_v41  ;;  %v19177_v41 = vld [vmem:[#allocation26 + $0x224] ss:$16 sps:$4 sm:$0xff]  }
0x15ae   :  { %8766 = vmatpush1.bf16.msra.mxu0 %v19112_v46  ;;  %v19175_v46 = vld [vmem:[#allocation26 + $0x220] ss:$16 sps:$4 sm:$0xff]  }
0x15af   :  { %8767 = vmatprep.subr.bf16.mxu0 %v19117_v5  ;;  %v19180_v5 = vld [vmem:[#allocation26 + $0x244] ss:$16 sps:$4 sm:$0xff]  }
0x15b2   :  { %8768 = vmatpush1.bf16.msra.mxu0 %v19115_v47  ;;  %v7511_v47 = vld [vmem:[#allocation10 + $0x40] sm:$0x11] }
0x15b3   :  { %8769 = vmatprep.subr.bf16.mxu0 %v19120_v42  ;;  %v19178_v42 = vld [vmem:[#allocation26 + $0x240] ss:$16 sps:$4 sm:$0xff]  }
0x15b6   :  { %8770 = vmatpush1.bf16.msra.mxu0 %v19118_v49  ;;  %v19184_v49 = vld [vmem:[#allocation26 + $0x264] ss:$16 sps:$4 sm:$0xff]  }
0x15b7   :  { %8771 = vmatprep.subr.bf16.mxu0 %v19123_v52  ;;  %v22138_v52 = vcombine.high %v7511_v47, %v7511_v47 }
0x15ba   :  { %8772 = vmatpush1.bf16.msra.mxu0 %v19121_v55  ;;  %v19182_v55 = vld [vmem:[#allocation26 + $0x260] ss:$16 sps:$4 sm:$0xff]  }
0x15bb   :  { %9464 = vmatprep.subr.bf16.mxu0 %v19126_v57  ;;  %v19188_v57 = vld [vmem:[#allocation26 + $0x284] ss:$16 sps:$4 sm:$0xff]  }
0x15bd   :  { %8774 = vmatmul.mubr.bf16.vlgmr.msra.gmra.mrb[108].mxu0 %v22091_v60  ;;  %v19136_v60 = vld [vmem:[#allocation26 + $0x80] ss:$16 sps:$4 sm:$0xff]  }
0x15be   :  { %8783 = vmatprep.mubr.bf16.mxu0 %v22105_v18  ;;  %9465 = vmatpush1.bf16.msra.mxu0 %v19124_v9  ;;  %v19141_v18 = vld [vmem:[#allocation26 + $0xa4] ss:$16 sps:$4 sm:$0xff]   ;;  %v19186_v9 = vld [vmem:[#allocation26 + $0x280] ss:$16 sps:$4 sm:$0xff]  }
0x15bf   :  { %9466 = vmatprep.subr.bf16.mxu0 %v19129_v29  ;;  %v22142_v29 = vcombine.low %v7511_v47, %v7511_v47  ;;  %v19238_v47 = vld [vmem:[#allocation26 + $0x8c] ss:$16 sps:$4 sm:$0xff]  }
0x15c2   :  { %9467 = vmatpush1.bf16.msra.mxu0 %v19127_v33  ;;  %v19191_v33 = vld [vmem:[#allocation26 + $0x2a4] ss:$16 sps:$4 sm:$0xff]  }
0x15c3   :  { %9468 = vmatprep.subr.bf16.mxu0 %v19132_v2  ;;  %v19189_v2 = vld [vmem:[#allocation26 + $0x2a0] ss:$16 sps:$4 sm:$0xff]  }
0x15c5   :  { %8784 = vmatmul.mubr.bf16.gmra.mrb[112].mxu0 %v22108_v22  ;;  %v19142_v22 = vld [vmem:[#allocation26 + $0xc0] ss:$16 sps:$4 sm:$0xff]  }
0x15c6   :  { %8793 = vmatprep.mubr.bf16.mxu0 %v22110_v24  ;;  %9469 = vmatpush1.bf16.msra.mxu0 %v19130_v63  ;;  %v19147_v24 = vld [vmem:[#allocation26 + $0xe4] ss:$16 sps:$4 sm:$0xff]  }
0x15c7   :  { %9470 = vmatprep.subr.bf16.mxu0 %v19135_v4  ;;  %v19194_v63 = vld [vmem:[#allocation26 + $0x2c4] ss:$16 sps:$4 sm:$0xff]   ;;  %v19192_v4 = vld [vmem:[#allocation26 + $0x2c0] ss:$16 sps:$4 sm:$0xff]  }
0x15ca   :  { %9471 = vmatpush1.bf16.msra.mxu0 %v19133_v27  ;;  %v19197_v27 = vld [vmem:[#allocation26 + $0x2e4] ss:$16 sps:$4 sm:$0xff]  }
0x15cb   :  { %9472 = vmatprep.subr.bf16.mxu0 %v19138_v3  ;;  %v19195_v3 = vld [vmem:[#allocation26 + $0x2e0] ss:$16 sps:$4 sm:$0xff]  }
0x15cd   :  { %8794 = vmatmul.mubr.bf16.gmra.mrb[120].mxu0 %v22116_v28  ;;  %v19151_v28 = vld [vmem:[#allocation26 + $0x120] ss:$16 sps:$4 sm:$0xff]  }
0x15ce   :  { %9473 = vmatpush1.bf16.msra.mxu0 %v19136_v60  ;;  %9496 = vmatprep.mubr.bf16.mxu0 %v22029_v51  ;;  %v19200_v60 = vld [vmem:[#allocation26 + $0x304] ss:$16 sps:$4 sm:$0xff]  }
0x15cf   :  { %9474 = vmatprep.subr.bf16.mxu0 %v19141_v18  ;;  %v19198_v18 = vld [vmem:[#allocation26 + $0x300] ss:$16 sps:$4 sm:$0xff]  }
0x15d2   :  { %9475 = vmatpush1.bf16.msra.mxu0 %v19139_v43  ;;  %v19203_v43 = vld [vmem:[#allocation26 + $0x324] ss:$16 sps:$4 sm:$0xff]  }
0x15d3   :  { %9476 = vmatprep.subr.bf16.mxu0 %v19144_v19  ;;  %v19201_v19 = vld [vmem:[#allocation26 + $0x320] ss:$16 sps:$4 sm:$0xff]  }
0x15d6   :  { %9477 = vmatpush1.bf16.msra.mxu0 %v19142_v22  ;;  %v19206_v22 = vld [vmem:[#allocation26 + $0x344] ss:$16 sps:$4 sm:$0xff]  }
0x15d7   :  { %9478 = vmatprep.subr.bf16.mxu0 %v19147_v24  ;;  %v19204_v24 = vld [vmem:[#allocation26 + $0x340] ss:$16 sps:$4 sm:$0xff]  }
0x15da   :  { %9479 = vmatpush1.bf16.msra.mxu0 %v19145_v40  ;;  %v19209_v40 = vld [vmem:[#allocation26 + $0x364] ss:$16 sps:$4 sm:$0xff]  }
0x15db   :  { %9480 = vmatprep.subr.bf16.mxu0 %v19150_v15 }
0x15de   :  { %9481 = vmatpush1.bf16.msra.mxu0 %v19148_v7  ;;  %v19207_v7 = vld [vmem:[#allocation26 + $0x360] ss:$16 sps:$4 sm:$0xff]  }
0x15df   :  { %9482 = vmatprep.subr.bf16.mxu0 %v19153_v8 }
0x15e2   :  { %9483 = vmatpush1.bf16.msra.mxu0 %v19151_v28 }
0x15e3   :  { %9484 = vmatprep.subr.bf16.mxu0 %v19156_v12  ;;  %v19212_v12 = vld [vmem:[#allocation26 + $0x384] ss:$16 sps:$4 sm:$0xff]  }
0x15e6   :  { %9485 = vmatpush1.bf16.msra.mxu0 %v19154_v37 }
0x15e7   :  { %9486 = vmatprep.subr.bf16.mxu0 %v19159_v13 }
0x15e8   :  { %v22132_v34 = vpop.f32.mrb[100].mxu0 }
0x15e9   :  { %v22134_v20 = vpop.f32.mrb[101].mxu0 }
0x15ea   :  { %v8616_v35 = vpop.f32.mrb[102].mxu0  ;;  %9487 = vmatpush1.bf16.msra.mxu0 %v19157_v11 }
0x15eb   :  { %v8617_v36 = vpop.f32.mrb[103].mxu0  ;;  %9488 = vmatprep.subr.bf16.mxu0 %v19162_v14  ;;  %v19210_v14 = vld [vmem:[#allocation26 + $0x380] ss:$16 sps:$4 sm:$0xff]   ;;  %v19215_v35 = vld [vmem:[#allocation26 + $0x3a4] ss:$16 sps:$4 sm:$0xff]  }
0x15ec   :  { %v19213_v36 = vld [vmem:[#allocation26 + $0x3a0] ss:$16 sps:$4 sm:$0xff]  }
0x15ee   :  { %9489 = vmatpush1.bf16.msra.mxu0 %v19160_v31  ;;  %v19218_v31 = vld [vmem:[#allocation26 + $0x3c4] ss:$16 sps:$4 sm:$0xff]  }
0x15ef   :  { %9490 = vmatprep.subr.bf16.mxu0 %v19165_v26  ;;  %v19216_v26 = vld [vmem:[#allocation26 + $0x3c0] ss:$16 sps:$4 sm:$0xff]  }
0x15f2   :  { %9491 = vmatpush1.bf16.msra.mxu0 %v19163_v32  ;;  %v19219_v32 = vld [vmem:[#allocation26 + $0x3e0] ss:$16 sps:$4 sm:$0xff]  }
0x15f3   :  { %9492 = vmatprep.subr.bf16.mxu0 %v19168_v58  ;;  %v19224_v58 = vld [vmem:[#allocation26 + $0xc] ss:$16 sps:$4 sm:$0xff]  }
0x15f6   :  { %9493 = vmatpush1.bf16.msra.mxu0 %v19166_v56  ;;  %v19227_v56 = vld [vmem:[#allocation26 + $0x2c] ss:$16 sps:$4 sm:$0xff]  }
0x15f7   :  { %9494 = vmatprep.subr.bf16.mxu0 %v19171_v59  ;;  %v19225_v59 = vld [vmem:[#allocation26 + $0x28] ss:$16 sps:$4 sm:$0xff]  }
0x15fa   :  { %9495 = vmatpush1.bf16.msra.mxu0 %v19169_v54  ;;  %v19230_v54 = vld [vmem:[#allocation26 + $0x4c] ss:$16 sps:$4 sm:$0xff]  }
0x15fb   :  { %9525 = vmatprep.subr.bf16.mxu0 %v19174_v30  ;;  %v7512_v30 = vld [vmem:[#allocation10 + $0x48] sm:$0x11] }
0x15fd   :  { %9497 = vmatmul.mubr.bf16.vlgmr.msra.gmra.mrb[92].mxu0 %v22027_v38 }
0x15fe   :  { %9506 = vmatprep.mubr.bf16.mxu0 %v22035_v62  ;;  %9526 = vmatpush1.bf16.msra.mxu0 %v19172_v39  ;;  %v19228_v39 = vld [vmem:[#allocation26 + $0x48] ss:$16 sps:$4 sm:$0xff]  }
0x15ff   :  { %9527 = vmatprep.subr.bf16.mxu0 %v19177_v41  ;;  %v19234_v41 = vld [vmem:[#allocation26 + $0x6c] ss:$16 sps:$4 sm:$0xff]  }
0x1602   :  { %9528 = vmatpush1.bf16.msra.mxu0 %v19175_v46  ;;  %v22154_v46 = vcombine.high %v7512_v30, %v7512_v30 }
0x1603   :  { %9529 = vmatprep.subr.bf16.mxu0 %v19180_v5  ;;  %v19232_v5 = vld [vmem:[#allocation26 + $0x68] ss:$16 sps:$4 sm:$0xff]  }
0x1605   :  { %9507 = vmatmul.mubr.bf16.gmra.mrb[96].mxu0 %v22033_v61 }
0x1606   :  { %9516 = vmatprep.mubr.bf16.mxu0 %v22138_v52  ;;  %9530 = vmatpush1.bf16.msra.mxu0 %v19178_v42  ;;  %v19236_v42 = vld [vmem:[#allocation26 + $0x88] ss:$16 sps:$4 sm:$0xff]  }
0x1607   :  { %9531 = vmatprep.subr.bf16.mxu0 %v19184_v49  ;;  %v22158_v49 = vcombine.low %v7512_v30, %v7512_v30  ;;  %v19289_v30 = vld [vmem:[#allocation26 + $0x2ac] ss:$16 sps:$4 sm:$0xff]  }
0x160a   :  { %9532 = vmatpush1.bf16.msra.mxu0 %v19182_v55  ;;  %v19241_v55 = vld [vmem:[#allocation26 + $0xac] ss:$16 sps:$4 sm:$0xff]  }
0x160b   :  { %9533 = vmatprep.subr.bf16.mxu0 %v19188_v57  ;;  %v19239_v57 = vld [vmem:[#allocation26 + $0xa8] ss:$16 sps:$4 sm:$0xff]  }
0x160d   :  { %9517 = vmatmul.mubr.bf16.gmra.mrb[124].mxu0 %v22142_v29 }
0x160e   :  { %9534 = vmatpush1.bf16.msra.mxu0 %v19186_v9  ;;  %9557 = vmatprep.mubr.bf16.mxu0 %v22075_v17  ;;  %v19244_v9 = vld [vmem:[#allocation26 + $0xcc] ss:$16 sps:$4 sm:$0xff]  }
0x160f   :  { %9535 = vmatprep.subr.bf16.mxu0 %v19191_v33  ;;  %v19242_v33 = vld [vmem:[#allocation26 + $0xc8] ss:$16 sps:$4 sm:$0xff]  }
0x1612   :  { %9536 = vmatpush1.bf16.msra.mxu0 %v19189_v2  ;;  %v19247_v2 = vld [vmem:[#allocation26 + $0xec] ss:$16 sps:$4 sm:$0xff]  }
0x1613   :  { %9537 = vmatprep.subr.bf16.mxu0 %v19194_v63  ;;  %v19245_v63 = vld [vmem:[#allocation26 + $0xe8] ss:$16 sps:$4 sm:$0xff]  }
0x1616   :  { %9538 = vmatpush1.bf16.msra.mxu0 %v19192_v4  ;;  %v19250_v4 = vld [vmem:[#allocation26 + $0x10c] ss:$16 sps:$4 sm:$0xff]  }
0x1617   :  { %9539 = vmatprep.subr.bf16.mxu0 %v19197_v27  ;;  %v19248_v27 = vld [vmem:[#allocation26 + $0x108] ss:$16 sps:$4 sm:$0xff]  }
0x161a   :  { %9540 = vmatpush1.bf16.msra.mxu0 %v19195_v3  ;;  %v19253_v3 = vld [vmem:[#allocation26 + $0x12c] ss:$16 sps:$4 sm:$0xff]  }
0x161b   :  { %9541 = vmatprep.subr.bf16.mxu0 %v19200_v60  ;;  %v19251_v60 = vld [vmem:[#allocation26 + $0x128] ss:$16 sps:$4 sm:$0xff]  }
0x161e   :  { %9542 = vmatpush1.bf16.msra.mxu0 %v19198_v18  ;;  %v19256_v18 = vld [vmem:[#allocation26 + $0x14c] ss:$16 sps:$4 sm:$0xff]  }
0x161f   :  { %9543 = vmatprep.subr.bf16.mxu0 %v19203_v43 }
0x1622   :  { %9544 = vmatpush1.bf16.msra.mxu0 %v19201_v19 }
0x1623   :  { %9545 = vmatprep.subr.bf16.mxu0 %v19206_v22  ;;  %v19254_v22 = vld [vmem:[#allocation26 + $0x148] ss:$16 sps:$4 sm:$0xff]  }
0x1626   :  { %9546 = vmatpush1.bf16.msra.mxu0 %v19204_v24 }
0x1627   :  { %9547 = vmatprep.subr.bf16.mxu0 %v19209_v40  ;;  %v19259_v40 = vld [vmem:[#allocation26 + $0x16c] ss:$16 sps:$4 sm:$0xff]  }
0x1628   :  { %v8673_v15 = vpop.f32.mrb[104].mxu0 }
0x1629   :  { %v22147_v8 = vadd.f32 %v8673_v15, %v22132_v34  ;;  %v8675_v28 = vpop.f32.mrb[105].mxu0  ;;  %v19221_v34 = vld [vmem:[#allocation26 + $0x3e4] ss:$16 sps:$4 sm:$0xff]   ;;  %v19257_v15 = vld [vmem:[#allocation26 + $0x168] ss:$16 sps:$4 sm:$0xff]  }
0x162a   :  { %v22150_v37 = vadd.f32 %v8675_v28, %v22134_v20  ;;  %v8677_v13 = vpop.f32.mrb[106].mxu0  ;;  %9548 = vmatpush1.bf16.msra.mxu0 %v19207_v7  ;;  %v19222_v20 = vld [vmem:[#allocation26 + $0x8] ss:$16 sps:$4 sm:$0xff]   ;;  %v19262_v7 = vld [vmem:[#allocation26 + $0x18c] ss:$16 sps:$4 sm:$0xff]  }
0x162b   :  { %v8678_v11 = vpop.f32.mrb[107].mxu0  ;;  %9549 = vmatprep.subr.bf16.mxu0 %v19212_v12  ;;  %v19260_v28 = vld [vmem:[#allocation26 + $0x188] ss:$16 sps:$4 sm:$0xff]   ;;  %v19265_v12 = vld [vmem:[#allocation26 + $0x1ac] ss:$16 sps:$4 sm:$0xff]  }
0x162c   :  { %v19263_v13 = vld [vmem:[#allocation26 + $0x1a8] ss:$16 sps:$4 sm:$0xff]   ;;  %v19268_v11 = vld [vmem:[#allocation26 + $0x1cc] ss:$16 sps:$4 sm:$0xff]  }
0x162e   :  { %9550 = vmatpush1.bf16.msra.mxu0 %v19210_v14  ;;  %v19266_v14 = vld [vmem:[#allocation26 + $0x1c8] ss:$16 sps:$4 sm:$0xff]  }
0x162f   :  { %9551 = vmatprep.subr.bf16.mxu0 %v19215_v35  ;;  %v19271_v35 = vld [vmem:[#allocation26 + $0x1ec] ss:$16 sps:$4 sm:$0xff]  }
0x1632   :  { %9552 = vmatpush1.bf16.msra.mxu0 %v19213_v36  ;;  %v19269_v36 = vld [vmem:[#allocation26 + $0x1e8] ss:$16 sps:$4 sm:$0xff]  }
0x1633   :  { %9553 = vmatprep.subr.bf16.mxu0 %v19218_v31  ;;  %v19274_v31 = vld [vmem:[#allocation26 + $0x20c] ss:$16 sps:$4 sm:$0xff]  }
0x1636   :  { %9554 = vmatpush1.bf16.msra.mxu0 %v19216_v26  ;;  %v19272_v26 = vld [vmem:[#allocation26 + $0x208] ss:$16 sps:$4 sm:$0xff]  }
0x1637   :  { %9555 = vmatprep.subr.bf16.mxu0 %v19221_v34  ;;  %v19277_v34 = vld [vmem:[#allocation26 + $0x22c] ss:$16 sps:$4 sm:$0xff]  }
0x163a   :  { %9556 = vmatpush1.bf16.msra.mxu0 %v19219_v32  ;;  %v19275_v32 = vld [vmem:[#allocation26 + $0x228] ss:$16 sps:$4 sm:$0xff]  }
0x163b   :  { %9586 = vmatprep.subr.bf16.mxu0 %v19224_v58  ;;  %v19280_v58 = vld [vmem:[#allocation26 + $0x24c] ss:$16 sps:$4 sm:$0xff]  }
0x163d   :  { %9558 = vmatmul.mubr.bf16.vlgmr.msra.gmra.mrb[92].mxu0 %v22073_v6 }
0x163e   :  { %9567 = vmatprep.mubr.bf16.mxu0 %v22081_v25  ;;  %9587 = vmatpush1.bf16.msra.mxu0 %v19222_v20  ;;  %v19278_v20 = vld [vmem:[#allocation26 + $0x248] ss:$16 sps:$4 sm:$0xff]  }
0x163f   :  { %9588 = vmatprep.subr.bf16.mxu0 %v19227_v56  ;;  %v19283_v56 = vld [vmem:[#allocation26 + $0x26c] ss:$16 sps:$4 sm:$0xff]  }
0x1642   :  { %9589 = vmatpush1.bf16.msra.mxu0 %v19225_v59  ;;  %v19281_v59 = vld [vmem:[#allocation26 + $0x268] ss:$16 sps:$4 sm:$0xff]  }
0x1643   :  { %9590 = vmatprep.subr.bf16.mxu0 %v19230_v54  ;;  %v19286_v54 = vld [vmem:[#allocation26 + $0x28c] ss:$16 sps:$4 sm:$0xff]  }
0x1645   :  { %9568 = vmatmul.mubr.bf16.gmra.mrb[96].mxu0 %v22079_v23 }
0x1646   :  { %9577 = vmatprep.mubr.bf16.mxu0 %v22154_v46  ;;  %9591 = vmatpush1.bf16.msra.mxu0 %v19228_v39  ;;  %v19287_v39 = vld [vmem:[#allocation26 + $0x2a8] ss:$16 sps:$4 sm:$0xff]  }
0x1647   :  { %9592 = vmatprep.subr.bf16.mxu0 %v19234_v41  ;;  %v19292_v41 = vld [vmem:[#allocation26 + $0x2cc] ss:$16 sps:$4 sm:$0xff]  }
0x164a   :  { %9593 = vmatpush1.bf16.msra.mxu0 %v19232_v5  ;;  %v19290_v5 = vld [vmem:[#allocation26 + $0x2c8] ss:$16 sps:$4 sm:$0xff]  }
0x164b   :  { %9594 = vmatprep.subr.bf16.mxu0 %v19238_v47  ;;  %v19293_v47 = vld [vmem:[#allocation26 + $0x2e8] ss:$16 sps:$4 sm:$0xff]  }
0x164d   :  { %9578 = vmatmul.mubr.bf16.gmra.mrb[128].mxu0 %v22158_v49 }
0x164e   :  { %9595 = vmatpush1.bf16.msra.mxu0 %v19236_v42  ;;  %9618 = vmatprep.mubr.bf16.mxu0 %v22029_v51  ;;  %v19298_v42 = vld [vmem:[#allocation26 + $0x30c] ss:$16 sps:$4 sm:$0xff]  }
0x164f   :  { %9596 = vmatprep.subr.bf16.mxu0 %v19241_v55  ;;  %v19296_v55 = vld [vmem:[#allocation26 + $0x308] ss:$16 sps:$4 sm:$0xff]  }
0x1652   :  { %9597 = vmatpush1.bf16.msra.mxu0 %v19239_v57  ;;  %v19301_v57 = vld [vmem:[#allocation26 + $0x32c] ss:$16 sps:$4 sm:$0xff]  }
0x1653   :  { %9598 = vmatprep.subr.bf16.mxu0 %v19244_v9  ;;  %v19304_v9 = vld [vmem:[#allocation26 + $0x34c] ss:$16 sps:$4 sm:$0xff]  }
0x1656   :  { %9599 = vmatpush1.bf16.msra.mxu0 %v19242_v33 }
0x1657   :  { %9600 = vmatprep.subr.bf16.mxu0 %v19247_v2 }
0x165a   :  { %9601 = vmatpush1.bf16.msra.mxu0 %v19245_v63 }
0x165b   :  { %9602 = vmatprep.subr.bf16.mxu0 %v19250_v4 }
0x165e   :  { %9603 = vmatpush1.bf16.msra.mxu0 %v19248_v27  ;;  %v19302_v27 = vld [vmem:[#allocation26 + $0x348] ss:$16 sps:$4 sm:$0xff]  }
0x165f   :  { %9604 = vmatprep.subr.bf16.mxu0 %v19253_v3 }
0x1660   :  { %v22162_v51 = vpop.f32.mrb[116].mxu0 }
0x1661   :  { %v22164_v43 = vpop.f32.mrb[117].mxu0 }
0x1662   :  { %v8738_v19 = vpop.f32.mrb[118].mxu0  ;;  %9605 = vmatpush1.bf16.msra.mxu0 %v19251_v60  ;;  %v19307_v60 = vld [vmem:[#allocation26 + $0x36c] ss:$16 sps:$4 sm:$0xff]  }
0x1663   :  { %v8739_v24 = vpop.f32.mrb[119].mxu0  ;;  %9606 = vmatprep.subr.bf16.mxu0 %v19256_v18  ;;  %v19305_v18 = vld [vmem:[#allocation26 + $0x368] ss:$16 sps:$4 sm:$0xff]   ;;  %v19310_v19 = vld [vmem:[#allocation26 + $0x38c] ss:$16 sps:$4 sm:$0xff]  }
0x1664   :  { %v19313_v24 = vld [vmem:[#allocation26 + $0x3ac] ss:$16 sps:$4 sm:$0xff]  }
0x1666   :  { %9607 = vmatpush1.bf16.msra.mxu0 %v19254_v22  ;;  %v19308_v22 = vld [vmem:[#allocation26 + $0x388] ss:$16 sps:$4 sm:$0xff]  }
0x1667   :  { %9608 = vmatprep.subr.bf16.mxu0 %v19259_v40  ;;  %v19316_v40 = vld [vmem:[#allocation26 + $0x3cc] ss:$16 sps:$4 sm:$0xff]  }
0x166a   :  { %9609 = vmatpush1.bf16.msra.mxu0 %v19257_v15  ;;  %v19319_v15 = vld [vmem:[#allocation26 + $0x3ec] ss:$16 sps:$4 sm:$0xff]  }
0x166b   :  { %9610 = vmatprep.subr.bf16.mxu0 %v19262_v7  ;;  %v19317_v7 = vld [vmem:[#allocation26 + $0x3e8] ss:$16 sps:$4 sm:$0xff]  }
0x166e   :  { %9611 = vmatpush1.bf16.msra.mxu0 %v19260_v28  ;;  %v19322_v28 = vld [vmem:[#allocation26 + $0x804] ss:$16 sps:$4 sm:$0xff]  }
0x166f   :  { %9612 = vmatprep.subr.bf16.mxu0 %v19265_v12  ;;  %v19320_v12 = vld [vmem:[#allocation26 + $0x800] ss:$16 sps:$4 sm:$0xff]  }
0x1672   :  { %9613 = vmatpush1.bf16.msra.mxu0 %v19263_v13  ;;  %v19325_v13 = vld [vmem:[#allocation26 + $0x824] ss:$16 sps:$4 sm:$0xff]  }
0x1673   :  { %9614 = vmatprep.subr.bf16.mxu0 %v19268_v11  ;;  %v19323_v11 = vld [vmem:[#allocation26 + $0x820] ss:$16 sps:$4 sm:$0xff]  }
0x1676   :  { %9615 = vmatpush1.bf16.msra.mxu0 %v19266_v14  ;;  %v19328_v14 = vld [vmem:[#allocation26 + $0x844] ss:$16 sps:$4 sm:$0xff]  }
0x1677   :  { %9616 = vmatprep.subr.bf16.mxu0 %v19271_v35  ;;  %v19326_v35 = vld [vmem:[#allocation26 + $0x840] ss:$16 sps:$4 sm:$0xff]  }
0x167a   :  { %9617 = vmatpush1.bf16.msra.mxu0 %v19269_v36  ;;  %v19331_v36 = vld [vmem:[#allocation26 + $0x864] ss:$16 sps:$4 sm:$0xff]  }
0x167b   :  { %9647 = vmatprep.subr.bf16.mxu0 %v19274_v31  ;;  %v22180_v31 = vld [vmem:[#allocation10] sm:$0xee] }
0x167d   :  { %9619 = vmatmul.mubr.bf16.vlgmr.msra.gmra.mrb[108].mxu0 %v22027_v38  ;;  %v19284_v38 = vld [vmem:[#allocation26 + $0x288] ss:$16 sps:$4 sm:$0xff]  }
0x167e   :  { %9628 = vmatprep.mubr.bf16.mxu0 %v22035_v62  ;;  %9648 = vmatpush1.bf16.msra.mxu0 %v19272_v26  ;;  %v19329_v26 = vld [vmem:[#allocation26 + $0x860] ss:$16 sps:$4 sm:$0xff]  }
0x167f   :  { %9649 = vmatprep.subr.bf16.mxu0 %v19277_v34  ;;  %v22184_v34 = vld [vmem:[#allocation10 + $0x10] sm:$0xff] }
0x1682   :  { %9650 = vmatpush1.bf16.msra.mxu0 %v19275_v32  ;;  %v16754_v32 = vcombine.high %v22180_v31, %v22184_v34 }
0x1683   :  { %9651 = vmatprep.subr.bf16.mxu0 %v19280_v58  ;;  %v9853_v58 = vrot.slane %v22035_v62, 1  ;;  %v22226_v62 = vld [vmem:[#allocation10 + $0x8] sm:$0xee] }
0x1685   :  { %9629 = vmatmul.mubr.bf16.gmra.mrb[112].mxu0 %v22033_v61 }
0x1686   :  { %9638 = vmatprep.mubr.bf16.mxu0 %v22138_v52  ;;  %9652 = vmatpush1.bf16.msra.mxu0 %v19278_v20  ;;  %v19295_v52 = vld [vmem:[#allocation26 + $0x2ec] ss:$16 sps:$4 sm:$0xff]   ;;  %v19332_v20 = vld [vmem:[#allocation26 + $0x880] ss:$16 sps:$4 sm:$0xff]  }
0x1687   :  { %9653 = vmatprep.subr.bf16.mxu0 %v19283_v56  ;;  %v9852_v56 = vrot.slane %v16754_v32, 1 }
0x168a   :  { %9654 = vmatpush1.bf16.msra.mxu0 %v19281_v59  ;;  %v19337_v59 = vld [vmem:[#allocation26 + $0x8a4] ss:$16 sps:$4 sm:$0xff]  }
0x168b   :  { %9655 = vmatprep.subr.bf16.mxu0 %v19286_v54  ;;  %v19335_v54 = vld [vmem:[#allocation26 + $0x8a0] ss:$16 sps:$4 sm:$0xff]  }
0x168d   :  { %9639 = vmatmul.mubr.bf16.gmra.mrb[132].mxu0 %v22142_v29  ;;  %v19299_v29 = vld [vmem:[#allocation26 + $0x328] ss:$16 sps:$4 sm:$0xff]  }
0x168e   :  { %9656 = vmatpush1.bf16.msra.mxu0 %v19284_v38  ;;  %9679 = vmatprep.mubr.bf16.mxu0 %v22075_v17  ;;  %v19340_v38 = vld [vmem:[#allocation26 + $0x8c4] ss:$16 sps:$4 sm:$0xff]  }
0x168f   :  { %9657 = vmatprep.subr.bf16.mxu0 %v19289_v30  ;;  %v19338_v30 = vld [vmem:[#allocation26 + $0x8c0] ss:$16 sps:$4 sm:$0xff]  }
0x1692   :  { %9658 = vmatpush1.bf16.msra.mxu0 %v19287_v39  ;;  %v19343_v39 = vld [vmem:[#allocation26 + $0x8e4] ss:$16 sps:$4 sm:$0xff]  }
0x1693   :  { %9659 = vmatprep.subr.bf16.mxu0 %v19292_v41  ;;  %v19341_v41 = vld [vmem:[#allocation26 + $0x8e0] ss:$16 sps:$4 sm:$0xff]  }
0x1696   :  { %9660 = vmatpush1.bf16.msra.mxu0 %v19290_v5  ;;  %v19346_v5 = vld [vmem:[#allocation26 + $0x904] ss:$16 sps:$4 sm:$0xff]  }
0x1697   :  { %9661 = vmatprep.subr.bf16.mxu0 %v19295_v52  ;;  %v19349_v52 = vld [vmem:[#allocation26 + $0x924] ss:$16 sps:$4 sm:$0xff]  }
0x169a   :  { %9662 = vmatpush1.bf16.msra.mxu0 %v19293_v47  ;;  %v19347_v47 = vld [vmem:[#allocation26 + $0x920] ss:$16 sps:$4 sm:$0xff]  }
0x169b   :  { %9663 = vmatprep.subr.bf16.mxu0 %v19298_v42  ;;  %v19352_v42 = vld [vmem:[#allocation26 + $0x944] ss:$16 sps:$4 sm:$0xff]  }
0x169e   :  { %9664 = vmatpush1.bf16.msra.mxu0 %v19296_v55 }
0x169f   :  { %9665 = vmatprep.subr.bf16.mxu0 %v19301_v57 }
0x16a0   :  { %v8795_v17 = vpop.f32.mrb[120].mxu0 }
0x16a1   :  { %v22173_v33 = vadd.f32 %v8795_v17, %v22162_v51  ;;  %v8797_v2 = vpop.f32.mrb[121].mxu0  ;;  %v19311_v51 = vld [vmem:[#allocation26 + $0x3a8] ss:$16 sps:$4 sm:$0xff]  }
0x16a2   :  { %v22176_v63 = vadd.f32 %v8797_v2, %v22164_v43  ;;  %v8799_v4 = vpop.f32.mrb[122].mxu0  ;;  %9666 = vmatpush1.bf16.msra.mxu0 %v19299_v29  ;;  %v19314_v43 = vld [vmem:[#allocation26 + $0x3c8] ss:$16 sps:$4 sm:$0xff]   ;;  %v19350_v2 = vld [vmem:[#allocation26 + $0x940] ss:$16 sps:$4 sm:$0xff]  }
0x16a3   :  { %v8800_v3 = vpop.f32.mrb[123].mxu0  ;;  %9667 = vmatprep.subr.bf16.mxu0 %v19304_v9 }
0x16a4   :  { %v19353_v3 = vld [vmem:[#allocation26 + $0x960] ss:$16 sps:$4 sm:$0xff]  }
0x16a6   :  { %9668 = vmatpush1.bf16.msra.mxu0 %v19302_v27  ;;  %v19355_v27 = vld [vmem:[#allocation26 + $0x964] ss:$16 sps:$4 sm:$0xff]  }
0x16a7   :  { %9669 = vmatprep.subr.bf16.mxu0 %v19307_v60  ;;  %v19358_v60 = vld [vmem:[#allocation26 + $0x984] ss:$16 sps:$4 sm:$0xff]  }
0x16aa   :  { %9670 = vmatpush1.bf16.msra.mxu0 %v19305_v18  ;;  %v19356_v18 = vld [vmem:[#allocation26 + $0x980] ss:$16 sps:$4 sm:$0xff]  }
0x16ab   :  { %9671 = vmatprep.subr.bf16.mxu0 %v19310_v19  ;;  %v19361_v19 = vld [vmem:[#allocation26 + $0x9a4] ss:$16 sps:$4 sm:$0xff]  }
0x16ae   :  { %9672 = vmatpush1.bf16.msra.mxu0 %v19308_v22  ;;  %v19364_v22 = vld [vmem:[#allocation26 + $0x9c4] ss:$16 sps:$4 sm:$0xff]  }
0x16af   :  { %9673 = vmatprep.subr.bf16.mxu0 %v19313_v24  ;;  %v19367_v24 = vld [vmem:[#allocation26 + $0x9e4] ss:$16 sps:$4 sm:$0xff]  }
0x16b2   :  { %9674 = vmatpush1.bf16.msra.mxu0 %v19311_v51  ;;  %v16753_v51 = vcombine.low %v22180_v31, %v22184_v34  ;;  %v19379_v31 = vld [vmem:[#allocation26 + $0xa64] ss:$16 sps:$4 sm:$0xff]  }
0x16b3   :  { %9675 = vmatprep.subr.bf16.mxu0 %v19316_v40  ;;  %v19365_v40 = vld [vmem:[#allocation26 + $0x9e0] ss:$16 sps:$4 sm:$0xff]   ;;  %v19382_v34 = vld [vmem:[#allocation26 + $0xa84] ss:$16 sps:$4 sm:$0xff]  }
0x16b6   :  { %9676 = vmatpush1.bf16.msra.mxu0 %v19314_v43  ;;  %v19370_v43 = vld [vmem:[#allocation26 + $0xa04] ss:$16 sps:$4 sm:$0xff]  }
0x16b7   :  { %9677 = vmatprep.subr.bf16.mxu0 %v19319_v15  ;;  %v9850_v15 = vrot.slane %v22033_v61, 1  ;;  %v19371_v61 = vld [vmem:[#allocation26 + $0xa20] ss:$16 sps:$4 sm:$0xff]  }
0x16ba   :  { %9678 = vmatpush1.bf16.msra.mxu0 %v19317_v7  ;;  %v22206_v7 = vrot.slane %v22049_v16, 1  ;;  %v19376_v16 = vld [vmem:[#allocation26 + $0xa44] ss:$16 sps:$4 sm:$0xff]  }
0x16bb   :  { %10521 = vmatprep.subr.bf16.mxu0 %v19322_v28  ;;  %v9849_v28 = vrot.slane %v16753_v51, 1  ;;  %v19415_v51 = vld [vmem:[#allocation26 + $0xbe4] ss:$16 sps:$4 sm:$0xff]  }
0x16bd   :  { %9680 = vmatmul.mubr.bf16.vlgmr.msra.gmra.mrb[108].mxu0 %v22073_v6  ;;  %v19334_v6 = vld [vmem:[#allocation26 + $0x884] ss:$16 sps:$4 sm:$0xff]  }
0x16be   :  { %9689 = vmatprep.mubr.bf16.mxu0 %v22081_v25  ;;  %10522 = vmatpush1.bf16.msra.mxu0 %v19320_v12  ;;  %v19368_v12 = vld [vmem:[#allocation26 + $0xa00] ss:$16 sps:$4 sm:$0xff]  }
0x16bf   :  { %10523 = vmatprep.subr.bf16.mxu0 %v19325_v13  ;;  %v19373_v13 = vld [vmem:[#allocation26 + $0xa24] ss:$16 sps:$4 sm:$0xff]  }
0x16c2   :  { %10524 = vmatpush1.bf16.msra.mxu0 %v19323_v11  ;;  %v22209_v11 = vsel %vm857_vm2, %v9849_v28, %v9850_v15  ;;  %v9856_v28 = vrot.slane %v22079_v23, 1 }
0x16c3   :  { %10525 = vmatprep.subr.bf16.mxu0 %v19328_v14  ;;  %v22216_v14 = vsel %vm857_vm2, %v9853_v58, %v22206_v7 }
0x16c5   :  { %9690 = vmatmul.mubr.bf16.gmra.mrb[112].mxu0 %v22079_v23  ;;  %v19419_v23 = vld [vmem:[#allocation26 + $0x828] ss:$16 sps:$4 sm:$0xff]  }
0x16c6   :  { %9699 = vmatprep.mubr.bf16.mxu0 %v22154_v46  ;;  %10526 = vmatpush1.bf16.msra.mxu0 %v19326_v35  ;;  %v22193_v46 = vsel %vm857_vm2, %v9852_v56, %v9853_v58  ;;  %v22220_v35 = vrot.slane %v22051_v21, 1  ;;  %v22230_v21 = vld [vmem:[#allocation10 + $0x18] sm:$0xff]  ;;  %v9859_v58 = vrot.slane %v22081_v25, 1  ;;  %v19425_v25 = vld [vmem:[#allocation26 + $0x868] ss:$16 sps:$4 sm:$0xff]  }
0x16c7   :  { %10527 = vmatprep.subr.bf16.mxu0 %v19331_v36  ;;  %v19374_v36 = vld [vmem:[#allocation26 + $0xa40] ss:$16 sps:$4 sm:$0xff]   ;;  %v16756_v32 = vcombine.high %v22226_v62, %v22230_v21 }
0x16c9   :  { %v9858_v56 = vrot.slane %v16756_v32, 1  ;;  %v19430_v32 = vld [vmem:[#allocation26 + $0x88c] ss:$16 sps:$4 sm:$0xff]  }
0x16ca   :  { %10528 = vmatpush1.bf16.msra.mxu0 %v19329_v26  ;;  %v22224_v26 = vsel %vm857_vm2, %v9850_v15, %v22220_v35  ;;  %v19418_v15 = vld [vmem:[#allocation26 + $0x80c] ss:$16 sps:$4 sm:$0xff]  }
0x16cb   :  { %10529 = vmatprep.subr.bf16.mxu0 %v19334_v6  ;;  %v19377_v6 = vld [vmem:[#allocation26 + $0xa60] ss:$16 sps:$4 sm:$0xff]  }
0x16cd   :  { %9700 = vmatmul.mubr.bf16.gmra.mrb[136].mxu0 %v22158_v49  ;;  %v19344_v49 = vld [vmem:[#allocation26 + $0x900] ss:$16 sps:$4 sm:$0xff]  }
0x16ce   :  { %10530 = vmatpush1.bf16.msra.mxu0 %v19332_v20  ;;  %10553 = vmatprep.mubr.bf16.mxu0 %v22193_v46  ;;  %v19380_v20 = vld [vmem:[#allocation26 + $0xa80] ss:$16 sps:$4 sm:$0xff]  }
0x16cf   :  { %10531 = vmatprep.subr.bf16.mxu0 %v19337_v59  ;;  %v19385_v59 = vld [vmem:[#allocation26 + $0xaa4] ss:$16 sps:$4 sm:$0xff]  }
0x16d2   :  { %10532 = vmatpush1.bf16.msra.mxu0 %v19335_v54  ;;  %v22239_v54 = vsel %vm857_vm2, %v9858_v56, %v9859_v58  ;;  %v19436_v56 = vld [vmem:[#allocation26 + $0x8cc] ss:$16 sps:$4 sm:$0xff]  }
0x16d3   :  { %10533 = vmatprep.subr.bf16.mxu0 %v19340_v38  ;;  %v19383_v38 = vld [vmem:[#allocation26 + $0xaa0] ss:$16 sps:$4 sm:$0xff]  }
0x16d6   :  { %10534 = vmatpush1.bf16.msra.mxu0 %v19338_v30  ;;  %v19388_v30 = vld [vmem:[#allocation26 + $0xac4] ss:$16 sps:$4 sm:$0xff]  }
0x16d7   :  { %10535 = vmatprep.subr.bf16.mxu0 %v19343_v39  ;;  %v19386_v39 = vld [vmem:[#allocation26 + $0xac0] ss:$16 sps:$4 sm:$0xff]  }
0x16da   :  { %10536 = vmatpush1.bf16.msra.mxu0 %v19341_v41  ;;  %v19391_v41 = vld [vmem:[#allocation26 + $0xae4] ss:$16 sps:$4 sm:$0xff]  }
0x16db   :  { %10537 = vmatprep.subr.bf16.mxu0 %v19346_v5  ;;  %v19389_v5 = vld [vmem:[#allocation26 + $0xae0] ss:$16 sps:$4 sm:$0xff]  }
0x16de   :  { %10538 = vmatpush1.bf16.msra.mxu0 %v19344_v49  ;;  %v19394_v49 = vld [vmem:[#allocation26 + $0xb04] ss:$16 sps:$4 sm:$0xff]  }
0x16df   :  { %10539 = vmatprep.subr.bf16.mxu0 %v19349_v52  ;;  %v19392_v52 = vld [vmem:[#allocation26 + $0xb00] ss:$16 sps:$4 sm:$0xff]  }
0x16e0   :  { %v9518_v55 = vpop.f32.mrb[124].mxu0 }
0x16e1   :  { %v22197_v57 = vadd.f32 %v9518_v55, %v22147_v8  ;;  %v9520_v29 = vpop.f32.mrb[125].mxu0  ;;  %v19359_v8 = vld [vmem:[#allocation26 + $0x9a0] ss:$16 sps:$4 sm:$0xff]   ;;  %v19400_v55 = vld [vmem:[#allocation26 + $0xb44] ss:$16 sps:$4 sm:$0xff]  }
0x16e2   :  { %v22200_v9 = vadd.f32 %v9520_v29, %v22150_v37  ;;  %v9522_v17 = vpop.f32.mrb[126].mxu0  ;;  %10540 = vmatpush1.bf16.msra.mxu0 %v19347_v47  ;;  %v19362_v37 = vld [vmem:[#allocation26 + $0x9c0] ss:$16 sps:$4 sm:$0xff]   ;;  %v19397_v47 = vld [vmem:[#allocation26 + $0xb24] ss:$16 sps:$4 sm:$0xff]  }
0x16e3   :  { %v9523_v4 = vpop.f32.mrb[127].mxu0  ;;  %10541 = vmatprep.subr.bf16.mxu0 %v19352_v42  ;;  %v19395_v42 = vld [vmem:[#allocation26 + $0xb20] ss:$16 sps:$4 sm:$0xff]  }
0x16e6   :  { %10542 = vmatpush1.bf16.msra.mxu0 %v19350_v2 }
0x16e7   :  { %10543 = vmatprep.subr.bf16.mxu0 %v19355_v27 }
0x16ea   :  { %10544 = vmatpush1.bf16.msra.mxu0 %v19353_v3  ;;  %v19398_v3 = vld [vmem:[#allocation26 + $0xb40] ss:$16 sps:$4 sm:$0xff]  }
0x16eb   :  { %10545 = vmatprep.subr.bf16.mxu0 %v19358_v60 }
0x16ee   :  { %10546 = vmatpush1.bf16.msra.mxu0 %v19356_v18  ;;  %v19403_v18 = vld [vmem:[#allocation26 + $0xb64] ss:$16 sps:$4 sm:$0xff]  }
0x16ef   :  { %10547 = vmatprep.subr.bf16.mxu0 %v19361_v19  ;;  %v19401_v19 = vld [vmem:[#allocation26 + $0xb60] ss:$16 sps:$4 sm:$0xff]  }
0x16f2   :  { %10548 = vmatpush1.bf16.msra.mxu0 %v19359_v8  ;;  %v19406_v8 = vld [vmem:[#allocation26 + $0xb84] ss:$16 sps:$4 sm:$0xff]  }
0x16f3   :  { %10549 = vmatprep.subr.bf16.mxu0 %v19364_v22  ;;  %v19404_v22 = vld [vmem:[#allocation26 + $0xb80] ss:$16 sps:$4 sm:$0xff]  }
0x16f6   :  { %10550 = vmatpush1.bf16.msra.mxu0 %v19362_v37  ;;  %v19409_v37 = vld [vmem:[#allocation26 + $0xba4] ss:$16 sps:$4 sm:$0xff]  }
0x16f7   :  { %10551 = vmatprep.subr.bf16.mxu0 %v19367_v24  ;;  %v19412_v24 = vld [vmem:[#allocation26 + $0xbc4] ss:$16 sps:$4 sm:$0xff]  }
0x16fa   :  { %10552 = vmatpush1.bf16.msra.mxu0 %v19365_v40  ;;  %v16755_v40 = vcombine.low %v22226_v62, %v22230_v21  ;;  %v22266_v62 = vrot.slane %v22097_v10, 1  ;;  %v19433_v10 = vld [vmem:[#allocation26 + $0x8ac] ss:$16 sps:$4 sm:$0xff]  }
0x16fb   :  { %10582 = vmatprep.subr.bf16.mxu0 %v19370_v43  ;;  %v19413_v43 = vld [vmem:[#allocation26 + $0xbe0] ss:$16 sps:$4 sm:$0xff]  }
0x16fc   :  { %v22270_v21 = vsel %vm857_vm2, %v9856_v28, %v22266_v62 }
0x16fd   :  { %10554 = vmatmul.mubr.bf16.vlgmr.msra.gmra.mrb[92].mxu0 %v22209_v11 }
0x16fe   :  { %10563 = vmatprep.mubr.bf16.mxu0 %v22216_v14  ;;  %10583 = vmatpush1.bf16.msra.mxu0 %v19368_v12  ;;  %v22252_v12 = vrot.slane %v22095_v1, 1  ;;  %v19424_v1 = vld [vmem:[#allocation26 + $0x84c] ss:$16 sps:$4 sm:$0xff]  }
0x16ff   :  { %10584 = vmatprep.subr.bf16.mxu0 %v19373_v13  ;;  %v9855_v13 = vrot.slane %v16755_v40, 1  ;;  %v19467_v40 = vld [vmem:[#allocation26 + $0xa28] ss:$16 sps:$4 sm:$0xff]  }
0x1702   :  { %10585 = vmatpush1.bf16.msra.mxu0 %v19371_v61  ;;  %v19416_v61 = vld [vmem:[#allocation26 + $0x808] ss:$16 sps:$4 sm:$0xff]  }
0x1703   :  { %10586 = vmatprep.subr.bf16.mxu0 %v19376_v16  ;;  %v19421_v16 = vld [vmem:[#allocation26 + $0x82c] ss:$16 sps:$4 sm:$0xff]  }
0x1705   :  { %10564 = vmatmul.mubr.bf16.gmra.mrb[96].mxu0 %v22224_v26 }
0x1706   :  { %10573 = vmatprep.mubr.bf16.mxu0 %v22206_v7  ;;  %10587 = vmatpush1.bf16.msra.mxu0 %v19374_v36  ;;  %v22255_v36 = vsel %vm857_vm2, %v9855_v13, %v9856_v28  ;;  %v19475_v28 = vld [vmem:[#allocation26 + $0xa6c] ss:$16 sps:$4 sm:$0xff]   ;;  %v19473_v13 = vld [vmem:[#allocation26 + $0xa68] ss:$16 sps:$4 sm:$0xff]  }
0x1707   :  { %10588 = vmatprep.subr.bf16.mxu0 %v19379_v31  ;;  %v22262_v31 = vsel %vm857_vm2, %v9859_v58, %v22252_v12  ;;  %v19428_v58 = vld [vmem:[#allocation26 + $0x888] ss:$16 sps:$4 sm:$0xff]  }
0x170a   :  { %10589 = vmatpush1.bf16.msra.mxu0 %v19377_v6  ;;  %v19422_v6 = vld [vmem:[#allocation26 + $0x848] ss:$16 sps:$4 sm:$0xff]  }
0x170b   :  { %10590 = vmatprep.subr.bf16.mxu0 %v19382_v34  ;;  %v19427_v34 = vld [vmem:[#allocation26 + $0x86c] ss:$16 sps:$4 sm:$0xff]  }
0x170d   :  { %10574 = vmatmul.mubr.bf16.gmra.mrb[140].mxu0 %v22220_v35 }
0x170e   :  { %10591 = vmatpush1.bf16.msra.mxu0 %v19380_v20  ;;  %10614 = vmatprep.mubr.bf16.mxu0 %v22239_v54  ;;  %v19431_v20 = vld [vmem:[#allocation26 + $0x8a8] ss:$16 sps:$4 sm:$0xff]  }
0x170f   :  { %10592 = vmatprep.subr.bf16.mxu0 %v19385_v59  ;;  %v19434_v59 = vld [vmem:[#allocation26 + $0x8c8] ss:$16 sps:$4 sm:$0xff]  }
0x1712   :  { %10593 = vmatpush1.bf16.msra.mxu0 %v19383_v38  ;;  %v19439_v38 = vld [vmem:[#allocation26 + $0x8ec] ss:$16 sps:$4 sm:$0xff]  }
0x1713   :  { %10594 = vmatprep.subr.bf16.mxu0 %v19388_v30  ;;  %v19437_v30 = vld [vmem:[#allocation26 + $0x8e8] ss:$16 sps:$4 sm:$0xff]  }
0x1716   :  { %10595 = vmatpush1.bf16.msra.mxu0 %v19386_v39  ;;  %v19442_v39 = vld [vmem:[#allocation26 + $0x90c] ss:$16 sps:$4 sm:$0xff]  }
0x1717   :  { %10596 = vmatprep.subr.bf16.mxu0 %v19391_v41  ;;  %v19440_v41 = vld [vmem:[#allocation26 + $0x908] ss:$16 sps:$4 sm:$0xff]  }
0x171a   :  { %10597 = vmatpush1.bf16.msra.mxu0 %v19389_v5  ;;  %v19445_v5 = vld [vmem:[#allocation26 + $0x92c] ss:$16 sps:$4 sm:$0xff]  }
0x171b   :  { %10598 = vmatprep.subr.bf16.mxu0 %v19394_v49  ;;  %v19443_v49 = vld [vmem:[#allocation26 + $0x928] ss:$16 sps:$4 sm:$0xff]  }
0x171e   :  { %10599 = vmatpush1.bf16.msra.mxu0 %v19392_v52  ;;  %v19448_v52 = vld [vmem:[#allocation26 + $0x94c] ss:$16 sps:$4 sm:$0xff]  }
0x171f   :  { %10600 = vmatprep.subr.bf16.mxu0 %v19397_v47 }
0x1720   :  { %v9579_v29 = vpop.f32.mrb[128].mxu0 }
0x1721   :  { %v22243_v17 = vadd.f32 %v9579_v29, %v22197_v57  ;;  %v9581_v2 = vpop.f32.mrb[129].mxu0  ;;  %v19407_v57 = vld [vmem:[#allocation26 + $0xba0] ss:$16 sps:$4 sm:$0xff]  }
0x1722   :  { %v22246_v4 = vadd.f32 %v9581_v2, %v22200_v9  ;;  %v9583_v27 = vpop.f32.mrb[130].mxu0  ;;  %10601 = vmatpush1.bf16.msra.mxu0 %v19395_v42  ;;  %v19410_v9 = vld [vmem:[#allocation26 + $0xbc0] ss:$16 sps:$4 sm:$0xff]   ;;  %v19446_v2 = vld [vmem:[#allocation26 + $0x948] ss:$16 sps:$4 sm:$0xff]  }
0x1723   :  { %v9584_v60 = vpop.f32.mrb[131].mxu0  ;;  %10602 = vmatprep.subr.bf16.mxu0 %v19400_v55 }
0x1724   :  { %v19449_v60 = vld [vmem:[#allocation26 + $0x968] ss:$16 sps:$4 sm:$0xff]  }
0x1726   :  { %10603 = vmatpush1.bf16.msra.mxu0 %v19398_v3  ;;  %v19451_v3 = vld [vmem:[#allocation26 + $0x96c] ss:$16 sps:$4 sm:$0xff]  }
0x1727   :  { %10604 = vmatprep.subr.bf16.mxu0 %v19403_v18  ;;  %v19454_v18 = vld [vmem:[#allocation26 + $0x98c] ss:$16 sps:$4 sm:$0xff]  }
0x172a   :  { %10605 = vmatpush1.bf16.msra.mxu0 %v19401_v19  ;;  %v19452_v19 = vld [vmem:[#allocation26 + $0x988] ss:$16 sps:$4 sm:$0xff]  }
0x172b   :  { %10606 = vmatprep.subr.bf16.mxu0 %v19406_v8  ;;  %v19457_v8 = vld [vmem:[#allocation26 + $0x9ac] ss:$16 sps:$4 sm:$0xff]  }
0x172e   :  { %10607 = vmatpush1.bf16.msra.mxu0 %v19404_v22  ;;  %v19460_v22 = vld [vmem:[#allocation26 + $0x9cc] ss:$16 sps:$4 sm:$0xff]  }
0x172f   :  { %10608 = vmatprep.subr.bf16.mxu0 %v19409_v37  ;;  %v19463_v37 = vld [vmem:[#allocation26 + $0x9ec] ss:$16 sps:$4 sm:$0xff]  }
0x1732   :  { %10609 = vmatpush1.bf16.msra.mxu0 %v19407_v57  ;;  %v19461_v57 = vld [vmem:[#allocation26 + $0x9e8] ss:$16 sps:$4 sm:$0xff]  }
0x1733   :  { %10610 = vmatprep.subr.bf16.mxu0 %v19412_v24  ;;  %v19466_v24 = vld [vmem:[#allocation26 + $0xa0c] ss:$16 sps:$4 sm:$0xff]  }
0x1736   :  { %10611 = vmatpush1.bf16.msra.mxu0 %v19410_v9  ;;  %v19464_v9 = vld [vmem:[#allocation26 + $0xa08] ss:$16 sps:$4 sm:$0xff]  }
0x1737   :  { %10612 = vmatprep.subr.bf16.mxu0 %v19415_v51  ;;  %v19469_v51 = vld [vmem:[#allocation26 + $0xa2c] ss:$16 sps:$4 sm:$0xff]  }
0x173a   :  { %10613 = vmatpush1.bf16.msra.mxu0 %v19413_v43  ;;  %v19472_v43 = vld [vmem:[#allocation26 + $0xa4c] ss:$16 sps:$4 sm:$0xff]  }
0x173b   :  { %10643 = vmatprep.subr.bf16.mxu0 %v19418_v15  ;;  %v19470_v15 = vld [vmem:[#allocation26 + $0xa48] ss:$16 sps:$4 sm:$0xff]  }
0x173d   :  { %10615 = vmatmul.mubr.bf16.vlgmr.msra.gmra.mrb[92].mxu0 %v22255_v36 }
0x173e   :  { %10624 = vmatprep.mubr.bf16.mxu0 %v22262_v31  ;;  %10644 = vmatpush1.bf16.msra.mxu0 %v19416_v61  ;;  %v19478_v61 = vld [vmem:[#allocation26 + $0xa8c] ss:$16 sps:$4 sm:$0xff]  }
0x173f   :  { %10645 = vmatprep.subr.bf16.mxu0 %v19421_v16  ;;  %v19479_v16 = vld [vmem:[#allocation26 + $0xaa8] ss:$16 sps:$4 sm:$0xff]  }
0x1742   :  { %10646 = vmatpush1.bf16.msra.mxu0 %v19419_v23  ;;  %v19484_v23 = vld [vmem:[#allocation26 + $0xacc] ss:$16 sps:$4 sm:$0xff]  }
0x1743   :  { %10647 = vmatprep.subr.bf16.mxu0 %v19424_v1  ;;  %v19485_v1 = vld [vmem:[#allocation26 + $0xae8] ss:$16 sps:$4 sm:$0xff]  }
0x1745   :  { %10625 = vmatmul.mubr.bf16.gmra.mrb[96].mxu0 %v22270_v21 }
0x1746   :  { %10634 = vmatprep.mubr.bf16.mxu0 %v22252_v12  ;;  %10648 = vmatpush1.bf16.msra.mxu0 %v19422_v6  ;;  %v19490_v6 = vld [vmem:[#allocation26 + $0xb0c] ss:$16 sps:$4 sm:$0xff]  }
0x1747   :  { %10649 = vmatprep.subr.bf16.mxu0 %v19427_v34  ;;  %v19488_v34 = vld [vmem:[#allocation26 + $0xb08] ss:$16 sps:$4 sm:$0xff]  }
0x174a   :  { %10650 = vmatpush1.bf16.msra.mxu0 %v19425_v25  ;;  %v19493_v25 = vld [vmem:[#allocation26 + $0xb2c] ss:$16 sps:$4 sm:$0xff]  }
0x174b   :  { %10651 = vmatprep.subr.bf16.mxu0 %v19430_v32  ;;  %v19496_v32 = vld [vmem:[#allocation26 + $0xb4c] ss:$16 sps:$4 sm:$0xff]  }
0x174d   :  { %10635 = vmatmul.mubr.bf16.gmra.mrb[144].mxu0 %v22266_v62 }
0x174e   :  { %10652 = vmatpush1.bf16.msra.mxu0 %v19428_v58  ;;  %10675 = vmatprep.mubr.bf16.mxu0 %v22193_v46 }
0x174f   :  { %10653 = vmatprep.subr.bf16.mxu0 %v19433_v10 }
0x1752   :  { %10654 = vmatpush1.bf16.msra.mxu0 %v19431_v20 }
0x1753   :  { %10655 = vmatprep.subr.bf16.mxu0 %v19436_v56 }
0x1756   :  { %10656 = vmatpush1.bf16.msra.mxu0 %v19434_v59  ;;  %v19494_v59 = vld [vmem:[#allocation26 + $0xb48] ss:$16 sps:$4 sm:$0xff]  }
0x1757   :  { %10657 = vmatprep.subr.bf16.mxu0 %v19439_v38 }
0x175a   :  { %10658 = vmatpush1.bf16.msra.mxu0 %v19437_v30  ;;  %v19499_v30 = vld [vmem:[#allocation26 + $0xb6c] ss:$16 sps:$4 sm:$0xff]  }
0x175b   :  { %10659 = vmatprep.subr.bf16.mxu0 %v19442_v39  ;;  %v19497_v39 = vld [vmem:[#allocation26 + $0xb68] ss:$16 sps:$4 sm:$0xff]  }
0x175e   :  { %10660 = vmatpush1.bf16.msra.mxu0 %v19440_v41  ;;  %v19502_v41 = vld [vmem:[#allocation26 + $0xb8c] ss:$16 sps:$4 sm:$0xff]  }
0x175f   :  { %10661 = vmatprep.subr.bf16.mxu0 %v19445_v5  ;;  %v19500_v5 = vld [vmem:[#allocation26 + $0xb88] ss:$16 sps:$4 sm:$0xff]  }
0x1760   :  { %v9640_v46 = vpop.f32.mrb[132].mxu0 }
0x1761   :  { %v22277_v47 = vadd.f32 %v9640_v46, %v22173_v33  ;;  %v9642_v42 = vpop.f32.mrb[133].mxu0  ;;  %v19455_v33 = vld [vmem:[#allocation26 + $0x9a8] ss:$16 sps:$4 sm:$0xff]   ;;  %v19508_v46 = vld [vmem:[#allocation26 + $0xbcc] ss:$16 sps:$4 sm:$0xff]  }
0x1762   :  { %v22280_v55 = vadd.f32 %v9642_v42, %v22176_v63  ;;  %v9644_v29 = vpop.f32.mrb[134].mxu0  ;;  %10662 = vmatpush1.bf16.msra.mxu0 %v19443_v49  ;;  %v19458_v63 = vld [vmem:[#allocation26 + $0x9c8] ss:$16 sps:$4 sm:$0xff]   ;;  %v19505_v49 = vld [vmem:[#allocation26 + $0xbac] ss:$16 sps:$4 sm:$0xff]  }
0x1763   :  { %v9645_v27 = vpop.f32.mrb[135].mxu0  ;;  %10663 = vmatprep.subr.bf16.mxu0 %v19448_v52  ;;  %v19503_v52 = vld [vmem:[#allocation26 + $0xba8] ss:$16 sps:$4 sm:$0xff]   ;;  %v19511_v42 = vld [vmem:[#allocation26 + $0xbec] ss:$16 sps:$4 sm:$0xff]  }
0x1764   :  { %v19514_v29 = vld [vmem:[#allocation27 + $0x4] ss:$16 sps:$4 sm:$0xff]  }
0x1765   :  { %v19517_v27 = vld [vmem:[#allocation27 + $0x24] ss:$16 sps:$4 sm:$0xff]  }
0x1766   :  { %10664 = vmatpush1.bf16.msra.mxu0 %v19446_v2  ;;  %v19512_v2 = vld [vmem:[#allocation27] ss:$16 sps:$4 sm:$0xff]  }
0x1767   :  { %10665 = vmatprep.subr.bf16.mxu0 %v19451_v3  ;;  %v19515_v3 = vld [vmem:[#allocation27 + $0x20] ss:$16 sps:$4 sm:$0xff]  }
0x176a   :  { %10666 = vmatpush1.bf16.msra.mxu0 %v19449_v60  ;;  %v19520_v60 = vld [vmem:[#allocation27 + $0x44] ss:$16 sps:$4 sm:$0xff]  }
0x176b   :  { %10667 = vmatprep.subr.bf16.mxu0 %v19454_v18  ;;  %v19518_v18 = vld [vmem:[#allocation27 + $0x40] ss:$16 sps:$4 sm:$0xff]  }
0x176e   :  { %10668 = vmatpush1.bf16.msra.mxu0 %v19452_v19  ;;  %v19523_v19 = vld [vmem:[#allocation27 + $0x64] ss:$16 sps:$4 sm:$0xff]  }
0x176f   :  { %10669 = vmatprep.subr.bf16.mxu0 %v19457_v8  ;;  %v19521_v8 = vld [vmem:[#allocation27 + $0x60] ss:$16 sps:$4 sm:$0xff]  }
0x1772   :  { %10670 = vmatpush1.bf16.msra.mxu0 %v19455_v33  ;;  %v19526_v33 = vld [vmem:[#allocation27 + $0x84] ss:$16 sps:$4 sm:$0xff]  }
0x1773   :  { %10671 = vmatprep.subr.bf16.mxu0 %v19460_v22  ;;  %v10785_v22 = vld [vmem:[#allocation2] sm:$0xff] }
0x1776   :  { %10672 = vmatpush1.bf16.msra.mxu0 %v19458_v63  ;;  %v19531_v63 = vld [vmem:[#allocation27 + $0xa4] ss:$16 sps:$4 sm:$0xff]  }
0x1777   :  { %10673 = vmatprep.subr.bf16.mxu0 %v19463_v37 }
0x177a   :  { %10674 = vmatpush1.bf16.msra.mxu0 %v19461_v57  ;;  %v19532_v57 = vld [vmem:[#allocation27 + $0xc0] ss:$16 sps:$4 sm:$0xff]  }
0x177b   :  { %10704 = vmatprep.subr.bf16.mxu0 %v19466_v24  ;;  %v19537_v24 = vld [vmem:[#allocation27 + $0xe4] ss:$16 sps:$4 sm:$0xff]  }
0x177d   :  { %10676 = vmatmul.mubr.bf16.vlgmr.msra.gmra.mrb[108].mxu0 %v22209_v11  ;;  %v19476_v11 = vld [vmem:[#allocation26 + $0xa88] ss:$16 sps:$4 sm:$0xff]  }
0x177e   :  { %10685 = vmatprep.mubr.bf16.mxu0 %v22216_v14  ;;  %10705 = vmatpush1.bf16.msra.mxu0 %v19464_v9  ;;  %v19481_v14 = vld [vmem:[#allocation26 + $0xaac] ss:$16 sps:$4 sm:$0xff]   ;;  %v19535_v9 = vld [vmem:[#allocation27 + $0xe0] ss:$16 sps:$4 sm:$0xff]  }
0x177f   :  { %10706 = vmatprep.subr.bf16.mxu0 %v19469_v51  ;;  %v19540_v51 = vld [vmem:[#allocation27 + $0x104] ss:$16 sps:$4 sm:$0xff]  }
0x1782   :  { %10707 = vmatpush1.bf16.msra.mxu0 %v19467_v40  ;;  %v19538_v40 = vld [vmem:[#allocation27 + $0x100] ss:$16 sps:$4 sm:$0xff]  }
0x1783   :  { %10708 = vmatprep.subr.bf16.mxu0 %v19472_v43  ;;  %v19543_v43 = vld [vmem:[#allocation27 + $0x124] ss:$16 sps:$4 sm:$0xff]  }
0x1785   :  { %10686 = vmatmul.mubr.bf16.gmra.mrb[112].mxu0 %v22224_v26  ;;  %v19482_v26 = vld [vmem:[#allocation26 + $0xac8] ss:$16 sps:$4 sm:$0xff]  }
0x1786   :  { %10695 = vmatprep.mubr.bf16.mxu0 %v22206_v7  ;;  %10709 = vmatpush1.bf16.msra.mxu0 %v19470_v15  ;;  %v19487_v7 = vld [vmem:[#allocation26 + $0xaec] ss:$16 sps:$4 sm:$0xff]   ;;  %v19546_v15 = vld [vmem:[#allocation27 + $0x144] ss:$16 sps:$4 sm:$0xff]  }
0x1787   :  { %10710 = vmatprep.subr.bf16.mxu0 %v19475_v28 }
0x178a   :  { %10711 = vmatpush1.bf16.msra.mxu0 %v19473_v13 }
0x178b   :  { %10712 = vmatprep.subr.bf16.mxu0 %v19478_v61 }
0x178d   :  { %10696 = vmatmul.mubr.bf16.gmra.mrb[148].mxu0 %v22220_v35  ;;  %v19491_v35 = vld [vmem:[#allocation26 + $0xb28] ss:$16 sps:$4 sm:$0xff]  }
0x178e   :  { %10713 = vmatpush1.bf16.msra.mxu0 %v19476_v11  ;;  %10736 = vmatprep.mubr.bf16.mxu0 %v22239_v54  ;;  %v19544_v11 = vld [vmem:[#allocation27 + $0x140] ss:$16 sps:$4 sm:$0xff]  }
0x178f   :  { %10714 = vmatprep.subr.bf16.mxu0 %v19481_v14 }
0x1792   :  { %10715 = vmatpush1.bf16.msra.mxu0 %v19479_v16  ;;  %v19549_v16 = vld [vmem:[#allocation27 + $0x164] ss:$16 sps:$4 sm:$0xff]  }
0x1793   :  { %10716 = vmatprep.subr.bf16.mxu0 %v19484_v23  ;;  %v19547_v23 = vld [vmem:[#allocation27 + $0x160] ss:$16 sps:$4 sm:$0xff]  }
0x1796   :  { %10717 = vmatpush1.bf16.msra.mxu0 %v19482_v26  ;;  %v19552_v26 = vld [vmem:[#allocation27 + $0x184] ss:$16 sps:$4 sm:$0xff]  }
0x1797   :  { %10718 = vmatprep.subr.bf16.mxu0 %v19487_v7  ;;  %v19550_v7 = vld [vmem:[#allocation27 + $0x180] ss:$16 sps:$4 sm:$0xff]  }
0x179a   :  { %10719 = vmatpush1.bf16.msra.mxu0 %v19485_v1  ;;  %v19555_v1 = vld [vmem:[#allocation27 + $0x1a4] ss:$16 sps:$4 sm:$0xff]  }
0x179b   :  { %10720 = vmatprep.subr.bf16.mxu0 %v19490_v6  ;;  %v19553_v6 = vld [vmem:[#allocation27 + $0x1a0] ss:$16 sps:$4 sm:$0xff]  }
0x179e   :  { %10721 = vmatpush1.bf16.msra.mxu0 %v19488_v34  ;;  %v19558_v34 = vld [vmem:[#allocation27 + $0x1c4] ss:$16 sps:$4 sm:$0xff]  }
0x179f   :  { %10722 = vmatprep.subr.bf16.mxu0 %v19493_v25  ;;  %v19556_v25 = vld [vmem:[#allocation27 + $0x1c0] ss:$16 sps:$4 sm:$0xff]  }
0x17a0   :  { %v9701_v54 = vpop.f32.mrb[136].mxu0 }
0x17a1   :  { %v22289_v58 = vadd.f32 %v9701_v54, %v22277_v47  ;;  %v9703_v10 = vpop.f32.mrb[137].mxu0  ;;  %v19506_v47 = vld [vmem:[#allocation26 + $0xbc8] ss:$16 sps:$4 sm:$0xff]   ;;  %v19564_v54 = vld [vmem:[#allocation27 + $0xc] ss:$16 sps:$4 sm:$0xff]  }
0x17a2   :  { %v22292_v20 = vadd.f32 %v9703_v10, %v22280_v55  ;;  %v9705_v56 = vpop.f32.mrb[138].mxu0  ;;  %10723 = vmatpush1.bf16.msra.mxu0 %v19491_v35  ;;  %v19509_v55 = vld [vmem:[#allocation26 + $0xbe8] ss:$16 sps:$4 sm:$0xff]   ;;  %v19561_v35 = vld [vmem:[#allocation27 + $0x1e4] ss:$16 sps:$4 sm:$0xff]  }
0x17a3   :  { %v9706_v38 = vpop.f32.mrb[139].mxu0  ;;  %10724 = vmatprep.subr.bf16.mxu0 %v19496_v32  ;;  %v19559_v32 = vld [vmem:[#allocation27 + $0x1e0] ss:$16 sps:$4 sm:$0xff]   ;;  %v19562_v10 = vld [vmem:[#allocation27 + $0x8] ss:$16 sps:$4 sm:$0xff]  }
0x17a4   :  { %v22312_v38 = vld [vmem:[#allocation2 + $0x14] ss:$8 sps:$4 sm:$0xff]  }
0x17a6   :  { %10725 = vmatpush1.bf16.msra.mxu0 %v19494_v59  ;;  %v19569_v59 = vld [vmem:[#allocation27 + $0x2c] ss:$16 sps:$4 sm:$0xff]  }
0x17a7   :  { %10726 = vmatprep.subr.bf16.mxu0 %v19499_v30  ;;  %v19567_v30 = vld [vmem:[#allocation27 + $0x28] ss:$16 sps:$4 sm:$0xff]  }
0x17aa   :  { %10727 = vmatpush1.bf16.msra.mxu0 %v19497_v39  ;;  %v19573_v39 = vld [vmem:[#allocation27 + $0x4c] ss:$16 sps:$4 sm:$0xff]  }
0x17ab   :  { %10728 = vmatprep.subr.bf16.mxu0 %v19502_v41  ;;  %v10789_v41 = vld [vmem:[#allocation2 + $0x20] sm:$0x11] }
0x17ae   :  { %10729 = vmatpush1.bf16.msra.mxu0 %v19500_v5  ;;  %v19571_v5 = vld [vmem:[#allocation27 + $0x48] ss:$16 sps:$4 sm:$0xff]  }
0x17af   :  { %10730 = vmatprep.subr.bf16.mxu0 %v19505_v49  ;;  %v22316_v49 = vld [vmem:[#allocation2 + $0x10] ss:$8 sps:$4 sm:$0xff]  }
0x17b2   :  { %10731 = vmatpush1.bf16.msra.mxu0 %v19503_v52  ;;  %v19577_v52 = vld [vmem:[#allocation27 + $0x6c] ss:$16 sps:$4 sm:$0xff]  }
0x17b3   :  { %10732 = vmatprep.subr.bf16.mxu0 %v19508_v46  ;;  %v22318_v46 = vcombine.high %v10789_v41, %v10789_v41 }
0x17b6   :  { %10733 = vmatpush1.bf16.msra.mxu0 %v19506_v47  ;;  %v19575_v47 = vld [vmem:[#allocation27 + $0x68] ss:$16 sps:$4 sm:$0xff]  }
0x17b7   :  { %10734 = vmatprep.subr.bf16.mxu0 %v19511_v42  ;;  %v19581_v42 = vld [vmem:[#allocation27 + $0x8c] ss:$16 sps:$4 sm:$0xff]  }
0x17ba   :  { %10735 = vmatpush1.bf16.msra.mxu0 %v19509_v55  ;;  %v19579_v55 = vld [vmem:[#allocation27 + $0x88] ss:$16 sps:$4 sm:$0xff]  }
0x17bb   :  { %11201 = vmatprep.subr.bf16.mxu0 %v19514_v29  ;;  %v22322_v29 = vcombine.low %v10789_v41, %v10789_v41 }
0x17bd   :  { %10737 = vmatmul.mubr.bf16.vlgmr.msra.gmra.mrb[108].mxu0 %v22255_v36  ;;  %v22298_v36 = vld [vmem:[#allocation2 + $0x8] sm:$0xff] }
0x17be   :  { %10746 = vmatprep.mubr.bf16.mxu0 %v22262_v31  ;;  %11202 = vmatpush1.bf16.msra.mxu0 %v19512_v2  ;;  %v19524_v31 = vld [vmem:[#allocation27 + $0x80] ss:$16 sps:$4 sm:$0xff]   ;;  %v22301_v37 = vcombine.high %v10785_v22, %v22298_v36  ;;  %v22310_v56 = vcombine.low %v10785_v22, %v22298_v36  ;;  %v19584_v2 = vld [vmem:[#allocation27 + $0xac] ss:$16 sps:$4 sm:$0xff]  }
0x17bf   :  { %11203 = vmatprep.subr.bf16.mxu0 %v19517_v27  ;;  %v19582_v27 = vld [vmem:[#allocation27 + $0xa8] ss:$16 sps:$4 sm:$0xff]   ;;  %v19596_v22 = vld [vmem:[#allocation27 + $0x12c] ss:$16 sps:$4 sm:$0xff]  }
0x17c2   :  { %11204 = vmatpush1.bf16.msra.mxu0 %v19515_v3  ;;  %v19587_v3 = vld [vmem:[#allocation27 + $0xcc] ss:$16 sps:$4 sm:$0xff]  }
0x17c3   :  { %11205 = vmatprep.subr.bf16.mxu0 %v19520_v60  ;;  %v19585_v60 = vld [vmem:[#allocation27 + $0xc8] ss:$16 sps:$4 sm:$0xff]  }
0x17c5   :  { %10747 = vmatmul.mubr.bf16.gmra.mrb[112].mxu0 %v22270_v21  ;;  %v19534_v21 = vld [vmem:[#allocation27 + $0xc4] ss:$16 sps:$4 sm:$0xff]  }
0x17c6   :  { %10756 = vmatprep.mubr.bf16.mxu0 %v22252_v12  ;;  %11206 = vmatpush1.bf16.msra.mxu0 %v19518_v18  ;;  %v19529_v12 = vld [vmem:[#allocation27 + $0xa0] ss:$16 sps:$4 sm:$0xff]   ;;  %v19590_v18 = vld [vmem:[#allocation27 + $0xec] ss:$16 sps:$4 sm:$0xff]  }
0x17c7   :  { %11207 = vmatprep.subr.bf16.mxu0 %v19523_v19  ;;  %v19588_v19 = vld [vmem:[#allocation27 + $0xe8] ss:$16 sps:$4 sm:$0xff]  }
0x17ca   :  { %11208 = vmatpush1.bf16.msra.mxu0 %v19521_v8  ;;  %v19593_v8 = vld [vmem:[#allocation27 + $0x10c] ss:$16 sps:$4 sm:$0xff]  }
0x17cb   :  { %11209 = vmatprep.subr.bf16.mxu0 %v19526_v33  ;;  %v19591_v33 = vld [vmem:[#allocation27 + $0x108] ss:$16 sps:$4 sm:$0xff]  }
0x17cd   :  { %10757 = vmatmul.mubr.bf16.gmra.mrb[152].mxu0 %v22266_v62  ;;  %v19541_v62 = vld [vmem:[#allocation27 + $0x120] ss:$16 sps:$4 sm:$0xff]  }
0x17ce   :  { %11210 = vmatpush1.bf16.msra.mxu0 %v19524_v31  ;;  %11233 = vmatprep.mubr.bf16.mxu0 %v22301_v37  ;;  %v19594_v31 = vld [vmem:[#allocation27 + $0x128] ss:$16 sps:$4 sm:$0xff]  }
0x17cf   :  { %11211 = vmatprep.subr.bf16.mxu0 %v19531_v63  ;;  %v19599_v63 = vld [vmem:[#allocation27 + $0x14c] ss:$16 sps:$4 sm:$0xff]  }
0x17d2   :  { %11212 = vmatpush1.bf16.msra.mxu0 %v19529_v12 }
0x17d3   :  { %11213 = vmatprep.subr.bf16.mxu0 %v19534_v21 }
0x17d6   :  { %11214 = vmatpush1.bf16.msra.mxu0 %v19532_v57 }
0x17d7   :  { %11215 = vmatprep.subr.bf16.mxu0 %v19537_v24 }
0x17da   :  { %11216 = vmatpush1.bf16.msra.mxu0 %v19535_v9 }
0x17db   :  { %11217 = vmatprep.subr.bf16.mxu0 %v19540_v51  ;;  %v19597_v51 = vld [vmem:[#allocation27 + $0x148] ss:$16 sps:$4 sm:$0xff]  }
0x17de   :  { %11218 = vmatpush1.bf16.msra.mxu0 %v19538_v40 }
0x17df   :  { %11219 = vmatprep.subr.bf16.mxu0 %v19543_v43  ;;  %v19602_v43 = vld [vmem:[#allocation27 + $0x16c] ss:$16 sps:$4 sm:$0xff]  }
0x17e0   :  { %v22305_v28 = vpop.f32.mrb[140].mxu0 }
0x17e1   :  { %v22307_v13 = vpop.f32.mrb[141].mxu0 }
0x17e2   :  { %v10579_v61 = vpop.f32.mrb[142].mxu0  ;;  %11220 = vmatpush1.bf16.msra.mxu0 %v19541_v62 }
0x17e3   :  { %v10580_v14 = vpop.f32.mrb[143].mxu0  ;;  %11221 = vmatprep.subr.bf16.mxu0 %v19546_v15  ;;  %v19600_v61 = vld [vmem:[#allocation27 + $0x168] ss:$16 sps:$4 sm:$0xff]  }
0x17e4   :  { %v19606_v14 = vld [vmem:[#allocation27 + $0x1a8] ss:$16 sps:$4 sm:$0xff]  }
0x17e6   :  { %11222 = vmatpush1.bf16.msra.mxu0 %v19544_v11  ;;  %v19605_v11 = vld [vmem:[#allocation27 + $0x18c] ss:$16 sps:$4 sm:$0xff]  }
0x17e7   :  { %11223 = vmatprep.subr.bf16.mxu0 %v19549_v16  ;;  %v19611_v16 = vld [vmem:[#allocation27 + $0x1cc] ss:$16 sps:$4 sm:$0xff]  }
0x17ea   :  { %11224 = vmatpush1.bf16.msra.mxu0 %v19547_v23  ;;  %v19609_v23 = vld [vmem:[#allocation27 + $0x1c8] ss:$16 sps:$4 sm:$0xff]  }
0x17eb   :  { %11225 = vmatprep.subr.bf16.mxu0 %v19552_v26  ;;  %v19612_v26 = vld [vmem:[#allocation27 + $0x1e8] ss:$16 sps:$4 sm:$0xff]  }
0x17ee   :  { %11226 = vmatpush1.bf16.msra.mxu0 %v19550_v7  ;;  %v19615_v7 = vld [vmem:[#allocation27 + $0x200] ss:$16 sps:$4 sm:$0xff]  }
0x17ef   :  { %11227 = vmatprep.subr.bf16.mxu0 %v19555_v1  ;;  %v19620_v1 = vld [vmem:[#allocation27 + $0x224] ss:$16 sps:$4 sm:$0xff]  }
0x17f2   :  { %11228 = vmatpush1.bf16.msra.mxu0 %v19553_v6  ;;  %v19618_v6 = vld [vmem:[#allocation27 + $0x220] ss:$16 sps:$4 sm:$0xff]  }
0x17f3   :  { %11229 = vmatprep.subr.bf16.mxu0 %v19558_v34  ;;  %v19623_v34 = vld [vmem:[#allocation27 + $0x244] ss:$16 sps:$4 sm:$0xff]  }
0x17f6   :  { %11230 = vmatpush1.bf16.msra.mxu0 %v19556_v25  ;;  %v11429_v25 = vshll.u32 %v22301_v37, 16 }
0x17f7   :  { %11231 = vmatprep.subr.bf16.mxu0 %v19561_v35  ;;  %v19621_v35 = vld [vmem:[#allocation27 + $0x240] ss:$16 sps:$4 sm:$0xff]  }
0x17fa   :  { %11232 = vmatpush1.bf16.msra.mxu0 %v19559_v32  ;;  %v19626_v32 = vld [vmem:[#allocation27 + $0x264] ss:$16 sps:$4 sm:$0xff]  }
0x17fb   :  { %11262 = vmatprep.subr.bf16.mxu0 %v19564_v54  ;;  %v11427_v54 = vshrl.u32 %v22301_v37, 16 }
0x17fd   :  { %11234 = vmatmul.mubr.bf16.vlgmr.msra.gmra.mrb[92].mxu0 %v22310_v56 }
0x17fe   :  { %11243 = vmatprep.mubr.bf16.mxu0 %v22312_v38  ;;  %11263 = vmatpush1.bf16.msra.mxu0 %v19562_v10  ;;  %v11431_v10 = vrot.slane %v11429_v25, 1 }
0x17ff   :  { %11264 = vmatprep.subr.bf16.mxu0 %v19569_v59  ;;  %v11434_v59 = vshll.u32 %v22312_v38, 16 }
0x1800   :  { %v11432_v41 = vor.u32 %v11431_v10, %v11427_v54  ;;  %v11438_v10 = vshrl.u32 %v22316_v49, 16 }
0x1802   :  { %11265 = vmatpush1.bf16.msra.mxu0 %v19567_v30  ;;  %v19624_v30 = vld [vmem:[#allocation27 + $0x260] ss:$16 sps:$4 sm:$0xff]  }
0x1803   :  { %11266 = vmatprep.subr.bf16.mxu0 %v19573_v39  ;;  %v19629_v39 = vld [vmem:[#allocation27 + $0x284] ss:$16 sps:$4 sm:$0xff]  }
0x1805   :  { %11244 = vmatmul.mubr.bf16.gmra.mrb[96].mxu0 %v22316_v49 }
0x1806   :  { %11253 = vmatprep.mubr.bf16.mxu0 %v22318_v46  ;;  %11267 = vmatpush1.bf16.msra.mxu0 %v19571_v5  ;;  %v22341_v5 = vrot.slane %v11434_v59, 1 }
0x1807   :  { %11268 = vmatprep.subr.bf16.mxu0 %v19577_v52  ;;  %v19627_v52 = vld [vmem:[#allocation27 + $0x280] ss:$16 sps:$4 sm:$0xff]  }
0x180a   :  { %11269 = vmatpush1.bf16.msra.mxu0 %v19575_v47  ;;  %v19632_v47 = vld [vmem:[#allocation27 + $0x2a4] ss:$16 sps:$4 sm:$0xff]  }
0x180b   :  { %11270 = vmatprep.subr.bf16.mxu0 %v19581_v42  ;;  %v19635_v42 = vld [vmem:[#allocation27 + $0x2c4] ss:$16 sps:$4 sm:$0xff]  }
0x180d   :  { %11254 = vmatmul.mubr.bf16.gmra.mrb[156].mxu0 %v22322_v29 }
0x180e   :  { %11271 = vmatpush1.bf16.msra.mxu0 %v19579_v55  ;;  %11294 = vmatprep.mubr.bf16.mxu0 %v22301_v37  ;;  %v22346_v37 = vsel %vm642_vm0, %v11432_v41, %v22341_v5  ;;  %v19633_v55 = vld [vmem:[#allocation27 + $0x2c0] ss:$16 sps:$4 sm:$0xff]   ;;  %v19673_v41 = vld [vmem:[#allocation27 + $0x24c] ss:$16 sps:$4 sm:$0xff]  }
0x180f   :  { %11272 = vmatprep.subr.bf16.mxu0 %v19584_v2  ;;  %v19638_v2 = vld [vmem:[#allocation27 + $0x2e4] ss:$16 sps:$4 sm:$0xff]  }
0x1812   :  { %11273 = vmatpush1.bf16.msra.mxu0 %v19582_v27  ;;  %v19636_v27 = vld [vmem:[#allocation27 + $0x2e0] ss:$16 sps:$4 sm:$0xff]  }
0x1813   :  { %11274 = vmatprep.subr.bf16.mxu0 %v19587_v3  ;;  %v19641_v3 = vld [vmem:[#allocation27 + $0x304] ss:$16 sps:$4 sm:$0xff]  }
0x1816   :  { %11275 = vmatpush1.bf16.msra.mxu0 %v19585_v60  ;;  %v19644_v60 = vld [vmem:[#allocation27 + $0x324] ss:$16 sps:$4 sm:$0xff]  }
0x1817   :  { %11276 = vmatprep.subr.bf16.mxu0 %v19590_v18  ;;  %v19642_v18 = vld [vmem:[#allocation27 + $0x320] ss:$16 sps:$4 sm:$0xff]  }
0x181a   :  { %11277 = vmatpush1.bf16.msra.mxu0 %v19588_v19  ;;  %v19647_v19 = vld [vmem:[#allocation27 + $0x344] ss:$16 sps:$4 sm:$0xff]  }
0x181b   :  { %11278 = vmatprep.subr.bf16.mxu0 %v19593_v8 }
0x181e   :  { %11279 = vmatpush1.bf16.msra.mxu0 %v19591_v33 }
0x181f   :  { %11280 = vmatprep.subr.bf16.mxu0 %v19596_v22 }
0x1820   :  { %v10636_v12 = vpop.f32.mrb[144].mxu0 }
0x1821   :  { %v10637_v21 = vadd.f32 %v10636_v12, %v22305_v28  ;;  %v10638_v57 = vpop.f32.mrb[145].mxu0  ;;  %v19603_v28 = vld [vmem:[#allocation27 + $0x188] ss:$16 sps:$4 sm:$0xff]   ;;  %v19650_v12 = vld [vmem:[#allocation27 + $0x364] ss:$16 sps:$4 sm:$0xff]  }
0x1822   :  { %v10639_v24 = vadd.f32 %v10638_v57, %v22307_v13  ;;  %v10640_v9 = vpop.f32.mrb[146].mxu0  ;;  %11281 = vmatpush1.bf16.msra.mxu0 %v19594_v31  ;;  %v19608_v13 = vld [vmem:[#allocation27 + $0x1ac] ss:$16 sps:$4 sm:$0xff]   ;;  %v19645_v31 = vld [vmem:[#allocation27 + $0x340] ss:$16 sps:$4 sm:$0xff]  }
0x1823   :  { %v10641_v40 = vpop.f32.mrb[147].mxu0  ;;  %11282 = vmatprep.subr.bf16.mxu0 %v19599_v63  ;;  %v22329_v62 = vadd.f32 %v10637_v21, %v22243_v17  ;;  %v19614_v17 = vld [vmem:[#allocation27 + $0x1ec] ss:$16 sps:$4 sm:$0xff]   ;;  %v19648_v21 = vld [vmem:[#allocation27 + $0x360] ss:$16 sps:$4 sm:$0xff]  }
0x1824   :  { %v22332_v15 = vadd.f32 %v10639_v24, %v22246_v4  ;;  %v19617_v4 = vld [vmem:[#allocation27 + $0x204] ss:$16 sps:$4 sm:$0xff]   ;;  %v19651_v24 = vld [vmem:[#allocation27 + $0x380] ss:$16 sps:$4 sm:$0xff]   ;;  %v11343_v40 = vld [vmem:[#allocation2 + $0x20] sm:$0x33] }
0x1825   :  { %v19653_v57 = vld [vmem:[#allocation27 + $0x384] ss:$16 sps:$4 sm:$0xff]  }
0x1826   :  { %11283 = vmatpush1.bf16.msra.mxu0 %v19597_v51  ;;  %v19656_v9 = vld [vmem:[#allocation27 + $0x3a4] ss:$16 sps:$4 sm:$0xff]   ;;  %v19654_v51 = vld [vmem:[#allocation27 + $0x3a0] ss:$16 sps:$4 sm:$0xff]  }
0x1827   :  { %11284 = vmatprep.subr.bf16.mxu0 %v19602_v43  ;;  %v19659_v43 = vld [vmem:[#allocation27 + $0x3c4] ss:$16 sps:$4 sm:$0xff]  }
0x182a   :  { %11285 = vmatpush1.bf16.msra.mxu0 %v19600_v61  ;;  %v11417_v61 = vshll.u32 %v22310_v56, 16 }
0x182b   :  { %11286 = vmatprep.subr.bf16.mxu0 %v19605_v11  ;;  %v22354_v11 = vcombine.high %v11343_v40, %v11343_v40 }
0x182e   :  { %11287 = vmatpush1.bf16.msra.mxu0 %v19603_v28  ;;  %v19657_v28 = vld [vmem:[#allocation27 + $0x3c0] ss:$16 sps:$4 sm:$0xff]  }
0x182f   :  { %11288 = vmatprep.subr.bf16.mxu0 %v19608_v13  ;;  %v19662_v13 = vld [vmem:[#allocation27 + $0x3e4] ss:$16 sps:$4 sm:$0xff]  }
0x1832   :  { %11289 = vmatpush1.bf16.msra.mxu0 %v19606_v14  ;;  %v11415_v14 = vshrl.u32 %v22310_v56, 16 }
0x1833   :  { %11290 = vmatprep.subr.bf16.mxu0 %v19611_v16  ;;  %v11419_v16 = vrot.slane %v11417_v61, 1 }
0x1836   :  { %11291 = vmatpush1.bf16.msra.mxu0 %v19609_v23  ;;  %v11422_v23 = vshll.u32 %v22316_v49, 16 }
0x1837   :  { %11292 = vmatprep.subr.bf16.mxu0 %v19614_v17  ;;  %v11446_v17 = vshrl.u32 %v22312_v38, 16 }
0x1839   :  { %v11448_v25 = vor.u32 %v11446_v17, %v22341_v5 }
0x183a   :  { %11293 = vmatpush1.bf16.msra.mxu0 %v19612_v26  ;;  %v11450_v26 = vshll.u32 %v22354_v11, 16 }
0x183b   :  { %11786 = vmatprep.subr.bf16.mxu0 %v19617_v4  ;;  %v19660_v4 = vld [vmem:[#allocation27 + $0x3e0] ss:$16 sps:$4 sm:$0xff]  }
0x183d   :  { %11295 = vmatmul.mubr.bf16.vlgmr.msra.gmra.mrb[108].mxu0 %v22310_v56  ;;  %v19663_v56 = vld [vmem:[#allocation27 + $0x208] ss:$16 sps:$4 sm:$0xff]  }
0x183e   :  { %11304 = vmatprep.mubr.bf16.mxu0 %v22312_v38  ;;  %11787 = vmatpush1.bf16.msra.mxu0 %v19615_v7  ;;  %v19665_v7 = vld [vmem:[#allocation27 + $0x20c] ss:$16 sps:$4 sm:$0xff]  }
0x183f   :  { %11788 = vmatprep.subr.bf16.mxu0 %v19620_v1  ;;  %v11420_v1 = vor.u32 %v11419_v16, %v11415_v14  ;;  %v19695_v14 = vld [vmem:[#allocation27 + $0x348] ss:$16 sps:$4 sm:$0xff]  }
0x1842   :  { %11789 = vmatpush1.bf16.msra.mxu0 %v19618_v6  ;;  %v11424_v6 = vrot.slane %v11422_v23, 1  ;;  %v19700_v23 = vld [vmem:[#allocation27 + $0x36c] ss:$16 sps:$4 sm:$0xff]  }
0x1843   :  { %11790 = vmatprep.subr.bf16.mxu0 %v19623_v34  ;;  %v22360_v34 = vcombine.low %v11343_v40, %v11343_v40  ;;  %v19697_v40 = vld [vmem:[#allocation27 + $0x34c] ss:$16 sps:$4 sm:$0xff]  }
0x1844   :  { %v22364_v54 = vsel %vm642_vm0, %v11420_v1, %v11424_v6  ;;  %v11440_v5 = vor.u32 %v11438_v10, %v11424_v6  ;;  %v19704_v1 = vld [vmem:[#allocation27 + $0x3a8] ss:$16 sps:$4 sm:$0xff]   ;;  %v19709_v6 = vld [vmem:[#allocation27 + $0x3cc] ss:$16 sps:$4 sm:$0xff]   ;;  %v19716_v10 = vld [vmem:[#allocation27 + $0x420] ss:$16 sps:$4 sm:$0xff]  }
0x1845   :  { %11305 = vmatmul.mubr.bf16.gmra.mrb[112].mxu0 %v22316_v49  ;;  %v11442_v59 = vshll.u32 %v22360_v34, 16 }
0x1846   :  { %11314 = vmatprep.mubr.bf16.mxu0 %v22318_v46  ;;  %11791 = vmatpush1.bf16.msra.mxu0 %v19621_v35  ;;  %v19630_v46 = vld [vmem:[#allocation27 + $0x2a0] ss:$16 sps:$4 sm:$0xff]   ;;  %v11452_v35 = vrot.slane %v11450_v26, 1 }
0x1847   :  { %11792 = vmatprep.subr.bf16.mxu0 %v19626_v32  ;;  %v19669_v32 = vld [vmem:[#allocation27 + $0x22c] ss:$16 sps:$4 sm:$0xff]  }
0x184a   :  { %11793 = vmatpush1.bf16.msra.mxu0 %v19624_v30  ;;  %v22370_v30 = vsel %vm642_vm0, %v11448_v25, %v11452_v35  ;;  %v19707_v25 = vld [vmem:[#allocation27 + $0x3c8] ss:$16 sps:$4 sm:$0xff]  }
0x184b   :  { %11794 = vmatprep.subr.bf16.mxu0 %v19629_v39  ;;  %v19667_v39 = vld [vmem:[#allocation27 + $0x228] ss:$16 sps:$4 sm:$0xff]  }
0x184d   :  { %11315 = vmatmul.mubr.bf16.gmra.mrb[160].mxu0 %v22322_v29  ;;  %v19639_v29 = vld [vmem:[#allocation27 + $0x300] ss:$16 sps:$4 sm:$0xff]  }
0x184e   :  { %11795 = vmatpush1.bf16.msra.mxu0 %v19627_v52  ;;  %11818 = vmatprep.mubr.bf16.mxu0 %v22346_v37  ;;  %v11444_v52 = vrot.slane %v11442_v59, 1  ;;  %v19721_v59 = vld [vmem:[#allocation27 + $0x444] ss:$16 sps:$4 sm:$0xff]  }
0x184f   :  { %11796 = vmatprep.subr.bf16.mxu0 %v19632_v47  ;;  %v11457_v47 = vshrl.u32 %v22354_v11, 16 }
0x1852   :  { %11797 = vmatpush1.bf16.msra.mxu0 %v19630_v46  ;;  %v19671_v46 = vld [vmem:[#allocation27 + $0x248] ss:$16 sps:$4 sm:$0xff]  }
0x1853   :  { %11798 = vmatprep.subr.bf16.mxu0 %v19635_v42  ;;  %v19676_v42 = vld [vmem:[#allocation27 + $0x26c] ss:$16 sps:$4 sm:$0xff]  }
0x1856   :  { %11799 = vmatpush1.bf16.msra.mxu0 %v19633_v55  ;;  %v22375_v55 = vsel %vm642_vm0, %v11440_v5, %v11444_v52  ;;  %v19724_v5 = vld [vmem:[#allocation27 + $0x464] ss:$16 sps:$4 sm:$0xff]  }
0x1857   :  { %11800 = vmatprep.subr.bf16.mxu0 %v19638_v2  ;;  %v22377_v2 = vor.u32 %v11457_v47, %v11452_v35  ;;  %v19710_v35 = vld [vmem:[#allocation27 + $0x3e8] ss:$16 sps:$4 sm:$0xff]  }
0x185a   :  { %11801 = vmatpush1.bf16.msra.mxu0 %v19636_v27  ;;  %v19674_v27 = vld [vmem:[#allocation27 + $0x268] ss:$16 sps:$4 sm:$0xff]  }
0x185b   :  { %11802 = vmatprep.subr.bf16.mxu0 %v19641_v3  ;;  %v11454_v3 = vshrl.u32 %v22360_v34, 16 }
0x185e   :  { %11803 = vmatpush1.bf16.msra.mxu0 %v19639_v29  ;;  %v19679_v29 = vld [vmem:[#allocation27 + $0x28c] ss:$16 sps:$4 sm:$0xff]  }
0x185f   :  { %11804 = vmatprep.subr.bf16.mxu0 %v19644_v60  ;;  %v19677_v60 = vld [vmem:[#allocation27 + $0x288] ss:$16 sps:$4 sm:$0xff]  }
0x1860   :  { %v22349_v8 = vpop.f32.mrb[148].mxu0 }
0x1861   :  { %v22351_v33 = vpop.f32.mrb[149].mxu0 }
0x1862   :  { %v10701_v22 = vpop.f32.mrb[150].mxu0  ;;  %11805 = vmatpush1.bf16.msra.mxu0 %v19642_v18  ;;  %v22382_v18 = vor.u32 %v11454_v3, %v11444_v52  ;;  %v19735_v3 = vld [vmem:[#allocation27 + $0x4c4] ss:$16 sps:$4 sm:$0xff]  }
0x1863   :  { %v10702_v63 = vpop.f32.mrb[151].mxu0  ;;  %11806 = vmatprep.subr.bf16.mxu0 %v19647_v19  ;;  %v19682_v19 = vld [vmem:[#allocation27 + $0x2ac] ss:$16 sps:$4 sm:$0xff]   ;;  %v19680_v22 = vld [vmem:[#allocation27 + $0x2a8] ss:$16 sps:$4 sm:$0xff]  }
0x1864   :  { %v19683_v63 = vld [vmem:[#allocation27 + $0x2c8] ss:$16 sps:$4 sm:$0xff]  }
0x1866   :  { %11807 = vmatpush1.bf16.msra.mxu0 %v19645_v31  ;;  %v19685_v31 = vld [vmem:[#allocation27 + $0x2cc] ss:$16 sps:$4 sm:$0xff]  }
0x1867   :  { %11808 = vmatprep.subr.bf16.mxu0 %v19650_v12  ;;  %v19688_v12 = vld [vmem:[#allocation27 + $0x2ec] ss:$16 sps:$4 sm:$0xff]  }
0x186a   :  { %11809 = vmatpush1.bf16.msra.mxu0 %v19648_v21  ;;  %v19686_v21 = vld [vmem:[#allocation27 + $0x2e8] ss:$16 sps:$4 sm:$0xff]  }
0x186b   :  { %11810 = vmatprep.subr.bf16.mxu0 %v19653_v57  ;;  %v19691_v57 = vld [vmem:[#allocation27 + $0x30c] ss:$16 sps:$4 sm:$0xff]  }
0x186e   :  { %11811 = vmatpush1.bf16.msra.mxu0 %v19651_v24  ;;  %v19689_v24 = vld [vmem:[#allocation27 + $0x308] ss:$16 sps:$4 sm:$0xff]  }
0x186f   :  { %11812 = vmatprep.subr.bf16.mxu0 %v19656_v9  ;;  %v19694_v9 = vld [vmem:[#allocation27 + $0x32c] ss:$16 sps:$4 sm:$0xff]  }
0x1872   :  { %11813 = vmatpush1.bf16.msra.mxu0 %v19654_v51  ;;  %v19692_v51 = vld [vmem:[#allocation27 + $0x328] ss:$16 sps:$4 sm:$0xff]  }
0x1873   :  { %11814 = vmatprep.subr.bf16.mxu0 %v19659_v43 }
0x1876   :  { %11815 = vmatpush1.bf16.msra.mxu0 %v19657_v28 }
0x1877   :  { %11816 = vmatprep.subr.bf16.mxu0 %v19662_v13 }
0x187a   :  { %11817 = vmatpush1.bf16.msra.mxu0 %v19660_v4  ;;  %v19698_v4 = vld [vmem:[#allocation27 + $0x368] ss:$16 sps:$4 sm:$0xff]  }
0x187b   :  { %11847 = vmatprep.subr.bf16.mxu0 %v19665_v7  ;;  %v19703_v7 = vld [vmem:[#allocation27 + $0x38c] ss:$16 sps:$4 sm:$0xff]  }
0x187d   :  { %11819 = vmatmul.mubr.bf16.vlgmr.msra.gmra.mrb[92].mxu0 %v22364_v54 }
0x187e   :  { %11828 = vmatprep.mubr.bf16.mxu0 %v22370_v30  ;;  %11848 = vmatpush1.bf16.msra.mxu0 %v19663_v56  ;;  %v19713_v56 = vld [vmem:[#allocation27 + $0x400] ss:$16 sps:$4 sm:$0xff]  }
0x187f   :  { %11849 = vmatprep.subr.bf16.mxu0 %v19669_v32  ;;  %v19718_v32 = vld [vmem:[#allocation27 + $0x424] ss:$16 sps:$4 sm:$0xff]  }
0x1882   :  { %11850 = vmatpush1.bf16.msra.mxu0 %v19667_v39  ;;  %v19719_v39 = vld [vmem:[#allocation27 + $0x440] ss:$16 sps:$4 sm:$0xff]  }
0x1883   :  { %11851 = vmatprep.subr.bf16.mxu0 %v19673_v41  ;;  %v22396_v41 = vld [vmem:[#allocation2] sm:$0xee] }
0x1884   :  { %v17022_v52 = vcombine.high %v22396_v41, %v22298_v36 }
0x1885   :  { %11829 = vmatmul.mubr.bf16.gmra.mrb[96].mxu0 %v22375_v55 }
0x1886   :  { %11838 = vmatprep.mubr.bf16.mxu0 %v22377_v2  ;;  %11852 = vmatpush1.bf16.msra.mxu0 %v19671_v46  ;;  %v12002_v47 = vrot.slane %v17022_v52, 1  ;;  %v12003_v46 = vrot.slane %v22312_v38, 1  ;;  %v19772_v38 = vld [vmem:[#allocation27 + $0x468] ss:$16 sps:$4 sm:$0xff]  }
0x1887   :  { %11853 = vmatprep.subr.bf16.mxu0 %v19676_v42  ;;  %v19725_v42 = vld [vmem:[#allocation27 + $0x480] ss:$16 sps:$4 sm:$0xff]   ;;  %v19781_v52 = vld [vmem:[#allocation27 + $0x4c8] ss:$16 sps:$4 sm:$0xff]  }
0x188a   :  { %11854 = vmatpush1.bf16.msra.mxu0 %v19674_v27  ;;  %v19732_v27 = vld [vmem:[#allocation27 + $0x4a4] ss:$16 sps:$4 sm:$0xff]  }
0x188b   :  { %11855 = vmatprep.subr.bf16.mxu0 %v19679_v29  ;;  %v19733_v29 = vld [vmem:[#allocation27 + $0x4c0] ss:$16 sps:$4 sm:$0xff]  }
0x188d   :  { %11839 = vmatmul.mubr.bf16.gmra.mrb[164].mxu0 %v22382_v18 }
0x188e   :  { %11856 = vmatpush1.bf16.msra.mxu0 %v19677_v60  ;;  %11879 = vmatprep.mubr.bf16.mxu0 %v22346_v37  ;;  %v19738_v60 = vld [vmem:[#allocation27 + $0x4e4] ss:$16 sps:$4 sm:$0xff]  }
0x188f   :  { %11857 = vmatprep.subr.bf16.mxu0 %v19682_v19  ;;  %v19736_v19 = vld [vmem:[#allocation27 + $0x4e0] ss:$16 sps:$4 sm:$0xff]  }
0x1892   :  { %11858 = vmatpush1.bf16.msra.mxu0 %v19680_v22  ;;  %v19741_v22 = vld [vmem:[#allocation27 + $0x504] ss:$16 sps:$4 sm:$0xff]  }
0x1893   :  { %11859 = vmatprep.subr.bf16.mxu0 %v19685_v31  ;;  %v19744_v31 = vld [vmem:[#allocation27 + $0x524] ss:$16 sps:$4 sm:$0xff]  }
0x1896   :  { %11860 = vmatpush1.bf16.msra.mxu0 %v19683_v63  ;;  %v19742_v63 = vld [vmem:[#allocation27 + $0x520] ss:$16 sps:$4 sm:$0xff]  }
0x1897   :  { %11861 = vmatprep.subr.bf16.mxu0 %v19688_v12  ;;  %v19747_v12 = vld [vmem:[#allocation27 + $0x544] ss:$16 sps:$4 sm:$0xff]  }
0x189a   :  { %11862 = vmatpush1.bf16.msra.mxu0 %v19686_v21 }
0x189b   :  { %11863 = vmatprep.subr.bf16.mxu0 %v19691_v57 }
0x189e   :  { %11864 = vmatpush1.bf16.msra.mxu0 %v19689_v24 }
0x189f   :  { %11865 = vmatprep.subr.bf16.mxu0 %v19694_v9 }
0x18a0   :  { %v10758_v37 = vpop.f32.mrb[152].mxu0 }
0x18a1   :  { %v10759_v43 = vadd.f32 %v10758_v37, %v22349_v8  ;;  %v10760_v61 = vpop.f32.mrb[153].mxu0  ;;  %v19701_v8 = vld [vmem:[#allocation27 + $0x388] ss:$16 sps:$4 sm:$0xff]  }
0x18a2   :  { %v10761_v28 = vadd.f32 %v10760_v61, %v22351_v33  ;;  %v10762_v13 = vpop.f32.mrb[154].mxu0  ;;  %11866 = vmatpush1.bf16.msra.mxu0 %v19692_v51  ;;  %v19706_v33 = vld [vmem:[#allocation27 + $0x3ac] ss:$16 sps:$4 sm:$0xff]   ;;  %v19748_v61 = vld [vmem:[#allocation27 + $0x560] ss:$16 sps:$4 sm:$0xff]  }
0x18a3   :  { %v10763_v16 = vpop.f32.mrb[155].mxu0  ;;  %11867 = vmatprep.subr.bf16.mxu0 %v19697_v40  ;;  %v22389_v17 = vadd.f32 %v10759_v43, %v22289_v58  ;;  %v19712_v58 = vld [vmem:[#allocation27 + $0x3ec] ss:$16 sps:$4 sm:$0xff]   ;;  %v19745_v40 = vld [vmem:[#allocation27 + $0x540] ss:$16 sps:$4 sm:$0xff]  }
0x18a4   :  { %v22392_v26 = vadd.f32 %v10761_v28, %v22292_v20  ;;  %v19715_v20 = vld [vmem:[#allocation27 + $0x404] ss:$16 sps:$4 sm:$0xff]   ;;  %v19751_v13 = vld [vmem:[#allocation27 + $0x580] ss:$16 sps:$4 sm:$0xff]  }
0x18a5   :  { %v19750_v43 = vld [vmem:[#allocation27 + $0x564] ss:$16 sps:$4 sm:$0xff]  }
0x18a6   :  { %11868 = vmatpush1.bf16.msra.mxu0 %v19695_v14  ;;  %v19753_v28 = vld [vmem:[#allocation27 + $0x584] ss:$16 sps:$4 sm:$0xff]  }
0x18a7   :  { %11869 = vmatprep.subr.bf16.mxu0 %v19700_v23  ;;  %v19756_v14 = vld [vmem:[#allocation27 + $0x5a4] ss:$16 sps:$4 sm:$0xff]  }
0x18a8   :  { %v19759_v16 = vld [vmem:[#allocation27 + $0x5c4] ss:$16 sps:$4 sm:$0xff]  }
0x18a9   :  { %v19762_v23 = vld [vmem:[#allocation27 + $0x5e4] ss:$16 sps:$4 sm:$0xff]  }
0x18aa   :  { %11870 = vmatpush1.bf16.msra.mxu0 %v19698_v4  ;;  %v17021_v4 = vcombine.low %v22396_v41, %v22298_v36  ;;  %v19778_v41 = vld [vmem:[#allocation27 + $0x4a8] ss:$16 sps:$4 sm:$0xff]  }
0x18ab   :  { %11871 = vmatprep.subr.bf16.mxu0 %v19703_v7  ;;  %v19760_v7 = vld [vmem:[#allocation27 + $0x5e0] ss:$16 sps:$4 sm:$0xff]  }
0x18ae   :  { %11872 = vmatpush1.bf16.msra.mxu0 %v19701_v8  ;;  %v19765_v8 = vld [vmem:[#allocation27 + $0x40c] ss:$16 sps:$4 sm:$0xff]  }
0x18af   :  { %11873 = vmatprep.subr.bf16.mxu0 %v19706_v33  ;;  %v11999_v33 = vrot.slane %v17021_v4, 1 }
0x18b2   :  { %11874 = vmatpush1.bf16.msra.mxu0 %v19704_v1  ;;  %v12000_v1 = vrot.slane %v22316_v49, 1  ;;  %v19766_v49 = vld [vmem:[#allocation27 + $0x428] ss:$16 sps:$4 sm:$0xff]  }
0x18b3   :  { %11875 = vmatprep.subr.bf16.mxu0 %v19709_v6  ;;  %v22420_v6 = vrot.slane %v22354_v11, 1  ;;  %v19771_v11 = vld [vmem:[#allocation27 + $0x44c] ss:$16 sps:$4 sm:$0xff]  }
0x18b5   :  { %v22430_v36 = vsel %vm857_vm2, %v12003_v46, %v22420_v6 }
0x18b6   :  { %11876 = vmatpush1.bf16.msra.mxu0 %v19707_v25  ;;  %v19763_v25 = vld [vmem:[#allocation27 + $0x408] ss:$16 sps:$4 sm:$0xff]  }
0x18b7   :  { %11877 = vmatprep.subr.bf16.mxu0 %v19712_v58  ;;  %v19768_v58 = vld [vmem:[#allocation27 + $0x42c] ss:$16 sps:$4 sm:$0xff]  }
0x18ba   :  { %11878 = vmatpush1.bf16.msra.mxu0 %v19710_v35  ;;  %v22423_v35 = vsel %vm857_vm2, %v11999_v33, %v12000_v1  ;;  %v22457_v33 = vld [vmem:[#allocation41] sm:$0xf] }
0x18bb   :  { %12335 = vmatprep.subr.bf16.mxu0 %v19715_v20  ;;  %v22434_v20 = vrot.slane %v22360_v34, 1  ;;  %v19780_v34 = vld [vmem:[#allocation27 + $0x4ac] ss:$16 sps:$4 sm:$0xff]  }
0x18bd   :  { %11880 = vmatmul.mubr.bf16.vlgmr.msra.gmra.mrb[108].mxu0 %v22364_v54  ;;  %v19722_v54 = vld [vmem:[#allocation27 + $0x460] ss:$16 sps:$4 sm:$0xff]  }
0x18be   :  { %11889 = vmatprep.mubr.bf16.mxu0 %v22370_v30  ;;  %12336 = vmatpush1.bf16.msra.mxu0 %v19713_v56  ;;  %v19727_v30 = vld [vmem:[#allocation27 + $0x484] ss:$16 sps:$4 sm:$0xff]   ;;  %v19769_v56 = vld [vmem:[#allocation27 + $0x448] ss:$16 sps:$4 sm:$0xff]  }
0x18bf   :  { %12337 = vmatprep.subr.bf16.mxu0 %v19718_v32  ;;  %v19774_v32 = vld [vmem:[#allocation27 + $0x46c] ss:$16 sps:$4 sm:$0xff]  }
0x18c2   :  { %12338 = vmatpush1.bf16.msra.mxu0 %v19716_v10  ;;  %v22438_v10 = vsel %vm857_vm2, %v12000_v1, %v22434_v20  ;;  %v12482_v1 = vrot.slane %v22457_v33, %v21635_v50 }
0x18c3   :  { %12339 = vmatprep.subr.bf16.mxu0 %v19721_v59  ;;  %v19777_v59 = vld [vmem:[#allocation27 + $0x48c] ss:$16 sps:$4 sm:$0xff]  }
0x18c5   :  { %11890 = vmatmul.mubr.bf16.gmra.mrb[112].mxu0 %v22375_v55  ;;  %v22407_v55 = vsel %vm857_vm2, %v12002_v47, %v12003_v46  ;;  %v19789_v47 = vld [vmem:[#allocation27 + $0x50c] ss:$16 sps:$4 sm:$0xff]   ;;  %v19787_v46 = vld [vmem:[#allocation27 + $0x508] ss:$16 sps:$4 sm:$0xff]  }
0x18c6   :  { %11899 = vmatprep.mubr.bf16.mxu0 %v22377_v2  ;;  %12340 = vmatpush1.bf16.msra.mxu0 %v19719_v39  ;;  %v19730_v2 = vld [vmem:[#allocation27 + $0x4a0] ss:$16 sps:$4 sm:$0xff]   ;;  %v19775_v39 = vld [vmem:[#allocation27 + $0x488] ss:$16 sps:$4 sm:$0xff]  }
0x18c7   :  { %12341 = vmatprep.subr.bf16.mxu0 %v19724_v5  ;;  %v19783_v5 = vld [vmem:[#allocation27 + $0x4cc] ss:$16 sps:$4 sm:$0xff]  }
0x18ca   :  { %12342 = vmatpush1.bf16.msra.mxu0 %v19722_v54  ;;  %v19786_v54 = vld [vmem:[#allocation27 + $0x4ec] ss:$16 sps:$4 sm:$0xff]  }
0x18cb   :  { %12343 = vmatprep.subr.bf16.mxu0 %v19727_v30  ;;  %v19784_v30 = vld [vmem:[#allocation27 + $0x4e8] ss:$16 sps:$4 sm:$0xff]  }
0x18cd   :  { %11900 = vmatmul.mubr.bf16.gmra.mrb[168].mxu0 %v22382_v18  ;;  %v19739_v18 = vld [vmem:[#allocation27 + $0x500] ss:$16 sps:$4 sm:$0xff]  }
0x18ce   :  { %12344 = vmatpush1.bf16.msra.mxu0 %v19725_v42  ;;  %12367 = vmatprep.mubr.bf16.mxu0 %v22407_v55  ;;  %v19792_v42 = vld [vmem:[#allocation27 + $0x52c] ss:$16 sps:$4 sm:$0xff]  }
0x18cf   :  { %12345 = vmatprep.subr.bf16.mxu0 %v19732_v27  ;;  %v19790_v27 = vld [vmem:[#allocation27 + $0x528] ss:$16 sps:$4 sm:$0xff]  }
0x18d2   :  { %12346 = vmatpush1.bf16.msra.mxu0 %v19730_v2  ;;  %v19795_v2 = vld [vmem:[#allocation27 + $0x54c] ss:$16 sps:$4 sm:$0xff]  }
0x18d3   :  { %12347 = vmatprep.subr.bf16.mxu0 %v19735_v3 }
0x18d6   :  { %12348 = vmatpush1.bf16.msra.mxu0 %v19733_v29 }
0x18d7   :  { %12349 = vmatprep.subr.bf16.mxu0 %v19738_v60 }
0x18da   :  { %12350 = vmatpush1.bf16.msra.mxu0 %v19736_v19 }
0x18db   :  { %12351 = vmatprep.subr.bf16.mxu0 %v19741_v22  ;;  %v19793_v22 = vld [vmem:[#allocation27 + $0x548] ss:$16 sps:$4 sm:$0xff]  }
0x18de   :  { %12352 = vmatpush1.bf16.msra.mxu0 %v19739_v18 }
0x18df   :  { %12353 = vmatprep.subr.bf16.mxu0 %v19744_v31  ;;  %v19798_v31 = vld [vmem:[#allocation27 + $0x56c] ss:$16 sps:$4 sm:$0xff]  }
0x18e0   :  { %v11255_v21 = vpop.f32.mrb[156].mxu0 }
0x18e1   :  { %v22411_v57 = vadd.f32 %v11255_v21, %v22329_v62  ;;  %v11257_v24 = vpop.f32.mrb[157].mxu0  ;;  %v19754_v62 = vld [vmem:[#allocation27 + $0x5a0] ss:$16 sps:$4 sm:$0xff]   ;;  %v19799_v21 = vld [vmem:[#allocation27 + $0x588] ss:$16 sps:$4 sm:$0xff]  }
0x18e2   :  { %v22414_v9 = vadd.f32 %v11257_v24, %v22332_v15  ;;  %v11259_v51 = vpop.f32.mrb[158].mxu0  ;;  %12354 = vmatpush1.bf16.msra.mxu0 %v19742_v63  ;;  %v19757_v15 = vld [vmem:[#allocation27 + $0x5c0] ss:$16 sps:$4 sm:$0xff]   ;;  %v19796_v63 = vld [vmem:[#allocation27 + $0x568] ss:$16 sps:$4 sm:$0xff]  }
0x18e3   :  { %v11260_v37 = vpop.f32.mrb[159].mxu0  ;;  %12355 = vmatprep.subr.bf16.mxu0 %v19747_v12  ;;  %v19801_v12 = vld [vmem:[#allocation27 + $0x58c] ss:$16 sps:$4 sm:$0xff]   ;;  %v19802_v51 = vld [vmem:[#allocation27 + $0x5a8] ss:$16 sps:$4 sm:$0xff]  }
0x18e4   :  { %v19804_v24 = vld [vmem:[#allocation27 + $0x5ac] ss:$16 sps:$4 sm:$0xff]   ;;  %v19808_v37 = vld [vmem:[#allocation27 + $0x5e8] ss:$16 sps:$4 sm:$0xff]  }
0x18e6   :  { %12356 = vmatpush1.bf16.msra.mxu0 %v19745_v40  ;;  %v19810_v40 = vld [vmem:[#allocation27 + $0x5ec] ss:$16 sps:$4 sm:$0xff]  }
0x18e7   :  { %12357 = vmatprep.subr.bf16.mxu0 %v19750_v43 }
0x18ea   :  { %12358 = vmatpush1.bf16.msra.mxu0 %v19748_v61 }
0x18eb   :  { %12359 = vmatprep.subr.bf16.mxu0 %v19753_v28 }
0x18ee   :  { %12360 = vmatpush1.bf16.msra.mxu0 %v19751_v13 }
0x18ef   :  { %12361 = vmatprep.subr.bf16.mxu0 %v19756_v14 }
0x18f2   :  { %12362 = vmatpush1.bf16.msra.mxu0 %v19754_v62 }
0x18f3   :  { %12363 = vmatprep.subr.bf16.mxu0 %v19759_v16 }
0x18f6   :  { %12364 = vmatpush1.bf16.msra.mxu0 %v19757_v15 }
0x18f7   :  { %12365 = vmatprep.subr.bf16.mxu0 %v19762_v23 }
0x18fa   :  { %12366 = vmatpush1.bf16.msra.mxu0 %v19760_v7 }
0x18fb   :  { %12396 = vmatprep.subr.bf16.mxu0 %v19765_v8 }
0x18fd   :  { %12368 = vmatmul.mubr.bf16.vlgmr.msra.gmra.mrb[92].mxu0 %v22423_v35 }
0x18fe   :  { %12377 = vmatprep.mubr.bf16.mxu0 %v22430_v36  ;;  %12397 = vmatpush1.bf16.msra.mxu0 %v19763_v25 }
0x18ff   :  { %12398 = vmatprep.subr.bf16.mxu0 %v19768_v58 }
0x1902   :  { %12399 = vmatpush1.bf16.msra.mxu0 %v19766_v49 }
0x1903   :  { %12400 = vmatprep.subr.bf16.mxu0 %v19771_v11 }
0x1905   :  { %12378 = vmatmul.mubr.bf16.gmra.mrb[96].mxu0 %v22438_v10 }
0x1906   :  { %12387 = vmatprep.mubr.bf16.mxu0 %v22420_v6  ;;  %12401 = vmatpush1.bf16.msra.mxu0 %v19769_v56 }
0x1907   :  { %12402 = vmatprep.subr.bf16.mxu0 %v19774_v32 }
0x190a   :  { %12403 = vmatpush1.bf16.msra.mxu0 %v19772_v38 }
0x190b   :  { %12404 = vmatprep.subr.bf16.mxu0 %v19777_v59 }
0x190d   :  { %12388 = vmatmul.mubr.bf16.gmra.mrb[172].mxu0 %v22434_v20 }
0x190e   :  { %12405 = vmatpush1.bf16.msra.mxu0 %v19775_v39  ;;  %12428 = vmatprep.mubr.bf16.mxu0 %v22407_v55 }
0x190f   :  { %12406 = vmatprep.subr.bf16.mxu0 %v19780_v34 }
0x1912   :  { %12407 = vmatpush1.bf16.msra.mxu0 %v19778_v41 }
0x1913   :  { %12408 = vmatprep.subr.bf16.mxu0 %v19783_v5 }
0x1916   :  { %12409 = vmatpush1.bf16.msra.mxu0 %v19781_v52 }
0x1917   :  { %12410 = vmatprep.subr.bf16.mxu0 %v19786_v54 }
0x191a   :  { %12411 = vmatpush1.bf16.msra.mxu0 %v19784_v30 }
0x191b   :  { %12412 = vmatprep.subr.bf16.mxu0 %v19789_v47 }
0x191e   :  { %12413 = vmatpush1.bf16.msra.mxu0 %v19787_v46 }
0x191f   :  { %12414 = vmatprep.subr.bf16.mxu0 %v19792_v42 }
0x1920   :  { %v11316_v55 = vpop.f32.mrb[160].mxu0 }
0x1921   :  { %v11341_v3 = vadd.f32 %v11316_v55, %v22389_v17  ;;  %v11318_v29 = vpop.f32.mrb[161].mxu0  ;;  %v19807_v17 = vld [vmem:[#allocation27 + $0x5cc] ss:$16 sps:$4 sm:$0xff]  }
0x1922   :  { %v11342_v60 = vadd.f32 %v11318_v29, %v22392_v26  ;;  %v11320_v19 = vpop.f32.mrb[162].mxu0  ;;  %12415 = vmatpush1.bf16.msra.mxu0 %v19790_v27  ;;  %v19805_v26 = vld [vmem:[#allocation27 + $0x5c8] ss:$16 sps:$4 sm:$0xff]  }
0x1923   :  { %v11321_v18 = vpop.f32.mrb[163].mxu0  ;;  %12416 = vmatprep.subr.bf16.mxu0 %v19795_v2 }
0x1926   :  { %12417 = vmatpush1.bf16.msra.mxu0 %v19793_v22 }
0x1927   :  { %12418 = vmatprep.subr.bf16.mxu0 %v19798_v31 }
0x192a   :  { %12419 = vmatpush1.bf16.msra.mxu0 %v19796_v63 }
0x192b   :  { %12420 = vmatprep.subr.bf16.mxu0 %v19801_v12 }
0x192e   :  { %12421 = vmatpush1.bf16.msra.mxu0 %v19799_v21 }
0x192f   :  { %12422 = vmatprep.subr.bf16.mxu0 %v19804_v24 }
0x1932   :  { %12423 = vmatpush1.bf16.msra.mxu0 %v19802_v51 }
0x1933   :  { %12424 = vmatprep.subr.bf16.mxu0 %v19807_v17 }
0x1936   :  { %12425 = vmatpush1.bf16.msra.mxu0 %v19805_v26 }
0x1937   :  { %12426 = vmatprep.subr.bf16.mxu0 %v19810_v40 }
0x193a   :  { %12427 = vmatpush1.bf16.msra.mxu0 %v19808_v37 }
0x193d   :  { %12429 = vmatmul.mubr.bf16.vlgmr.msra.gmra.mrb[108].mxu0 %v22423_v35 }
0x193e   :  { %12438 = vmatprep.mubr.bf16.mxu0 %v22430_v36 }
0x1945   :  { %12439 = vmatmul.mubr.bf16.gmra.mrb[112].mxu0 %v22438_v10 }
0x1946   :  { %12448 = vmatprep.mubr.bf16.mxu0 %v22420_v6 }
0x194d   :  { %12449 = vmatmul.mubr.bf16.gmra.mrb[176].mxu0 %v22434_v20 }
0x1960   :  { %v11840_v43 = vpop.f32.mrb[164].mxu0 }
0x1961   :  { %v11924_v61 = vadd.f32 %v11840_v43, %v22411_v57  ;;  %v11842_v28 = vpop.f32.mrb[165].mxu0  ;;  %v12486_v57 = vrot.slane %v22457_v33, %v21638_v53 }
0x1962   :  { %v11925_v13 = vadd.f32 %v11842_v28, %v22414_v9  ;;  %v11844_v14 = vpop.f32.mrb[166].mxu0 }
0x1963   :  { %v11845_v62 = vpop.f32.mrb[167].mxu0 }
0x19a0   :  { %v11901_v16 = vpop.f32.mrb[168].mxu0 }
0x19a1   :  { %v22453_v15 = vadd.f32 %v11901_v16, %v11341_v3  ;;  %v11903_v23 = vpop.f32.mrb[169].mxu0 }
0x19a2   :  { %v22455_v4 = vadd.f32 %v11903_v23, %v11342_v60  ;;  %v11905_v7 = vpop.f32.mrb[170].mxu0 }
0x19a3   :  { %v11906_v8 = vpop.f32.mrb[171].mxu0 }
0x19d0   :  { %v12369_v6 = vpop.f32.mrb[92].mxu0 }
0x19d1   :  { %v12499_v9 = vadd.f32 %v12482_v1, %v12369_v6  ;;  %v12371_v25 = vpop.f32.mrb[93].mxu0  ;;  %v12494_v6 = vrot.slane %v22457_v33, %v7206_v48 }
0x19d2   :  { %v12500_v58 = vadd.f32 %v12486_v57, %v12371_v25  ;;  %v12373_v35 = vpop.f32.mrb[94].mxu0 }
0x19d3   :  { %v12539_v36 = vmul.f32 0.2, %v12499_v9  ;;  %v12503_v49 = vadd.f32 %v12482_v1, %v12373_v35  ;;  %v12375_v11 = vpop.f32.mrb[95].mxu0  ;;  %vm12519_vm8 = vcmp.gt.f32.partialorder %v12499_v9, 0.0 }
0x19d4   :  { %v12540_v20 = vmul.f32 0.2, %v12500_v58  ;;  %v12504_v56 = vadd.f32 %v12486_v57, %v12375_v11  ;;  %vm12520_vm3 = vcmp.gt.f32.partialorder %v12500_v58, 0.0 }
0x19d5   :  { %vm12523_vm6 = vcmp.gt.f32.partialorder %v12503_v49, 0.0  ;;  %v12543_v32 = vmul.f32 0.2, %v12503_v49  ;;  %v12559_v38 = vsel %vm12519_vm8, %v12499_v9, %v12539_v36 }
0x19d6   :  { %vm12524_vm7 = vcmp.gt.f32.partialorder %v12504_v56, 0.0  ;;  %v12544_v10 = vmul.f32 0.2, %v12504_v56  ;;  %v12560_v41 = vsel %vm12520_vm3, %v12500_v58, %v12540_v20 }
0x19d7   :  { %v12563_v59 = vsel %vm12523_vm6, %v12503_v49, %v12543_v32 }
0x19d8   :  { %v12579_v39 = vpack.c.bf16 %v12563_v59, %v12559_v38  ;;  %v12379_v34 = vpop.f32.mrb[96].mxu0  ;;  %v12564_v5 = vsel %vm12524_vm7, %v12504_v56, %v12544_v10 }
0x19d9   :  { %v12507_v52 = vadd.f32 %v12482_v1, %v12379_v34  ;;  %v12381_v54 = vpop.f32.mrb[97].mxu0  ;;  %v12580_v30 = vpack.c.bf16 %v12564_v5, %v12560_v41 }
0x19da   :  { %v12508_v47 = vadd.f32 %v12486_v57, %v12381_v54  ;;  %v12383_v46 = vpop.f32.mrb[98].mxu0 }
0x19db   :  { %v12547_v42 = vmul.f32 0.2, %v12507_v52  ;;  %v12511_v27 = vadd.f32 %v12482_v1, %v12383_v46  ;;  %v12385_v2 = vpop.f32.mrb[99].mxu0  ;;  %12630 = vmatprep.subr.bf16.mxu1 %v12580_v30  ;;  %vm12527_vm9 = vcmp.gt.f32.partialorder %v12507_v52, 0.0 }
0x19dc   :  { %v12548_v55 = vmul.f32 0.2, %v12508_v47  ;;  %v12512_v3 = vadd.f32 %v12486_v57, %v12385_v2  ;;  %12631 = vmatpush1.bf16.msra.mxu1 %v12579_v39  ;;  %vm12528_vm10 = vcmp.gt.f32.partialorder %v12508_v47, 0.0 }
0x19dd   :  { %vm12531_vm11 = vcmp.gt.f32.partialorder %v12511_v27, 0.0  ;;  %v12551_v29 = vmul.f32 0.2, %v12511_v27  ;;  %v12567_v19 = vsel %vm12527_vm9, %v12507_v52, %v12547_v42 }
0x19de   :  { %vm12532_vm12 = vcmp.gt.f32.partialorder %v12512_v3, 0.0  ;;  %v12552_v60 = vmul.f32 0.2, %v12512_v3  ;;  %v12568_v63 = vsel %vm12528_vm10, %v12508_v47, %v12548_v55 }
0x19df   :  { %v12571_v22 = vsel %vm12531_vm11, %v12511_v27, %v12551_v29 }
0x19e0   :  { %v12583_v18 = vpack.c.bf16 %v12571_v22, %v12567_v19  ;;  %v12389_v31 = vpop.f32.mrb[172].mxu0  ;;  %v12572_v12 = vsel %vm12532_vm12, %v12512_v3, %v12552_v60 }
0x19e1   :  { %v12473_v21 = vadd.f32 %v12389_v31, %v11924_v61  ;;  %v12391_v24 = vpop.f32.mrb[173].mxu0  ;;  %v12584_v51 = vpack.c.bf16 %v12572_v12, %v12568_v63  ;;  %v22465_v61 = vld [vmem:[#allocation45] sm:$0xff]  }
0x19e2   :  { %v12474_v17 = vadd.f32 %v12391_v24, %v11925_v13  ;;  %v12393_v26 = vpop.f32.mrb[174].mxu0  ;;  %v22470_v13 = vld [vmem:[#allocation45 + $0x8] sm:$0xff]  }
0x19e3   :  { %v12515_v40 = vadd.f32 %v12482_v1, %v12473_v21  ;;  %v12394_v37 = vpop.f32.mrb[175].mxu0  ;;  %12632 = vmatprep.subr.bf16.mxu1 %v12584_v51  ;;  %v22475_v1 = vld [vmem:[#allocation45 + $0x10] ss:$0 sps:$4 sm:$0x33]  }
0x19e4   :  { %v12516_v43 = vadd.f32 %v12486_v57, %v12474_v17  ;;  %12633 = vmatpush1.bf16.msra.mxu1 %v12583_v18  ;;  %v12490_v57 = vrot.slane %v22457_v33, %v7202_v44 }
0x19e5   :  { %vm12535_vm15 = vcmp.gt.f32.partialorder %v12515_v40, 0.0  ;;  %v12555_v28 = vmul.f32 0.2, %v12515_v40 }
0x19e6   :  { %vm12536_vm4 = vcmp.gt.f32.partialorder %v12516_v43, 0.0  ;;  %v12556_v14 = vmul.f32 0.2, %v12516_v43 }
0x19e7   :  { %v12575_v62 = vsel %vm12535_vm15, %v12515_v40, %v12555_v28 }
0x19e8   :  { %v12576_v16 = vsel %vm12536_vm4, %v12516_v43, %v12556_v14  ;;  %v12587_v23 = vpack.c.bf16 %v12575_v62, %v12575_v62 }
0x19e9   :  { %v12588_v7 = vpack.c.bf16 %v12576_v16, %v12576_v16  ;;  %v19816_v16 = vld [vmem:[#allocation29 + $0x204] ss:$8 sps:$4 sm:$0xff]  }
0x19ea   :  { %v12619_v8 = vsel %vm1049_vm13, %v12587_v23, 0  ;;  %v19819_v23 = vld [vmem:[#allocation29 + $0x214] ss:$8 sps:$4 sm:$0xff]  }
0x19eb   :  { %17090 = vmatprep.subr.msk.bf16.mxu1 %vm1049_vm13, %v12588_v7  ;;  %v19817_v7 = vld [vmem:[#allocation29 + $0x210] ss:$8 sps:$4 sm:$0xff]  }
0x19ec   :  { %12635 = vmatpush1.bf16.msra.mxu1 %v12619_v8  ;;  %v19822_v8 = vld [vmem:[#allocation29 + $0x224] ss:$8 sps:$4 sm:$0xff]  }
0x19ef   :  { %17091 = vmatmul.mubr.msk.bf16.vlgmr.msra.gmra.mrb[124].mxu1 %vm1039_vm14, %v22465_v61 }
0x19f0   :  { %12672 = vmatprep.mubr.bf16.mxu1 %v21194_v0 }
0x19f7   :  { %17092 = vmatmul.mubr.msk.bf16.gmra.mrb[128].mxu1 %vm1039_vm14, %v22470_v13 }
0x19f8   :  { %12682 = vmatprep.mubr.bf16.mxu1 %v21194_v0 }
0x19ff   :  { %17093 = vmatmul.mubr.msk.bf16.gmra.mrb[132].mxu1 %vm1039_vm14, %v22475_v1 }
0x1a00   :  { %12723 = vmatprep.mubr.bf16.mxu1 %v21194_v0 }
0x1a10   :  { %v12430_v9 = vpop.f32.mrb[108].mxu0 }
0x1a11   :  { %v12501_v25 = vadd.f32 %v12490_v57, %v12430_v9  ;;  %v12432_v58 = vpop.f32.mrb[109].mxu0  ;;  %v19823_v9 = vld [vmem:[#allocation29 + $0x230] ss:$8 sps:$4 sm:$0xff]  }
0x1a12   :  { %v12502_v35 = vadd.f32 %v12494_v6, %v12432_v58  ;;  %v12434_v36 = vpop.f32.mrb[110].mxu0  ;;  %v19831_v58 = vld [vmem:[#allocation29 + $0x254] ss:$8 sps:$4 sm:$0xff]  }
0x1a13   :  { %v12541_v49 = vmul.f32 0.2, %v12501_v25  ;;  %v12505_v11 = vadd.f32 %v12490_v57, %v12434_v36  ;;  %v12436_v20 = vpop.f32.mrb[111].mxu0  ;;  %vm12521_vm5 = vcmp.gt.f32.partialorder %v12501_v25, 0.0  ;;  %v19834_v36 = vld [vmem:[#allocation29 + $0x264] ss:$8 sps:$4 sm:$0xff]  }
0x1a14   :  { %v12542_v56 = vmul.f32 0.2, %v12502_v35  ;;  %v12506_v32 = vadd.f32 %v12494_v6, %v12436_v20  ;;  %vm12522_vm1 = vcmp.gt.f32.partialorder %v12502_v35, 0.0  ;;  %v19840_v20 = vld [vmem:[#allocation29 + $0x284] ss:$8 sps:$4 sm:$0xff]  }
0x1a15   :  { %vm12525_vm8 = vcmp.gt.f32.partialorder %v12505_v11, 0.0  ;;  %v12545_v10 = vmul.f32 0.2, %v12505_v11  ;;  %v12561_v38 = vsel %vm12521_vm5, %v12501_v25, %v12541_v49  ;;  %v19828_v25 = vld [vmem:[#allocation29 + $0x244] ss:$8 sps:$4 sm:$0xff]  }
0x1a16   :  { %vm12526_vm3 = vcmp.gt.f32.partialorder %v12506_v32, 0.0  ;;  %v12546_v44 = vmul.f32 0.2, %v12506_v32  ;;  %v12562_v33 = vsel %vm12522_vm1, %v12502_v35, %v12542_v56  ;;  %v19829_v35 = vld [vmem:[#allocation29 + $0x250] ss:$8 sps:$4 sm:$0xff]  }
0x1a17   :  { %v12565_v45 = vsel %vm12525_vm8, %v12505_v11, %v12545_v10  ;;  %v19832_v49 = vld [vmem:[#allocation29 + $0x260] ss:$8 sps:$4 sm:$0xff]   ;;  %v19835_v11 = vld [vmem:[#allocation29 + $0x270] ss:$8 sps:$4 sm:$0xff]  }
0x1a18   :  { %v12581_v59 = vpack.c.bf16 %v12565_v45, %v12561_v38  ;;  %v12440_v48 = vpop.f32.mrb[112].mxu0  ;;  %v12566_v39 = vsel %vm12526_vm3, %v12506_v32, %v12546_v44  ;;  %v19838_v56 = vld [vmem:[#allocation29 + $0x280] ss:$8 sps:$4 sm:$0xff]   ;;  %v19843_v32 = vld [vmem:[#allocation29 + $0x294] ss:$8 sps:$4 sm:$0xff]  }
0x1a19   :  { %v12509_v34 = vadd.f32 %v12490_v57, %v12440_v48  ;;  %v12442_v41 = vpop.f32.mrb[113].mxu0  ;;  %v12582_v5 = vpack.c.bf16 %v12566_v39, %v12562_v33  ;;  %v19841_v10 = vld [vmem:[#allocation29 + $0x290] ss:$8 sps:$4 sm:$0xff]   ;;  %v19844_v44 = vld [vmem:[#allocation29 + $0x2a0] ss:$8 sps:$4 sm:$0xff]  }
0x1a1a   :  { %v12510_v52 = vadd.f32 %v12494_v6, %v12442_v41  ;;  %v12444_v54 = vpop.f32.mrb[114].mxu0  ;;  %v19849_v38 = vld [vmem:[#allocation29 + $0x2b4] ss:$8 sps:$4 sm:$0xff]   ;;  %v19847_v45 = vld [vmem:[#allocation29 + $0x2b0] ss:$8 sps:$4 sm:$0xff]  }
0x1a1b   :  { %v12549_v30 = vmul.f32 0.2, %v12509_v34  ;;  %v12513_v47 = vadd.f32 %v12490_v57, %v12444_v54  ;;  %v12446_v46 = vpop.f32.mrb[115].mxu0  ;;  %12691 = vmatprep.subr.bf16.mxu1 %v12582_v5  ;;  %vm12529_vm6 = vcmp.gt.f32.partialorder %v12509_v34, 0.0  ;;  %v19850_v48 = vld [vmem:[#allocation29 + $0x2c0] ss:$8 sps:$4 sm:$0xff]  }
0x1a1c   :  { %v12550_v42 = vmul.f32 0.2, %v12510_v52  ;;  %v12514_v27 = vadd.f32 %v12494_v6, %v12446_v46  ;;  %12692 = vmatpush1.bf16.msra.mxu1 %v12581_v59  ;;  %vm12530_vm7 = vcmp.gt.f32.partialorder %v12510_v52, 0.0  ;;  %v19852_v59 = vld [vmem:[#allocation29 + $0x2c4] ss:$8 sps:$4 sm:$0xff]  }
0x1a1d   :  { %vm12533_vm9 = vcmp.gt.f32.partialorder %v12513_v47, 0.0  ;;  %v12553_v2 = vmul.f32 0.2, %v12513_v47  ;;  %v12569_v3 = vsel %vm12529_vm6, %v12509_v34, %v12549_v30  ;;  %v19855_v33 = vld [vmem:[#allocation29 + $0x2d4] ss:$8 sps:$4 sm:$0xff]  }
0x1a1e   :  { %vm12534_vm10 = vcmp.gt.f32.partialorder %v12514_v27, 0.0  ;;  %v12554_v55 = vmul.f32 0.2, %v12514_v27  ;;  %v12570_v22 = vsel %vm12530_vm7, %v12510_v52, %v12550_v42  ;;  %v19853_v39 = vld [vmem:[#allocation29 + $0x2d0] ss:$8 sps:$4 sm:$0xff]  }
0x1a1f   :  { %v12573_v29 = vsel %vm12533_vm9, %v12513_v47, %v12553_v2  ;;  %v19858_v34 = vld [vmem:[#allocation29 + $0x2e4] ss:$8 sps:$4 sm:$0xff]   ;;  %v19856_v41 = vld [vmem:[#allocation29 + $0x2e0] ss:$8 sps:$4 sm:$0xff]   ;;  %v19861_v5 = vld [vmem:[#allocation29 + $0x2f4] ss:$8 sps:$4 sm:$0xff]  }
0x1a20   :  { %v12585_v60 = vpack.c.bf16 %v12573_v29, %v12569_v3  ;;  %v12450_v19 = vpop.f32.mrb[176].mxu0  ;;  %v12574_v18 = vsel %vm12534_vm10, %v12514_v27, %v12554_v55  ;;  %v19859_v52 = vld [vmem:[#allocation29 + $0x2f0] ss:$8 sps:$4 sm:$0xff]   ;;  %v19864_v54 = vld [vmem:[#allocation29 + $0x304] ss:$8 sps:$4 sm:$0xff]  }
0x1a21   :  { %v12475_v31 = vadd.f32 %v12450_v19, %v22453_v15  ;;  %v12452_v63 = vpop.f32.mrb[177].mxu0  ;;  %v12586_v12 = vpack.c.bf16 %v12574_v18, %v12570_v22 }
0x1a22   :  { %v12476_v21 = vadd.f32 %v12452_v63, %v22455_v4  ;;  %v12454_v24 = vpop.f32.mrb[178].mxu0  ;;  %v19814_v4 = vld [vmem:[#allocation29 + $0x200] ss:$8 sps:$4 sm:$0xff]  }
0x1a23   :  { %v12517_v51 = vadd.f32 %v12490_v57, %v12475_v31  ;;  %v12455_v17 = vpop.f32.mrb[179].mxu0  ;;  %12693 = vmatprep.subr.bf16.mxu1 %v12586_v12  ;;  %v19820_v57 = vld [vmem:[#allocation29 + $0x220] ss:$8 sps:$4 sm:$0xff]  }
0x1a24   :  { %v12518_v26 = vadd.f32 %v12494_v6, %v12476_v21  ;;  %12694 = vmatpush1.bf16.msra.mxu1 %v12585_v60  ;;  %v19825_v6 = vld [vmem:[#allocation29 + $0x234] ss:$8 sps:$4 sm:$0xff]  }
0x1a25   :  { %vm12537_vm11 = vcmp.gt.f32.partialorder %v12517_v51, 0.0  ;;  %v12557_v40 = vmul.f32 0.2, %v12517_v51 }
0x1a26   :  { %vm12538_vm12 = vcmp.gt.f32.partialorder %v12518_v26, 0.0  ;;  %v12558_v37 = vmul.f32 0.2, %v12518_v26 }
0x1a27   :  { %v12577_v43 = vsel %vm12537_vm11, %v12517_v51, %v12557_v40 }
0x1a28   :  { %v12578_v28 = vsel %vm12538_vm12, %v12518_v26, %v12558_v37  ;;  %v12589_v14 = vpack.c.bf16 %v12577_v43, %v12577_v43 }
0x1a29   :  { %v12590_v62 = vpack.c.bf16 %v12578_v28, %v12578_v28 }
0x1a2a   :  { %v12625_v15 = vsel %vm1049_vm13, %v12589_v14, 0 }
0x1a2b   :  { %17094 = vmatprep.subr.msk.bf16.mxu1 %vm1049_vm13, %v12590_v62 }
0x1a2c   :  { %12696 = vmatpush1.bf16.msra.mxu1 %v12625_v15 }
0x1a2d   :  { %13433 = vmatprep.subr.bf16.mxu1 %v19816_v16 }
0x1a2f   :  { %17095 = vmatmul.mubr.msk.bf16.vlgmr.msra.gmra.mrb[136].mxu1 %vm1039_vm14, %v22465_v61  ;;  %v19826_v61 = vld [vmem:[#allocation29 + $0x240] ss:$8 sps:$4 sm:$0xff]  }
0x1a30   :  { %12733 = vmatprep.mubr.bf16.mxu1 %v21194_v0  ;;  %13434 = vmatpush1.bf16.msra.mxu1 %v19814_v4 }
0x1a31   :  { %13435 = vmatprep.subr.bf16.mxu1 %v19819_v23  ;;  %v19862_v23 = vld [vmem:[#allocation29 + $0x300] ss:$8 sps:$4 sm:$0xff]  }
0x1a34   :  { %13436 = vmatpush1.bf16.msra.mxu1 %v19817_v7 }
0x1a35   :  { %13437 = vmatprep.subr.bf16.mxu1 %v19822_v8 }
0x1a37   :  { %17096 = vmatmul.mubr.msk.bf16.gmra.mrb[140].mxu1 %vm1039_vm14, %v22470_v13  ;;  %v19837_v13 = vld [vmem:[#allocation29 + $0x274] ss:$8 sps:$4 sm:$0xff]  }
0x1a38   :  { %12743 = vmatprep.mubr.bf16.mxu1 %v21194_v0  ;;  %13438 = vmatpush1.bf16.msra.mxu1 %v19820_v57 }
0x1a39   :  { %13439 = vmatprep.subr.bf16.mxu1 %v19825_v6  ;;  %v19867_v6 = vld [vmem:[#allocation29 + $0x314] ss:$8 sps:$4 sm:$0xff]  }
0x1a3c   :  { %13440 = vmatpush1.bf16.msra.mxu1 %v19823_v9  ;;  %v19865_v9 = vld [vmem:[#allocation29 + $0x310] ss:$8 sps:$4 sm:$0xff]  }
0x1a3d   :  { %13441 = vmatprep.subr.bf16.mxu1 %v19828_v25  ;;  %v19871_v25 = vld [vmem:[#allocation29 + $0x324] ss:$8 sps:$4 sm:$0xff]  }
0x1a3f   :  { %17097 = vmatmul.mubr.msk.bf16.gmra.mrb[144].mxu1 %vm1039_vm14, %v22475_v1  ;;  %v19846_v1 = vld [vmem:[#allocation29 + $0x2a4] ss:$8 sps:$4 sm:$0xff]  }
0x1a40   :  { %13442 = vmatpush1.bf16.msra.mxu1 %v19826_v61 }
0x1a41   :  { %13443 = vmatprep.subr.bf16.mxu1 %v19831_v58  ;;  %v19869_v58 = vld [vmem:[#allocation29 + $0x320] ss:$8 sps:$4 sm:$0xff]  }
0x1a44   :  { %13444 = vmatpush1.bf16.msra.mxu1 %v19829_v35 }
0x1a45   :  { %13445 = vmatprep.subr.bf16.mxu1 %v19834_v36 }
0x1a48   :  { %13446 = vmatpush1.bf16.msra.mxu1 %v19832_v49  ;;  %v19875_v49 = vld [vmem:[#allocation29 + $0x334] ss:$8 sps:$4 sm:$0xff]  }
0x1a49   :  { %13447 = vmatprep.subr.bf16.mxu1 %v19837_v13 }
0x1a4c   :  { %13448 = vmatpush1.bf16.msra.mxu1 %v19835_v11 }
0x1a4d   :  { %13449 = vmatprep.subr.bf16.mxu1 %v19840_v20 }
0x1a50   :  { %13450 = vmatpush1.bf16.msra.mxu1 %v19838_v56 }
0x1a51   :  { %13451 = vmatprep.subr.bf16.mxu1 %v19843_v32 }
0x1a54   :  { %13452 = vmatpush1.bf16.msra.mxu1 %v19841_v10  ;;  %v19873_v10 = vld [vmem:[#allocation29 + $0x330] ss:$8 sps:$4 sm:$0xff]  }
0x1a55   :  { %13453 = vmatprep.subr.bf16.mxu1 %v19846_v1 }
0x1a58   :  { %13454 = vmatpush1.bf16.msra.mxu1 %v19844_v44 }
0x1a59   :  { %13455 = vmatprep.subr.bf16.mxu1 %v19849_v38 }
0x1a5c   :  { %13456 = vmatpush1.bf16.msra.mxu1 %v19847_v45 }
0x1a5d   :  { %13457 = vmatprep.subr.bf16.mxu1 %v19852_v59  ;;  %v19878_v59 = vld [vmem:[#allocation29 + $0x344] ss:$8 sps:$4 sm:$0xff]  }
0x1a60   :  { %13458 = vmatpush1.bf16.msra.mxu1 %v19850_v48 }
0x1a61   :  { %13459 = vmatprep.subr.bf16.mxu1 %v19855_v33 }
0x1a64   :  { %13460 = vmatpush1.bf16.msra.mxu1 %v19853_v39 }
0x1a65   :  { %13461 = vmatprep.subr.bf16.mxu1 %v19858_v34  ;;  %v19876_v34 = vld [vmem:[#allocation29 + $0x340] ss:$8 sps:$4 sm:$0xff]  }
0x1a68   :  { %13462 = vmatpush1.bf16.msra.mxu1 %v19856_v41  ;;  %v19881_v41 = vld [vmem:[#allocation29 + $0x354] ss:$8 sps:$4 sm:$0xff]  }
0x1a69   :  { %13463 = vmatprep.subr.bf16.mxu1 %v19861_v5 }
0x1a6c   :  { %13464 = vmatpush1.bf16.msra.mxu1 %v19859_v52  ;;  %v19879_v52 = vld [vmem:[#allocation29 + $0x350] ss:$8 sps:$4 sm:$0xff]  }
0x1a6d   :  { %13494 = vmatprep.subr.bf16.mxu1 %v19864_v54  ;;  %v19884_v54 = vld [vmem:[#allocation29 + $0x364] ss:$8 sps:$4 sm:$0xff]  }
0x1ac2   :  { %v12664_v30 = vpop.f32.mrb[124].mxu1 }
0x1ac3   :  { %v12666_v47 = vpop.f32.mrb[125].mxu1 }
0x1ac4   :  { %v17468_v46 = vpack.c.bf16 %v12666_v47, %v12664_v30  ;;  %v12668_v42 = vpop.f32.mrb[126].mxu1 }
0x1ac5   :  { %v12670_v27 = vpop.f32.mrb[127].mxu1  ;;  %v22500_v55 = vpack.c.bf16 %v12668_v42, %v12664_v30 }
0x1ac6   :  { %12816 = vst [vmem:[#allocation11] sm:$0xff] %v17468_v46  ;;  %v22498_v2 = vpack.c.bf16 %v12670_v27, %v12668_v42  ;;  %v22502_v3 = vpack.c.bf16 %v12670_v27, %v12666_v47  ;;  %v19882_v47 = vld [vmem:[#allocation29 + $0x360] ss:$8 sps:$4 sm:$0xff]   ;;  %v19887_v46 = vld [vmem:[#allocation29 + $0x374] ss:$8 sps:$4 sm:$0xff]  }
0x1ac7   :  { %v13012_v18 = vshll.u32 %v22500_v55, 16  ;;  %v13010_v40 = vshrl.u32 %v22500_v55, 16  ;;  %v19885_v42 = vld [vmem:[#allocation29 + $0x370] ss:$8 sps:$4 sm:$0xff]   ;;  %v19890_v27 = vld [vmem:[#allocation29 + $0x384] ss:$8 sps:$4 sm:$0xff]  }
0x1ac8   :  { %v13024_v19 = vshll.u32 %v22502_v3, 16  ;;  %v13022_v51 = vshrl.u32 %v22502_v3, 16 }
0x1ac9   :  { %v13014_v24 = vrot.slane %v13012_v18, 1  ;;  %v19894_v18 = vld [vmem:[#allocation29 + $0x3a0] ss:$8 sps:$4 sm:$0xff]  }
0x1aca   :  { %v12674_v29 = vpop.f32.mrb[128].mxu1  ;;  %v13026_v63 = vrot.slane %v13024_v19, 1  ;;  %v19891_v19 = vld [vmem:[#allocation29 + $0x390] ss:$8 sps:$4 sm:$0xff]  }
0x1acb   :  { %v12676_v60 = vpop.f32.mrb[129].mxu1  ;;  %v13015_v16 = vor.u32 %v13014_v24, %v13010_v40 }
0x1acc   :  { %v12678_v22 = vpop.f32.mrb[130].mxu1  ;;  %v13027_v28 = vor.u32 %v13026_v63, %v13022_v51  ;;  %v19897_v63 = vld [vmem:[#allocation29 + $0x3b0] ss:$8 sps:$4 sm:$0xff]   ;;  %v19902_v51 = vld [vmem:[#allocation29 + $0x3c4] ss:$8 sps:$4 sm:$0xff]  }
0x1acd   :  { %v12680_v31 = vpop.f32.mrb[131].mxu1  ;;  %v22506_v12 = vpack.c.bf16 %v12678_v22, %v12674_v29  ;;  %v19888_v29 = vld [vmem:[#allocation29 + $0x380] ss:$8 sps:$4 sm:$0xff]   ;;  %v19896_v22 = vld [vmem:[#allocation29 + $0x3a4] ss:$8 sps:$4 sm:$0xff]  }
0x1ace   :  { %v22508_v21 = vpack.c.bf16 %v12680_v31, %v12676_v60  ;;  %v19893_v60 = vld [vmem:[#allocation29 + $0x394] ss:$8 sps:$4 sm:$0xff]  }
0x1acf   :  { %v13017_v37 = vshll.u32 %v22506_v12, 16  ;;  %v13057_v20 = vshrl.u32 %v22506_v12, 16  ;;  %v19899_v31 = vld [vmem:[#allocation29 + $0x3b4] ss:$8 sps:$4 sm:$0xff]  }
0x1ad0   :  { %v13029_v26 = vshll.u32 %v22508_v21, 16  ;;  %v13065_v13 = vshrl.u32 %v22508_v21, 16 }
0x1ad1   :  { %v13019_v15 = vrot.slane %v13017_v37, 1 }
0x1ad2   :  { %v12684_v17 = vpop.f32.mrb[132].mxu1  ;;  %v13031_v62 = vrot.slane %v13029_v26, 1 }
0x1ad3   :  { %v12686_v43 = vpop.f32.mrb[133].mxu1  ;;  %v13020_v57 = vsel %vm642_vm0, %v13015_v16, %v13019_v15  ;;  %v13059_v38 = vor.u32 %v13057_v20, %v13019_v15  ;;  %v19903_v15 = vld [vmem:[#allocation29 + $0x3d0] ss:$8 sps:$4 sm:$0xff]  }
0x1ad4   :  { %v17476_v14 = vpack.c.bf16 %v12686_v43, %v12684_v17  ;;  %v12688_v4 = vpop.f32.mrb[134].mxu1  ;;  %v13032_v8 = vsel %vm642_vm0, %v13027_v28, %v13031_v62  ;;  %v13067_v1 = vor.u32 %v13065_v13, %v13031_v62  ;;  %v19900_v43 = vld [vmem:[#allocation29 + $0x3c0] ss:$8 sps:$4 sm:$0xff]   ;;  %v19909_v20 = vld [vmem:[#allocation29 + $0x3f0] ss:$8 sps:$4 sm:$0xff]  }
0x1ad5   :  { %v12689_v7 = vpop.f32.mrb[135].mxu1  ;;  %13465 = vmatprep.mubr.bf16.mxu1 %v13032_v8 }
0x1ad6   :  { %12824 = vst [vmem:[#allocation11 + $0x40] sm:$0x33] %v17476_v14  ;;  %13466 = vmatmul.mubr.bf16.vlgmr.msra.gmra.mrb[148].mxu1 %v13020_v57  ;;  %v19905_v14 = vld [vmem:[#allocation29 + $0x3d4] ss:$8 sps:$4 sm:$0xff]  }
0x1ad7   :  { %13495 = vmatpush1.bf16.msra.mxu1 %v19862_v23  ;;  %v19908_v23 = vld [vmem:[#allocation29 + $0x3e4] ss:$8 sps:$4 sm:$0xff]  }
0x1ad8   :  { %13496 = vmatprep.subr.bf16.mxu1 %v19867_v6 }
0x1adb   :  { %13497 = vmatpush1.bf16.msra.mxu1 %v19865_v9 }
0x1adc   :  { %13498 = vmatprep.subr.bf16.mxu1 %v19871_v25  ;;  %v19906_v25 = vld [vmem:[#allocation29 + $0x3e0] ss:$8 sps:$4 sm:$0xff]  }
0x1add   :  { %v12900_v61 = vld [vmem:[#allocation11 + $0x40] sm:$0x33] }
0x1ade   :  { %v22516_v35 = vcombine.high %v12900_v61, %v12900_v61  ;;  %v22518_v36 = vcombine.low %v12900_v61, %v12900_v61  ;;  %v19911_v61 = vld [vmem:[#allocation29 + $0x3f4] ss:$8 sps:$4 sm:$0xff]  }
0x1adf   :  { %13499 = vmatpush1.bf16.msra.mxu1 %v19869_v58 }
0x1ae0   :  { %v13069_v11 = vshll.u32 %v22516_v35, 16  ;;  %v13061_v56 = vshll.u32 %v22518_v36, 16  ;;  %v13092_v32 = vshrl.u32 %v22516_v35, 16  ;;  %13500 = vmatprep.subr.bf16.mxu1 %v19875_v49  ;;  %v13089_v5 = vshrl.u32 %v22518_v36, 16 }
0x1ae2   :  { %v13071_v44 = vrot.slane %v13069_v11, 1  ;;  %v13063_v45 = vrot.slane %v13061_v56, 1 }
0x1ae3   :  { %13501 = vmatpush1.bf16.msra.mxu1 %v19873_v10 }
0x1ae4   :  { %v13072_v48 = vsel %vm642_vm0, %v13067_v1, %v13071_v44  ;;  %v13064_v33 = vsel %vm642_vm0, %v13059_v38, %v13063_v45  ;;  %v13094_v39 = vor.u32 %v13092_v32, %v13071_v44  ;;  %13502 = vmatprep.subr.bf16.mxu1 %v19878_v59  ;;  %v13091_v30 = vor.u32 %v13089_v5, %v13063_v45  ;;  %v19914_v1 = vld [vmem:[#allocation29 + $0x4] ss:$8 sps:$4 sm:$0xff]   ;;  %v19912_v5 = vld [vmem:[#allocation29] ss:$8 sps:$4 sm:$0xff]  }
0x1ae5   :  { %13475 = vmatprep.mubr.bf16.mxu1 %v13072_v48 }
0x1ae6   :  { %13476 = vmatmul.mubr.bf16.gmra.mrb[152].mxu1 %v13064_v33 }
0x1ae7   :  { %13485 = vmatprep.mubr.bf16.mxu1 %v13094_v39  ;;  %13503 = vmatpush1.bf16.msra.mxu1 %v19876_v34 }
0x1ae8   :  { %13504 = vmatprep.subr.bf16.mxu1 %v19881_v41 }
0x1aeb   :  { %13505 = vmatpush1.bf16.msra.mxu1 %v19879_v52 }
0x1aec   :  { %13506 = vmatprep.subr.bf16.mxu1 %v19884_v54 }
0x1aee   :  { %13486 = vmatmul.mubr.bf16.gmra.mrb[156].mxu1 %v13091_v30 }
0x1aef   :  { %13507 = vmatpush1.bf16.msra.mxu1 %v19882_v47  ;;  %v19917_v47 = vld [vmem:[#allocation29 + $0x14] ss:$8 sps:$4 sm:$0xff]  }
0x1af0   :  { %13508 = vmatprep.subr.bf16.mxu1 %v19887_v46  ;;  %v19915_v46 = vld [vmem:[#allocation29 + $0x10] ss:$8 sps:$4 sm:$0xff]  }
0x1af3   :  { %13509 = vmatpush1.bf16.msra.mxu1 %v19885_v42  ;;  %v19921_v42 = vld [vmem:[#allocation29 + $0x24] ss:$8 sps:$4 sm:$0xff]  }
0x1af4   :  { %13510 = vmatprep.subr.bf16.mxu1 %v19890_v27 }
0x1af7   :  { %13511 = vmatpush1.bf16.msra.mxu1 %v19888_v29  ;;  %v19919_v29 = vld [vmem:[#allocation29 + $0x20] ss:$8 sps:$4 sm:$0xff]  }
0x1af8   :  { %13512 = vmatprep.subr.bf16.mxu1 %v19893_v60 }
0x1afb   :  { %13513 = vmatpush1.bf16.msra.mxu1 %v19891_v19 }
0x1afc   :  { %13514 = vmatprep.subr.bf16.mxu1 %v19896_v22  ;;  %v19925_v22 = vld [vmem:[#allocation29 + $0x34] ss:$8 sps:$4 sm:$0xff]  }
0x1aff   :  { %13515 = vmatpush1.bf16.msra.mxu1 %v19894_v18 }
0x1b00   :  { %13516 = vmatprep.subr.bf16.mxu1 %v19899_v31 }
0x1b02   :  { %v12725_v24 = vpop.f32.mrb[136].mxu1 }
0x1b03   :  { %v12727_v17 = vpop.f32.mrb[137].mxu1  ;;  %13517 = vmatpush1.bf16.msra.mxu1 %v19897_v63 }
0x1b04   :  { %v17469_v26 = vpack.c.bf16 %v12727_v17, %v12725_v24  ;;  %v12729_v40 = vpop.f32.mrb[138].mxu1  ;;  %13518 = vmatprep.subr.bf16.mxu1 %v19902_v51 }
0x1b05   :  { %v12731_v37 = vpop.f32.mrb[139].mxu1  ;;  %v22530_v62 = vpack.c.bf16 %v12729_v40, %v12725_v24 }
0x1b06   :  { %12817 = vst [vmem:[#allocation11 + $0x8] sm:$0xff] %v17469_v26  ;;  %v22528_v28 = vpack.c.bf16 %v12731_v37, %v12729_v40  ;;  %v22532_v16 = vpack.c.bf16 %v12731_v37, %v12727_v17  ;;  %v19923_v17 = vld [vmem:[#allocation29 + $0x30] ss:$8 sps:$4 sm:$0xff]  }
0x1b07   :  { %13519 = vmatpush1.bf16.msra.mxu1 %v19900_v43  ;;  %v13036_v6 = vshll.u32 %v22530_v62, 16  ;;  %v13034_v44 = vshrl.u32 %v22530_v62, 16 }
0x1b08   :  { %13520 = vmatprep.subr.bf16.mxu1 %v19905_v14  ;;  %v13048_v8 = vshll.u32 %v22532_v16, 16  ;;  %v13046_v56 = vshrl.u32 %v22532_v16, 16  ;;  %v19928_v14 = vld [vmem:[#allocation29 + $0x44] ss:$8 sps:$4 sm:$0xff]  }
0x1b09   :  { %v13038_v11 = vrot.slane %v13036_v6, 1  ;;  %v19929_v6 = vld [vmem:[#allocation29 + $0x50] ss:$8 sps:$4 sm:$0xff]  }
0x1b0a   :  { %v12735_v4 = vpop.f32.mrb[140].mxu1  ;;  %v13050_v58 = vrot.slane %v13048_v8, 1 }
0x1b0b   :  { %v12737_v7 = vpop.f32.mrb[141].mxu1  ;;  %13521 = vmatpush1.bf16.msra.mxu1 %v19903_v15  ;;  %v13039_v39 = vor.u32 %v13038_v11, %v13034_v44  ;;  %v19935_v11 = vld [vmem:[#allocation29 + $0x70] ss:$8 sps:$4 sm:$0xff]   ;;  %v19944_v44 = vld [vmem:[#allocation29 + $0xa0] ss:$8 sps:$4 sm:$0xff]  }
0x1b0c   :  { %v12739_v57 = vpop.f32.mrb[142].mxu1  ;;  %13522 = vmatprep.subr.bf16.mxu1 %v19908_v23  ;;  %v13051_v59 = vor.u32 %v13050_v58, %v13046_v56  ;;  %v19937_v58 = vld [vmem:[#allocation29 + $0x74] ss:$8 sps:$4 sm:$0xff]   ;;  %v19938_v56 = vld [vmem:[#allocation29 + $0x80] ss:$8 sps:$4 sm:$0xff]  }
0x1b0d   :  { %v12741_v9 = vpop.f32.mrb[143].mxu1  ;;  %v22536_v49 = vpack.c.bf16 %v12739_v57, %v12735_v4  ;;  %v19931_v57 = vld [vmem:[#allocation29 + $0x54] ss:$8 sps:$4 sm:$0xff]  }
0x1b0e   :  { %v22538_v13 = vpack.c.bf16 %v12741_v9, %v12737_v7  ;;  %v19926_v7 = vld [vmem:[#allocation29 + $0x40] ss:$8 sps:$4 sm:$0xff]  }
0x1b0f   :  { %13523 = vmatpush1.bf16.msra.mxu1 %v19906_v25  ;;  %v13041_v38 = vshll.u32 %v22536_v49, 16  ;;  %v13073_v63 = vshrl.u32 %v22536_v49, 16  ;;  %v19934_v25 = vld [vmem:[#allocation29 + $0x64] ss:$8 sps:$4 sm:$0xff]  }
0x1b10   :  { %13524 = vmatprep.subr.bf16.mxu1 %v19911_v61  ;;  %v13053_v10 = vshll.u32 %v22538_v13, 16  ;;  %v13081_v18 = vshrl.u32 %v22538_v13, 16  ;;  %v19932_v61 = vld [vmem:[#allocation29 + $0x60] ss:$8 sps:$4 sm:$0xff]  }
0x1b11   :  { %v13043_v34 = vrot.slane %v13041_v38, 1  ;;  %v19949_v38 = vld [vmem:[#allocation29 + $0xb4] ss:$8 sps:$4 sm:$0xff]  }
0x1b12   :  { %v12745_v32 = vpop.f32.mrb[144].mxu1  ;;  %v13055_v33 = vrot.slane %v13053_v10, 1  ;;  %v19941_v10 = vld [vmem:[#allocation29 + $0x90] ss:$8 sps:$4 sm:$0xff]  }
0x1b13   :  { %v12747_v45 = vpop.f32.mrb[145].mxu1  ;;  %13525 = vmatpush1.bf16.msra.mxu1 %v19909_v20  ;;  %v13044_v30 = vsel %vm642_vm0, %v13039_v39, %v13043_v34  ;;  %v13075_v37 = vor.u32 %v13073_v63, %v13043_v34  ;;  %v19940_v20 = vld [vmem:[#allocation29 + $0x84] ss:$8 sps:$4 sm:$0xff]   ;;  %v19956_v34 = vld [vmem:[#allocation29 + $0xe0] ss:$8 sps:$4 sm:$0xff]  }
0x1b14   :  { %v17477_v48 = vpack.c.bf16 %v12747_v45, %v12745_v32  ;;  %v12749_v41 = vpop.f32.mrb[146].mxu1  ;;  %v13056_v54 = vsel %vm642_vm0, %v13051_v59, %v13055_v33  ;;  %13897 = vmatprep.subr.bf16.mxu1 %v19914_v1  ;;  %v13083_v26 = vor.u32 %v13081_v18, %v13055_v33  ;;  %v19943_v32 = vld [vmem:[#allocation29 + $0x94] ss:$8 sps:$4 sm:$0xff]   ;;  %v19946_v1 = vld [vmem:[#allocation29 + $0xa4] ss:$8 sps:$4 sm:$0xff]  }
0x1b15   :  { %v12750_v52 = vpop.f32.mrb[147].mxu1  ;;  %13526 = vmatprep.mubr.bf16.mxu1 %v13056_v54  ;;  %v19947_v45 = vld [vmem:[#allocation29 + $0xb0] ss:$8 sps:$4 sm:$0xff]   ;;  %v19950_v59 = vld [vmem:[#allocation29 + $0xc0] ss:$8 sps:$4 sm:$0xff]  }
0x1b16   :  { %12825 = vst [vmem:[#allocation11 + $0x48] sm:$0x33] %v17477_v48  ;;  %13527 = vmatmul.mubr.bf16.vlgmr.msra.gmra.mrb[148].mxu1 %v13044_v30  ;;  %v19955_v48 = vld [vmem:[#allocation29 + $0xd4] ss:$8 sps:$4 sm:$0xff]   ;;  %v19953_v33 = vld [vmem:[#allocation29 + $0xd0] ss:$8 sps:$4 sm:$0xff]  }
0x1b17   :  { %13898 = vmatpush1.bf16.msra.mxu1 %v19912_v5  ;;  %v19958_v39 = vld [vmem:[#allocation29 + $0xe4] ss:$8 sps:$4 sm:$0xff]   ;;  %v19961_v41 = vld [vmem:[#allocation29 + $0xf4] ss:$8 sps:$4 sm:$0xff]   ;;  %v19959_v5 = vld [vmem:[#allocation29 + $0xf0] ss:$8 sps:$4 sm:$0xff]  }
0x1b18   :  { %13899 = vmatprep.subr.bf16.mxu1 %v19917_v47  ;;  %v19964_v52 = vld [vmem:[#allocation29 + $0x104] ss:$8 sps:$4 sm:$0xff]   ;;  %v19962_v54 = vld [vmem:[#allocation29 + $0x100] ss:$8 sps:$4 sm:$0xff]   ;;  %v19967_v30 = vld [vmem:[#allocation29 + $0x114] ss:$8 sps:$4 sm:$0xff]  }
0x1b19   :  { %v19965_v47 = vld [vmem:[#allocation29 + $0x110] ss:$8 sps:$4 sm:$0xff]  }
0x1b1a   :  { %v19972_v18 = vld [vmem:[#allocation29 + $0x130] ss:$8 sps:$4 sm:$0xff]  }
0x1b1b   :  { %13900 = vmatpush1.bf16.msra.mxu1 %v19915_v46  ;;  %v19970_v46 = vld [vmem:[#allocation29 + $0x124] ss:$8 sps:$4 sm:$0xff]  }
0x1b1c   :  { %13901 = vmatprep.subr.bf16.mxu1 %v19921_v42  ;;  %v12834_v42 = vld [vmem:[#allocation11 + $0x40] sm:$0x11] }
0x1b1d   :  { %v12901_v27 = vld [vmem:[#allocation11 + $0x48] sm:$0x33]  ;;  %v17184_v63 = vcombine.low %v12834_v42, %v12834_v42 }
0x1b1e   :  { %v22546_v60 = vcombine.high %v12901_v27, %v12901_v27  ;;  %v22548_v19 = vcombine.low %v12901_v27, %v12901_v27  ;;  %v19968_v27 = vld [vmem:[#allocation29 + $0x120] ss:$8 sps:$4 sm:$0xff]  }
0x1b1f   :  { %13902 = vmatpush1.bf16.msra.mxu1 %v19919_v29  ;;  %v19974_v29 = vld [vmem:[#allocation29 + $0x134] ss:$8 sps:$4 sm:$0xff]  }
0x1b20   :  { %v13085_v31 = vshll.u32 %v22546_v60, 16  ;;  %v13077_v24 = vshll.u32 %v22548_v19, 16  ;;  %v13098_v51 = vshrl.u32 %v22546_v60, 16  ;;  %13903 = vmatprep.subr.bf16.mxu1 %v19925_v22  ;;  %v13095_v8 = vshrl.u32 %v22548_v19, 16 }
0x1b21   :  { %v17185_v22 = vcombine.high %v12834_v42, %v12834_v42  ;;  %v20032_v42 = vld [vmem:[#allocation29 + $0x460] ss:$8 sps:$4 sm:$0xff]  }
0x1b22   :  { %v13087_v40 = vrot.slane %v13085_v31, 1  ;;  %v13079_v43 = vrot.slane %v13077_v24, 1  ;;  %v19978_v31 = vld [vmem:[#allocation29 + $0x144] ss:$8 sps:$4 sm:$0xff]   ;;  %v19981_v24 = vld [vmem:[#allocation29 + $0x154] ss:$8 sps:$4 sm:$0xff]  }
0x1b23   :  { %13904 = vmatpush1.bf16.msra.mxu1 %v19923_v17  ;;  %v19984_v17 = vld [vmem:[#allocation29 + $0x164] ss:$8 sps:$4 sm:$0xff]  }
0x1b24   :  { %v13088_v15 = vsel %vm642_vm0, %v13083_v26, %v13087_v40  ;;  %v13080_v4 = vsel %vm642_vm0, %v13075_v37, %v13079_v43  ;;  %v13100_v23 = vor.u32 %v13098_v51, %v13087_v40  ;;  %13905 = vmatprep.subr.bf16.mxu1 %v19928_v14  ;;  %v13097_v9 = vor.u32 %v13095_v8, %v13079_v43  ;;  %v19979_v51 = vld [vmem:[#allocation29 + $0x150] ss:$8 sps:$4 sm:$0xff]   ;;  %v19982_v26 = vld [vmem:[#allocation29 + $0x160] ss:$8 sps:$4 sm:$0xff]   ;;  %v19987_v40 = vld [vmem:[#allocation29 + $0x174] ss:$8 sps:$4 sm:$0xff]  }
0x1b25   :  { %13536 = vmatprep.mubr.bf16.mxu1 %v13088_v15  ;;  %v19985_v37 = vld [vmem:[#allocation29 + $0x170] ss:$8 sps:$4 sm:$0xff]   ;;  %v19990_v43 = vld [vmem:[#allocation29 + $0x184] ss:$8 sps:$4 sm:$0xff]   ;;  %v19988_v14 = vld [vmem:[#allocation29 + $0x180] ss:$8 sps:$4 sm:$0xff]  }
0x1b26   :  { %13537 = vmatmul.mubr.bf16.gmra.mrb[152].mxu1 %v13080_v4  ;;  %v19993_v15 = vld [vmem:[#allocation29 + $0x194] ss:$8 sps:$4 sm:$0xff]   ;;  %v19991_v4 = vld [vmem:[#allocation29 + $0x190] ss:$8 sps:$4 sm:$0xff]  }
0x1b27   :  { %13546 = vmatprep.mubr.bf16.mxu1 %v13100_v23  ;;  %13906 = vmatpush1.bf16.msra.mxu1 %v19926_v7  ;;  %v19996_v23 = vld [vmem:[#allocation29 + $0x1a4] ss:$8 sps:$4 sm:$0xff]   ;;  %v19999_v7 = vld [vmem:[#allocation29 + $0x1b4] ss:$8 sps:$4 sm:$0xff]   ;;  %v19997_v8 = vld [vmem:[#allocation29 + $0x1b0] ss:$8 sps:$4 sm:$0xff]  }
0x1b28   :  { %13907 = vmatprep.subr.bf16.mxu1 %v19931_v57  ;;  %v20002_v57 = vld [vmem:[#allocation29 + $0x1c4] ss:$8 sps:$4 sm:$0xff]  }
0x1b2b   :  { %13908 = vmatpush1.bf16.msra.mxu1 %v19929_v6  ;;  %v20000_v6 = vld [vmem:[#allocation29 + $0x1c0] ss:$8 sps:$4 sm:$0xff]  }
0x1b2c   :  { %13909 = vmatprep.subr.bf16.mxu1 %v19934_v25  ;;  %v20003_v25 = vld [vmem:[#allocation29 + $0x1d0] ss:$8 sps:$4 sm:$0xff]  }
0x1b2e   :  { %13547 = vmatmul.mubr.bf16.gmra.mrb[160].mxu1 %v13097_v9  ;;  %v20005_v9 = vld [vmem:[#allocation29 + $0x1d4] ss:$8 sps:$4 sm:$0xff]  }
0x1b2f   :  { %13929 = vmatprep.mubr.bf16.mxu1 %v22502_v3  ;;  %13910 = vmatpush1.bf16.msra.mxu1 %v19932_v61  ;;  %v19952_v3 = vld [vmem:[#allocation29 + $0xc4] ss:$8 sps:$4 sm:$0xff]  }
0x1b30   :  { %13911 = vmatprep.subr.bf16.mxu1 %v19937_v58  ;;  %v20008_v61 = vld [vmem:[#allocation29 + $0x1e4] ss:$8 sps:$4 sm:$0xff]   ;;  %v20006_v58 = vld [vmem:[#allocation29 + $0x1e0] ss:$8 sps:$4 sm:$0xff]  }
0x1b33   :  { %13912 = vmatpush1.bf16.msra.mxu1 %v19935_v11  ;;  %v20011_v11 = vld [vmem:[#allocation29 + $0x1f4] ss:$8 sps:$4 sm:$0xff]  }
0x1b34   :  { %13913 = vmatprep.subr.bf16.mxu1 %v19940_v20  ;;  %v20009_v20 = vld [vmem:[#allocation29 + $0x1f0] ss:$8 sps:$4 sm:$0xff]  }
0x1b37   :  { %13914 = vmatpush1.bf16.msra.mxu1 %v19938_v56  ;;  %v20014_v56 = vld [vmem:[#allocation29 + $0x404] ss:$8 sps:$4 sm:$0xff]  }
0x1b38   :  { %13915 = vmatprep.subr.bf16.mxu1 %v19943_v32  ;;  %v20012_v32 = vld [vmem:[#allocation29 + $0x400] ss:$8 sps:$4 sm:$0xff]  }
0x1b3b   :  { %13916 = vmatpush1.bf16.msra.mxu1 %v19941_v10  ;;  %v20017_v10 = vld [vmem:[#allocation29 + $0x414] ss:$8 sps:$4 sm:$0xff]  }
0x1b3c   :  { %13917 = vmatprep.subr.bf16.mxu1 %v19946_v1  ;;  %v20015_v1 = vld [vmem:[#allocation29 + $0x410] ss:$8 sps:$4 sm:$0xff]  }
0x1b3f   :  { %13918 = vmatpush1.bf16.msra.mxu1 %v19944_v44  ;;  %v20020_v44 = vld [vmem:[#allocation29 + $0x424] ss:$8 sps:$4 sm:$0xff]  }
0x1b40   :  { %13919 = vmatprep.subr.bf16.mxu1 %v19949_v38  ;;  %v12835_v38 = vld [vmem:[#allocation11 + $0x48] sm:$0x11] }
0x1b43   :  { %13920 = vmatpush1.bf16.msra.mxu1 %v19947_v45  ;;  %v20018_v45 = vld [vmem:[#allocation29 + $0x420] ss:$8 sps:$4 sm:$0xff]  }
0x1b44   :  { %13921 = vmatprep.subr.bf16.mxu1 %v19952_v3  ;;  %v20024_v3 = vld [vmem:[#allocation29 + $0x434] ss:$8 sps:$4 sm:$0xff]  }
0x1b47   :  { %13922 = vmatpush1.bf16.msra.mxu1 %v19950_v59  ;;  %v17187_v59 = vcombine.high %v12835_v38, %v12835_v38 }
0x1b48   :  { %13923 = vmatprep.subr.bf16.mxu1 %v19955_v48  ;;  %v22565_v48 = vld [vmem:[#allocation11] sm:$0xee] }
0x1b4b   :  { %13924 = vmatpush1.bf16.msra.mxu1 %v19953_v33  ;;  %v20022_v33 = vld [vmem:[#allocation29 + $0x430] ss:$8 sps:$4 sm:$0xff]  }
0x1b4c   :  { %13925 = vmatprep.subr.bf16.mxu1 %v19958_v39  ;;  %v17253_v39 = vcombine.high %v22565_v48, %v22498_v2 }
0x1b4f   :  { %13926 = vmatpush1.bf16.msra.mxu1 %v19956_v34  ;;  %v14100_v34 = vrot.slane %v22508_v21, 1 }
0x1b50   :  { %13927 = vmatprep.subr.bf16.mxu1 %v19961_v41  ;;  %v20026_v41 = vld [vmem:[#allocation29 + $0x440] ss:$8 sps:$4 sm:$0xff]  }
0x1b53   :  { %13928 = vmatpush1.bf16.msra.mxu1 %v19959_v5  ;;  %v17186_v5 = vcombine.low %v12835_v38, %v12835_v38  ;;  %v22588_v38 = vld [vmem:[#allocation11 + $0x8] sm:$0xee] }
0x1b54   :  { %13958 = vmatprep.subr.bf16.mxu1 %v19964_v52  ;;  %v14099_v52 = vrot.slane %v17253_v39, 1  ;;  %v20077_v39 = vld [vmem:[#allocation29 + $0x550] ss:$8 sps:$4 sm:$0xff]  }
0x1b56   :  { %13930 = vmatmul.mubr.bf16.vlgmr.msra.gmra.mrb[148].mxu1 %v22500_v55  ;;  %v19976_v55 = vld [vmem:[#allocation29 + $0x140] ss:$8 sps:$4 sm:$0xff]  }
0x1b57   :  { %13939 = vmatprep.mubr.bf16.mxu1 %v22508_v21  ;;  %13959 = vmatpush1.bf16.msra.mxu1 %v19962_v54  ;;  %v20031_v54 = vld [vmem:[#allocation29 + $0x454] ss:$8 sps:$4 sm:$0xff]   ;;  %v20071_v21 = vld [vmem:[#allocation29 + $0x530] ss:$8 sps:$4 sm:$0xff]  }
0x1b58   :  { %13960 = vmatprep.subr.bf16.mxu1 %v19967_v30  ;;  %v14101_v30 = vsel %vm857_vm2, %v14099_v52, %v14100_v34  ;;  %v20083_v52 = vld [vmem:[#allocation29 + $0x570] ss:$8 sps:$4 sm:$0xff]  }
0x1b5b   :  { %13961 = vmatpush1.bf16.msra.mxu1 %v19965_v47  ;;  %v20029_v47 = vld [vmem:[#allocation29 + $0x450] ss:$8 sps:$4 sm:$0xff]  }
0x1b5c   :  { %13962 = vmatprep.subr.bf16.mxu1 %v19970_v46  ;;  %v20034_v46 = vld [vmem:[#allocation29 + $0x464] ss:$8 sps:$4 sm:$0xff]  }
0x1b5e   :  { %13940 = vmatmul.mubr.bf16.gmra.mrb[152].mxu1 %v22506_v12 }
0x1b5f   :  { %13949 = vmatprep.mubr.bf16.mxu1 %v17185_v22  ;;  %13963 = vmatpush1.bf16.msra.mxu1 %v19968_v27  ;;  %v20037_v27 = vld [vmem:[#allocation29 + $0x474] ss:$8 sps:$4 sm:$0xff]   ;;  %v20040_v22 = vld [vmem:[#allocation29 + $0x484] ss:$8 sps:$4 sm:$0xff]  }
0x1b60   :  { %13964 = vmatprep.subr.bf16.mxu1 %v19974_v29  ;;  %v20035_v29 = vld [vmem:[#allocation29 + $0x470] ss:$8 sps:$4 sm:$0xff]  }
0x1b63   :  { %13965 = vmatpush1.bf16.msra.mxu1 %v19972_v18  ;;  %v20038_v18 = vld [vmem:[#allocation29 + $0x480] ss:$8 sps:$4 sm:$0xff]  }
0x1b64   :  { %13966 = vmatprep.subr.bf16.mxu1 %v19978_v31  ;;  %v20043_v31 = vld [vmem:[#allocation29 + $0x494] ss:$8 sps:$4 sm:$0xff]  }
0x1b66   :  { %13950 = vmatmul.mubr.bf16.gmra.mrb[164].mxu1 %v17184_v63  ;;  %v20046_v63 = vld [vmem:[#allocation29 + $0x4a4] ss:$8 sps:$4 sm:$0xff]  }
0x1b67   :  { %13967 = vmatpush1.bf16.msra.mxu1 %v19976_v55  ;;  %13990 = vmatprep.mubr.bf16.mxu1 %v22532_v16  ;;  %v19994_v16 = vld [vmem:[#allocation29 + $0x1a0] ss:$8 sps:$4 sm:$0xff]   ;;  %v20041_v55 = vld [vmem:[#allocation29 + $0x490] ss:$8 sps:$4 sm:$0xff]  }
0x1b68   :  { %13968 = vmatprep.subr.bf16.mxu1 %v19981_v24  ;;  %v20044_v24 = vld [vmem:[#allocation29 + $0x4a0] ss:$8 sps:$4 sm:$0xff]  }
0x1b6b   :  { %13969 = vmatpush1.bf16.msra.mxu1 %v19979_v51  ;;  %v20049_v51 = vld [vmem:[#allocation29 + $0x4b4] ss:$8 sps:$4 sm:$0xff]  }
0x1b6c   :  { %13970 = vmatprep.subr.bf16.mxu1 %v19984_v17  ;;  %v20047_v17 = vld [vmem:[#allocation29 + $0x4b0] ss:$8 sps:$4 sm:$0xff]  }
0x1b6f   :  { %13971 = vmatpush1.bf16.msra.mxu1 %v19982_v26 }
0x1b70   :  { %13972 = vmatprep.subr.bf16.mxu1 %v19987_v40  ;;  %v20052_v40 = vld [vmem:[#allocation29 + $0x4c4] ss:$8 sps:$4 sm:$0xff]  }
0x1b73   :  { %13973 = vmatpush1.bf16.msra.mxu1 %v19985_v37 }
0x1b74   :  { %13974 = vmatprep.subr.bf16.mxu1 %v19990_v43 }
0x1b77   :  { %13975 = vmatpush1.bf16.msra.mxu1 %v19988_v14 }
0x1b78   :  { %13976 = vmatprep.subr.bf16.mxu1 %v19993_v15  ;;  %v20050_v15 = vld [vmem:[#allocation29 + $0x4c0] ss:$8 sps:$4 sm:$0xff]  }
0x1b7b   :  { %13977 = vmatpush1.bf16.msra.mxu1 %v19991_v4  ;;  %v20055_v4 = vld [vmem:[#allocation29 + $0x4d4] ss:$8 sps:$4 sm:$0xff]  }
0x1b7c   :  { %13978 = vmatprep.subr.bf16.mxu1 %v19996_v23  ;;  %v20053_v23 = vld [vmem:[#allocation29 + $0x4d0] ss:$8 sps:$4 sm:$0xff]  }
0x1b7f   :  { %13979 = vmatpush1.bf16.msra.mxu1 %v19994_v16  ;;  %v20058_v16 = vld [vmem:[#allocation29 + $0x4e4] ss:$8 sps:$4 sm:$0xff]  }
0x1b80   :  { %13980 = vmatprep.subr.bf16.mxu1 %v19999_v7  ;;  %v20056_v7 = vld [vmem:[#allocation29 + $0x4e0] ss:$8 sps:$4 sm:$0xff]  }
0x1b83   :  { %13981 = vmatpush1.bf16.msra.mxu1 %v19997_v8  ;;  %v20061_v8 = vld [vmem:[#allocation29 + $0x4f4] ss:$8 sps:$4 sm:$0xff]  }
0x1b84   :  { %13982 = vmatprep.subr.bf16.mxu1 %v20002_v57  ;;  %v17252_v57 = vcombine.low %v22565_v48, %v22498_v2 }
0x1b87   :  { %13983 = vmatpush1.bf16.msra.mxu1 %v20000_v6  ;;  %v20059_v6 = vld [vmem:[#allocation29 + $0x4f0] ss:$8 sps:$4 sm:$0xff]  }
0x1b88   :  { %13984 = vmatprep.subr.bf16.mxu1 %v20005_v9  ;;  %v20064_v9 = vld [vmem:[#allocation29 + $0x504] ss:$8 sps:$4 sm:$0xff]  }
0x1b8b   :  { %13985 = vmatpush1.bf16.msra.mxu1 %v20003_v25  ;;  %v14097_v25 = vrot.slane %v22506_v12, 1  ;;  %v14108_v12 = vrot.slane %v22518_v36, 1  ;;  %v20074_v36 = vld [vmem:[#allocation29 + $0x540] ss:$8 sps:$4 sm:$0xff]  }
0x1b8c   :  { %13986 = vmatprep.subr.bf16.mxu1 %v20008_v61  ;;  %v14110_v61 = vrot.slane %v22516_v35, 1  ;;  %v20068_v35 = vld [vmem:[#allocation29 + $0x520] ss:$8 sps:$4 sm:$0xff]  }
0x1b8e   :  { %v14111_v2 = vsel %vm857_vm2, %v14100_v34, %v14110_v61  ;;  %v20082_v34 = vld [vmem:[#allocation29 + $0x564] ss:$8 sps:$4 sm:$0xff]  }
0x1b8f   :  { %13987 = vmatpush1.bf16.msra.mxu1 %v20006_v58  ;;  %v14096_v58 = vrot.slane %v17252_v57, 1 }
0x1b90   :  { %13988 = vmatprep.subr.bf16.mxu1 %v20011_v11  ;;  %v20062_v11 = vld [vmem:[#allocation29 + $0x500] ss:$8 sps:$4 sm:$0xff]  }
0x1b93   :  { %13989 = vmatpush1.bf16.msra.mxu1 %v20009_v20  ;;  %v20067_v20 = vld [vmem:[#allocation29 + $0x514] ss:$8 sps:$4 sm:$0xff]  }
0x1b94   :  { %14448 = vmatprep.subr.bf16.mxu1 %v20014_v56  ;;  %v14098_v56 = vsel %vm857_vm2, %v14096_v58, %v14097_v25 }
0x1b96   :  { %13991 = vmatmul.mubr.bf16.vlgmr.msra.gmra.mrb[148].mxu1 %v22530_v62  ;;  %v20028_v62 = vld [vmem:[#allocation29 + $0x444] ss:$8 sps:$4 sm:$0xff]  }
0x1b97   :  { %14000 = vmatprep.mubr.bf16.mxu1 %v22538_v13  ;;  %14449 = vmatpush1.bf16.msra.mxu1 %v20012_v32  ;;  %v20065_v32 = vld [vmem:[#allocation29 + $0x510] ss:$8 sps:$4 sm:$0xff]  }
0x1b98   :  { %14450 = vmatprep.subr.bf16.mxu1 %v20017_v10  ;;  %v20070_v10 = vld [vmem:[#allocation29 + $0x524] ss:$8 sps:$4 sm:$0xff]  }
0x1b9b   :  { %14451 = vmatpush1.bf16.msra.mxu1 %v20015_v1  ;;  %v20073_v1 = vld [vmem:[#allocation29 + $0x534] ss:$8 sps:$4 sm:$0xff]  }
0x1b9c   :  { %14452 = vmatprep.subr.bf16.mxu1 %v20020_v44  ;;  %v14109_v44 = vsel %vm857_vm2, %v14097_v25, %v14108_v12 }
0x1b9e   :  { %14001 = vmatmul.mubr.bf16.gmra.mrb[152].mxu1 %v22536_v49 }
0x1b9f   :  { %14010 = vmatprep.mubr.bf16.mxu1 %v17187_v59  ;;  %14453 = vmatpush1.bf16.msra.mxu1 %v20018_v45  ;;  %v20076_v45 = vld [vmem:[#allocation29 + $0x544] ss:$8 sps:$4 sm:$0xff]   ;;  %v14106_v59 = vrot.slane %v22538_v13, 1 }
0x1ba0   :  { %14454 = vmatprep.subr.bf16.mxu1 %v20024_v3  ;;  %v17255_v3 = vcombine.high %v22588_v38, %v22528_v28 }
0x1ba2   :  { %v14105_v48 = vrot.slane %v17255_v3, 1 }
0x1ba3   :  { %14455 = vmatpush1.bf16.msra.mxu1 %v20022_v33  ;;  %v20079_v33 = vld [vmem:[#allocation29 + $0x554] ss:$8 sps:$4 sm:$0xff]  }
0x1ba4   :  { %14456 = vmatprep.subr.bf16.mxu1 %v20028_v62  ;;  %v14107_v62 = vsel %vm857_vm2, %v14105_v48, %v14106_v59 }
0x1ba6   :  { %14011 = vmatmul.mubr.bf16.gmra.mrb[168].mxu1 %v17186_v5  ;;  %v20085_v5 = vld [vmem:[#allocation29 + $0x574] ss:$8 sps:$4 sm:$0xff]  }
0x1ba7   :  { %14457 = vmatpush1.bf16.msra.mxu1 %v20026_v41  ;;  %14480 = vmatprep.mubr.bf16.mxu1 %v14101_v30  ;;  %v20080_v41 = vld [vmem:[#allocation29 + $0x560] ss:$8 sps:$4 sm:$0xff]  }
0x1ba8   :  { %14458 = vmatprep.subr.bf16.mxu1 %v20031_v54  ;;  %v20088_v54 = vld [vmem:[#allocation29 + $0x584] ss:$8 sps:$4 sm:$0xff]   ;;  %v20086_v30 = vld [vmem:[#allocation29 + $0x580] ss:$8 sps:$4 sm:$0xff]  }
0x1bab   :  { %14459 = vmatpush1.bf16.msra.mxu1 %v20029_v47  ;;  %v20091_v47 = vld [vmem:[#allocation29 + $0x594] ss:$8 sps:$4 sm:$0xff]  }
0x1bac   :  { %14460 = vmatprep.subr.bf16.mxu1 %v20034_v46  ;;  %v20089_v46 = vld [vmem:[#allocation29 + $0x590] ss:$8 sps:$4 sm:$0xff]  }
0x1baf   :  { %14461 = vmatpush1.bf16.msra.mxu1 %v20032_v42  ;;  %v20094_v42 = vld [vmem:[#allocation29 + $0x5a4] ss:$8 sps:$4 sm:$0xff]  }
0x1bb0   :  { %14462 = vmatprep.subr.bf16.mxu1 %v20037_v27  ;;  %v20092_v27 = vld [vmem:[#allocation29 + $0x5a0] ss:$8 sps:$4 sm:$0xff]  }
0x1bb3   :  { %14463 = vmatpush1.bf16.msra.mxu1 %v20035_v29  ;;  %v20097_v29 = vld [vmem:[#allocation29 + $0x5b4] ss:$8 sps:$4 sm:$0xff]  }
0x1bb4   :  { %14464 = vmatprep.subr.bf16.mxu1 %v20040_v22 }
0x1bb7   :  { %14465 = vmatpush1.bf16.msra.mxu1 %v20038_v18  ;;  %v20095_v18 = vld [vmem:[#allocation29 + $0x5b0] ss:$8 sps:$4 sm:$0xff]  }
0x1bb8   :  { %14466 = vmatprep.subr.bf16.mxu1 %v20043_v31 }
0x1bbb   :  { %14467 = vmatpush1.bf16.msra.mxu1 %v20041_v55 }
0x1bbc   :  { %14468 = vmatprep.subr.bf16.mxu1 %v20046_v63  ;;  %v20100_v63 = vld [vmem:[#allocation29 + $0x5c4] ss:$8 sps:$4 sm:$0xff]  }
0x1bbf   :  { %14469 = vmatpush1.bf16.msra.mxu1 %v20044_v24 }
0x1bc0   :  { %14470 = vmatprep.subr.bf16.mxu1 %v20049_v51 }
0x1bc1   :  { %v22574_v26 = vpop.f32.mrb[156].mxu1 }
0x1bc2   :  { %v22576_v37 = vpop.f32.mrb[157].mxu1 }
0x1bc3   :  { %v13491_v43 = vpop.f32.mrb[158].mxu1  ;;  %14471 = vmatpush1.bf16.msra.mxu1 %v20047_v17 }
0x1bc4   :  { %v13492_v14 = vpop.f32.mrb[159].mxu1  ;;  %14472 = vmatprep.subr.bf16.mxu1 %v20052_v40  ;;  %v20098_v40 = vld [vmem:[#allocation29 + $0x5c0] ss:$8 sps:$4 sm:$0xff]   ;;  %v20103_v43 = vld [vmem:[#allocation29 + $0x5d4] ss:$8 sps:$4 sm:$0xff]  }
0x1bc5   :  { %v20101_v14 = vld [vmem:[#allocation29 + $0x5d0] ss:$8 sps:$4 sm:$0xff]  }
0x1bc7   :  { %14473 = vmatpush1.bf16.msra.mxu1 %v20050_v15  ;;  %v20106_v15 = vld [vmem:[#allocation29 + $0x5e4] ss:$8 sps:$4 sm:$0xff]  }
0x1bc8   :  { %14474 = vmatprep.subr.bf16.mxu1 %v20055_v4  ;;  %v20104_v4 = vld [vmem:[#allocation29 + $0x5e0] ss:$8 sps:$4 sm:$0xff]  }
0x1bcb   :  { %14475 = vmatpush1.bf16.msra.mxu1 %v20053_v23  ;;  %v20109_v23 = vld [vmem:[#allocation29 + $0x5f4] ss:$8 sps:$4 sm:$0xff]  }
0x1bcc   :  { %14476 = vmatprep.subr.bf16.mxu1 %v20058_v16  ;;  %v20107_v16 = vld [vmem:[#allocation29 + $0x5f0] ss:$8 sps:$4 sm:$0xff]  }
0x1bcf   :  { %14477 = vmatpush1.bf16.msra.mxu1 %v20056_v7  ;;  %v14114_v7 = vrot.slane %v22546_v60, 1 }
0x1bd0   :  { %14478 = vmatprep.subr.bf16.mxu1 %v20061_v8 }
0x1bd3   :  { %14479 = vmatpush1.bf16.msra.mxu1 %v20059_v6  ;;  %v14115_v6 = vsel %vm857_vm2, %v14106_v59, %v14114_v7 }
0x1bd4   :  { %14509 = vmatprep.subr.bf16.mxu1 %v20064_v9  ;;  %v14112_v9 = vrot.slane %v22548_v19, 1 }
0x1bd6   :  { %14481 = vmatmul.mubr.bf16.vlgmr.msra.gmra.mrb[148].mxu1 %v14098_v56 }
0x1bd7   :  { %14490 = vmatprep.mubr.bf16.mxu1 %v14111_v2  ;;  %14510 = vmatpush1.bf16.msra.mxu1 %v20062_v11 }
0x1bd8   :  { %14511 = vmatprep.subr.bf16.mxu1 %v20067_v20 }
0x1bdb   :  { %14512 = vmatpush1.bf16.msra.mxu1 %v20065_v32 }
0x1bdc   :  { %14513 = vmatprep.subr.bf16.mxu1 %v20070_v10 }
0x1bde   :  { %14491 = vmatmul.mubr.bf16.gmra.mrb[152].mxu1 %v14109_v44  ;;  %v14580_v44 = vld [vmem:[#allocation42] sm:$0x3] }
0x1bdf   :  { %14500 = vmatprep.mubr.bf16.mxu1 %v14110_v61  ;;  %14514 = vmatpush1.bf16.msra.mxu1 %v20068_v35 }
0x1be0   :  { %14515 = vmatprep.subr.bf16.mxu1 %v20073_v1 }
0x1be3   :  { %14516 = vmatpush1.bf16.msra.mxu1 %v20071_v21  ;;  %v14589_v21 = vrot.slane %v14580_v44, %v21638_v53 }
0x1be4   :  { %14517 = vmatprep.subr.bf16.mxu1 %v20076_v45 }
0x1be6   :  { %14501 = vmatmul.mubr.bf16.gmra.mrb[172].mxu1 %v14108_v12 }
0x1be7   :  { %14518 = vmatpush1.bf16.msra.mxu1 %v20074_v36  ;;  %14541 = vmatprep.mubr.bf16.mxu1 %v14107_v62 }
0x1be8   :  { %14519 = vmatprep.subr.bf16.mxu1 %v20079_v33 }
0x1beb   :  { %14520 = vmatpush1.bf16.msra.mxu1 %v20077_v39 }
0x1bec   :  { %14521 = vmatprep.subr.bf16.mxu1 %v20082_v34 }
0x1bef   :  { %14522 = vmatpush1.bf16.msra.mxu1 %v20080_v41 }
0x1bf0   :  { %14523 = vmatprep.subr.bf16.mxu1 %v20085_v5 }
0x1bf3   :  { %14524 = vmatpush1.bf16.msra.mxu1 %v20083_v52 }
0x1bf4   :  { %14525 = vmatprep.subr.bf16.mxu1 %v20088_v54 }
0x1bf7   :  { %14526 = vmatpush1.bf16.msra.mxu1 %v20086_v30 }
0x1bf8   :  { %14527 = vmatprep.subr.bf16.mxu1 %v20091_v47 }
0x1bfb   :  { %14528 = vmatpush1.bf16.msra.mxu1 %v20089_v46 }
0x1bfc   :  { %14529 = vmatprep.subr.bf16.mxu1 %v20094_v42 }
0x1bff   :  { %14530 = vmatpush1.bf16.msra.mxu1 %v20092_v27 }
0x1c00   :  { %14531 = vmatprep.subr.bf16.mxu1 %v20097_v29 }
0x1c01   :  { %v13548_v22 = vpop.f32.mrb[160].mxu1 }
0x1c02   :  { %v13549_v31 = vadd.f32 %v13548_v22, %v22574_v26  ;;  %v13550_v55 = vpop.f32.mrb[161].mxu1  ;;  %v17254_v26 = vcombine.low %v22588_v38, %v22528_v28  ;;  %v14585_v38 = vrot.slane %v14580_v44, %v21635_v50  ;;  %v20121_v44 = vld [vmem:[#allocation30 + $0x124] ss:$8 sps:$4 sm:$0xff]  }
0x1c03   :  { %v13551_v24 = vadd.f32 %v13550_v55, %v22576_v37  ;;  %v13552_v51 = vpop.f32.mrb[162].mxu1  ;;  %14532 = vmatpush1.bf16.msra.mxu1 %v20095_v18  ;;  %v14103_v37 = vrot.slane %v22536_v49, 1 }
0x1c04   :  { %v13553_v17 = vpop.f32.mrb[163].mxu1  ;;  %14533 = vmatprep.subr.bf16.mxu1 %v20100_v63  ;;  %v14102_v8 = vrot.slane %v17254_v26, 1 }
0x1c05   :  { %v14113_v28 = vsel %vm857_vm2, %v14103_v37, %v14112_v9 }
0x1c06   :  { %v14104_v57 = vsel %vm857_vm2, %v14102_v8, %v14103_v37 }
0x1c07   :  { %14534 = vmatpush1.bf16.msra.mxu1 %v20098_v40 }
0x1c08   :  { %14535 = vmatprep.subr.bf16.mxu1 %v20103_v43 }
0x1c0b   :  { %14536 = vmatpush1.bf16.msra.mxu1 %v20101_v14 }
0x1c0c   :  { %14537 = vmatprep.subr.bf16.mxu1 %v20106_v15 }
0x1c0f   :  { %14538 = vmatpush1.bf16.msra.mxu1 %v20104_v4 }
0x1c10   :  { %14539 = vmatprep.subr.bf16.mxu1 %v20109_v23 }
0x1c13   :  { %14540 = vmatpush1.bf16.msra.mxu1 %v20107_v16 }
0x1c16   :  { %14542 = vmatmul.mubr.bf16.vlgmr.msra.gmra.mrb[148].mxu1 %v14104_v57 }
0x1c17   :  { %14551 = vmatprep.mubr.bf16.mxu1 %v14115_v6 }
0x1c1e   :  { %14552 = vmatmul.mubr.bf16.gmra.mrb[152].mxu1 %v14113_v28 }
0x1c1f   :  { %14561 = vmatprep.mubr.bf16.mxu1 %v14114_v7 }
0x1c26   :  { %14562 = vmatmul.mubr.bf16.gmra.mrb[176].mxu1 %v14112_v9 }
0x1c27   :  { %14703 = vmatprep.mubr.bf16.mxu1 %v21194_v0 }
0x1c39   :  { %v13951_v49 = vpop.f32.mrb[164].mxu1 }
0x1c3a   :  { %v13952_v60 = vadd.f32 %v13951_v49, %v13549_v31  ;;  %v13953_v25 = vpop.f32.mrb[165].mxu1 }
0x1c3b   :  { %v13954_v61 = vadd.f32 %v13953_v25, %v13551_v24  ;;  %v13955_v58 = vpop.f32.mrb[166].mxu1 }
0x1c3c   :  { %v13956_v11 = vpop.f32.mrb[167].mxu1 }
0x1c79   :  { %v14012_v20 = vpop.f32.mrb[168].mxu1 }
0x1c7a   :  { %v22609_v13 = vadd.f32 %v14012_v20, %v13952_v60  ;;  %v14014_v56 = vpop.f32.mrb[169].mxu1 }
0x1c7b   :  { %v22611_v2 = vadd.f32 %v14014_v56, %v13954_v61  ;;  %v14016_v19 = vpop.f32.mrb[170].mxu1 }
0x1c7c   :  { %v14017_v32 = vpop.f32.mrb[171].mxu1 }
0x1cb9   :  { %v14502_v10 = vpop.f32.mrb[172].mxu1 }
0x1cba   :  { %v14504_v12 = vpop.f32.mrb[173].mxu1 }
0x1cbb   :  { %v14506_v35 = vpop.f32.mrb[174].mxu1 }
0x1cbc   :  { %v14507_v1 = vpop.f32.mrb[175].mxu1  ;;  %v20113_v35 = vld [vmem:[#allocation30 + $0x100] ss:$8 sps:$4 sm:$0xff]  }
0x1cbd   :  { %v20116_v1 = vld [vmem:[#allocation30 + $0x110] ss:$8 sps:$4 sm:$0xff]  }
0x1ce9   :  { %v14543_v45 = vpop.f32.mrb[148].mxu1 }
0x1cea   :  { %v14592_v3 = vadd.f32 %v14585_v38, %v14543_v45  ;;  %v14545_v59 = vpop.f32.mrb[149].mxu1  ;;  %v20124_v45 = vld [vmem:[#allocation30 + $0x134] ss:$8 sps:$4 sm:$0xff]  }
0x1ceb   :  { %v14593_v36 = vadd.f32 %v14589_v21, %v14545_v59  ;;  %v14547_v48 = vpop.f32.mrb[150].mxu1  ;;  %v20127_v59 = vld [vmem:[#allocation30 + $0x144] ss:$8 sps:$4 sm:$0xff]  }
0x1cec   :  { %v14612_v33 = vmul.f32 0.2, %v14592_v3  ;;  %v14594_v62 = vadd.f32 %v14585_v38, %v14547_v48  ;;  %v14549_v39 = vpop.f32.mrb[151].mxu1  ;;  %vm14602_vm15 = vcmp.gt.f32.partialorder %v14592_v3, 0.0  ;;  %v20125_v48 = vld [vmem:[#allocation30 + $0x140] ss:$8 sps:$4 sm:$0xff]  }
0x1ced   :  { %v14613_v34 = vmul.f32 0.2, %v14593_v36  ;;  %v14595_v41 = vadd.f32 %v14589_v21, %v14549_v39  ;;  %vm14603_vm4 = vcmp.gt.f32.partialorder %v14593_v36, 0.0  ;;  %v20133_v39 = vld [vmem:[#allocation30 + $0x164] ss:$8 sps:$4 sm:$0xff]  }
0x1cee   :  { %vm14604_vm5 = vcmp.gt.f32.partialorder %v14594_v62, 0.0  ;;  %v14614_v5 = vmul.f32 0.2, %v14594_v62  ;;  %v14622_v54 = vsel %vm14602_vm15, %v14592_v3, %v14612_v33  ;;  %v20122_v3 = vld [vmem:[#allocation30 + $0x130] ss:$8 sps:$4 sm:$0xff]  }
0x1cef   :  { %vm14605_vm1 = vcmp.gt.f32.partialorder %v14595_v41, 0.0  ;;  %v14615_v52 = vmul.f32 0.2, %v14595_v41  ;;  %v14623_v42 = vsel %vm14603_vm4, %v14593_v36, %v14613_v34  ;;  %v20112_v36 = vld [vmem:[#allocation45 + $0x10] ss:$0 sps:$4 sm:$0x33]  }
0x1cf0   :  { %v14624_v30 = vsel %vm14604_vm5, %v14594_v62, %v14614_v5  ;;  %v20130_v33 = vld [vmem:[#allocation30 + $0x154] ss:$8 sps:$4 sm:$0xff]   ;;  %v20128_v62 = vld [vmem:[#allocation30 + $0x150] ss:$8 sps:$4 sm:$0xff]   ;;  %v20131_v34 = vld [vmem:[#allocation30 + $0x160] ss:$8 sps:$4 sm:$0xff]  }
0x1cf1   :  { %v14632_v47 = vpack.c.bf16 %v14624_v30, %v14622_v54  ;;  %v14553_v46 = vpop.f32.mrb[152].mxu1  ;;  %v14625_v27 = vsel %vm14605_vm1, %v14595_v41, %v14615_v52  ;;  %v20136_v41 = vld [vmem:[#allocation30 + $0x174] ss:$8 sps:$4 sm:$0xff]   ;;  %v20139_v5 = vld [vmem:[#allocation30 + $0x184] ss:$8 sps:$4 sm:$0xff]  }
0x1cf2   :  { %v14596_v29 = vadd.f32 %v14585_v38, %v14553_v46  ;;  %v14555_v22 = vpop.f32.mrb[153].mxu1  ;;  %v14633_v18 = vpack.c.bf16 %v14625_v27, %v14623_v42  ;;  %v20137_v52 = vld [vmem:[#allocation30 + $0x180] ss:$8 sps:$4 sm:$0xff]   ;;  %v20142_v54 = vld [vmem:[#allocation30 + $0x194] ss:$8 sps:$4 sm:$0xff]  }
0x1cf3   :  { %v14597_v31 = vadd.f32 %v14589_v21, %v14555_v22  ;;  %v14557_v55 = vpop.f32.mrb[154].mxu1  ;;  %v20140_v30 = vld [vmem:[#allocation30 + $0x190] ss:$8 sps:$4 sm:$0xff]   ;;  %v20143_v46 = vld [vmem:[#allocation30 + $0x1a0] ss:$8 sps:$4 sm:$0xff]  }
0x1cf4   :  { %v14616_v63 = vmul.f32 0.2, %v14596_v29  ;;  %v14598_v24 = vadd.f32 %v14585_v38, %v14557_v55  ;;  %v14559_v51 = vpop.f32.mrb[155].mxu1  ;;  %14671 = vmatprep.subr.bf16.mxu1 %v14633_v18  ;;  %vm14606_vm8 = vcmp.gt.f32.partialorder %v14596_v29, 0.0  ;;  %v20148_v42 = vld [vmem:[#allocation30 + $0x1b4] ss:$8 sps:$4 sm:$0xff]  }
0x1cf5   :  { %v14617_v17 = vmul.f32 0.2, %v14597_v31  ;;  %v14599_v40 = vadd.f32 %v14589_v21, %v14559_v51  ;;  %14672 = vmatpush1.bf16.msra.mxu1 %v14632_v47  ;;  %vm14607_vm3 = vcmp.gt.f32.partialorder %v14597_v31, 0.0  ;;  %v20145_v47 = vld [vmem:[#allocation30 + $0x1a4] ss:$8 sps:$4 sm:$0xff]  }
0x1cf6   :  { %vm14608_vm6 = vcmp.gt.f32.partialorder %v14598_v24, 0.0  ;;  %v14618_v43 = vmul.f32 0.2, %v14598_v24  ;;  %v14626_v15 = vsel %vm14606_vm8, %v14596_v29, %v14616_v63  ;;  %v20146_v27 = vld [vmem:[#allocation30 + $0x1b0] ss:$8 sps:$4 sm:$0xff]  }
0x1cf7   :  { %vm14609_vm7 = vcmp.gt.f32.partialorder %v14599_v40, 0.0  ;;  %v14619_v14 = vmul.f32 0.2, %v14599_v40  ;;  %v14627_v16 = vsel %vm14607_vm3, %v14597_v31, %v14617_v17  ;;  %v20151_v29 = vld [vmem:[#allocation30 + $0x1c4] ss:$8 sps:$4 sm:$0xff]  }
0x1cf8   :  { %v14628_v4 = vsel %vm14608_vm6, %v14598_v24, %v14618_v43  ;;  %v20149_v22 = vld [vmem:[#allocation30 + $0x1c0] ss:$8 sps:$4 sm:$0xff]   ;;  %v20154_v18 = vld [vmem:[#allocation30 + $0x1d4] ss:$8 sps:$4 sm:$0xff]   ;;  %v20152_v31 = vld [vmem:[#allocation30 + $0x1d0] ss:$8 sps:$4 sm:$0xff]  }
0x1cf9   :  { %v14634_v23 = vpack.c.bf16 %v14628_v4, %v14626_v15  ;;  %v14563_v26 = vpop.f32.mrb[176].mxu1  ;;  %v14629_v37 = vsel %vm14609_vm7, %v14599_v40, %v14619_v14  ;;  %v20157_v55 = vld [vmem:[#allocation30 + $0x1e4] ss:$8 sps:$4 sm:$0xff]   ;;  %v20155_v63 = vld [vmem:[#allocation30 + $0x1e0] ss:$8 sps:$4 sm:$0xff]  }
0x1cfa   :  { %v14564_v7 = vadd.f32 %v14563_v26, %v14502_v10  ;;  %v14565_v8 = vpop.f32.mrb[177].mxu1  ;;  %v14635_v57 = vpack.c.bf16 %v14629_v37, %v14627_v16  ;;  %v20115_v10 = vld [vmem:[#allocation30 + $0x104] ss:$8 sps:$4 sm:$0xff]   ;;  %v20160_v24 = vld [vmem:[#allocation30 + $0x1f4] ss:$8 sps:$4 sm:$0xff]  }
0x1cfb   :  { %v14566_v6 = vadd.f32 %v14565_v8, %v14504_v12  ;;  %v14567_v9 = vpop.f32.mrb[178].mxu1  ;;  %v20158_v51 = vld [vmem:[#allocation30 + $0x1f0] ss:$8 sps:$4 sm:$0xff]   ;;  %v20163_v17 = vld [vmem:[#allocation30 + $0x4] ss:$8 sps:$4 sm:$0xff]  }
0x1cfc   :  { %v14578_v28 = vadd.f32 %v14564_v7, %v22609_v13  ;;  %v14568_v49 = vpop.f32.mrb[179].mxu1  ;;  %14673 = vmatprep.subr.bf16.mxu1 %v14635_v57  ;;  %v20110_v13 = vld [vmem:[#allocation45] sm:$0xff]  }
0x1cfd   :  { %v14579_v60 = vadd.f32 %v14566_v6, %v22611_v2  ;;  %14674 = vmatpush1.bf16.msra.mxu1 %v14634_v23  ;;  %v20118_v2 = vld [vmem:[#allocation30 + $0x114] ss:$8 sps:$4 sm:$0xff]  }
0x1cfe   :  { %v14600_v25 = vadd.f32 %v14585_v38, %v14578_v28  ;;  %v20111_v38 = vld [vmem:[#allocation45 + $0x8] sm:$0xff]  }
0x1cff   :  { %v14601_v61 = vadd.f32 %v14589_v21, %v14579_v60  ;;  %v20119_v21 = vld [vmem:[#allocation30 + $0x120] ss:$8 sps:$4 sm:$0xff]  }
0x1d00   :  { %v14620_v58 = vmul.f32 0.2, %v14600_v25  ;;  %vm14610_vm9 = vcmp.gt.f32.partialorder %v14600_v25, 0.0 }
0x1d01   :  { %vm14611_vm10 = vcmp.gt.f32.partialorder %v14601_v61, 0.0  ;;  %v14621_v11 = vmul.f32 0.2, %v14601_v61 }
0x1d02   :  { %v14630_v20 = vsel %vm14610_vm9, %v14600_v25, %v14620_v58 }
0x1d03   :  { %v14631_v56 = vsel %vm14611_vm10, %v14601_v61, %v14621_v11  ;;  %v14636_v19 = vpack.c.bf16 %v14630_v20, %v14630_v20 }
0x1d04   :  { %v14637_v32 = vpack.c.bf16 %v14631_v56, %v14631_v56 }
0x1d05   :  { %v14666_v12 = vsel %vm1049_vm13, %v14636_v19, 0 }
0x1d06   :  { %17323 = vmatprep.subr.msk.bf16.mxu1 %vm1049_vm13, %v14637_v32 }
0x1d07   :  { %14676 = vmatpush1.bf16.msra.mxu1 %v14666_v12 }
0x1d08   :  { %15073 = vmatprep.subr.bf16.mxu1 %v20115_v10 }
0x1d0a   :  { %17324 = vmatmul.mubr.msk.bf16.vlgmr.msra.gmra.mrb[180].mxu1 %vm1039_vm14, %v20110_v13 }
0x1d0b   :  { %14713 = vmatprep.mubr.bf16.mxu1 %v21194_v0  ;;  %15074 = vmatpush1.bf16.msra.mxu1 %v20113_v35 }
0x1d0c   :  { %15075 = vmatprep.subr.bf16.mxu1 %v20118_v2 }
0x1d0f   :  { %15076 = vmatpush1.bf16.msra.mxu1 %v20116_v1  ;;  %v20161_v1 = vld [vmem:[#allocation30] ss:$8 sps:$4 sm:$0xff]  }
0x1d10   :  { %15077 = vmatprep.subr.bf16.mxu1 %v20121_v44 }
0x1d12   :  { %17325 = vmatmul.mubr.msk.bf16.gmra.mrb[184].mxu1 %vm1039_vm14, %v20111_v38 }
0x1d13   :  { %14723 = vmatprep.mubr.bf16.mxu1 %v21194_v0  ;;  %15078 = vmatpush1.bf16.msra.mxu1 %v20119_v21  ;;  %v20134_v0 = vld [vmem:[#allocation30 + $0x170] ss:$8 sps:$4 sm:$0xff]  }
0x1d14   :  { %15079 = vmatprep.subr.bf16.mxu1 %v20124_v45  ;;  %v20166_v45 = vld [vmem:[#allocation30 + $0x14] ss:$8 sps:$4 sm:$0xff]  }
0x1d17   :  { %15080 = vmatpush1.bf16.msra.mxu1 %v20122_v3  ;;  %v20164_v3 = vld [vmem:[#allocation30 + $0x10] ss:$8 sps:$4 sm:$0xff]  }
0x1d18   :  { %15081 = vmatprep.subr.bf16.mxu1 %v20127_v59  ;;  %v20170_v59 = vld [vmem:[#allocation30 + $0x24] ss:$8 sps:$4 sm:$0xff]  }
0x1d1a   :  { %17326 = vmatmul.mubr.msk.bf16.gmra.mrb[188].mxu1 %vm1039_vm14, %v20112_v36 }
0x1d1b   :  { %15082 = vmatpush1.bf16.msra.mxu1 %v20125_v48  ;;  %v20168_v48 = vld [vmem:[#allocation30 + $0x20] ss:$8 sps:$4 sm:$0xff]  }
0x1d1c   :  { %15083 = vmatprep.subr.bf16.mxu1 %v20130_v33 }
0x1d1f   :  { %15084 = vmatpush1.bf16.msra.mxu1 %v20128_v62 }
0x1d20   :  { %15085 = vmatprep.subr.bf16.mxu1 %v20133_v39  ;;  %v20174_v39 = vld [vmem:[#allocation30 + $0x34] ss:$8 sps:$4 sm:$0xff]  }
0x1d23   :  { %15086 = vmatpush1.bf16.msra.mxu1 %v20131_v34 }
0x1d24   :  { %15087 = vmatprep.subr.bf16.mxu1 %v20136_v41 }
0x1d27   :  { %15088 = vmatpush1.bf16.msra.mxu1 %v20134_v0 }
0x1d28   :  { %15089 = vmatprep.subr.bf16.mxu1 %v20139_v5 }
0x1d2b   :  { %15090 = vmatpush1.bf16.msra.mxu1 %v20137_v52 }
0x1d2c   :  { %15091 = vmatprep.subr.bf16.mxu1 %v20142_v54  ;;  %v20172_v54 = vld [vmem:[#allocation30 + $0x30] ss:$8 sps:$4 sm:$0xff]  }
0x1d2f   :  { %15092 = vmatpush1.bf16.msra.mxu1 %v20140_v30 }
0x1d30   :  { %15093 = vmatprep.subr.bf16.mxu1 %v20145_v47 }
0x1d33   :  { %15094 = vmatpush1.bf16.msra.mxu1 %v20143_v46 }
0x1d34   :  { %15095 = vmatprep.subr.bf16.mxu1 %v20148_v42 }
0x1d37   :  { %15096 = vmatpush1.bf16.msra.mxu1 %v20146_v27  ;;  %v20177_v27 = vld [vmem:[#allocation30 + $0x44] ss:$8 sps:$4 sm:$0xff]  }
0x1d38   :  { %15097 = vmatprep.subr.bf16.mxu1 %v20151_v29 }
0x1d3b   :  { %15098 = vmatpush1.bf16.msra.mxu1 %v20149_v22 }
0x1d3c   :  { %15099 = vmatprep.subr.bf16.mxu1 %v20154_v18 }
0x1d3f   :  { %15100 = vmatpush1.bf16.msra.mxu1 %v20152_v31  ;;  %v20175_v31 = vld [vmem:[#allocation30 + $0x40] ss:$8 sps:$4 sm:$0xff]  }
0x1d40   :  { %15101 = vmatprep.subr.bf16.mxu1 %v20157_v55 }
0x1d43   :  { %15102 = vmatpush1.bf16.msra.mxu1 %v20155_v63  ;;  %v20180_v63 = vld [vmem:[#allocation30 + $0x54] ss:$8 sps:$4 sm:$0xff]  }
0x1d44   :  { %15103 = vmatprep.subr.bf16.mxu1 %v20160_v24  ;;  %v20178_v24 = vld [vmem:[#allocation30 + $0x50] ss:$8 sps:$4 sm:$0xff]  }
0x1d47   :  { %15104 = vmatpush1.bf16.msra.mxu1 %v20158_v51 }
0x1d48   :  { %15305 = vmatprep.subr.bf16.mxu1 %v20163_v17  ;;  %v20183_v17 = vld [vmem:[#allocation30 + $0x64] ss:$8 sps:$4 sm:$0xff]  }
0x1ddd   :  { %v14705_v40 = vpop.f32.mrb[180].mxu1 }
0x1dde   :  { %v14707_v43 = vpop.f32.mrb[181].mxu1 }
0x1ddf   :  { %v17478_v14 = vpack.c.bf16 %v14707_v43, %v14705_v40  ;;  %v14709_v15 = vpop.f32.mrb[182].mxu1 }
0x1de0   :  { %v14711_v4 = vpop.f32.mrb[183].mxu1  ;;  %v22626_v26 = vpack.c.bf16 %v14709_v15, %v14705_v40  ;;  %v20181_v40 = vld [vmem:[#allocation30 + $0x60] ss:$8 sps:$4 sm:$0xff]  }
0x1de1   :  { %14764 = vst [vmem:[#allocation12] sm:$0xff] %v17478_v14  ;;  %v22624_v23 = vpack.c.bf16 %v14711_v4, %v14709_v15  ;;  %v22628_v16 = vpack.c.bf16 %v14711_v4, %v14707_v43  ;;  %v20186_v43 = vld [vmem:[#allocation30 + $0x74] ss:$8 sps:$4 sm:$0xff]   ;;  %v20184_v14 = vld [vmem:[#allocation30 + $0x70] ss:$8 sps:$4 sm:$0xff]  }
0x1de2   :  { %v14864_v6 = vshll.u32 %v22626_v26, 16  ;;  %v14862_v20 = vshrl.u32 %v22626_v26, 16  ;;  %v20189_v15 = vld [vmem:[#allocation30 + $0x84] ss:$8 sps:$4 sm:$0xff]   ;;  %v20187_v4 = vld [vmem:[#allocation30 + $0x80] ss:$8 sps:$4 sm:$0xff]  }
0x1de3   :  { %v14876_v8 = vshll.u32 %v22628_v16, 16  ;;  %v14874_v61 = vshrl.u32 %v22628_v16, 16 }
0x1de4   :  { %v14866_v25 = vrot.slane %v14864_v6, 1  ;;  %v20198_v6 = vld [vmem:[#allocation30 + $0xb4] ss:$8 sps:$4 sm:$0xff]  }
0x1de5   :  { %v14715_v37 = vpop.f32.mrb[184].mxu1  ;;  %v14878_v28 = vrot.slane %v14876_v8, 1  ;;  %v20195_v8 = vld [vmem:[#allocation30 + $0xa4] ss:$8 sps:$4 sm:$0xff]  }
0x1de6   :  { %v14717_v7 = vpop.f32.mrb[185].mxu1  ;;  %v14867_v13 = vor.u32 %v14866_v25, %v14862_v20  ;;  %v20204_v25 = vld [vmem:[#allocation30 + $0xd4] ss:$8 sps:$4 sm:$0xff]  }
0x1de7   :  { %v14719_v57 = vpop.f32.mrb[186].mxu1  ;;  %v14879_v32 = vor.u32 %v14878_v28, %v14874_v61  ;;  %v20199_v28 = vld [vmem:[#allocation30 + $0xc0] ss:$8 sps:$4 sm:$0xff]   ;;  %v20202_v61 = vld [vmem:[#allocation30 + $0xd0] ss:$8 sps:$4 sm:$0xff]  }
0x1de8   :  { %v14721_v9 = vpop.f32.mrb[187].mxu1  ;;  %v22632_v49 = vpack.c.bf16 %v14719_v57, %v14715_v37  ;;  %v20192_v37 = vld [vmem:[#allocation30 + $0x94] ss:$8 sps:$4 sm:$0xff]   ;;  %v20193_v57 = vld [vmem:[#allocation30 + $0xa0] ss:$8 sps:$4 sm:$0xff]  }
0x1de9   :  { %v22634_v60 = vpack.c.bf16 %v14721_v9, %v14717_v7  ;;  %v20190_v7 = vld [vmem:[#allocation30 + $0x90] ss:$8 sps:$4 sm:$0xff]   ;;  %v20210_v20 = vld [vmem:[#allocation30 + $0xf4] ss:$8 sps:$4 sm:$0xff]  }
0x1dea   :  { %v14869_v56 = vshll.u32 %v22632_v49, 16  ;;  %v14885_v0 = vshrl.u32 %v22632_v49, 16  ;;  %v20196_v9 = vld [vmem:[#allocation30 + $0xb0] ss:$8 sps:$4 sm:$0xff]  }
0x1deb   :  { %v14881_v11 = vshll.u32 %v22634_v60, 16  ;;  %v14893_v34 = vshrl.u32 %v22634_v60, 16 }
0x1dec   :  { %v14871_v35 = vrot.slane %v14869_v56, 1  ;;  %v20208_v56 = vld [vmem:[#allocation30 + $0xf0] ss:$8 sps:$4 sm:$0xff]  }
0x1ded   :  { %v14725_v58 = vpop.f32.mrb[188].mxu1  ;;  %v14883_v12 = vrot.slane %v14881_v11, 1  ;;  %v20205_v11 = vld [vmem:[#allocation30 + $0xe0] ss:$8 sps:$4 sm:$0xff]  }
0x1dee   :  { %v14727_v19 = vpop.f32.mrb[189].mxu1  ;;  %v14872_v21 = vsel %vm642_vm0, %v14867_v13, %v14871_v35  ;;  %v14887_v46 = vor.u32 %v14885_v0, %v14871_v35  ;;  %v20219_v13 = vld [vmem:[#allocation30 + $0x224] ss:$8 sps:$4 sm:$0xff]  }
0x1def   :  { %v17482_v10 = vpack.c.bf16 %v14727_v19, %v14725_v58  ;;  %v14729_v2 = vpop.f32.mrb[190].mxu1  ;;  %v14884_v38 = vsel %vm642_vm0, %v14879_v32, %v14883_v12  ;;  %v14895_v30 = vor.u32 %v14893_v34, %v14883_v12  ;;  %v20207_v58 = vld [vmem:[#allocation30 + $0xe4] ss:$8 sps:$4 sm:$0xff]   ;;  %v20211_v32 = vld [vmem:[#allocation30 + $0x200] ss:$8 sps:$4 sm:$0xff]  }
0x1df0   :  { %v14730_v44 = vpop.f32.mrb[191].mxu1  ;;  %15105 = vmatprep.mubr.bf16.mxu1 %v14884_v38  ;;  %v20213_v19 = vld [vmem:[#allocation30 + $0x204] ss:$8 sps:$4 sm:$0xff]   ;;  %v20214_v12 = vld [vmem:[#allocation30 + $0x210] ss:$8 sps:$4 sm:$0xff]  }
0x1df1   :  { %14768 = vst [vmem:[#allocation12 + $0x20] sm:$0x33] %v17482_v10  ;;  %15106 = vmatmul.mubr.bf16.vlgmr.msra.gmra.mrb[192].mxu1 %v14872_v21  ;;  %v20216_v10 = vld [vmem:[#allocation30 + $0x214] ss:$8 sps:$4 sm:$0xff]   ;;  %v20217_v2 = vld [vmem:[#allocation30 + $0x220] ss:$8 sps:$4 sm:$0xff]  }
0x1df2   :  { %15306 = vmatpush1.bf16.msra.mxu1 %v20161_v1  ;;  %v20223_v1 = vld [vmem:[#allocation30 + $0x234] ss:$8 sps:$4 sm:$0xff]   ;;  %v20221_v21 = vld [vmem:[#allocation30 + $0x230] ss:$8 sps:$4 sm:$0xff]   ;;  %v20233_v0 = vld [vmem:[#allocation30 + $0x264] ss:$8 sps:$4 sm:$0xff]  }
0x1df3   :  { %15307 = vmatprep.subr.bf16.mxu1 %v20166_v45  ;;  %v22657_v38 = vld [vmem:[#allocation12] sm:$0xee] }
0x1df4   :  { %v17405_v45 = vcombine.high %v22657_v38, %v22624_v23 }
0x1df6   :  { %15308 = vmatpush1.bf16.msra.mxu1 %v20164_v3  ;;  %v15409_v3 = vrot.slane %v22634_v60, 1 }
0x1df7   :  { %15309 = vmatprep.subr.bf16.mxu1 %v20170_v59  ;;  %v20225_v59 = vld [vmem:[#allocation30 + $0x240] ss:$8 sps:$4 sm:$0xff]  }
0x1df8   :  { %v14806_v36 = vld [vmem:[#allocation12 + $0x20] sm:$0x33] }
0x1df9   :  { %v22642_v33 = vcombine.high %v14806_v36, %v14806_v36  ;;  %v22644_v62 = vcombine.low %v14806_v36, %v14806_v36  ;;  %v14773_v35 = vld [vmem:[#allocation12 + $0x20] sm:$0x11] }
0x1dfa   :  { %15310 = vmatpush1.bf16.msra.mxu1 %v20168_v48  ;;  %v17371_v44 = vcombine.high %v14773_v35, %v14773_v35  ;;  %v17370_v36 = vcombine.low %v14773_v35, %v14773_v35  ;;  %v15408_v48 = vrot.slane %v17405_v45, 1 }
0x1dfb   :  { %v14897_v41 = vshll.u32 %v22642_v33, 16  ;;  %v14889_v5 = vshll.u32 %v22644_v62, 16  ;;  %v14904_v52 = vshrl.u32 %v22642_v33, 16  ;;  %15311 = vmatprep.subr.bf16.mxu1 %v20174_v39  ;;  %v14901_v55 = vshrl.u32 %v22644_v62, 16  ;;  %v20230_v39 = vld [vmem:[#allocation30 + $0x254] ss:$8 sps:$4 sm:$0xff]  }
0x1dfc   :  { %v15410_v34 = vsel %vm857_vm2, %v15408_v48, %v15409_v3 }
0x1dfd   :  { %v14899_v47 = vrot.slane %v14897_v41, 1  ;;  %v14891_v42 = vrot.slane %v14889_v5, 1  ;;  %v20228_v41 = vld [vmem:[#allocation30 + $0x250] ss:$8 sps:$4 sm:$0xff]   ;;  %v20231_v5 = vld [vmem:[#allocation30 + $0x260] ss:$8 sps:$4 sm:$0xff]  }
0x1dfe   :  { %15312 = vmatpush1.bf16.msra.mxu1 %v20172_v54  ;;  %v20239_v54 = vld [vmem:[#allocation30 + $0x284] ss:$8 sps:$4 sm:$0xff]  }
0x1dff   :  { %v14900_v29 = vsel %vm642_vm0, %v14895_v30, %v14899_v47  ;;  %v14892_v22 = vsel %vm642_vm0, %v14887_v46, %v14891_v42  ;;  %v14906_v18 = vor.u32 %v14904_v52, %v14899_v47  ;;  %15313 = vmatprep.subr.bf16.mxu1 %v20177_v27  ;;  %v14903_v51 = vor.u32 %v14901_v55, %v14891_v42  ;;  %v20236_v52 = vld [vmem:[#allocation30 + $0x274] ss:$8 sps:$4 sm:$0xff]   ;;  %v20237_v30 = vld [vmem:[#allocation30 + $0x280] ss:$8 sps:$4 sm:$0xff]   ;;  %v20240_v46 = vld [vmem:[#allocation30 + $0x290] ss:$8 sps:$4 sm:$0xff]  }
0x1e00   :  { %15115 = vmatprep.mubr.bf16.mxu1 %v14900_v29  ;;  %v20242_v47 = vld [vmem:[#allocation30 + $0x294] ss:$8 sps:$4 sm:$0xff]   ;;  %v20245_v42 = vld [vmem:[#allocation30 + $0x2a4] ss:$8 sps:$4 sm:$0xff]   ;;  %v20243_v27 = vld [vmem:[#allocation30 + $0x2a0] ss:$8 sps:$4 sm:$0xff]  }
0x1e01   :  { %15116 = vmatmul.mubr.bf16.gmra.mrb[196].mxu1 %v14892_v22  ;;  %v20248_v29 = vld [vmem:[#allocation30 + $0x2b4] ss:$8 sps:$4 sm:$0xff]   ;;  %v20246_v22 = vld [vmem:[#allocation30 + $0x2b0] ss:$8 sps:$4 sm:$0xff]  }
0x1e02   :  { %15125 = vmatprep.mubr.bf16.mxu1 %v14906_v18  ;;  %15314 = vmatpush1.bf16.msra.mxu1 %v20175_v31  ;;  %v20251_v18 = vld [vmem:[#allocation30 + $0x2c4] ss:$8 sps:$4 sm:$0xff]   ;;  %v20249_v31 = vld [vmem:[#allocation30 + $0x2c0] ss:$8 sps:$4 sm:$0xff]   ;;  %v20254_v55 = vld [vmem:[#allocation30 + $0x2d4] ss:$8 sps:$4 sm:$0xff]  }
0x1e03   :  { %15315 = vmatprep.subr.bf16.mxu1 %v20180_v63  ;;  %v20252_v63 = vld [vmem:[#allocation30 + $0x2d0] ss:$8 sps:$4 sm:$0xff]  }
0x1e06   :  { %15316 = vmatpush1.bf16.msra.mxu1 %v20178_v24  ;;  %v20257_v24 = vld [vmem:[#allocation30 + $0x2e4] ss:$8 sps:$4 sm:$0xff]  }
0x1e07   :  { %15317 = vmatprep.subr.bf16.mxu1 %v20183_v17  ;;  %v20260_v17 = vld [vmem:[#allocation30 + $0x2f4] ss:$8 sps:$4 sm:$0xff]  }
0x1e09   :  { %15126 = vmatmul.mubr.bf16.gmra.mrb[200].mxu1 %v14903_v51  ;;  %v20255_v51 = vld [vmem:[#allocation30 + $0x2e0] ss:$8 sps:$4 sm:$0xff]  }
0x1e0a   :  { %15337 = vmatprep.mubr.bf16.mxu1 %v22628_v16  ;;  %15318 = vmatpush1.bf16.msra.mxu1 %v20181_v40  ;;  %v20201_v16 = vld [vmem:[#allocation30 + $0xc4] ss:$8 sps:$4 sm:$0xff]   ;;  %v17404_v40 = vcombine.low %v22657_v38, %v22624_v23 }
0x1e0b   :  { %15319 = vmatprep.subr.bf16.mxu1 %v20186_v43  ;;  %v20258_v43 = vld [vmem:[#allocation30 + $0x2f0] ss:$8 sps:$4 sm:$0xff]  }
0x1e0e   :  { %15320 = vmatpush1.bf16.msra.mxu1 %v20184_v14  ;;  %v15406_v14 = vrot.slane %v22632_v49, 1 }
0x1e0f   :  { %15321 = vmatprep.subr.bf16.mxu1 %v20189_v15  ;;  %v15413_v15 = vrot.slane %v22642_v33, 1 }
0x1e12   :  { %15322 = vmatpush1.bf16.msra.mxu1 %v20187_v4  ;;  %v15405_v4 = vrot.slane %v17404_v40, 1 }
0x1e13   :  { %15323 = vmatprep.subr.bf16.mxu1 %v20192_v37 }
0x1e14   :  { %v15407_v37 = vsel %vm857_vm2, %v15405_v4, %v15406_v14 }
0x1e16   :  { %15324 = vmatpush1.bf16.msra.mxu1 %v20190_v7  ;;  %v15414_v7 = vsel %vm857_vm2, %v15409_v3, %v15413_v15 }
0x1e17   :  { %15325 = vmatprep.subr.bf16.mxu1 %v20195_v8  ;;  %v15411_v8 = vrot.slane %v22644_v62, 1 }
0x1e1a   :  { %15326 = vmatpush1.bf16.msra.mxu1 %v20193_v57  ;;  %v15412_v57 = vsel %vm857_vm2, %v15406_v14, %v15411_v8 }
0x1e1b   :  { %15327 = vmatprep.subr.bf16.mxu1 %v20198_v6 }
0x1e1e   :  { %15328 = vmatpush1.bf16.msra.mxu1 %v20196_v9 }
0x1e1f   :  { %15329 = vmatprep.subr.bf16.mxu1 %v20201_v16 }
0x1e22   :  { %15330 = vmatpush1.bf16.msra.mxu1 %v20199_v28 }
0x1e23   :  { %15331 = vmatprep.subr.bf16.mxu1 %v20204_v25 }
0x1e26   :  { %15332 = vmatpush1.bf16.msra.mxu1 %v20202_v61 }
0x1e27   :  { %15333 = vmatprep.subr.bf16.mxu1 %v20207_v58 }
0x1e2a   :  { %15334 = vmatpush1.bf16.msra.mxu1 %v20205_v11  ;;  %v15652_v11 = vld [vmem:[#allocation44] sm:$0x3] }
0x1e2b   :  { %15335 = vmatprep.subr.bf16.mxu1 %v20210_v20  ;;  %v15657_v20 = vrot.slane %v15652_v11, %v21635_v50  ;;  %v15661_v62 = vrot.slane %v15652_v11, %v21638_v53 }
0x1e2e   :  { %15336 = vmatpush1.bf16.msra.mxu1 %v20208_v56 }
0x1e2f   :  { %15581 = vmatprep.subr.bf16.mxu1 %v20213_v19 }
0x1e31   :  { %15338 = vmatmul.mubr.bf16.vlgmr.msra.gmra.mrb[192].mxu1 %v22626_v26  ;;  %v20227_v26 = vld [vmem:[#allocation30 + $0x244] ss:$8 sps:$4 sm:$0xff]  }
0x1e32   :  { %15347 = vmatprep.mubr.bf16.mxu1 %v22634_v60  ;;  %15582 = vmatpush1.bf16.msra.mxu1 %v20211_v32  ;;  %v20234_v60 = vld [vmem:[#allocation30 + $0x270] ss:$8 sps:$4 sm:$0xff]  }
0x1e33   :  { %15583 = vmatprep.subr.bf16.mxu1 %v20216_v10 }
0x1e36   :  { %15584 = vmatpush1.bf16.msra.mxu1 %v20214_v12 }
0x1e37   :  { %15585 = vmatprep.subr.bf16.mxu1 %v20219_v13 }
0x1e39   :  { %15348 = vmatmul.mubr.bf16.gmra.mrb[196].mxu1 %v22632_v49 }
0x1e3a   :  { %15357 = vmatprep.mubr.bf16.mxu1 %v17371_v44  ;;  %15586 = vmatpush1.bf16.msra.mxu1 %v20217_v2 }
0x1e3b   :  { %15587 = vmatprep.subr.bf16.mxu1 %v20223_v1 }
0x1e3e   :  { %15588 = vmatpush1.bf16.msra.mxu1 %v20221_v21 }
0x1e3f   :  { %15589 = vmatprep.subr.bf16.mxu1 %v20227_v26 }
0x1e41   :  { %15358 = vmatmul.mubr.bf16.gmra.mrb[204].mxu1 %v17370_v36 }
0x1e42   :  { %15590 = vmatpush1.bf16.msra.mxu1 %v20225_v59  ;;  %15613 = vmatprep.mubr.bf16.mxu1 %v15410_v34 }
0x1e43   :  { %15591 = vmatprep.subr.bf16.mxu1 %v20230_v39 }
0x1e46   :  { %15592 = vmatpush1.bf16.msra.mxu1 %v20228_v41 }
0x1e47   :  { %15593 = vmatprep.subr.bf16.mxu1 %v20233_v0 }
0x1e4a   :  { %15594 = vmatpush1.bf16.msra.mxu1 %v20231_v5 }
0x1e4b   :  { %15595 = vmatprep.subr.bf16.mxu1 %v20236_v52 }
0x1e4e   :  { %15596 = vmatpush1.bf16.msra.mxu1 %v20234_v60 }
0x1e4f   :  { %15597 = vmatprep.subr.bf16.mxu1 %v20239_v54 }
0x1e52   :  { %15598 = vmatpush1.bf16.msra.mxu1 %v20237_v30 }
0x1e53   :  { %15599 = vmatprep.subr.bf16.mxu1 %v20242_v47 }
0x1e56   :  { %15600 = vmatpush1.bf16.msra.mxu1 %v20240_v46 }
0x1e57   :  { %15601 = vmatprep.subr.bf16.mxu1 %v20245_v42 }
0x1e5a   :  { %15602 = vmatpush1.bf16.msra.mxu1 %v20243_v27 }
0x1e5b   :  { %15603 = vmatprep.subr.bf16.mxu1 %v20248_v29 }
0x1e5e   :  { %15604 = vmatpush1.bf16.msra.mxu1 %v20246_v22 }
0x1e5f   :  { %15605 = vmatprep.subr.bf16.mxu1 %v20251_v18 }
0x1e62   :  { %15606 = vmatpush1.bf16.msra.mxu1 %v20249_v31 }
0x1e63   :  { %15607 = vmatprep.subr.bf16.mxu1 %v20254_v55 }
0x1e66   :  { %15608 = vmatpush1.bf16.msra.mxu1 %v20252_v63 }
0x1e67   :  { %15609 = vmatprep.subr.bf16.mxu1 %v20257_v24 }
0x1e6a   :  { %15610 = vmatpush1.bf16.msra.mxu1 %v20255_v51 }
0x1e6b   :  { %15611 = vmatprep.subr.bf16.mxu1 %v20260_v17 }
0x1e6e   :  { %15612 = vmatpush1.bf16.msra.mxu1 %v20258_v43 }
0x1e71   :  { %15614 = vmatmul.mubr.bf16.vlgmr.msra.gmra.mrb[192].mxu1 %v15407_v37 }
0x1e72   :  { %15623 = vmatprep.mubr.bf16.mxu1 %v15414_v7 }
0x1e79   :  { %15624 = vmatmul.mubr.bf16.gmra.mrb[196].mxu1 %v15412_v57 }
0x1e7a   :  { %15633 = vmatprep.mubr.bf16.mxu1 %v15413_v15 }
0x1e81   :  { %15634 = vmatmul.mubr.bf16.gmra.mrb[208].mxu1 %v15411_v8 }
0x1edc   :  { %v15127_v23 = vpop.f32.mrb[200].mxu1 }
0x1edd   :  { %v15129_v6 = vpop.f32.mrb[201].mxu1 }
0x1ede   :  { %v15131_v49 = vpop.f32.mrb[202].mxu1 }
0x1edf   :  { %v15132_v9 = vpop.f32.mrb[203].mxu1 }
0x1f14   :  { %v15359_v33 = vpop.f32.mrb[204].mxu1 }
0x1f15   :  { %v15360_v16 = vadd.f32 %v15359_v33, %v15127_v23  ;;  %v15361_v28 = vpop.f32.mrb[205].mxu1 }
0x1f16   :  { %v15362_v25 = vadd.f32 %v15361_v28, %v15129_v6  ;;  %v15363_v61 = vpop.f32.mrb[206].mxu1 }
0x1f17   :  { %v15364_v58 = vpop.f32.mrb[207].mxu1 }
0x1f44   :  { %v15615_v56 = vpop.f32.mrb[192].mxu1 }
0x1f45   :  { %v15664_v19 = vadd.f32 %v15657_v20, %v15615_v56  ;;  %v15617_v32 = vpop.f32.mrb[193].mxu1 }
0x1f46   :  { %v15665_v10 = vadd.f32 %v15661_v62, %v15617_v32  ;;  %v15619_v12 = vpop.f32.mrb[194].mxu1 }
0x1f47   :  { %vm15674_vm0 = vcmp.gt.f32.partialorder %v15664_v19, 0.0  ;;  %v15684_v13 = vmul.f32 0.2, %v15664_v19  ;;  %v15666_v35 = vadd.f32 %v15657_v20, %v15619_v12  ;;  %v15621_v2 = vpop.f32.mrb[195].mxu1 }
0x1f48   :  { %vm15675_vm2 = vcmp.gt.f32.partialorder %v15665_v10, 0.0  ;;  %v15685_v1 = vmul.f32 0.2, %v15665_v10  ;;  %v15667_v44 = vadd.f32 %v15661_v62, %v15621_v2 }
0x1f49   :  { %v15694_v38 = vsel %vm15674_vm0, %v15664_v19, %v15684_v13  ;;  %vm15676_vm13 = vcmp.gt.f32.partialorder %v15666_v35, 0.0  ;;  %v15686_v50 = vmul.f32 0.2, %v15666_v35 }
0x1f4a   :  { %15704 = vst [vmem:[%s21390_s4] sm:$0xff] %v15694_v38  ;;  %v15695_v53 = vsel %vm15675_vm2, %v15665_v10, %v15685_v1  ;;  %vm15677_vm14 = vcmp.gt.f32.partialorder %v15667_v44, 0.0  ;;  %v15687_v21 = vmul.f32 0.2, %v15667_v44 }
0x1f4b   :  { %15705 = vst [vmem:[%s21390_s4 + $0x8] sm:$0xff] %v15695_v53  ;;  %v15696_v26 = vsel %vm15676_vm13, %v15666_v35, %v15686_v50 }
0x1f4c   :  { %15706 = vst [vmem:[%s21390_s4 + $0x10] sm:$0xff] %v15696_v26  ;;  %v15697_v45 = vsel %vm15677_vm14, %v15667_v44, %v15687_v21  ;;  %v15625_v3 = vpop.f32.mrb[196].mxu1 }
0x1f4d   :  { %15707 = vst [vmem:[%s21390_s4 + $0x18] sm:$0xff] %v15697_v45  ;;  %v15668_v59 = vadd.f32 %v15657_v20, %v15625_v3  ;;  %v15627_v36 = vpop.f32.mrb[197].mxu1 }
0x1f4e   :  { %v15669_v48 = vadd.f32 %v15661_v62, %v15627_v36  ;;  %v15629_v39 = vpop.f32.mrb[198].mxu1 }
0x1f4f   :  { %vm15678_vm11 = vcmp.gt.f32.partialorder %v15668_v59, 0.0  ;;  %v15688_v34 = vmul.f32 0.2, %v15668_v59  ;;  %v15670_v41 = vadd.f32 %v15657_v20, %v15629_v39  ;;  %v15631_v0 = vpop.f32.mrb[199].mxu1 }
0x1f50   :  { %vm15679_vm12 = vcmp.gt.f32.partialorder %v15669_v48, 0.0  ;;  %v15689_v5 = vmul.f32 0.2, %v15669_v48  ;;  %v15671_v52 = vadd.f32 %v15661_v62, %v15631_v0 }
0x1f51   :  { %v15698_v60 = vsel %vm15678_vm11, %v15668_v59, %v15688_v34  ;;  %vm15680_vm15 = vcmp.gt.f32.partialorder %v15670_v41, 0.0  ;;  %v15690_v54 = vmul.f32 0.2, %v15670_v41 }
0x1f52   :  { %15708 = vst [vmem:[%s21390_s4 + $0x20] sm:$0xff] %v15698_v60  ;;  %v15699_v30 = vsel %vm15679_vm12, %v15669_v48, %v15689_v5  ;;  %vm15681_vm4 = vcmp.gt.f32.partialorder %v15671_v52, 0.0  ;;  %v15691_v47 = vmul.f32 0.2, %v15671_v52 }
0x1f53   :  { %15709 = vst [vmem:[%s21390_s4 + $0x28] sm:$0xff] %v15699_v30  ;;  %v15700_v46 = vsel %vm15680_vm15, %v15670_v41, %v15690_v54 }
0x1f54   :  { %15710 = vst [vmem:[%s21390_s4 + $0x30] sm:$0xff] %v15700_v46  ;;  %v15701_v42 = vsel %vm15681_vm4, %v15671_v52, %v15691_v47  ;;  %v15635_v27 = vpop.f32.mrb[208].mxu1 }
0x1f55   :  { %15711 = vst [vmem:[%s21390_s4 + $0x38] sm:$0xff] %v15701_v42  ;;  %v15650_v29 = vadd.f32 %v15635_v27, %v15360_v16  ;;  %v15637_v22 = vpop.f32.mrb[209].mxu1 }
0x1f56   :  { %v15651_v18 = vadd.f32 %v15637_v22, %v15362_v25  ;;  %v15639_v31 = vpop.f32.mrb[210].mxu1 }
0x1f57   :  { %v15672_v55 = vadd.f32 %v15657_v20, %v15650_v29  ;;  %v15640_v63 = vpop.f32.mrb[211].mxu1 }
0x1f58   :  { %v15673_v24 = vadd.f32 %v15661_v62, %v15651_v18 }
0x1f59   :  { %vm15682_vm5 = vcmp.gt.f32.partialorder %v15672_v55, 0.0  ;;  %v15692_v51 = vmul.f32 0.2, %v15672_v55 }
0x1f5a   :  { %vm15683_vm1 = vcmp.gt.f32.partialorder %v15673_v24, 0.0  ;;  %v15693_v17 = vmul.f32 0.2, %v15673_v24 }
0x1f5b   :  { %v15702_v40 = vsel %vm15682_vm5, %v15672_v55, %v15692_v51 }
0x1f5c   :  { %15712 = vst [vmem:[%s21390_s4 + $0x40] sm:$0x3] %v15702_v40  ;;  %v15703_v43 = vsel %vm15683_vm1, %v15673_v24, %v15693_v17 }
0x1f5d   :  { %15713 = vst [vmem:[%s21390_s4 + $0x48] sm:$0x3] %v15703_v43 }
0x1f5e   :  { %15718 = vsyncpa [#allocation14], 1 }
0x1f5f   :  { %15719 = vsyncpa [#allocation16], 1 }
0x1f60   :  { %15720 = vsyncpa [#allocation19], 1 }
0x1f61   :  { %15721 = vsyncpa [#allocation22], 1 }
0x1f62   :  { %15722 = vsyncpa [#allocation25], 1 }
0x1f63   :  { %15723 = vsyncpa [#allocation28], 1 }
0x1f64   :  { %15724 = vsyncpa [#allocation31], 1 }
0x1f65   :  { %15725 = vsyncpa [#allocation34], 1 }
0x1f66   :  { %15726 = vsyncpa [#allocation37], 1 }
0x1f67   :  { %15727 = vsyncpa [#allocation40], 1 }
0x1f68   :  { %15728 = vsyncpa [#allocation43], 1 }
0x1f69   :  { %15729 = vsyncpa [#allocation46], 1 }
0x1f6a   :  { %15730 = vsyncpa [#allocation49], 1 }
0x1f6b   :  { %15731 = vsyncpa [#allocation52], 1 }
0x1f6c   :  { %15732 = vsyncpa [#allocation55], 1 }
0x1f6d   :  { %15733 = vsyncpa [#allocation58], 1 }
0x1f6e   :  { %15734 = vsyncpa [#allocation61], 1 }
0x1f6f   :  { %15735 = vsyncpa [#allocation64], 1 }
0x1f70   :  { %15736 = vsyncpa [#allocation67], 1 }

</bundles_post_ra>
